<compile_context>
chip_gen: v5e
topology: v5e:2x2
jax: 0.10.0
libtpu: 0.0.40
codegen_flags: <defaults>
</compile_context>

<pallas_src>
import jax
import jax.numpy as jnp
from jax import lax
from jax.experimental import pallas as pl
from jax.experimental.pallas import tpu as pltpu

_EPS = 1e-5                 # nn.InstanceNorm2d default (affine=False)
_MXU_DTYPE = jnp.float32    # set to jnp.bfloat16 on v6e/v7x for ~2x MXU throughput
                            # (re-check tolerance if you do)


def _make_kernel(H, W, C, Wq):
    """Build the fused conv+IN+ReLU -> conv+IN -> +x kernel for fixed shapes.

    Flat layout used everywhere in-kernel: (rows, C) with
      rows = [1 halo row][padded row 0][padded rows 1..H][padded row H+1][1 halo row]
    each "row" being Wq flat positions (Wq = W+2 rounded up to a multiple of 8).
    The conv output covers padded rows 1..H over all Wq columns; only columns
    1..W are valid pixels (the rest is masked garbage, dropped in glue).
    """
    SOUT = H * Wq            # conv output rows (padded rows 1..H, full width)
    BASE = 2 * Wq            # flat offset of output position q's center tap

    def conv3x3_instnorm(src_ref, w_ref, b_ref, interior):
        """3x3 conv (9 MXU matmuls) + bias + masked instance norm. -> (SOUT, C) f32."""
        acc = jnp.zeros((SOUT, C), jnp.float32)
        for t in range(9):
            dh, dw = divmod(t, 3)
            off = BASE + (dh - 1) * Wq + (dw - 1)
            patch = src_ref[pl.ds(off, SOUT), :]                     # (SOUT, Cin)
            acc = acc + lax.dot_general(
                patch.astype(_MXU_DTYPE), w_ref[t].astype(_MXU_DTYPE),
                (((1,), (0,)), ((), ())),
                preferred_element_type=jnp.float32)
        acc = acc + b_ref[...].astype(jnp.float32)                   # bias (1, C)

        # One-pass instance-norm statistics over the H*W valid pixels only.
        inv_n = 1.0 / float(H * W)
        acc_m = jnp.where(interior, acc, 0.0)
        mean = jnp.sum(acc_m, axis=0, keepdims=True) * inv_n         # (1, C)
        ex2 = jnp.sum(acc_m * acc_m, axis=0, keepdims=True) * inv_n
        var = ex2 - mean * mean
        return (acc - mean) * lax.rsqrt(var + _EPS)

    def kernel(xbig_ref, w1_ref, b1_ref, w2_ref, b2_ref, col_ref, o_ref, y1_ref):
        col = col_ref[...]                                           # (SOUT, 1) int32
        interior = jnp.logical_and(col >= 1, col <= W)               # valid columns

        # ---- stage 1: conv1 + InstanceNorm + ReLU ----
        y1 = jnp.maximum(conv3x3_instnorm(xbig_ref, w1_ref, b1_ref, interior), 0.0)

        # ---- in-VMEM reflect pad (pad=1) of y1 into the scratch ----
        zeros2 = jnp.zeros((2 * Wq, C), jnp.float32)
        y1_ref[pl.ds(0, 2 * Wq), :] = zeros2                         # halo + pad row 0
        y1_ref[pl.ds((H + 2) * Wq, 2 * Wq), :] = zeros2              # pad row H+1 + halo
        y1_ref[pl.ds(BASE, SOUT), :] = y1                            # padded rows 1..H
        # reflect pad columns: col 0 <- col 2, col W+1 <- col W-1
        left = y1_ref[pl.ds(BASE + 2, SOUT), :]
        right = y1_ref[pl.ds(BASE - 2, SOUT), :]
        y1fix = jnp.where(col == 0, left, jnp.where(col == W + 1, right, y1))
        y1_ref[pl.ds(BASE, SOUT), :] = y1fix
        # reflect pad rows: padded row 0 <- row 2, padded row H+1 <- row H-1
        y1_ref[pl.ds(Wq, Wq), :] = y1_ref[pl.ds(3 * Wq, Wq), :]
        y1_ref[pl.ds((H + 2) * Wq, Wq), :] = y1_ref[pl.ds(H * Wq, Wq), :]

        # ---- stage 2: conv2 + InstanceNorm + residual add ----
        y2 = conv3x3_instnorm(y1_ref, w2_ref, b2_ref, interior)
        res = xbig_ref[pl.ds(BASE, SOUT), :].astype(jnp.float32)     # original x slab
        o_ref[...] = (res + y2).astype(o_ref.dtype)

    return kernel


@jax.jit
def residual_block(x, w1, b1, w2, b2):
    """x: (B, C, H, W) f32 -> (B, C, H, W) f32, identical to ResidualBlock.forward."""
    B, C, H, W = x.shape
    Wq = ((W + 2 + 7) // 8) * 8          # padded width, rounded up -> aligned rows
    SOUT = H * Wq
    SX = (H + 4) * Wq                    # padded grid rows + 1 halo row each side

    # --- glue: NCHW -> channels-last, reflect pad, flatten rows, halo rows ---
    xt = jnp.transpose(x, (0, 2, 3, 1))                                   # (B,H,W,C)
    xp = jnp.pad(xt, ((0, 0), (1, 1), (1, 1), (0, 0)), mode="reflect")    # (B,H+2,W+2,C)
    xp = jnp.pad(xp, ((0, 0), (0, 0), (0, Wq - (W + 2)), (0, 0)))         # width -> Wq
    xf = xp.reshape(B, (H + 2) * Wq, C)
    xbig = jnp.pad(xf, ((0, 0), (Wq, Wq), (0, 0)))                        # zero halo rows

    # --- glue: weight repack OIHW -> (9, Cin, Cout); bias -> lane-dense (1, C) ---
    w1_9 = jnp.transpose(w1, (2, 3, 1, 0)).reshape(9, C, C)
    w2_9 = jnp.transpose(w2, (2, 3, 1, 0)).reshape(9, C, C)
    b1r = b1.reshape(1, C).astype(jnp.float32)
    b2r = b2.reshape(1, C).astype(jnp.float32)
    # column index of every flat output position (used for masks / reflect fix)
    col = (jnp.arange(SOUT, dtype=jnp.int32) % Wq).reshape(SOUT, 1)

    kernel = _make_kernel(H, W, C, Wq)

    flops = 2 * 2 * 9 * B * C * C * H * W
    bytes_accessed = 4 * (B * SX * C + B * SOUT * C + 2 * 9 * C * C + 2 * C + SOUT)

    out_flat = pl.pallas_call(
        kernel,
        grid=(B,),
        in_specs=[
            pl.BlockSpec((None, SX, C), lambda b: (b, 0, 0)),     # xbig (batch squeezed)
            pl.BlockSpec((9, C, C), lambda b: (0, 0, 0)),         # w1
            pl.BlockSpec((1, C), lambda b: (0, 0)),               # b1
            pl.BlockSpec((9, C, C), lambda b: (0, 0, 0)),         # w2
            pl.BlockSpec((1, C), lambda b: (0, 0)),               # b2
            pl.BlockSpec((SOUT, 1), lambda b: (0, 0)),            # column index
        ],
        out_specs=pl.BlockSpec((None, SOUT, C), lambda b: (b, 0, 0)),
        out_shape=jax.ShapeDtypeStruct((B, SOUT, C), x.dtype),
        scratch_shapes=[pltpu.VMEM((SX, C), jnp.float32)],        # reflect-padded y1
        compiler_params=pltpu.CompilerParams(dimension_semantics=("parallel",)),
        cost_estimate=pl.CostEstimate(flops=flops, transcendentals=2 * B * C,
                                      bytes_accessed=bytes_accessed),
    )(xbig, w1_9, b1r, w2_9, b2r, col)

    # --- glue: drop the pad columns, back to NCHW ---
    out = out_flat.reshape(B, H, Wq, C)[:, :, 1:W + 1, :]
    return jnp.transpose(out, (0, 3, 1, 2))


def _reference(x, w1, b1, w2, b2):
    """Pure-JAX/XLA reference for the same math (sanity check only)."""
    def conv_in(inp, w, b, relu):
        xp = jnp.pad(inp, ((0, 0), (0, 0), (1, 1), (1, 1)), mode="reflect")
        y = lax.conv_general_dilated(xp, w, (1, 1), "VALID",
                                     dimension_numbers=("NCHW", "OIHW", "NCHW"))
        y = y + b[None, :, None, None]
        mean = jnp.mean(y, axis=(2, 3), keepdims=True)
        var = jnp.mean((y - mean) ** 2, axis=(2, 3), keepdims=True)
        y = (y - mean) / jnp.sqrt(var + _EPS)
        return jnp.maximum(y, 0.0) if relu else y

    y = conv_in(x, w1, b1, True)
    y = conv_in(y, w2, b2, False)
    return x + y


if __name__ == "__main__":
    B, C, H, W = 2, 4, 16, 16
    key = jax.random.PRNGKey(0)
    kx, k1, k2, k3, k4 = jax.random.split(key, 5)

    x = jax.random.normal(kx, (B, C, H, W), dtype=jnp.float32)
    # Deterministic synthetic parameters (shapes from nn.Conv2d(C, C, 3, padding=1)).
    w1 = 0.1 * jax.random.normal(k1, (C, C, 3, 3), dtype=jnp.float32)
    b1 = 0.1 * jax.random.normal(k2, (C,), dtype=jnp.float32)
    w2 = 0.1 * jax.random.normal(k3, (C, C, 3, 3), dtype=jnp.float32)
    b2 = 0.1 * jax.random.normal(k4, (C,), dtype=jnp.float32)

    out = jax.block_until_ready(residual_block(x, w1, b1, w2, b2))
    ref = jax.block_until_ready(_reference(x, w1, b1, w2, b2))

    assert out.shape == (B, C, H, W) and out.dtype == jnp.float32
    max_err = float(jnp.max(jnp.abs(out - ref)))
    assert jnp.allclose(out, ref, atol=1e-3, rtol=1e-3), max_err

    print("KERNEL_OK")
</pallas_src>

<mosaic_0001>
module attributes {stable_mosaic.version = 11 : i64} {
  func.func @kernel(%arg0: i32, %arg1: memref<1x480x4xf32, #tpu.memory_space<vmem>>, %arg2: memref<9x4x4xf32, #tpu.memory_space<vmem>>, %arg3: memref<1x4xf32, #tpu.memory_space<vmem>>, %arg4: memref<9x4x4xf32, #tpu.memory_space<vmem>>, %arg5: memref<1x4xf32, #tpu.memory_space<vmem>>, %arg6: memref<384x1xi32, #tpu.memory_space<vmem>>, %arg7: memref<1x384x4xf32, #tpu.memory_space<vmem>>, %arg8: memref<480x4xf32, #tpu.memory_space<vmem>>) attributes {dimension_semantics = [#tpu.dimension_semantics<parallel>], iteration_bounds = array<i64: 2>, scalar_prefetch = 0 : i64, scratch_operands = 1 : i64, tpu.core_type = #tpu.core_type<tc>, window_params = [{transform_indices = @transform_0, window_bounds = array<i64: 1, 480, 4>}, {pipeline_mode = #tpu.pipeline_mode<synchronous>, transform_indices = @transform_1, window_bounds = array<i64: 9, 4, 4>}, {pipeline_mode = #tpu.pipeline_mode<synchronous>, transform_indices = @transform_2, window_bounds = array<i64: 1, 4>}, {pipeline_mode = #tpu.pipeline_mode<synchronous>, transform_indices = @transform_3, window_bounds = array<i64: 9, 4, 4>}, {pipeline_mode = #tpu.pipeline_mode<synchronous>, transform_indices = @transform_4, window_bounds = array<i64: 1, 4>}, {pipeline_mode = #tpu.pipeline_mode<synchronous>, transform_indices = @transform_5, window_bounds = array<i64: 384, 1>}, {transform_indices = @transform_6, window_bounds = array<i64: 1, 384, 4>}]} {
    %c0 = arith.constant 0 : index
    %c0_0 = arith.constant 0 : index
    %0 = vector.load %arg6[%c0, %c0_0] : memref<384x1xi32, #tpu.memory_space<vmem>>, vector<384x1xi32>
    %c1_i32 = arith.constant 1 : i32
    %1 = vector.broadcast %c1_i32 : i32 to vector<384x1xi32>
    %2 = arith.cmpi sge, %0, %1 : vector<384x1xi32>
    %c16_i32 = arith.constant 16 : i32
    %3 = vector.broadcast %c16_i32 : i32 to vector<384x1xi32>
    %4 = arith.cmpi sle, %0, %3 : vector<384x1xi32>
    %5 = arith.andi %2, %4 : vector<384x1xi1>
    %cst = arith.constant 0.000000e+00 : f32
    %6 = vector.broadcast %cst : f32 to vector<384x4xf32>
    %c0_1 = arith.constant 0 : index
    %c23 = arith.constant 23 : index
    %c0_2 = arith.constant 0 : index
    %7 = vector.load %arg1[%c0_1, %c23, %c0_2] : memref<1x480x4xf32, #tpu.memory_space<vmem>>, vector<1x384x4xf32>
    %8 = vector.shape_cast %7 : vector<1x384x4xf32> to vector<384x4xf32>
    %c0_3 = arith.constant 0 : index
    %c0_4 = arith.constant 0 : index
    %c0_5 = arith.constant 0 : index
    %9 = vector.load %arg2[%c0_3, %c0_4, %c0_5] : memref<9x4x4xf32, #tpu.memory_space<vmem>>, vector<1x4x4xf32>
    %10 = vector.shape_cast %9 : vector<1x4x4xf32> to vector<4x4xf32>
    %cst_6 = arith.constant dense<0.000000e+00> : vector<384x4xf32>
    %11 = tpu.matmul %8, %10, %cst_6 {dimension_numbers = #tpu.dot_dimension_numbers<[1], [0], [0], [1], [0, 0, 1, 1], [], []>} : vector<384x4xf32>, vector<4x4xf32>, vector<384x4xf32> -> vector<384x4xf32>
    %12 = arith.addf %6, %11 : vector<384x4xf32>
    %c0_7 = arith.constant 0 : index
    %c24 = arith.constant 24 : index
    %c0_8 = arith.constant 0 : index
    %13 = vector.load %arg1[%c0_7, %c24, %c0_8] : memref<1x480x4xf32, #tpu.memory_space<vmem>>, vector<1x384x4xf32>
    %14 = vector.shape_cast %13 : vector<1x384x4xf32> to vector<384x4xf32>
    %c1 = arith.constant 1 : index
    %c0_9 = arith.constant 0 : index
    %c0_10 = arith.constant 0 : index
    %15 = vector.load %arg2[%c1, %c0_9, %c0_10] : memref<9x4x4xf32, #tpu.memory_space<vmem>>, vector<1x4x4xf32>
    %16 = vector.shape_cast %15 : vector<1x4x4xf32> to vector<4x4xf32>
    %cst_11 = arith.constant dense<0.000000e+00> : vector<384x4xf32>
    %17 = tpu.matmul %14, %16, %cst_11 {dimension_numbers = #tpu.dot_dimension_numbers<[1], [0], [0], [1], [0, 0, 1, 1], [], []>} : vector<384x4xf32>, vector<4x4xf32>, vector<384x4xf32> -> vector<384x4xf32>
    %18 = arith.addf %12, %17 : vector<384x4xf32>
    %c0_12 = arith.constant 0 : index
    %c25 = arith.constant 25 : index
    %c0_13 = arith.constant 0 : index
    %19 = vector.load %arg1[%c0_12, %c25, %c0_13] : memref<1x480x4xf32, #tpu.memory_space<vmem>>, vector<1x384x4xf32>
    %20 = vector.shape_cast %19 : vector<1x384x4xf32> to vector<384x4xf32>
    %c2 = arith.constant 2 : index
    %c0_14 = arith.constant 0 : index
    %c0_15 = arith.constant 0 : index
    %21 = vector.load %arg2[%c2, %c0_14, %c0_15] : memref<9x4x4xf32, #tpu.memory_space<vmem>>, vector<1x4x4xf32>
    %22 = vector.shape_cast %21 : vector<1x4x4xf32> to vector<4x4xf32>
    %cst_16 = arith.constant dense<0.000000e+00> : vector<384x4xf32>
    %23 = tpu.matmul %20, %22, %cst_16 {dimension_numbers = #tpu.dot_dimension_numbers<[1], [0], [0], [1], [0, 0, 1, 1], [], []>} : vector<384x4xf32>, vector<4x4xf32>, vector<384x4xf32> -> vector<384x4xf32>
    %24 = arith.addf %18, %23 : vector<384x4xf32>
    %c0_17 = arith.constant 0 : index
    %c47 = arith.constant 47 : index
    %c0_18 = arith.constant 0 : index
    %25 = vector.load %arg1[%c0_17, %c47, %c0_18] : memref<1x480x4xf32, #tpu.memory_space<vmem>>, vector<1x384x4xf32>
    %26 = vector.shape_cast %25 : vector<1x384x4xf32> to vector<384x4xf32>
    %c3 = arith.constant 3 : index
    %c0_19 = arith.constant 0 : index
    %c0_20 = arith.constant 0 : index
    %27 = vector.load %arg2[%c3, %c0_19, %c0_20] : memref<9x4x4xf32, #tpu.memory_space<vmem>>, vector<1x4x4xf32>
    %28 = vector.shape_cast %27 : vector<1x4x4xf32> to vector<4x4xf32>
    %cst_21 = arith.constant dense<0.000000e+00> : vector<384x4xf32>
    %29 = tpu.matmul %26, %28, %cst_21 {dimension_numbers = #tpu.dot_dimension_numbers<[1], [0], [0], [1], [0, 0, 1, 1], [], []>} : vector<384x4xf32>, vector<4x4xf32>, vector<384x4xf32> -> vector<384x4xf32>
    %30 = arith.addf %24, %29 : vector<384x4xf32>
    %c0_22 = arith.constant 0 : index
    %c48 = arith.constant 48 : index
    %c0_23 = arith.constant 0 : index
    %31 = vector.load %arg1[%c0_22, %c48, %c0_23] : memref<1x480x4xf32, #tpu.memory_space<vmem>>, vector<1x384x4xf32>
    %32 = vector.shape_cast %31 : vector<1x384x4xf32> to vector<384x4xf32>
    %c4 = arith.constant 4 : index
    %c0_24 = arith.constant 0 : index
    %c0_25 = arith.constant 0 : index
    %33 = vector.load %arg2[%c4, %c0_24, %c0_25] : memref<9x4x4xf32, #tpu.memory_space<vmem>>, vector<1x4x4xf32>
    %34 = vector.shape_cast %33 : vector<1x4x4xf32> to vector<4x4xf32>
    %cst_26 = arith.constant dense<0.000000e+00> : vector<384x4xf32>
    %35 = tpu.matmul %32, %34, %cst_26 {dimension_numbers = #tpu.dot_dimension_numbers<[1], [0], [0], [1], [0, 0, 1, 1], [], []>} : vector<384x4xf32>, vector<4x4xf32>, vector<384x4xf32> -> vector<384x4xf32>
    %36 = arith.addf %30, %35 : vector<384x4xf32>
    %c0_27 = arith.constant 0 : index
    %c49 = arith.constant 49 : index
    %c0_28 = arith.constant 0 : index
    %37 = vector.load %arg1[%c0_27, %c49, %c0_28] : memref<1x480x4xf32, #tpu.memory_space<vmem>>, vector<1x384x4xf32>
    %38 = vector.shape_cast %37 : vector<1x384x4xf32> to vector<384x4xf32>
    %c5 = arith.constant 5 : index
    %c0_29 = arith.constant 0 : index
    %c0_30 = arith.constant 0 : index
    %39 = vector.load %arg2[%c5, %c0_29, %c0_30] : memref<9x4x4xf32, #tpu.memory_space<vmem>>, vector<1x4x4xf32>
    %40 = vector.shape_cast %39 : vector<1x4x4xf32> to vector<4x4xf32>
    %cst_31 = arith.constant dense<0.000000e+00> : vector<384x4xf32>
    %41 = tpu.matmul %38, %40, %cst_31 {dimension_numbers = #tpu.dot_dimension_numbers<[1], [0], [0], [1], [0, 0, 1, 1], [], []>} : vector<384x4xf32>, vector<4x4xf32>, vector<384x4xf32> -> vector<384x4xf32>
    %42 = arith.addf %36, %41 : vector<384x4xf32>
    %c0_32 = arith.constant 0 : index
    %c71 = arith.constant 71 : index
    %c0_33 = arith.constant 0 : index
    %43 = vector.load %arg1[%c0_32, %c71, %c0_33] : memref<1x480x4xf32, #tpu.memory_space<vmem>>, vector<1x384x4xf32>
    %44 = vector.shape_cast %43 : vector<1x384x4xf32> to vector<384x4xf32>
    %c6 = arith.constant 6 : index
    %c0_34 = arith.constant 0 : index
    %c0_35 = arith.constant 0 : index
    %45 = vector.load %arg2[%c6, %c0_34, %c0_35] : memref<9x4x4xf32, #tpu.memory_space<vmem>>, vector<1x4x4xf32>
    %46 = vector.shape_cast %45 : vector<1x4x4xf32> to vector<4x4xf32>
    %cst_36 = arith.constant dense<0.000000e+00> : vector<384x4xf32>
    %47 = tpu.matmul %44, %46, %cst_36 {dimension_numbers = #tpu.dot_dimension_numbers<[1], [0], [0], [1], [0, 0, 1, 1], [], []>} : vector<384x4xf32>, vector<4x4xf32>, vector<384x4xf32> -> vector<384x4xf32>
    %48 = arith.addf %42, %47 : vector<384x4xf32>
    %c0_37 = arith.constant 0 : index
    %c72 = arith.constant 72 : index
    %c0_38 = arith.constant 0 : index
    %49 = vector.load %arg1[%c0_37, %c72, %c0_38] : memref<1x480x4xf32, #tpu.memory_space<vmem>>, vector<1x384x4xf32>
    %50 = vector.shape_cast %49 : vector<1x384x4xf32> to vector<384x4xf32>
    %c7 = arith.constant 7 : index
    %c0_39 = arith.constant 0 : index
    %c0_40 = arith.constant 0 : index
    %51 = vector.load %arg2[%c7, %c0_39, %c0_40] : memref<9x4x4xf32, #tpu.memory_space<vmem>>, vector<1x4x4xf32>
    %52 = vector.shape_cast %51 : vector<1x4x4xf32> to vector<4x4xf32>
    %cst_41 = arith.constant dense<0.000000e+00> : vector<384x4xf32>
    %53 = tpu.matmul %50, %52, %cst_41 {dimension_numbers = #tpu.dot_dimension_numbers<[1], [0], [0], [1], [0, 0, 1, 1], [], []>} : vector<384x4xf32>, vector<4x4xf32>, vector<384x4xf32> -> vector<384x4xf32>
    %54 = arith.addf %48, %53 : vector<384x4xf32>
    %c0_42 = arith.constant 0 : index
    %c73 = arith.constant 73 : index
    %c0_43 = arith.constant 0 : index
    %55 = vector.load %arg1[%c0_42, %c73, %c0_43] : memref<1x480x4xf32, #tpu.memory_space<vmem>>, vector<1x384x4xf32>
    %56 = vector.shape_cast %55 : vector<1x384x4xf32> to vector<384x4xf32>
    %c8 = arith.constant 8 : index
    %c0_44 = arith.constant 0 : index
    %c0_45 = arith.constant 0 : index
    %57 = vector.load %arg2[%c8, %c0_44, %c0_45] : memref<9x4x4xf32, #tpu.memory_space<vmem>>, vector<1x4x4xf32>
    %58 = vector.shape_cast %57 : vector<1x4x4xf32> to vector<4x4xf32>
    %cst_46 = arith.constant dense<0.000000e+00> : vector<384x4xf32>
    %59 = tpu.matmul %56, %58, %cst_46 {dimension_numbers = #tpu.dot_dimension_numbers<[1], [0], [0], [1], [0, 0, 1, 1], [], []>} : vector<384x4xf32>, vector<4x4xf32>, vector<384x4xf32> -> vector<384x4xf32>
    %60 = arith.addf %54, %59 : vector<384x4xf32>
    %c0_47 = arith.constant 0 : index
    %c0_48 = arith.constant 0 : index
    %61 = vector.load %arg3[%c0_47, %c0_48] : memref<1x4xf32, #tpu.memory_space<vmem>>, vector<1x4xf32>
    %62 = vector.broadcast %61 : vector<1x4xf32> to vector<384x4xf32>
    %63 = arith.addf %60, %62 : vector<384x4xf32>
    %cst_49 = arith.constant 0.000000e+00 : f32
    %64 = vector.shape_cast %5 : vector<384x1xi1> to vector<384x1xi1>
    %65 = vector.broadcast %64 : vector<384x1xi1> to vector<384x4xi1>
    %66 = vector.broadcast %cst_49 : f32 to vector<384x4xf32>
    %67 = arith.select %65, %63, %66 : vector<384x4xi1>, vector<384x4xf32>
    %cst_50 = arith.constant dense<0.000000e+00> : vector<4xf32>
    %68 = vector.multi_reduction <add>, %67, %cst_50 [0] : vector<384x4xf32> to vector<4xf32>
    %69 = vector.shape_cast %68 : vector<4xf32> to vector<1x4xf32>
    %cst_51 = arith.constant 3.906250e-03 : f32
    %70 = vector.broadcast %cst_51 : f32 to vector<1x4xf32>
    %71 = arith.mulf %69, %70 : vector<1x4xf32>
    %72 = arith.mulf %67, %67 : vector<384x4xf32>
    %cst_52 = arith.constant dense<0.000000e+00> : vector<4xf32>
    %73 = vector.multi_reduction <add>, %72, %cst_52 [0] : vector<384x4xf32> to vector<4xf32>
    %74 = vector.shape_cast %73 : vector<4xf32> to vector<1x4xf32>
    %cst_53 = arith.constant 3.906250e-03 : f32
    %75 = vector.broadcast %cst_53 : f32 to vector<1x4xf32>
    %76 = arith.mulf %74, %75 : vector<1x4xf32>
    %77 = arith.mulf %71, %71 : vector<1x4xf32>
    %78 = arith.subf %76, %77 : vector<1x4xf32>
    %79 = vector.broadcast %71 : vector<1x4xf32> to vector<384x4xf32>
    %80 = arith.subf %63, %79 : vector<384x4xf32>
    %cst_54 = arith.constant 9.99999974E-6 : f32
    %81 = vector.broadcast %cst_54 : f32 to vector<1x4xf32>
    %82 = arith.addf %78, %81 : vector<1x4xf32>
    %83 = math.rsqrt %82 : vector<1x4xf32>
    %84 = vector.broadcast %83 : vector<1x4xf32> to vector<384x4xf32>
    %85 = arith.mulf %80, %84 : vector<384x4xf32>
    %cst_55 = arith.constant 0.000000e+00 : f32
    %86 = vector.broadcast %cst_55 : f32 to vector<384x4xf32>
    %87 = arith.maximumf %85, %86 : vector<384x4xf32>
    %cst_56 = arith.constant 0.000000e+00 : f32
    %88 = vector.broadcast %cst_56 : f32 to vector<48x4xf32>
    %c0_57 = arith.constant 0 : index
    %c0_58 = arith.constant 0 : index
    %89 = vector.load %arg8[%c0_57, %c0_58] : memref<480x4xf32, #tpu.memory_space<vmem>>, vector<48x4xf32>
    tpu.vector_store %arg8[%c0_57, %c0_58], %88 {strides = array<i32>} : memref<480x4xf32, #tpu.memory_space<vmem>>, vector<48x4xf32>,
    %c432 = arith.constant 432 : index
    %c0_59 = arith.constant 0 : index
    %90 = vector.load %arg8[%c432, %c0_59] : memref<480x4xf32, #tpu.memory_space<vmem>>, vector<48x4xf32>
    tpu.vector_store %arg8[%c432, %c0_59], %88 {strides = array<i32>} : memref<480x4xf32, #tpu.memory_space<vmem>>, vector<48x4xf32>,
    %c48_60 = arith.constant 48 : index
    %c0_61 = arith.constant 0 : index
    %91 = vector.load %arg8[%c48_60, %c0_61] : memref<480x4xf32, #tpu.memory_space<vmem>>, vector<384x4xf32>
    tpu.vector_store %arg8[%c48_60, %c0_61], %87 {strides = array<i32>} : memref<480x4xf32, #tpu.memory_space<vmem>>, vector<384x4xf32>,
    %c50 = arith.constant 50 : index
    %c0_62 = arith.constant 0 : index
    %92 = vector.load %arg8[%c50, %c0_62] : memref<480x4xf32, #tpu.memory_space<vmem>>, vector<384x4xf32>
    %c46 = arith.constant 46 : index
    %c0_63 = arith.constant 0 : index
    %93 = vector.load %arg8[%c46, %c0_63] : memref<480x4xf32, #tpu.memory_space<vmem>>, vector<384x4xf32>
    %c0_i32 = arith.constant 0 : i32
    %94 = vector.broadcast %c0_i32 : i32 to vector<384x1xi32>
    %95 = arith.cmpi eq, %0, %94 : vector<384x1xi32>
    %c17_i32 = arith.constant 17 : i32
    %96 = vector.broadcast %c17_i32 : i32 to vector<384x1xi32>
    %97 = arith.cmpi eq, %0, %96 : vector<384x1xi32>
    %98 = vector.shape_cast %97 : vector<384x1xi1> to vector<384x1xi1>
    %99 = vector.broadcast %98 : vector<384x1xi1> to vector<384x4xi1>
    %100 = arith.select %99, %93, %87 : vector<384x4xi1>, vector<384x4xf32>
    %101 = vector.shape_cast %95 : vector<384x1xi1> to vector<384x1xi1>
    %102 = vector.broadcast %101 : vector<384x1xi1> to vector<384x4xi1>
    %103 = arith.select %102, %92, %100 : vector<384x4xi1>, vector<384x4xf32>
    %c48_64 = arith.constant 48 : index
    %c0_65 = arith.constant 0 : index
    %104 = vector.load %arg8[%c48_64, %c0_65] : memref<480x4xf32, #tpu.memory_space<vmem>>, vector<384x4xf32>
    tpu.vector_store %arg8[%c48_64, %c0_65], %103 {strides = array<i32>} : memref<480x4xf32, #tpu.memory_space<vmem>>, vector<384x4xf32>,
    %c72_66 = arith.constant 72 : index
    %c0_67 = arith.constant 0 : index
    %105 = vector.load %arg8[%c72_66, %c0_67] : memref<480x4xf32, #tpu.memory_space<vmem>>, vector<24x4xf32>
    %c24_68 = arith.constant 24 : index
    %c0_69 = arith.constant 0 : index
    %106 = vector.load %arg8[%c24_68, %c0_69] : memref<480x4xf32, #tpu.memory_space<vmem>>, vector<24x4xf32>
    tpu.vector_store %arg8[%c24_68, %c0_69], %105 {strides = array<i32>} : memref<480x4xf32, #tpu.memory_space<vmem>>, vector<24x4xf32>,
    %c384 = arith.constant 384 : index
    %c0_70 = arith.constant 0 : index
    %107 = vector.load %arg8[%c384, %c0_70] : memref<480x4xf32, #tpu.memory_space<vmem>>, vector<24x4xf32>
    %c432_71 = arith.constant 432 : index
    %c0_72 = arith.constant 0 : index
    %108 = vector.load %arg8[%c432_71, %c0_72] : memref<480x4xf32, #tpu.memory_space<vmem>>, vector<24x4xf32>
    tpu.vector_store %arg8[%c432_71, %c0_72], %107 {strides = array<i32>} : memref<480x4xf32, #tpu.memory_space<vmem>>, vector<24x4xf32>,
    %cst_73 = arith.constant 0.000000e+00 : f32
    %109 = vector.broadcast %cst_73 : f32 to vector<384x4xf32>
    %c23_74 = arith.constant 23 : index
    %c0_75 = arith.constant 0 : index
    %110 = vector.load %arg8[%c23_74, %c0_75] : memref<480x4xf32, #tpu.memory_space<vmem>>, vector<384x4xf32>
    %c0_76 = arith.constant 0 : index
    %c0_77 = arith.constant 0 : index
    %c0_78 = arith.constant 0 : index
    %111 = vector.load %arg4[%c0_76, %c0_77, %c0_78] : memref<9x4x4xf32, #tpu.memory_space<vmem>>, vector<1x4x4xf32>
    %112 = vector.shape_cast %111 : vector<1x4x4xf32> to vector<4x4xf32>
    %cst_79 = arith.constant dense<0.000000e+00> : vector<384x4xf32>
    %113 = tpu.matmul %110, %112, %cst_79 {dimension_numbers = #tpu.dot_dimension_numbers<[1], [0], [0], [1], [0, 0, 1, 1], [], []>} : vector<384x4xf32>, vector<4x4xf32>, vector<384x4xf32> -> vector<384x4xf32>
    %114 = arith.addf %109, %113 : vector<384x4xf32>
    %c24_80 = arith.constant 24 : index
    %c0_81 = arith.constant 0 : index
    %115 = vector.load %arg8[%c24_80, %c0_81] : memref<480x4xf32, #tpu.memory_space<vmem>>, vector<384x4xf32>
    %c1_82 = arith.constant 1 : index
    %c0_83 = arith.constant 0 : index
    %c0_84 = arith.constant 0 : index
    %116 = vector.load %arg4[%c1_82, %c0_83, %c0_84] : memref<9x4x4xf32, #tpu.memory_space<vmem>>, vector<1x4x4xf32>
    %117 = vector.shape_cast %116 : vector<1x4x4xf32> to vector<4x4xf32>
    %cst_85 = arith.constant dense<0.000000e+00> : vector<384x4xf32>
    %118 = tpu.matmul %115, %117, %cst_85 {dimension_numbers = #tpu.dot_dimension_numbers<[1], [0], [0], [1], [0, 0, 1, 1], [], []>} : vector<384x4xf32>, vector<4x4xf32>, vector<384x4xf32> -> vector<384x4xf32>
    %119 = arith.addf %114, %118 : vector<384x4xf32>
    %c25_86 = arith.constant 25 : index
    %c0_87 = arith.constant 0 : index
    %120 = vector.load %arg8[%c25_86, %c0_87] : memref<480x4xf32, #tpu.memory_space<vmem>>, vector<384x4xf32>
    %c2_88 = arith.constant 2 : index
    %c0_89 = arith.constant 0 : index
    %c0_90 = arith.constant 0 : index
    %121 = vector.load %arg4[%c2_88, %c0_89, %c0_90] : memref<9x4x4xf32, #tpu.memory_space<vmem>>, vector<1x4x4xf32>
    %122 = vector.shape_cast %121 : vector<1x4x4xf32> to vector<4x4xf32>
    %cst_91 = arith.constant dense<0.000000e+00> : vector<384x4xf32>
    %123 = tpu.matmul %120, %122, %cst_91 {dimension_numbers = #tpu.dot_dimension_numbers<[1], [0], [0], [1], [0, 0, 1, 1], [], []>} : vector<384x4xf32>, vector<4x4xf32>, vector<384x4xf32> -> vector<384x4xf32>
    %124 = arith.addf %119, %123 : vector<384x4xf32>
    %c47_92 = arith.constant 47 : index
    %c0_93 = arith.constant 0 : index
    %125 = vector.load %arg8[%c47_92, %c0_93] : memref<480x4xf32, #tpu.memory_space<vmem>>, vector<384x4xf32>
    %c3_94 = arith.constant 3 : index
    %c0_95 = arith.constant 0 : index
    %c0_96 = arith.constant 0 : index
    %126 = vector.load %arg4[%c3_94, %c0_95, %c0_96] : memref<9x4x4xf32, #tpu.memory_space<vmem>>, vector<1x4x4xf32>
    %127 = vector.shape_cast %126 : vector<1x4x4xf32> to vector<4x4xf32>
    %cst_97 = arith.constant dense<0.000000e+00> : vector<384x4xf32>
    %128 = tpu.matmul %125, %127, %cst_97 {dimension_numbers = #tpu.dot_dimension_numbers<[1], [0], [0], [1], [0, 0, 1, 1], [], []>} : vector<384x4xf32>, vector<4x4xf32>, vector<384x4xf32> -> vector<384x4xf32>
    %129 = arith.addf %124, %128 : vector<384x4xf32>
    %c48_98 = arith.constant 48 : index
    %c0_99 = arith.constant 0 : index
    %130 = vector.load %arg8[%c48_98, %c0_99] : memref<480x4xf32, #tpu.memory_space<vmem>>, vector<384x4xf32>
    %c4_100 = arith.constant 4 : index
    %c0_101 = arith.constant 0 : index
    %c0_102 = arith.constant 0 : index
    %131 = vector.load %arg4[%c4_100, %c0_101, %c0_102] : memref<9x4x4xf32, #tpu.memory_space<vmem>>, vector<1x4x4xf32>
    %132 = vector.shape_cast %131 : vector<1x4x4xf32> to vector<4x4xf32>
    %cst_103 = arith.constant dense<0.000000e+00> : vector<384x4xf32>
    %133 = tpu.matmul %130, %132, %cst_103 {dimension_numbers = #tpu.dot_dimension_numbers<[1], [0], [0], [1], [0, 0, 1, 1], [], []>} : vector<384x4xf32>, vector<4x4xf32>, vector<384x4xf32> -> vector<384x4xf32>
    %134 = arith.addf %129, %133 : vector<384x4xf32>
    %c49_104 = arith.constant 49 : index
    %c0_105 = arith.constant 0 : index
    %135 = vector.load %arg8[%c49_104, %c0_105] : memref<480x4xf32, #tpu.memory_space<vmem>>, vector<384x4xf32>
    %c5_106 = arith.constant 5 : index
    %c0_107 = arith.constant 0 : index
    %c0_108 = arith.constant 0 : index
    %136 = vector.load %arg4[%c5_106, %c0_107, %c0_108] : memref<9x4x4xf32, #tpu.memory_space<vmem>>, vector<1x4x4xf32>
    %137 = vector.shape_cast %136 : vector<1x4x4xf32> to vector<4x4xf32>
    %cst_109 = arith.constant dense<0.000000e+00> : vector<384x4xf32>
    %138 = tpu.matmul %135, %137, %cst_109 {dimension_numbers = #tpu.dot_dimension_numbers<[1], [0], [0], [1], [0, 0, 1, 1], [], []>} : vector<384x4xf32>, vector<4x4xf32>, vector<384x4xf32> -> vector<384x4xf32>
    %139 = arith.addf %134, %138 : vector<384x4xf32>
    %c71_110 = arith.constant 71 : index
    %c0_111 = arith.constant 0 : index
    %140 = vector.load %arg8[%c71_110, %c0_111] : memref<480x4xf32, #tpu.memory_space<vmem>>, vector<384x4xf32>
    %c6_112 = arith.constant 6 : index
    %c0_113 = arith.constant 0 : index
    %c0_114 = arith.constant 0 : index
    %141 = vector.load %arg4[%c6_112, %c0_113, %c0_114] : memref<9x4x4xf32, #tpu.memory_space<vmem>>, vector<1x4x4xf32>
    %142 = vector.shape_cast %141 : vector<1x4x4xf32> to vector<4x4xf32>
    %cst_115 = arith.constant dense<0.000000e+00> : vector<384x4xf32>
    %143 = tpu.matmul %140, %142, %cst_115 {dimension_numbers = #tpu.dot_dimension_numbers<[1], [0], [0], [1], [0, 0, 1, 1], [], []>} : vector<384x4xf32>, vector<4x4xf32>, vector<384x4xf32> -> vector<384x4xf32>
    %144 = arith.addf %139, %143 : vector<384x4xf32>
    %c72_116 = arith.constant 72 : index
    %c0_117 = arith.constant 0 : index
    %145 = vector.load %arg8[%c72_116, %c0_117] : memref<480x4xf32, #tpu.memory_space<vmem>>, vector<384x4xf32>
    %c7_118 = arith.constant 7 : index
    %c0_119 = arith.constant 0 : index
    %c0_120 = arith.constant 0 : index
    %146 = vector.load %arg4[%c7_118, %c0_119, %c0_120] : memref<9x4x4xf32, #tpu.memory_space<vmem>>, vector<1x4x4xf32>
    %147 = vector.shape_cast %146 : vector<1x4x4xf32> to vector<4x4xf32>
    %cst_121 = arith.constant dense<0.000000e+00> : vector<384x4xf32>
    %148 = tpu.matmul %145, %147, %cst_121 {dimension_numbers = #tpu.dot_dimension_numbers<[1], [0], [0], [1], [0, 0, 1, 1], [], []>} : vector<384x4xf32>, vector<4x4xf32>, vector<384x4xf32> -> vector<384x4xf32>
    %149 = arith.addf %144, %148 : vector<384x4xf32>
    %c73_122 = arith.constant 73 : index
    %c0_123 = arith.constant 0 : index
    %150 = vector.load %arg8[%c73_122, %c0_123] : memref<480x4xf32, #tpu.memory_space<vmem>>, vector<384x4xf32>
    %c8_124 = arith.constant 8 : index
    %c0_125 = arith.constant 0 : index
    %c0_126 = arith.constant 0 : index
    %151 = vector.load %arg4[%c8_124, %c0_125, %c0_126] : memref<9x4x4xf32, #tpu.memory_space<vmem>>, vector<1x4x4xf32>
    %152 = vector.shape_cast %151 : vector<1x4x4xf32> to vector<4x4xf32>
    %cst_127 = arith.constant dense<0.000000e+00> : vector<384x4xf32>
    %153 = tpu.matmul %150, %152, %cst_127 {dimension_numbers = #tpu.dot_dimension_numbers<[1], [0], [0], [1], [0, 0, 1, 1], [], []>} : vector<384x4xf32>, vector<4x4xf32>, vector<384x4xf32> -> vector<384x4xf32>
    %154 = arith.addf %149, %153 : vector<384x4xf32>
    %c0_128 = arith.constant 0 : index
    %c0_129 = arith.constant 0 : index
    %155 = vector.load %arg5[%c0_128, %c0_129] : memref<1x4xf32, #tpu.memory_space<vmem>>, vector<1x4xf32>
    %156 = vector.broadcast %155 : vector<1x4xf32> to vector<384x4xf32>
    %157 = arith.addf %154, %156 : vector<384x4xf32>
    %cst_130 = arith.constant 0.000000e+00 : f32
    %158 = vector.shape_cast %5 : vector<384x1xi1> to vector<384x1xi1>
    %159 = vector.broadcast %158 : vector<384x1xi1> to vector<384x4xi1>
    %160 = vector.broadcast %cst_130 : f32 to vector<384x4xf32>
    %161 = arith.select %159, %157, %160 : vector<384x4xi1>, vector<384x4xf32>
    %cst_131 = arith.constant dense<0.000000e+00> : vector<4xf32>
    %162 = vector.multi_reduction <add>, %161, %cst_131 [0] : vector<384x4xf32> to vector<4xf32>
    %163 = vector.shape_cast %162 : vector<4xf32> to vector<1x4xf32>
    %cst_132 = arith.constant 3.906250e-03 : f32
    %164 = vector.broadcast %cst_132 : f32 to vector<1x4xf32>
    %165 = arith.mulf %163, %164 : vector<1x4xf32>
    %166 = arith.mulf %161, %161 : vector<384x4xf32>
    %cst_133 = arith.constant dense<0.000000e+00> : vector<4xf32>
    %167 = vector.multi_reduction <add>, %166, %cst_133 [0] : vector<384x4xf32> to vector<4xf32>
    %168 = vector.shape_cast %167 : vector<4xf32> to vector<1x4xf32>
    %cst_134 = arith.constant 3.906250e-03 : f32
    %169 = vector.broadcast %cst_134 : f32 to vector<1x4xf32>
    %170 = arith.mulf %168, %169 : vector<1x4xf32>
    %171 = arith.mulf %165, %165 : vector<1x4xf32>
    %172 = arith.subf %170, %171 : vector<1x4xf32>
    %173 = vector.broadcast %165 : vector<1x4xf32> to vector<384x4xf32>
    %174 = arith.subf %157, %173 : vector<384x4xf32>
    %cst_135 = arith.constant 9.99999974E-6 : f32
    %175 = vector.broadcast %cst_135 : f32 to vector<1x4xf32>
    %176 = arith.addf %172, %175 : vector<1x4xf32>
    %177 = math.rsqrt %176 : vector<1x4xf32>
    %178 = vector.broadcast %177 : vector<1x4xf32> to vector<384x4xf32>
    %179 = arith.mulf %174, %178 : vector<384x4xf32>
    %c0_136 = arith.constant 0 : index
    %c48_137 = arith.constant 48 : index
    %c0_138 = arith.constant 0 : index
    %180 = vector.load %arg1[%c0_136, %c48_137, %c0_138] : memref<1x480x4xf32, #tpu.memory_space<vmem>>, vector<1x384x4xf32>
    %181 = vector.shape_cast %180 : vector<1x384x4xf32> to vector<384x4xf32>
    %182 = arith.addf %181, %179 : vector<384x4xf32>
    %c0_139 = arith.constant 0 : index
    %c0_140 = arith.constant 0 : index
    %c0_141 = arith.constant 0 : index
    %183 = vector.load %arg7[%c0_139, %c0_140, %c0_141] : memref<1x384x4xf32, #tpu.memory_space<vmem>>, vector<1x384x4xf32>
    %184 = vector.shape_cast %183 : vector<1x384x4xf32> to vector<384x4xf32>
    %185 = vector.shape_cast %182 : vector<384x4xf32> to vector<1x384x4xf32>
    tpu.vector_store %arg7[%c0_139, %c0_140, %c0_141], %185 {strides = array<i32>} : memref<1x384x4xf32, #tpu.memory_space<vmem>>, vector<1x384x4xf32>,
    return
  }
  func.func @transform_0(%arg0: i32) -> (i32, i32, i32) {
    %c0_i32 = arith.constant 0 : i32
    %c0_i32_0 = arith.constant 0 : i32
    %c0_i32_1 = arith.constant 0 : i32
    return %arg0, %c0_i32, %c0_i32_0 : i32, i32, i32
  }
  func.func @transform_1(%arg0: i32) -> (i32, i32, i32) {
    %c0_i32 = arith.constant 0 : i32
    %c0_i32_0 = arith.constant 0 : i32
    %c0_i32_1 = arith.constant 0 : i32
    %c0_i32_2 = arith.constant 0 : i32
    return %c0_i32, %c0_i32_0, %c0_i32_1 : i32, i32, i32
  }
  func.func @transform_2(%arg0: i32) -> (i32, i32) {
    %c0_i32 = arith.constant 0 : i32
    %c0_i32_0 = arith.constant 0 : i32
    %c0_i32_1 = arith.constant 0 : i32
    return %c0_i32, %c0_i32_0 : i32, i32
  }
  func.func @transform_3(%arg0: i32) -> (i32, i32, i32) {
    %c0_i32 = arith.constant 0 : i32
    %c0_i32_0 = arith.constant 0 : i32
    %c0_i32_1 = arith.constant 0 : i32
    %c0_i32_2 = arith.constant 0 : i32
    return %c0_i32, %c0_i32_0, %c0_i32_1 : i32, i32, i32
  }
  func.func @transform_4(%arg0: i32) -> (i32, i32) {
    %c0_i32 = arith.constant 0 : i32
    %c0_i32_0 = arith.constant 0 : i32
    %c0_i32_1 = arith.constant 0 : i32
    return %c0_i32, %c0_i32_0 : i32, i32
  }
  func.func @transform_5(%arg0: i32) -> (i32, i32) {
    %c0_i32 = arith.constant 0 : i32
    %c0_i32_0 = arith.constant 0 : i32
    %c0_i32_1 = arith.constant 0 : i32
    return %c0_i32, %c0_i32_0 : i32, i32
  }
  func.func @transform_6(%arg0: i32) -> (i32, i32, i32) {
    %c0_i32 = arith.constant 0 : i32
    %c0_i32_0 = arith.constant 0 : i32
    %c0_i32_1 = arith.constant 0 : i32
    return %arg0, %c0_i32, %c0_i32_0 : i32, i32, i32
  }
}

</mosaic_0001>

<bundles_post_ra>
// kernel: residual_block.1
= control target key start
LH: loop header
LB: loop body
LE: loop exit
PB: predicated region body
PF: predicated region fallthrough
CT: control target
= control target key end

     0   :  { %s10878_s21 = smov 0   ;;  %s17062_s0 = inlined_call_operand.vmem [shape: f32[2,480,4], index: 0, kind: input, shape index: {}]   ;;  %s17063_s1 = inlined_call_operand.vmem [shape: f32[9,4,4], index: 1, kind: input, shape index: {}]   ;;  %s17064_s2 = inlined_call_operand.vmem [shape: f32[1,4], index: 2, kind: input, shape index: {}]   ;;  %s17065_s3 = inlined_call_operand.vmem [shape: f32[9,4,4], index: 3, kind: input, shape index: {}]   ;;  %s17066_s4 = inlined_call_operand.vmem [shape: f32[1,4], index: 4, kind: input, shape index: {}]   ;;  %s17067_s5 = inlined_call_operand.vmem [shape: s32[384,1], index: 5, kind: input, shape index: {}]   ;;  %s17068_s6 = inlined_call_operand.vmem [shape: f32[2,384,4], index: 6, kind: output, shape index: {}]  }
   0x1 LB: > { %s9857_s22 = sadd.s32 4294967295, %s10839_s21   ;;  %p9861_p0 = scmp.ge.s32.totalorder %s10839_s21, 1  ;;  %s10839_s21 = sphi %s10878_s21, %s16_s21  }
   0x2   : > { %p212_p1 = scmp.lt.s32.totalorder %s10839_s21, 3 }
   0x4   : > { %p213_p2 = pnand %p9861_p0, %p212_p1 }
   0x6   : > { %216 = sbr.rel (%p213_p2) target bundleno = 2683 (0xa7b), region = 44 }
   0xb   : > { %v9864_v0 = vld [vmem:[%s17063_s1 + $0x4] sm:$0xf]  ;;  %vm17352_vm0 = vcmask 1043456   ;;  %v492_v1 = vld [vmem:[%s17063_s1] sm:$0xf]  ;;  %p242_p3 = scmp.lt.s32.totalorder %s9857_s22, 1 }
   0xc   : > { %10764 = vmatpush.msk.msra.mxu2 %vm17352_vm0, %v9864_v0  ;;  %10765 = vmatpush.msk.msra.mxu3 %vm17352_vm0, %v492_v1  ;;  %v9963_v2 = vld [vmem:[%s17063_s1 + $0x8] sm:$0xf]  ;;  %v10013_v3 = vld [vmem:[%s17063_s1 + $0xc] sm:$0xf]  ;;  %v10063_v4 = vld [vmem:[%s17063_s1 + $0x10] sm:$0xf] }
   0xd   : > { %s18296_s22 = smov (!%p242_p3, %s9857_s22), 1  ;;  %9865 = vmatpush.msk.msra.mxu0 %vm17352_vm0, %v9864_v0  ;;  %9914 = vmatpush.msk.msra.mxu1 %vm17352_vm0, %v492_v1  ;;  %vm543_vm1 = vcmask 31744  }
   0xe   : > { %9964 = vmatpush.msk.msrb.mxu2 %vm17352_vm0, %v9963_v2  ;;  %10014 = vmatpush.msk.msrb.mxu3 %vm17352_vm0, %v10013_v3  ;;  %s10766_s9 = smul.u32 480, %s18296_s22 }
   0xf   : > { %10064 = vmatpush.msk.msrb.mxu0 %vm17352_vm0, %v10063_v4  ;;  %s10767_s23 = smul.u32 384, %s18296_s22 }
  0x10   : > { %s10914_s12 = scalar_lea.vmem %s17062_s0, %s10766_s9 }
  0x11   : > { %v517_v5 = vld [vmem:[%s10914_s12 + $0xd8] sm:$0xff]  ;;  %v518_v9 = vld [vmem:[%s10914_s12 + $0xe0] sm:$0xff]  ;;  %v519_v13 = vld [vmem:[%s10914_s12 + $0xe8] sm:$0xff]  ;;  %s16856_s25 = scalar_lea.vmem %s17068_s6, %s10767_s23 }
  0x12   : > { %v468_v6 = vld [vmem:[%s10914_s12 + $0xd7] sm:$0xff]  ;;  %9890 = vmatmul.msk.f32.vlgmr.msra.gmra.mxu2 %vm543_vm1, %v517_v5  ;;  %v469_v10 = vld [vmem:[%s10914_s12 + $0xdf] sm:$0xff]  ;;  %v470_v14 = vld [vmem:[%s10914_s12 + $0xe7] sm:$0xff] }
  0x13   : > { %9939 = vmatmul.msk.f32.vlgmr.msra.gmra.mxu3 %vm543_vm1, %v468_v6  ;;  %v493_v7 = vld [vmem:[%s10914_s12 + $0x18] sm:$0xff]  ;;  %v494_v11 = vld [vmem:[%s10914_s12 + $0x20] sm:$0xff]  ;;  %v495_v15 = vld [vmem:[%s10914_s12 + $0x28] sm:$0xff] }
  0x14   : > { %v444_v8 = vld [vmem:[%s10914_s12 + $0x17] sm:$0xff]  ;;  %9866 = vmatmul.msk.f32.vlgmr.msra.gmra.mxu0 %vm543_vm1, %v493_v7  ;;  %v445_v12 = vld [vmem:[%s10914_s12 + $0x1f] sm:$0xff]  ;;  %v446_v16 = vld [vmem:[%s10914_s12 + $0x27] sm:$0xff] }
  0x15   : > { %9915 = vmatmul.msk.f32.vlgmr.msra.gmra.mxu1 %vm543_vm1, %v444_v8  ;;  %v520_v17 = vld [vmem:[%s10914_s12 + $0xf0] sm:$0xff]  ;;  %v521_v21 = vld [vmem:[%s10914_s12 + $0xf8] sm:$0xff]  ;;  %v522_v25 = vld [vmem:[%s10914_s12 + $0x100] sm:$0xff] }
  0x16   : > { %v471_v18 = vld [vmem:[%s10914_s12 + $0xef] sm:$0xff]  ;;  %v472_v22 = vld [vmem:[%s10914_s12 + $0xf7] sm:$0xff]  ;;  %v473_v26 = vld [vmem:[%s10914_s12 + $0xff] sm:$0xff] }
  0x17   : > { %v10943_v19 = vld [vmem:[%s10914_s12 + $0x30] sm:$0xff]  ;;  %v10957_v23 = vld [vmem:[%s10914_s12 + $0x38] sm:$0xff]  ;;  %v10971_v27 = vld [vmem:[%s10914_s12 + $0x40] sm:$0xff] }
  0x18   : > { %v10946_v20 = vld [vmem:[%s10914_s12 + $0x2f] sm:$0xff]  ;;  %v10960_v24 = vld [vmem:[%s10914_s12 + $0x37] sm:$0xff]  ;;  %v10974_v28 = vld [vmem:[%s10914_s12 + $0x3f] sm:$0xff] }
  0x19   : > { %v523_v29 = vld [vmem:[%s10914_s12 + $0x108] sm:$0xff]  ;;  %v524_v33 = vld [vmem:[%s10914_s12 + $0x110] sm:$0xff]  ;;  %v525_v37 = vld [vmem:[%s10914_s12 + $0x118] sm:$0xff] }
  0x1a   : > { %9891 = vmatmul.msk.f32.gmra.mxu2 %vm543_vm1, %v518_v9  ;;  %v474_v30 = vld [vmem:[%s10914_s12 + $0x107] sm:$0xff]  ;;  %v475_v34 = vld [vmem:[%s10914_s12 + $0x10f] sm:$0xff]  ;;  %v476_v38 = vld [vmem:[%s10914_s12 + $0x117] sm:$0xff] }
  0x1b   : > { %9940 = vmatmul.msk.f32.gmra.mxu3 %vm543_vm1, %v469_v10  ;;  %v10985_v31 = vld [vmem:[%s10914_s12 + $0x48] sm:$0xff]  ;;  %v10999_v35 = vld [vmem:[%s10914_s12 + $0x50] sm:$0xff]  ;;  %v11013_v39 = vld [vmem:[%s10914_s12 + $0x58] sm:$0xff] }
  0x1c   : > { %9867 = vmatmul.msk.f32.gmra.mxu0 %vm543_vm1, %v494_v11  ;;  %v10988_v32 = vld [vmem:[%s10914_s12 + $0x47] sm:$0xff]  ;;  %v11002_v36 = vld [vmem:[%s10914_s12 + $0x4f] sm:$0xff]  ;;  %v11016_v40 = vld [vmem:[%s10914_s12 + $0x57] sm:$0xff] }
  0x1d   : > { %9916 = vmatmul.msk.f32.gmra.mxu1 %vm543_vm1, %v445_v12  ;;  %v526_v41 = vld [vmem:[%s10914_s12 + $0x120] sm:$0xff]  ;;  %v527_v45 = vld [vmem:[%s10914_s12 + $0x128] sm:$0xff]  ;;  %v528_v49 = vld [vmem:[%s10914_s12 + $0x130] sm:$0xff] }
  0x1e   : > { %v477_v42 = vld [vmem:[%s10914_s12 + $0x11f] sm:$0xff]  ;;  %v478_v46 = vld [vmem:[%s10914_s12 + $0x127] sm:$0xff]  ;;  %v479_v50 = vld [vmem:[%s10914_s12 + $0x12f] sm:$0xff] }
  0x1f   : > { %v11027_v43 = vld [vmem:[%s10914_s12 + $0x60] sm:$0xff]  ;;  %v11041_v47 = vld [vmem:[%s10914_s12 + $0x68] sm:$0xff]  ;;  %v11055_v51 = vld [vmem:[%s10914_s12 + $0x70] sm:$0xff] }
  0x20   : > { %v11030_v44 = vld [vmem:[%s10914_s12 + $0x5f] sm:$0xff]  ;;  %v11044_v48 = vld [vmem:[%s10914_s12 + $0x67] sm:$0xff]  ;;  %v11058_v52 = vld [vmem:[%s10914_s12 + $0x6f] sm:$0xff] }
  0x21   : > { %v529_v53 = vld [vmem:[%s10914_s12 + $0x138] sm:$0xff]  ;;  %v530_v57 = vld [vmem:[%s10914_s12 + $0x140] sm:$0xff]  ;;  %v531_v61 = vld [vmem:[%s10914_s12 + $0x148] sm:$0xff] }
  0x22   : > { %9892 = vmatmul.msk.f32.gmra.mxu2 %vm543_vm1, %v519_v13  ;;  %v480_v54 = vld [vmem:[%s10914_s12 + $0x137] sm:$0xff]  ;;  %v481_v58 = vld [vmem:[%s10914_s12 + $0x13f] sm:$0xff]  ;;  %v482_v62 = vld [vmem:[%s10914_s12 + $0x147] sm:$0xff] }
  0x23   : > { %9941 = vmatmul.msk.f32.gmra.mxu3 %vm543_vm1, %v470_v14  ;;  %v11069_v55 = vld [vmem:[%s10914_s12 + $0x78] sm:$0xff]  ;;  %v11083_v59 = vld [vmem:[%s10914_s12 + $0x80] sm:$0xff]  ;;  %v11097_v63 = vld [vmem:[%s10914_s12 + $0x88] sm:$0xff] }
  0x24   : > { %9868 = vmatmul.msk.f32.gmra.mxu0 %vm543_vm1, %v495_v15  ;;  %v11072_v56 = vld [vmem:[%s10914_s12 + $0x77] sm:$0xff]  ;;  %v11086_v60 = vld [vmem:[%s10914_s12 + $0x7f] sm:$0xff]  ;;  %v11100_v0 = vld [vmem:[%s10914_s12 + $0x87] sm:$0xff] }
  0x25   : > { %9917 = vmatmul.msk.f32.gmra.mxu1 %vm543_vm1, %v446_v16  ;;  %v532_v1 = vld [vmem:[%s10914_s12 + $0x150] sm:$0xff]  ;;  %v533_v5 = vld [vmem:[%s10914_s12 + $0x158] sm:$0xff]  ;;  %v534_v14 = vld [vmem:[%s10914_s12 + $0x160] sm:$0xff] }
  0x26   : > { %v483_v2 = vld [vmem:[%s10914_s12 + $0x14f] sm:$0xff]  ;;  %v484_v6 = vld [vmem:[%s10914_s12 + $0x157] sm:$0xff]  ;;  %v485_v15 = vld [vmem:[%s10914_s12 + $0x15f] sm:$0xff] }
  0x27   : > { %v11111_v3 = vld [vmem:[%s10914_s12 + $0x90] sm:$0xff]  ;;  %v11129_v9 = vld [vmem:[%s10914_s12 + $0x98] sm:$0xff] }
  0x28   : > { %v11114_v4 = vld [vmem:[%s10914_s12 + $0x8f] sm:$0xff]  ;;  %v11132_v10 = vld [vmem:[%s10914_s12 + $0x97] sm:$0xff] }
  0x2a   : > { %9893 = vmatmul.msk.f32.gmra.mxu2 %vm543_vm1, %v520_v17 }
  0x2b   : > { %9942 = vmatmul.msk.f32.gmra.mxu3 %vm543_vm1, %v471_v18  ;;  %v11149_v18 = vld [vmem:[%s10914_s12 + $0xa0] sm:$0xff] }
  0x2c   : > { %9869 = vmatmul.msk.f32.gmra.mxu0 %vm543_vm1, %v10943_v19 }
  0x2d   : > { %9918 = vmatmul.msk.f32.gmra.mxu1 %vm543_vm1, %v10946_v20 }
  0x32   : > { %9894 = vmatmul.msk.f32.gmra.mxu2 %vm543_vm1, %v521_v21  ;;  %v11152_v21 = vld [vmem:[%s10914_s12 + $0x9f] sm:$0xff] }
  0x33   : > { %9943 = vmatmul.msk.f32.gmra.mxu3 %vm543_vm1, %v472_v22 }
  0x34   : > { %9870 = vmatmul.msk.f32.gmra.mxu0 %vm543_vm1, %v10957_v23 }
  0x35   : > { %9919 = vmatmul.msk.f32.gmra.mxu1 %vm543_vm1, %v10960_v24 }
  0x3a   : > { %9895 = vmatmul.msk.f32.gmra.mxu2 %vm543_vm1, %v522_v25 }
  0x3b   : > { %9944 = vmatmul.msk.f32.gmra.mxu3 %vm543_vm1, %v473_v26 }
  0x3c   : > { %9871 = vmatmul.msk.f32.gmra.mxu0 %vm543_vm1, %v10971_v27 }
  0x3d   : > { %9920 = vmatmul.msk.f32.gmra.mxu1 %vm543_vm1, %v10974_v28 }
  0x42   : > { %9896 = vmatmul.msk.f32.gmra.mxu2 %vm543_vm1, %v523_v29  ;;  %v535_v29 = vld [vmem:[%s10914_s12 + $0x168] sm:$0xff] }
  0x43   : > { %9945 = vmatmul.msk.f32.gmra.mxu3 %vm543_vm1, %v474_v30  ;;  %v486_v30 = vld [vmem:[%s10914_s12 + $0x167] sm:$0xff] }
  0x44   : > { %9872 = vmatmul.msk.f32.gmra.mxu0 %vm543_vm1, %v10985_v31 }
  0x45   : > { %9921 = vmatmul.msk.f32.gmra.mxu1 %vm543_vm1, %v10988_v32 }
  0x4a   : > { %9897 = vmatmul.msk.f32.gmra.mxu2 %vm543_vm1, %v524_v33 }
  0x4b   : > { %9946 = vmatmul.msk.f32.gmra.mxu3 %vm543_vm1, %v475_v34 }
  0x4c   : > { %9873 = vmatmul.msk.f32.gmra.mxu0 %vm543_vm1, %v10999_v35 }
  0x4d   : > { %9922 = vmatmul.msk.f32.gmra.mxu1 %vm543_vm1, %v11002_v36 }
  0x52   : > { %9898 = vmatmul.msk.f32.gmra.mxu2 %vm543_vm1, %v525_v37  ;;  %v11169_v37 = vld [vmem:[%s10914_s12 + $0xa8] sm:$0xff] }
  0x53   : > { %9947 = vmatmul.msk.f32.gmra.mxu3 %vm543_vm1, %v476_v38  ;;  %v11172_v38 = vld [vmem:[%s10914_s12 + $0xa7] sm:$0xff] }
  0x54   : > { %9874 = vmatmul.msk.f32.gmra.mxu0 %vm543_vm1, %v11013_v39 }
  0x55   : > { %9923 = vmatmul.msk.f32.gmra.mxu1 %vm543_vm1, %v11016_v40 }
  0x5a   : > { %9899 = vmatmul.msk.f32.gmra.mxu2 %vm543_vm1, %v526_v41 }
  0x5b   : > { %9948 = vmatmul.msk.f32.gmra.mxu3 %vm543_vm1, %v477_v42 }
  0x5c   : > { %9875 = vmatmul.msk.f32.gmra.mxu0 %vm543_vm1, %v11027_v43 }
  0x5d   : > { %9924 = vmatmul.msk.f32.gmra.mxu1 %vm543_vm1, %v11030_v44 }
  0x62   : > { %9900 = vmatmul.msk.f32.gmra.mxu2 %vm543_vm1, %v527_v45 }
  0x63   : > { %9949 = vmatmul.msk.f32.gmra.mxu3 %vm543_vm1, %v478_v46  ;;  %v536_v46 = vld [vmem:[%s10914_s12 + $0x170] sm:$0xff] }
  0x64   : > { %9876 = vmatmul.msk.f32.gmra.mxu0 %vm543_vm1, %v11041_v47 }
  0x65   : > { %9925 = vmatmul.msk.f32.gmra.mxu1 %vm543_vm1, %v11044_v48 }
  0x6a   : > { %9901 = vmatmul.msk.f32.gmra.mxu2 %vm543_vm1, %v528_v49  ;;  %v487_v49 = vld [vmem:[%s10914_s12 + $0x16f] sm:$0xff] }
  0x6b   : > { %9950 = vmatmul.msk.f32.gmra.mxu3 %vm543_vm1, %v479_v50 }
  0x6c   : > { %9877 = vmatmul.msk.f32.gmra.mxu0 %vm543_vm1, %v11055_v51 }
  0x6d   : > { %9926 = vmatmul.msk.f32.gmra.mxu1 %vm543_vm1, %v11058_v52 }
  0x72   : > { %9902 = vmatmul.msk.f32.gmra.mxu2 %vm543_vm1, %v529_v53 }
  0x73   : > { %9951 = vmatmul.msk.f32.gmra.mxu3 %vm543_vm1, %v480_v54  ;;  %v11189_v54 = vld [vmem:[%s10914_s12 + $0xb0] sm:$0xff] }
  0x74   : > { %9878 = vmatmul.msk.f32.gmra.mxu0 %vm543_vm1, %v11069_v55 }
  0x75   : > { %9927 = vmatmul.msk.f32.gmra.mxu1 %vm543_vm1, %v11072_v56 }
  0x7a   : > { %9903 = vmatmul.msk.f32.gmra.mxu2 %vm543_vm1, %v530_v57  ;;  %v11192_v57 = vld [vmem:[%s10914_s12 + $0xaf] sm:$0xff] }
  0x7b   : > { %9952 = vmatmul.msk.f32.gmra.mxu3 %vm543_vm1, %v481_v58 }
  0x7c   : > { %9879 = vmatmul.msk.f32.gmra.mxu0 %vm543_vm1, %v11083_v59 }
  0x7d   : > { %9928 = vmatmul.msk.f32.gmra.mxu1 %vm543_vm1, %v11086_v60 }
  0x82   : > { %9904 = vmatmul.msk.f32.gmra.mxu2 %vm543_vm1, %v531_v61 }
  0x83   : > { %9953 = vmatmul.msk.f32.gmra.mxu3 %vm543_vm1, %v482_v62 }
  0x84   : > { %9880 = vmatmul.msk.f32.gmra.mxu0 %vm543_vm1, %v11097_v63 }
  0x85   : > { %9929 = vmatmul.msk.f32.gmra.mxu1 %vm543_vm1, %v11100_v0 }
  0x8a   : > { %9905 = vmatmul.msk.f32.gmra.mxu2 %vm543_vm1, %v532_v1  ;;  %v537_v1 = vld [vmem:[%s10914_s12 + $0x178] sm:$0xff] }
  0x8b   : > { %9954 = vmatmul.msk.f32.gmra.mxu3 %vm543_vm1, %v483_v2  ;;  %v488_v2 = vld [vmem:[%s10914_s12 + $0x177] sm:$0xff] }
  0x8c   : > { %9881 = vmatmul.msk.f32.gmra.mxu0 %vm543_vm1, %v11111_v3 }
  0x8d   : > { %9930 = vmatmul.msk.f32.gmra.mxu1 %vm543_vm1, %v11114_v4 }
  0x91   : > { %v11124_v7 = vpop.f32.mrf.mxu0 }
  0x92   : > { %v11126_v8 = vpop.f32.mrf.mxu1  ;;  %9906 = vmatmul.msk.f32.gmra.mxu2 %vm543_vm1, %v533_v5 }
  0x93   : > { %9955 = vmatmul.msk.f32.gmra.mxu3 %vm543_vm1, %v484_v6 }
  0x94   : > { %9882 = vmatmul.msk.f32.gmra.mxu0 %vm543_vm1, %v11129_v9 }
  0x95   : > { %9931 = vmatmul.msk.f32.gmra.mxu1 %vm543_vm1, %v11132_v10  ;;  %v781_v11 = vpop.f32.mrf.mxu2 }
  0x96   : > { %v1089_v12 = vpop.f32.mrf.mxu3 }
  0x97   : > { %v11140_v13 = vadd.f32 %v1089_v12, %v781_v11  ;;  %v11209_v11 = vld [vmem:[%s10914_s12 + $0xb8] sm:$0xff] }
  0x98   : > { %v11212_v12 = vld [vmem:[%s10914_s12 + $0xb7] sm:$0xff] }
  0x99   : > { %17401 = vst [vmem:[#allocation3_spill] sm:$0xff] %v11140_v13  ;;  %v11144_v16 = vpop.f32.mrf.mxu0  ;;  %v1161_v13 = vld [vmem:[%s10914_s12 + $0x19] sm:$0xff] }
  0x9a   : > { %v11146_v17 = vpop.f32.mrf.mxu1  ;;  %9907 = vmatmul.msk.f32.gmra.mxu2 %vm543_vm1, %v534_v14  ;;  %v10163_v14 = vld [vmem:[%s17063_s1 + $0x18] sm:$0xf] }
  0x9b   : > { %9956 = vmatmul.msk.f32.gmra.mxu3 %vm543_vm1, %v485_v15  ;;  %v10213_v15 = vld [vmem:[%s17063_s1 + $0x1c] sm:$0xf]  ;;  %10164 = vmatpush.msk.msra.mxu2 %vm17352_vm0, %v10163_v14 }
  0x9c   : > { %9883 = vmatmul.msk.f32.gmra.mxu0 %vm543_vm1, %v11149_v18  ;;  %10214 = vmatpush.msk.msra.mxu3 %vm17352_vm0, %v10213_v15 }
  0x9d   : > { %9932 = vmatmul.msk.f32.gmra.mxu1 %vm543_vm1, %v11152_v21  ;;  %v784_v22 = vpop.f32.mrf.mxu2 }
  0x9e   : > { %v1092_v25 = vpop.f32.mrf.mxu3 }
  0x9f   : > { %v11160_v26 = vadd.f32 %v1092_v25, %v784_v22 }
  0xa1   : > { %17402 = vst [vmem:[#allocation4_spill] sm:$0xff] %v11160_v26  ;;  %v11164_v33 = vpop.f32.mrf.mxu0 }
  0xa2   : > { %v11166_v34 = vpop.f32.mrf.mxu1  ;;  %9908 = vmatmul.msk.f32.gmra.mxu2 %vm543_vm1, %v535_v29 }
  0xa3   : > { %9957 = vmatmul.msk.f32.gmra.mxu3 %vm543_vm1, %v486_v30  ;;  %v538_v30 = vld [vmem:[%s10914_s12 + $0x180] sm:$0xff] }
  0xa4   : > { %9884 = vmatmul.msk.f32.gmra.mxu0 %vm543_vm1, %v11169_v37 }
  0xa5   : > { %9933 = vmatmul.msk.f32.gmra.mxu1 %vm543_vm1, %v11172_v38  ;;  %v787_v41 = vpop.f32.mrf.mxu2 }
  0xa6   : > { %v1095_v42 = vpop.f32.mrf.mxu3 }
  0xa7   : > { %v11180_v45 = vadd.f32 %v1095_v42, %v787_v41  ;;  %v489_v41 = vld [vmem:[%s10914_s12 + $0x17f] sm:$0xff] }
  0xa9   : > { %17403 = vst [vmem:[#allocation5_spill] sm:$0xff] %v11180_v45  ;;  %v11184_v50 = vpop.f32.mrf.mxu0 }
  0xaa   : > { %v11186_v53 = vpop.f32.mrf.mxu1  ;;  %9909 = vmatmul.msk.f32.gmra.mxu2 %vm543_vm1, %v536_v46 }
  0xab   : > { %9958 = vmatmul.msk.f32.gmra.mxu3 %vm543_vm1, %v487_v49  ;;  %v11237_v49 = vld [vmem:[%s10914_s12 + $0xc0] sm:$0xff] }
  0xac   : > { %9885 = vmatmul.msk.f32.gmra.mxu0 %vm543_vm1, %v11189_v54 }
  0xad   : > { %9934 = vmatmul.msk.f32.gmra.mxu1 %vm543_vm1, %v11192_v57  ;;  %v790_v58 = vpop.f32.mrf.mxu2 }
  0xae   : > { %v1098_v61 = vpop.f32.mrf.mxu3 }
  0xaf   : > { %v11200_v62 = vadd.f32 %v1098_v61, %v790_v58  ;;  %v11240_v58 = vld [vmem:[%s10914_s12 + $0xbf] sm:$0xff] }
  0xb0   : > { %v10263_v61 = vld [vmem:[%s17063_s1 + $0x20] sm:$0xf] }
  0xb1   : > { %17404 = vst [vmem:[#allocation6_spill] sm:$0xff] %v11200_v62  ;;  %v11204_v5 = vpop.f32.mrf.mxu0  ;;  %10264 = vmatpush.msk.msra.mxu0 %vm17352_vm0, %v10263_v61  ;;  %v11265_v61 = vld [vmem:[%s10914_s12 + $0xc8] sm:$0xff] }
  0xb2   : > { %v11206_v6 = vpop.f32.mrf.mxu1  ;;  %9910 = vmatmul.msk.f32.gmra.mxu2 %vm543_vm1, %v537_v1  ;;  %v10113_v1 = vld [vmem:[%s17063_s1 + $0x14] sm:$0xf] }
  0xb3   : > { %9959 = vmatmul.msk.f32.gmra.mxu3 %vm543_vm1, %v488_v2  ;;  %10114 = vmatpush.msk.msrb.mxu1 %vm17352_vm0, %v10113_v1  ;;  %v491_v62 = vld [vmem:[%s10914_s12 + $0x18f] sm:$0xff] }
  0xb4   : > { %9886 = vmatmul.msk.f32.gmra.mxu0 %vm543_vm1, %v11209_v11 }
  0xb5   : > { %9935 = vmatmul.msk.f32.gmra.mxu1 %vm543_vm1, %v11212_v12  ;;  %v793_v22 = vpop.f32.mrf.mxu2 }
  0xb6   : > { %v1101_v25 = vpop.f32.mrf.mxu3 }
  0xb7   : > { %v11228_v29 = vadd.f32 %v1101_v25, %v793_v22  ;;  %v539_v22 = vld [vmem:[%s10914_s12 + $0x188] sm:$0xff] }
  0xb8   : > { %v490_v25 = vld [vmem:[%s10914_s12 + $0x187] sm:$0xff] }
  0xb9   : > { %17405 = vst [vmem:[#allocation7_spill] sm:$0xff] %v11228_v29  ;;  %v11232_v42 = vpop.f32.mrf.mxu0  ;;  %v11268_v29 = vld [vmem:[%s10914_s12 + $0xc7] sm:$0xff] }
  0xba   : > { %v11234_v46 = vpop.f32.mrf.mxu1  ;;  %9911 = vmatmul.msk.f32.gmra.mxu2 %vm543_vm1, %v538_v30 }
  0xbb   : > { %9960 = vmatmul.msk.f32.gmra.mxu3 %vm543_vm1, %v489_v41 }
  0xbc   : > { %9887 = vmatmul.msk.f32.gmra.mxu0 %vm543_vm1, %v11237_v49 }
  0xbd   : > { %9936 = vmatmul.msk.f32.gmra.mxu1 %vm543_vm1, %v11240_v58  ;;  %v796_v2 = vpop.f32.mrf.mxu2 }
  0xbe   : > { %v1104_v14 = vpop.f32.mrf.mxu3 }
  0xbf   : > { %v11256_v15 = vadd.f32 %v1104_v14, %v796_v2 }
  0xc1   : > { %17406 = vst [vmem:[#allocation8_spill] sm:$0xff] %v11256_v15  ;;  %v11260_v30 = vpop.f32.mrf.mxu0  ;;  %v540_v15 = vld [vmem:[%s10914_s12 + $0x190] sm:$0xff] }
  0xc2   : > { %v11262_v41 = vpop.f32.mrf.mxu1  ;;  %9912 = vmatmul.msk.f32.gmra.mxu2 %vm543_vm1, %v539_v22  ;;  %v11285_v22 = vld [vmem:[%s10914_s12 + $0xd0] sm:$0xff] }
  0xc3   : > { %9961 = vmatmul.msk.f32.gmra.mxu3 %vm543_vm1, %v490_v25  ;;  %v11288_v25 = vld [vmem:[%s10914_s12 + $0xcf] sm:$0xff] }
  0xc4   : > { %9888 = vmatmul.msk.f32.gmra.mxu0 %vm543_vm1, %v11265_v61 }
  0xc5   : > { %9937 = vmatmul.msk.f32.gmra.mxu1 %vm543_vm1, %v11268_v29  ;;  %v799_v1 = vpop.f32.mrf.mxu2 }
  0xc6   : > { %v1107_v2 = vpop.f32.mrf.mxu3 }
  0xc7   : > { %v11276_v14 = vadd.f32 %v1107_v2, %v799_v1 }
  0xc9   : > { %17407 = vst [vmem:[#allocation9_spill] sm:$0xff] %v11276_v14  ;;  %v11280_v45 = vpop.f32.mrf.mxu0 }
  0xca   : > { %17408 = vst [vmem:[#allocation10_spill] sm:$0xff] %v11280_v45  ;;  %v11282_v26 = vpop.f32.mrf.mxu1  ;;  %9913 = vmatmul.msk.f32.gmra.mxu2 %vm543_vm1, %v540_v15  ;;  %v2379_v15 = vld [vmem:[%s10914_s12 + $0x31] sm:$0xff] }
  0xcb   : > { %17409 = vst [vmem:[#allocation11_spill] sm:$0xff] %v11282_v26  ;;  %9962 = vmatmul.msk.f32.gmra.mxu3 %vm543_vm1, %v491_v62 }
  0xcc   : > { %9889 = vmatmul.msk.f32.gmra.mxu0 %vm543_vm1, %v11285_v22 }
  0xcd   : > { %9938 = vmatmul.msk.f32.gmra.mxu1 %vm543_vm1, %v11288_v25  ;;  %v802_v1 = vpop.f32.mrf.mxu2 }
  0xce   : > { %v1110_v2 = vpop.f32.mrf.mxu3 }
  0xcf   : > { %v11296_v14 = vadd.f32 %v1110_v2, %v802_v1 }
  0xd1   : > { %17410 = vst [vmem:[#allocation12_spill] sm:$0xff] %v11296_v14  ;;  %v11299_v26 = vpop.f32.mrf.mxu0  ;;  %v1162_v14 = vld [vmem:[%s10914_s12 + $0x21] sm:$0xff] }
  0xd2   : > { %17411 = vst [vmem:[#allocation13_spill] sm:$0xff] %v11299_v26  ;;  %v11301_v45 = vpop.f32.mrf.mxu1  ;;  %9965 = vmatmul.msk.f32.vlgmr.msrb.gmra.mxu2 %vm543_vm1, %v1161_v13  ;;  %v2380_v13 = vld [vmem:[%s10914_s12 + $0x39] sm:$0xff] }
  0xd3   : > { %17412 = vst [vmem:[#allocation14_spill] sm:$0xff] %v11301_v45  ;;  %10015 = vmatmul.msk.f32.vlgmr.msrb.gmra.mxu3 %vm543_vm1, %v10946_v20 }
  0xd4   : > { %10065 = vmatmul.msk.f32.vlgmr.msrb.gmra.mxu0 %vm543_vm1, %v10943_v19 }
  0xd5   : > { %10115 = vmatmul.msk.f32.vlgmr.msrb.gmra.mxu1 %vm543_vm1, %v2379_v15  ;;  %v805_v62 = vpop.f32.mrf.mxu2 }
  0xd6   : > { %v1113_v1 = vpop.f32.mrf.mxu3 }
  0xd7   : > { %v11310_v2 = vadd.f32 %v1113_v1, %v805_v62  ;;  %v1163_v1 = vld [vmem:[%s10914_s12 + $0x29] sm:$0xff] }
  0xd9   : > { %17413 = vst [vmem:[#allocation15_spill] sm:$0xff] %v11310_v2  ;;  %v11313_v26 = vpop.f32.mrf.mxu0 }
  0xda   : > { %17414 = vst [vmem:[#allocation16_spill] sm:$0xff] %v11313_v26  ;;  %v11315_v45 = vpop.f32.mrf.mxu1  ;;  %9966 = vmatmul.msk.f32.gmra.mxu2 %vm543_vm1, %v1162_v14  ;;  %v2381_v26 = vld [vmem:[%s10914_s12 + $0x41] sm:$0xff] }
  0xdb   : > { %17415 = vst [vmem:[#allocation17_spill] sm:$0xff] %v11315_v45  ;;  %10016 = vmatmul.msk.f32.gmra.mxu3 %vm543_vm1, %v10960_v24 }
  0xdc   : > { %10066 = vmatmul.msk.f32.gmra.mxu0 %vm543_vm1, %v10957_v23 }
  0xdd   : > { %10116 = vmatmul.msk.f32.gmra.mxu1 %vm543_vm1, %v2380_v13  ;;  %v808_v19 = vpop.f32.mrf.mxu2 }
  0xde   : > { %v1116_v20 = vpop.f32.mrf.mxu3 }
  0xdf   : > { %v11324_v62 = vadd.f32 %v1116_v20, %v808_v19 }
  0xe1   : > { %17416 = vst [vmem:[#allocation18_spill] sm:$0xff] %v11324_v62  ;;  %v11327_v2 = vpop.f32.mrf.mxu0  ;;  %v2382_v62 = vld [vmem:[%s10914_s12 + $0x49] sm:$0xff] }
  0xe2   : > { %v11329_v45 = vpop.f32.mrf.mxu1  ;;  %9967 = vmatmul.msk.f32.gmra.mxu2 %vm543_vm1, %v1163_v1 }
  0xe3   : > { %10017 = vmatmul.msk.f32.gmra.mxu3 %vm543_vm1, %v10974_v28 }
  0xe4   : > { %10067 = vmatmul.msk.f32.gmra.mxu0 %vm543_vm1, %v10971_v27 }
  0xe5   : > { %10117 = vmatmul.msk.f32.gmra.mxu1 %vm543_vm1, %v2381_v26  ;;  %v811_v23 = vpop.f32.mrf.mxu2 }
  0xe6   : > { %v1119_v24 = vpop.f32.mrf.mxu3 }
  0xe7   : > { %v11338_v14 = vadd.f32 %v1119_v24, %v811_v23 }
  0xe9   : > { %17417 = vst [vmem:[#allocation19_spill] sm:$0xff] %v11338_v14  ;;  %v11340_v19 = vpop.f32.mrf.mxu0  ;;  %v2383_v14 = vld [vmem:[%s10914_s12 + $0x51] sm:$0xff] }
  0xea   : > { %v11342_v20 = vpop.f32.mrf.mxu1  ;;  %9968 = vmatmul.msk.f32.gmra.mxu2 %vm543_vm1, %v2379_v15 }
  0xeb   : > { %10018 = vmatmul.msk.f32.gmra.mxu3 %vm543_vm1, %v10988_v32 }
  0xec   : > { %10068 = vmatmul.msk.f32.gmra.mxu0 %vm543_vm1, %v10985_v31 }
  0xed   : > { %10118 = vmatmul.msk.f32.gmra.mxu1 %vm543_vm1, %v2382_v62  ;;  %v814_v27 = vpop.f32.mrf.mxu2 }
  0xee   : > { %v1122_v28 = vpop.f32.mrf.mxu3 }
  0xef   : > { %v11351_v1 = vadd.f32 %v1122_v28, %v814_v27 }
  0xf1   : > { %17418 = vst [vmem:[#allocation20_spill] sm:$0xff] %v11351_v1  ;;  %v11353_v23 = vpop.f32.mrf.mxu0  ;;  %v2384_v1 = vld [vmem:[%s10914_s12 + $0x59] sm:$0xff] }
  0xf2   : > { %v11355_v24 = vpop.f32.mrf.mxu1  ;;  %9969 = vmatmul.msk.f32.gmra.mxu2 %vm543_vm1, %v2380_v13 }
  0xf3   : > { %10019 = vmatmul.msk.f32.gmra.mxu3 %vm543_vm1, %v11002_v36 }
  0xf4   : > { %10069 = vmatmul.msk.f32.gmra.mxu0 %vm543_vm1, %v10999_v35 }
  0xf5   : > { %10119 = vmatmul.msk.f32.gmra.mxu1 %vm543_vm1, %v2383_v14  ;;  %v817_v31 = vpop.f32.mrf.mxu2 }
  0xf6   : > { %v1125_v32 = vpop.f32.mrf.mxu3 }
  0xf7   : > { %v11364_v15 = vadd.f32 %v1125_v32, %v817_v31 }
  0xf9   : > { %17419 = vst [vmem:[#allocation21_spill] sm:$0xff] %v11364_v15  ;;  %v11366_v27 = vpop.f32.mrf.mxu0  ;;  %v2385_v15 = vld [vmem:[%s10914_s12 + $0x61] sm:$0xff] }
  0xfa   : > { %v11368_v28 = vpop.f32.mrf.mxu1  ;;  %9970 = vmatmul.msk.f32.gmra.mxu2 %vm543_vm1, %v2381_v26 }
  0xfb   : > { %10020 = vmatmul.msk.f32.gmra.mxu3 %vm543_vm1, %v11016_v40 }
  0xfc   : > { %10070 = vmatmul.msk.f32.gmra.mxu0 %vm543_vm1, %v11013_v39 }
  0xfd   : > { %10120 = vmatmul.msk.f32.gmra.mxu1 %vm543_vm1, %v2384_v1  ;;  %v820_v35 = vpop.f32.mrf.mxu2 }
  0xfe   : > { %v1128_v36 = vpop.f32.mrf.mxu3 }
  0xff   : > { %v11377_v13 = vadd.f32 %v1128_v36, %v820_v35 }
 0x101   : > { %17420 = vst [vmem:[#allocation22_spill] sm:$0xff] %v11377_v13  ;;  %v11379_v31 = vpop.f32.mrf.mxu0  ;;  %v2386_v13 = vld [vmem:[%s10914_s12 + $0x69] sm:$0xff] }
 0x102   : > { %v11381_v32 = vpop.f32.mrf.mxu1  ;;  %9971 = vmatmul.msk.f32.gmra.mxu2 %vm543_vm1, %v2382_v62 }
 0x103   : > { %10021 = vmatmul.msk.f32.gmra.mxu3 %vm543_vm1, %v11030_v44 }
 0x104   : > { %10071 = vmatmul.msk.f32.gmra.mxu0 %vm543_vm1, %v11027_v43 }
 0x105   : > { %10121 = vmatmul.msk.f32.gmra.mxu1 %vm543_vm1, %v2385_v15  ;;  %v823_v39 = vpop.f32.mrf.mxu2 }
 0x106   : > { %v1131_v40 = vpop.f32.mrf.mxu3 }
 0x107   : > { %v11390_v26 = vadd.f32 %v1131_v40, %v823_v39 }
 0x109   : > { %17421 = vst [vmem:[#allocation23_spill] sm:$0xff] %v11390_v26  ;;  %v11392_v35 = vpop.f32.mrf.mxu0  ;;  %v2387_v26 = vld [vmem:[%s10914_s12 + $0x71] sm:$0xff] }
 0x10a   : > { %v11394_v36 = vpop.f32.mrf.mxu1  ;;  %9972 = vmatmul.msk.f32.gmra.mxu2 %vm543_vm1, %v2383_v14 }
 0x10b   : > { %10022 = vmatmul.msk.f32.gmra.mxu3 %vm543_vm1, %v11044_v48 }
 0x10c   : > { %10072 = vmatmul.msk.f32.gmra.mxu0 %vm543_vm1, %v11041_v47 }
 0x10d   : > { %10122 = vmatmul.msk.f32.gmra.mxu1 %vm543_vm1, %v2386_v13  ;;  %v826_v43 = vpop.f32.mrf.mxu2 }
 0x10e   : > { %v1134_v44 = vpop.f32.mrf.mxu3 }
 0x10f   : > { %v11403_v62 = vadd.f32 %v1134_v44, %v826_v43 }
 0x111   : > { %17422 = vst [vmem:[#allocation24_spill] sm:$0xff] %v11403_v62  ;;  %v11405_v39 = vpop.f32.mrf.mxu0  ;;  %v2388_v62 = vld [vmem:[%s10914_s12 + $0x79] sm:$0xff] }
 0x112   : > { %v11407_v40 = vpop.f32.mrf.mxu1  ;;  %9973 = vmatmul.msk.f32.gmra.mxu2 %vm543_vm1, %v2384_v1 }
 0x113   : > { %10023 = vmatmul.msk.f32.gmra.mxu3 %vm543_vm1, %v11058_v52 }
 0x114   : > { %10073 = vmatmul.msk.f32.gmra.mxu0 %vm543_vm1, %v11055_v51 }
 0x115   : > { %10123 = vmatmul.msk.f32.gmra.mxu1 %vm543_vm1, %v2387_v26  ;;  %v829_v47 = vpop.f32.mrf.mxu2 }
 0x116   : > { %v1137_v48 = vpop.f32.mrf.mxu3 }
 0x117   : > { %v11416_v14 = vadd.f32 %v1137_v48, %v829_v47 }
 0x119   : > { %17423 = vst [vmem:[#allocation25_spill] sm:$0xff] %v11416_v14  ;;  %v11418_v43 = vpop.f32.mrf.mxu0  ;;  %v2389_v14 = vld [vmem:[%s10914_s12 + $0x81] sm:$0xff] }
 0x11a   : > { %v11420_v44 = vpop.f32.mrf.mxu1  ;;  %9974 = vmatmul.msk.f32.gmra.mxu2 %vm543_vm1, %v2385_v15 }
 0x11b   : > { %10024 = vmatmul.msk.f32.gmra.mxu3 %vm543_vm1, %v11072_v56 }
 0x11c   : > { %10074 = vmatmul.msk.f32.gmra.mxu0 %vm543_vm1, %v11069_v55 }
 0x11d   : > { %10124 = vmatmul.msk.f32.gmra.mxu1 %vm543_vm1, %v2388_v62  ;;  %v832_v51 = vpop.f32.mrf.mxu2 }
 0x11e   : > { %v1140_v52 = vpop.f32.mrf.mxu3 }
 0x11f   : > { %v11429_v1 = vadd.f32 %v1140_v52, %v832_v51 }
 0x121   : > { %17424 = vst [vmem:[#allocation26_spill] sm:$0xff] %v11429_v1  ;;  %v11431_v47 = vpop.f32.mrf.mxu0  ;;  %v2390_v1 = vld [vmem:[%s10914_s12 + $0x89] sm:$0xff] }
 0x122   : > { %v11433_v48 = vpop.f32.mrf.mxu1  ;;  %9975 = vmatmul.msk.f32.gmra.mxu2 %vm543_vm1, %v2386_v13 }
 0x123   : > { %10025 = vmatmul.msk.f32.gmra.mxu3 %vm543_vm1, %v11086_v60 }
 0x124   : > { %10075 = vmatmul.msk.f32.gmra.mxu0 %vm543_vm1, %v11083_v59 }
 0x125   : > { %10125 = vmatmul.msk.f32.gmra.mxu1 %vm543_vm1, %v2389_v14  ;;  %v835_v55 = vpop.f32.mrf.mxu2 }
 0x126   : > { %v1143_v56 = vpop.f32.mrf.mxu3 }
 0x127   : > { %v11442_v15 = vadd.f32 %v1143_v56, %v835_v55 }
 0x129   : > { %17425 = vst [vmem:[#allocation27_spill] sm:$0xff] %v11442_v15  ;;  %v11444_v51 = vpop.f32.mrf.mxu0  ;;  %v2391_v15 = vld [vmem:[%s10914_s12 + $0x91] sm:$0xff] }
 0x12a   : > { %v11446_v52 = vpop.f32.mrf.mxu1  ;;  %9976 = vmatmul.msk.f32.gmra.mxu2 %vm543_vm1, %v2387_v26 }
 0x12b   : > { %10026 = vmatmul.msk.f32.gmra.mxu3 %vm543_vm1, %v11100_v0 }
 0x12c   : > { %10076 = vmatmul.msk.f32.gmra.mxu0 %vm543_vm1, %v11097_v63 }
 0x12d   : > { %10126 = vmatmul.msk.f32.gmra.mxu1 %vm543_vm1, %v2390_v1  ;;  %v838_v59 = vpop.f32.mrf.mxu2 }
 0x12e   : > { %v1146_v60 = vpop.f32.mrf.mxu3 }
 0x12f   : > { %v11455_v13 = vadd.f32 %v1146_v60, %v838_v59 }
 0x131   : > { %17426 = vst [vmem:[#allocation28_spill] sm:$0xff] %v11455_v13  ;;  %v11457_v55 = vpop.f32.mrf.mxu0  ;;  %v2392_v13 = vld [vmem:[%s10914_s12 + $0x99] sm:$0xff] }
 0x132   : > { %v11459_v56 = vpop.f32.mrf.mxu1  ;;  %9977 = vmatmul.msk.f32.gmra.mxu2 %vm543_vm1, %v2388_v62 }
 0x133   : > { %10027 = vmatmul.msk.f32.gmra.mxu3 %vm543_vm1, %v11114_v4 }
 0x134   : > { %10077 = vmatmul.msk.f32.gmra.mxu0 %vm543_vm1, %v11111_v3 }
 0x135   : > { %10127 = vmatmul.msk.f32.gmra.mxu1 %vm543_vm1, %v2391_v15  ;;  %v841_v63 = vpop.f32.mrf.mxu2 }
 0x136   : > { %v1149_v0 = vpop.f32.mrf.mxu3 }
 0x137   : > { %v11468_v26 = vadd.f32 %v1149_v0, %v841_v63 }
 0x139   : > { %17427 = vst [vmem:[#allocation29_spill] sm:$0xff] %v11468_v26  ;;  %v11470_v59 = vpop.f32.mrf.mxu0  ;;  %v2393_v26 = vld [vmem:[%s10914_s12 + $0xa1] sm:$0xff] }
 0x13a   : > { %v11472_v60 = vpop.f32.mrf.mxu1  ;;  %9978 = vmatmul.msk.f32.gmra.mxu2 %vm543_vm1, %v2389_v14 }
 0x13b   : > { %10028 = vmatmul.msk.f32.gmra.mxu3 %vm543_vm1, %v11132_v10 }
 0x13c   : > { %10078 = vmatmul.msk.f32.gmra.mxu0 %vm543_vm1, %v11129_v9 }
 0x13d   : > { %10128 = vmatmul.msk.f32.gmra.mxu1 %vm543_vm1, %v2392_v13  ;;  %v844_v3 = vpop.f32.mrf.mxu2 }
 0x13e   : > { %v1152_v4 = vpop.f32.mrf.mxu3 }
 0x13f   : > { %v11481_v62 = vadd.f32 %v1152_v4, %v844_v3 }
 0x141   : > { %17428 = vst [vmem:[#allocation30_spill] sm:$0xff] %v11481_v62  ;;  %v11483_v63 = vpop.f32.mrf.mxu0  ;;  %v2394_v62 = vld [vmem:[%s10914_s12 + $0xa9] sm:$0xff] }
 0x142   : > { %v11485_v0 = vpop.f32.mrf.mxu1  ;;  %9979 = vmatmul.msk.f32.gmra.mxu2 %vm543_vm1, %v2390_v1 }
 0x143   : > { %10029 = vmatmul.msk.f32.gmra.mxu3 %vm543_vm1, %v11152_v21 }
 0x144   : > { %10079 = vmatmul.msk.f32.gmra.mxu0 %vm543_vm1, %v11149_v18 }
 0x145   : > { %10129 = vmatmul.msk.f32.gmra.mxu1 %vm543_vm1, %v2393_v26  ;;  %v847_v9 = vpop.f32.mrf.mxu2 }
 0x146   : > { %v1155_v10 = vpop.f32.mrf.mxu3 }
 0x147   : > { %v11494_v14 = vadd.f32 %v1155_v10, %v847_v9 }
 0x149   : > { %17429 = vst [vmem:[#allocation31_spill] sm:$0xff] %v11494_v14  ;;  %v11496_v3 = vpop.f32.mrf.mxu0  ;;  %v2395_v14 = vld [vmem:[%s10914_s12 + $0xb1] sm:$0xff] }
 0x14a   : > { %17430 = vst [vmem:[#allocation32_spill] sm:$0xff] %v11496_v3  ;;  %v11498_v4 = vpop.f32.mrf.mxu1  ;;  %9980 = vmatmul.msk.f32.gmra.mxu2 %vm543_vm1, %v2391_v15  ;;  %v2396_v3 = vld [vmem:[%s10914_s12 + $0xb9] sm:$0xff] }
 0x14b   : > { %17431 = vst [vmem:[#allocation33_spill] sm:$0xff] %v11498_v4  ;;  %10030 = vmatmul.msk.f32.gmra.mxu3 %vm543_vm1, %v11172_v38 }
 0x14c   : > { %10080 = vmatmul.msk.f32.gmra.mxu0 %vm543_vm1, %v11169_v37  ;;  %v1018_v37 = vadd.f32 %v11126_v8, %v11124_v7  ;;  %v1021_v7 = vadd.f32 %v11146_v17, %v11144_v16  ;;  %v1024_v16 = vadd.f32 %v11166_v34, %v11164_v33  ;;  %v1027_v33 = vadd.f32 %v11186_v53, %v11184_v50 }
 0x14d   : > { %10130 = vmatmul.msk.f32.gmra.mxu1 %vm543_vm1, %v2394_v62  ;;  %v850_v18 = vpop.f32.mrf.mxu2  ;;  %v1030_v50 = vadd.f32 %v11206_v6, %v11204_v5  ;;  %v1033_v5 = vadd.f32 %v11234_v46, %v11232_v42  ;;  %v1036_v42 = vadd.f32 %v11262_v41, %v11260_v30  ;;  %v17433_v30 = vld [vmem:[#allocation10_spill] sm:$0xff]  ;;  %v17434_v41 = vld [vmem:[#allocation11_spill] sm:$0xff] }
 0x14e   : > { %v1158_v21 = vpop.f32.mrf.mxu3 }
 0x14f   : > { %v11507_v1 = vadd.f32 %v1158_v21, %v850_v18 }
 0x151   : > { %17432 = vst [vmem:[#allocation34_spill] sm:$0xff] %v11507_v1  ;;  %v2187_v9 = vpop.f32.mrf.mxu0 }
 0x152   : > { %v2593_v10 = vpop.f32.mrf.mxu1  ;;  %9981 = vmatmul.msk.f32.gmra.mxu2 %vm543_vm1, %v2392_v13 }
 0x153   : > { %10031 = vmatmul.msk.f32.gmra.mxu3 %vm543_vm1, %v11192_v57 }
 0x154   : > { %10081 = vmatmul.msk.f32.gmra.mxu0 %vm543_vm1, %v11189_v54 }
 0x155   : > { %10131 = vmatmul.msk.f32.gmra.mxu1 %vm543_vm1, %v2395_v14  ;;  %v1375_v38 = vpop.f32.mrf.mxu2 }
 0x156   : > { %v1781_v15 = vpop.f32.mrf.mxu3  ;;  %v1519_v18 = vadd.f32 %v1375_v38, %v1018_v37 }
 0x158   : > { %v1925_v21 = vadd.f32 %v1781_v15, %v1519_v18  ;;  %v2397_v15 = vld [vmem:[%s10914_s12 + $0xc1] sm:$0xff] }
 0x159   : > { %v2190_v1 = vpop.f32.mrf.mxu0 }
 0x15a   : > { %v2596_v4 = vpop.f32.mrf.mxu1  ;;  %v2331_v13 = vadd.f32 %v2187_v9, %v1925_v21  ;;  %9982 = vmatmul.msk.f32.gmra.mxu2 %vm543_vm1, %v2393_v26 }
 0x15b   : > { %10032 = vmatmul.msk.f32.gmra.mxu3 %vm543_vm1, %v11212_v12 }
 0x15c   : > { %10082 = vmatmul.msk.f32.gmra.mxu0 %vm543_vm1, %v11209_v11  ;;  %v11527_v8 = vadd.f32 %v2593_v10, %v2331_v13  ;;  %v2398_v13 = vld [vmem:[%s10914_s12 + $0xc9] sm:$0xff] }
 0x15d   : > { %10132 = vmatmul.msk.f32.gmra.mxu1 %vm543_vm1, %v2396_v3  ;;  %v1378_v54 = vpop.f32.mrf.mxu2 }
 0x15e   : > { %v1784_v57 = vpop.f32.mrf.mxu3  ;;  %v1520_v37 = vadd.f32 %v1378_v54, %v1021_v7 }
 0x160   : > { %v1926_v38 = vadd.f32 %v1784_v57, %v1520_v37  ;;  %v2399_v37 = vld [vmem:[%s10914_s12 + $0xd1] sm:$0xff] }
 0x161   : > { %v2193_v9 = vpop.f32.mrf.mxu0 }
 0x162   : > { %v2599_v26 = vpop.f32.mrf.mxu1  ;;  %v2332_v18 = vadd.f32 %v2190_v1, %v1926_v38  ;;  %9983 = vmatmul.msk.f32.gmra.mxu2 %vm543_vm1, %v2394_v62 }
 0x163   : > { %10033 = vmatmul.msk.f32.gmra.mxu3 %vm543_vm1, %v11240_v58 }
 0x164   : > { %10083 = vmatmul.msk.f32.gmra.mxu0 %vm543_vm1, %v11237_v49  ;;  %v11538_v17 = vadd.f32 %v2596_v4, %v2332_v18 }
 0x165   : > { %10133 = vmatmul.msk.f32.gmra.mxu1 %vm543_vm1, %v2397_v15  ;;  %v1381_v11 = vpop.f32.mrf.mxu2 }
 0x166   : > { %v1787_v12 = vpop.f32.mrf.mxu3  ;;  %v1521_v10 = vadd.f32 %v1381_v11, %v1024_v16  ;;  %v1994_v11 = vld [vmem:[%s10914_s12 + $0xd8] sm:$0xff] }
 0x168   : > { %v1927_v21 = vadd.f32 %v1787_v12, %v1521_v10 }
 0x169   : > { %v2196_v1 = vpop.f32.mrf.mxu0 }
 0x16a   : > { %v2602_v62 = vpop.f32.mrf.mxu1  ;;  %v2333_v7 = vadd.f32 %v2193_v9, %v1927_v21  ;;  %9984 = vmatmul.msk.f32.gmra.mxu2 %vm543_vm1, %v2395_v14 }
 0x16b   : > { %10034 = vmatmul.msk.f32.gmra.mxu3 %vm543_vm1, %v11268_v29 }
 0x16c   : > { %10084 = vmatmul.msk.f32.gmra.mxu0 %vm543_vm1, %v11265_v61  ;;  %v11549_v34 = vadd.f32 %v2599_v26, %v2333_v7  ;;  %v1588_v26 = vld [vmem:[%s10914_s12 + $0xd7] sm:$0xff] }
 0x16d   : > { %10134 = vmatmul.msk.f32.gmra.mxu1 %vm543_vm1, %v2398_v13  ;;  %v1384_v49 = vpop.f32.mrf.mxu2 }
 0x16e   : > { %v1790_v58 = vpop.f32.mrf.mxu3  ;;  %v1522_v4 = vadd.f32 %v1384_v49, %v1027_v33  ;;  %v2401_v49 = vld [vmem:[%s10914_s12 + $0xe1] sm:$0xff] }
 0x170   : > { %v1928_v54 = vadd.f32 %v1790_v58, %v1522_v4 }
 0x171   : > { %v2199_v57 = vpop.f32.mrf.mxu0 }
 0x172   : > { %v2605_v14 = vpop.f32.mrf.mxu1  ;;  %v2334_v29 = vadd.f32 %v2196_v1, %v1928_v54  ;;  %9985 = vmatmul.msk.f32.gmra.mxu2 %vm543_vm1, %v2396_v3  ;;  %v1589_v1 = vld [vmem:[%s10914_s12 + $0xdf] sm:$0xff] }
 0x173   : > { %10035 = vmatmul.msk.f32.gmra.mxu3 %vm543_vm1, %v11288_v25  ;;  %v2400_v25 = vld [vmem:[%s10914_s12 + $0xd9] sm:$0xff] }
 0x174   : > { %10085 = vmatmul.msk.f32.gmra.mxu0 %vm543_vm1, %v11285_v22  ;;  %v11560_v53 = vadd.f32 %v2602_v62, %v2334_v29 }
 0x175   : > { %10135 = vmatmul.msk.f32.gmra.mxu1 %vm543_vm1, %v2399_v37  ;;  %v1387_v61 = vpop.f32.mrf.mxu2 }
 0x176   : > { %v1793_v38 = vpop.f32.mrf.mxu3  ;;  %v1523_v9 = vadd.f32 %v1387_v61, %v1030_v50 }
 0x178   : > { %v1929_v18 = vadd.f32 %v1793_v38, %v1523_v9  ;;  %v2402_v38 = vld [vmem:[%s10914_s12 + $0xe9] sm:$0xff] }
 0x179   : > { %v2202_v3 = vpop.f32.mrf.mxu0 }
 0x17a   : > { %v2608_v16 = vpop.f32.mrf.mxu1  ;;  %v2335_v22 = vadd.f32 %v2199_v57, %v1929_v18  ;;  %9986 = vmatmul.msk.f32.gmra.mxu2 %vm543_vm1, %v2397_v15  ;;  %v1995_v15 = vld [vmem:[%s10914_s12 + $0xe0] sm:$0xff] }
 0x17b   : > { %10036 = vmatmul.msk.f32.gmra.mxu3 %vm543_vm1, %v1588_v26  ;;  %v1039_v26 = vadd.f32 %v17434_v41, %v17433_v30 }
 0x17c   : > { %10086 = vmatmul.msk.f32.gmra.mxu0 %vm543_vm1, %v1994_v11  ;;  %v11571_v6 = vadd.f32 %v2605_v14, %v2335_v22  ;;  %v1590_v14 = vld [vmem:[%s10914_s12 + $0xe7] sm:$0xff]  ;;  %v1591_v22 = vld [vmem:[%s10914_s12 + $0xef] sm:$0xff] }
 0x17d   : > { %10136 = vmatmul.msk.f32.gmra.mxu1 %vm543_vm1, %v2400_v25  ;;  %v1390_v12 = vpop.f32.mrf.mxu2 }
 0x17e   : > { %v1796_v10 = vpop.f32.mrf.mxu3  ;;  %v1524_v21 = vadd.f32 %v1390_v12, %v1033_v5 }
 0x180   : > { %v1930_v62 = vadd.f32 %v1796_v10, %v1524_v21  ;;  %v2403_v21 = vld [vmem:[%s10914_s12 + $0xf1] sm:$0xff] }
 0x181   : > { %v2205_v7 = vpop.f32.mrf.mxu0 }
 0x182   : > { %v2611_v33 = vpop.f32.mrf.mxu1  ;;  %v2336_v58 = vadd.f32 %v2202_v3, %v1930_v62  ;;  %9987 = vmatmul.msk.f32.gmra.mxu2 %vm543_vm1, %v2398_v13  ;;  %v1996_v13 = vld [vmem:[%s10914_s12 + $0xe8] sm:$0xff]  ;;  %v17435_v62 = vld [vmem:[#allocation13_spill] sm:$0xff] }
 0x183   : > { %10037 = vmatmul.msk.f32.gmra.mxu3 %vm543_vm1, %v1589_v1 }
 0x184   : > { %10087 = vmatmul.msk.f32.gmra.mxu0 %vm543_vm1, %v1995_v15  ;;  %v11582_v46 = vadd.f32 %v2608_v16, %v2336_v58 }
 0x185   : > { %10137 = vmatmul.msk.f32.gmra.mxu1 %vm543_vm1, %v2401_v49  ;;  %v1393_v4 = vpop.f32.mrf.mxu2 }
 0x186   : > { %v1799_v54 = vpop.f32.mrf.mxu3  ;;  %v1525_v57 = vadd.f32 %v1393_v4, %v1036_v42 }
 0x188   : > { %v1931_v29 = vadd.f32 %v1799_v54, %v1525_v57  ;;  %v1592_v54 = vld [vmem:[%s10914_s12 + $0xf7] sm:$0xff] }
 0x189   : > { %v2208_v50 = vpop.f32.mrf.mxu0 }
 0x18a   : > { %v2614_v61 = vpop.f32.mrf.mxu1  ;;  %v2337_v9 = vadd.f32 %v2205_v7, %v1931_v29  ;;  %9988 = vmatmul.msk.f32.gmra.mxu2 %vm543_vm1, %v2399_v37  ;;  %v1997_v37 = vld [vmem:[%s10914_s12 + $0xf0] sm:$0xff]  ;;  %v17436_v7 = vld [vmem:[#allocation14_spill] sm:$0xff] }
 0x18b   : > { %10038 = vmatmul.msk.f32.gmra.mxu3 %vm543_vm1, %v1590_v14 }
 0x18c   : > { %10088 = vmatmul.msk.f32.gmra.mxu0 %vm543_vm1, %v1996_v13  ;;  %v11593_v18 = vadd.f32 %v2611_v33, %v2337_v9  ;;  %v1042_v33 = vadd.f32 %v17436_v7, %v17435_v62  ;;  %v17438_v9 = vld [vmem:[#allocation17_spill] sm:$0xff] }
 0x18d   : > { %10138 = vmatmul.msk.f32.gmra.mxu1 %vm543_vm1, %v2402_v38  ;;  %v1396_v3 = vpop.f32.mrf.mxu2 }
 0x18e   : > { %v1802_v16 = vpop.f32.mrf.mxu3  ;;  %v1526_v11 = vadd.f32 %v1396_v3, %v1039_v26 }
 0x190   : > { %v1932_v5 = vadd.f32 %v1802_v16, %v1526_v11  ;;  %v1593_v11 = vld [vmem:[%s10914_s12 + $0xff] sm:$0xff] }
 0x191   : > { %v2211_v12 = vpop.f32.mrf.mxu0 }
 0x192   : > { %v2617_v10 = vpop.f32.mrf.mxu1  ;;  %v2338_v1 = vadd.f32 %v2208_v50, %v1932_v5  ;;  %9989 = vmatmul.msk.f32.gmra.mxu2 %vm543_vm1, %v2400_v25  ;;  %v1998_v25 = vld [vmem:[%s10914_s12 + $0xf8] sm:$0xff] }
 0x193   : > { %10039 = vmatmul.msk.f32.gmra.mxu3 %vm543_vm1, %v1591_v22  ;;  %v2404_v50 = vld [vmem:[%s10914_s12 + $0xf9] sm:$0xff] }
 0x194   : > { %10089 = vmatmul.msk.f32.gmra.mxu0 %vm543_vm1, %v1997_v37  ;;  %v11604_v15 = vadd.f32 %v2614_v61, %v2338_v1  ;;  %v17437_v61 = vld [vmem:[#allocation16_spill] sm:$0xff] }
 0x195   : > { %10139 = vmatmul.msk.f32.gmra.mxu1 %vm543_vm1, %v2403_v21  ;;  %v1399_v58 = vpop.f32.mrf.mxu2  ;;  %v1045_v30 = vadd.f32 %v17438_v9, %v17437_v61  ;;  %v2405_v37 = vld [vmem:[%s10914_s12 + $0x101] sm:$0xff]  ;;  %v1595_v9 = vld [vmem:[%s10914_s12 + $0x10f] sm:$0xff] }
 0x196   : > { %v1805_v42 = vpop.f32.mrf.mxu3  ;;  %v1527_v4 = vadd.f32 %v1399_v58, %v1042_v33 }
 0x198   : > { %v1933_v57 = vadd.f32 %v1805_v42, %v1527_v4  ;;  %v1594_v42 = vld [vmem:[%s10914_s12 + $0x107] sm:$0xff] }
 0x199   : > { %v2214_v14 = vpop.f32.mrf.mxu0 }
 0x19a   : > { %v2620_v29 = vpop.f32.mrf.mxu1  ;;  %v2339_v13 = vadd.f32 %v2211_v12, %v1933_v57  ;;  %9990 = vmatmul.msk.f32.gmra.mxu2 %vm543_vm1, %v2401_v49  ;;  %v1999_v49 = vld [vmem:[%s10914_s12 + $0x100] sm:$0xff] }
 0x19b   : > { %10040 = vmatmul.msk.f32.gmra.mxu3 %vm543_vm1, %v1592_v54 }
 0x19c   : > { %10090 = vmatmul.msk.f32.gmra.mxu0 %vm543_vm1, %v1998_v25  ;;  %v11615_v41 = vadd.f32 %v2617_v10, %v2339_v13  ;;  %v1048_v10 = vadd.f32 %v11329_v45, %v11327_v2  ;;  %v1051_v45 = vadd.f32 %v11342_v20, %v11340_v19  ;;  %v1054_v19 = vadd.f32 %v11355_v24, %v11353_v23 }
 0x19d   : > { %10140 = vmatmul.msk.f32.gmra.mxu1 %vm543_vm1, %v2404_v50  ;;  %v1402_v26 = vpop.f32.mrf.mxu2  ;;  %v1057_v23 = vadd.f32 %v11368_v28, %v11366_v27  ;;  %v1060_v27 = vadd.f32 %v11381_v32, %v11379_v31  ;;  %v252_v31 = vld [vmem:[%s17067_s5] sm:$0xff]  ;;  %v1063_v32 = vadd.f32 %v11394_v36, %v11392_v35  ;;  %v1599_v36 = vld [vmem:[%s10914_s12 + $0x12f] sm:$0xff] }
 0x19e   : > { %v1808_v3 = vpop.f32.mrf.mxu3  ;;  %v1528_v16 = vadd.f32 %v1402_v26, %v1045_v30  ;;  %vm300_vm2 = vcmp.ge.s32.totalorder %v252_v31, 1  ;;  %vm348_vm3 = vcmp.le.s32.totalorder %v252_v31, 16 }
 0x19f   : > { %vm396_vm4 = vmand %vm300_vm2, %vm348_vm3 }
 0x1a0   : > { %v1934_v22 = vadd.f32 %v1808_v3, %v1528_v16  ;;  %v2407_v16 = vld [vmem:[%s10914_s12 + $0x111] sm:$0xff] }
 0x1a1   : > { %v2217_v5 = vpop.f32.mrf.mxu0 }
 0x1a2   : > { %v2623_v12 = vpop.f32.mrf.mxu1  ;;  %v2340_v1 = vadd.f32 %v2214_v14, %v1934_v22  ;;  %9991 = vmatmul.msk.f32.gmra.mxu2 %vm543_vm1, %v2402_v38  ;;  %v2000_v38 = vld [vmem:[%s10914_s12 + $0x108] sm:$0xff] }
 0x1a3   : > { %10041 = vmatmul.msk.f32.gmra.mxu3 %vm543_vm1, %v1593_v11  ;;  %v2406_v14 = vld [vmem:[%s10914_s12 + $0x109] sm:$0xff] }
 0x1a4   : > { %10091 = vmatmul.msk.f32.gmra.mxu0 %vm543_vm1, %v1999_v49  ;;  %v11626_v62 = vadd.f32 %v2620_v29, %v2340_v1  ;;  %v1596_v49 = vld [vmem:[%s10914_s12 + $0x117] sm:$0xff] }
 0x1a5   : > { %10141 = vmatmul.msk.f32.gmra.mxu1 %vm543_vm1, %v2405_v37  ;;  %v1405_v7 = vpop.f32.mrf.mxu2 }
 0x1a6   : > { %v1811_v33 = vpop.f32.mrf.mxu3  ;;  %v1529_v58 = vadd.f32 %v1405_v7, %v1048_v10 }
 0x1a8   : > { %v1935_v4 = vadd.f32 %v1811_v33, %v1529_v58  ;;  %v11653_v33 = vld [vmem:[%s10914_s12 + $0x119] sm:$0xff] }
 0x1a9   : > { %v2220_v54 = vpop.f32.mrf.mxu0 }
 0x1aa   : > { %v2626_v57 = vpop.f32.mrf.mxu1  ;;  %v2341_v25 = vadd.f32 %v2217_v5, %v1935_v4  ;;  %9992 = vmatmul.msk.f32.gmra.mxu2 %vm543_vm1, %v2403_v21  ;;  %v2001_v21 = vld [vmem:[%s10914_s12 + $0x110] sm:$0xff] }
 0x1ab   : > { %10042 = vmatmul.msk.f32.gmra.mxu3 %vm543_vm1, %v1594_v42 }
 0x1ac   : > { %10092 = vmatmul.msk.f32.gmra.mxu0 %vm543_vm1, %v2000_v38  ;;  %v11637_v2 = vadd.f32 %v2623_v12, %v2341_v25 }
 0x1ad   : > { %10142 = vmatmul.msk.f32.gmra.mxu1 %vm543_vm1, %v2406_v14  ;;  %v1408_v29 = vpop.f32.mrf.mxu2 }
 0x1ae   : > { %v1814_v13 = vpop.f32.mrf.mxu3  ;;  %v1530_v61 = vadd.f32 %v1408_v29, %v1051_v45  ;;  %v2003_v45 = vld [vmem:[%s10914_s12 + $0x120] sm:$0xff] }
 0x1af   : > { %v11667_v29 = vld [vmem:[%s10914_s12 + $0x121] sm:$0xff] }
 0x1b0   : > { %v1936_v30 = vadd.f32 %v1814_v13, %v1530_v61 }
 0x1b1   : > { %v2223_v26 = vpop.f32.mrf.mxu0 }
 0x1b2   : > { %v2629_v3 = vpop.f32.mrf.mxu1  ;;  %v2342_v11 = vadd.f32 %v2220_v54, %v1936_v30  ;;  %9993 = vmatmul.msk.f32.gmra.mxu2 %vm543_vm1, %v2404_v50  ;;  %v2002_v50 = vld [vmem:[%s10914_s12 + $0x118] sm:$0xff] }
 0x1b3   : > { %10043 = vmatmul.msk.f32.gmra.mxu3 %vm543_vm1, %v1595_v9 }
 0x1b4   : > { %10093 = vmatmul.msk.f32.gmra.mxu0 %vm543_vm1, %v2001_v21  ;;  %v11648_v20 = vadd.f32 %v2626_v57, %v2342_v11  ;;  %v1597_v57 = vld [vmem:[%s10914_s12 + $0x11f] sm:$0xff] }
 0x1b5   : > { %10143 = vmatmul.msk.f32.gmra.mxu1 %vm543_vm1, %v2407_v16  ;;  %v1411_v22 = vpop.f32.mrf.mxu2 }
 0x1b6   : > { %v1817_v5 = vpop.f32.mrf.mxu3  ;;  %v1531_v12 = vadd.f32 %v1411_v22, %v1054_v19  ;;  %v11681_v19 = vld [vmem:[%s10914_s12 + $0x129] sm:$0xff] }
 0x1b8   : > { %v1937_v1 = vadd.f32 %v1817_v5, %v1531_v12 }
 0x1b9   : > { %v2226_v10 = vpop.f32.mrf.mxu0 }
 0x1ba   : > { %v2632_v7 = vpop.f32.mrf.mxu1  ;;  %v2343_v58 = vadd.f32 %v2223_v26, %v1937_v1  ;;  %9994 = vmatmul.msk.f32.gmra.mxu2 %vm543_vm1, %v2405_v37  ;;  %v1598_v26 = vld [vmem:[%s10914_s12 + $0x127] sm:$0xff]  ;;  %v17100_v1 = vmov 0  }
 0x1bb   : > { %10044 = vmatmul.msk.f32.gmra.mxu3 %vm543_vm1, %v1596_v49  ;;  %10778 = vset.pattern.permute.xlu0 %v17100_v1 }
 0x1bc   : > { %10094 = vmatmul.msk.f32.gmra.mxu0 %vm543_vm1, %v2002_v50  ;;  %v11662_v24 = vadd.f32 %v2629_v3, %v2343_v58  ;;  %10779 = vset.pattern.permute.xlu1 %v17100_v1 }
 0x1bd   : > { %10144 = vmatmul.msk.f32.gmra.mxu1 %vm543_vm1, %v11653_v33  ;;  %v1414_v42 = vpop.f32.mrf.mxu2  ;;  %10780 = vset.pattern.permute.xlu2 %v17100_v1 }
 0x1be   : > { %v1820_v4 = vpop.f32.mrf.mxu3  ;;  %v1532_v54 = vadd.f32 %v1414_v42, %v1057_v23  ;;  %v2005_v42 = vld [vmem:[%s10914_s12 + $0x130] sm:$0xff] }
 0x1c0   : > { %v1938_v38 = vadd.f32 %v1820_v4, %v1532_v54  ;;  %v11706_v4 = vld [vmem:[%s10914_s12 + $0x131] sm:$0xff] }
 0x1c1   : > { %v2229_v25 = vpop.f32.mrf.mxu0 }
 0x1c2   : > { %v2635_v37 = vpop.f32.mrf.mxu1  ;;  %v2344_v13 = vadd.f32 %v2226_v10, %v1938_v38  ;;  %9995 = vmatmul.msk.f32.gmra.mxu2 %vm543_vm1, %v2406_v14  ;;  %v2004_v14 = vld [vmem:[%s10914_s12 + $0x128] sm:$0xff]  ;;  %v4055_v10 = vsel %vm396_vm4, 1, %v17100_v1  ;;  %v1066_v38 = vadd.f32 %v11407_v40, %v11405_v39  ;;  %v1600_v39 = vld [vmem:[%s10914_s12 + $0x137] sm:$0xff] }
 0x1c3   : > { %10045 = vmatmul.msk.f32.gmra.mxu3 %vm543_vm1, %v1597_v57  ;;  %4104 = vperm.xlu0 %10778, %v4055_v10   ;;  %v253_v57 = vld [vmem:[%s17067_s5 + $0x8] sm:$0xff] }
 0x1c4   : > { %10095 = vmatmul.msk.f32.gmra.mxu0 %vm543_vm1, %v2003_v45  ;;  %v11676_v28 = vadd.f32 %v2632_v7, %v2344_v13  ;;  %vm301_vm8 = vcmp.ge.s32.totalorder %v253_v57, 1  ;;  %vm349_vm9 = vcmp.le.s32.totalorder %v253_v57, 16 }
 0x1c5   : > { %10145 = vmatmul.msk.f32.gmra.mxu1 %vm543_vm1, %v11667_v29  ;;  %v1417_v61 = vpop.f32.mrf.mxu2  ;;  %vm397_vm10 = vmand %vm301_vm8, %vm349_vm9 }
 0x1c6   : > { %v1823_v9 = vpop.f32.mrf.mxu3  ;;  %v1533_v30 = vadd.f32 %v1417_v61, %v1060_v27  ;;  %v4056_v13 = vsel %vm397_vm10, 1, %v17100_v1 }
 0x1c8   : > { %v1939_v3 = vadd.f32 %v1823_v9, %v1533_v30 }
 0x1c9   : > { %v2232_v21 = vpop.f32.mrf.mxu0 }
 0x1ca   : > { %v2638_v11 = vpop.f32.mrf.mxu1  ;;  %v2345_v22 = vadd.f32 %v2229_v25, %v1939_v3  ;;  %9996 = vmatmul.msk.f32.gmra.mxu2 %vm543_vm1, %v2407_v16  ;;  %v254_v16 = vld [vmem:[%s17067_s5 + $0x10] sm:$0xff]  ;;  %v11733_v3 = vld [vmem:[%s10914_s12 + $0x139] sm:$0xff] }
 0x1cb   : > { %10046 = vmatmul.msk.f32.gmra.mxu3 %vm543_vm1, %v1598_v26  ;;  %vm302_vm5 = vcmp.ge.s32.totalorder %v254_v16, 1  ;;  %vm350_vm6 = vcmp.le.s32.totalorder %v254_v16, 16  ;;  %4107 = vperm.xlu0 %10778, %v4056_v13   ;;  %v2006_v26 = vld [vmem:[%s10914_s12 + $0x138] sm:$0xff] }
 0x1cc   : > { %10096 = vmatmul.msk.f32.gmra.mxu0 %vm543_vm1, %v2004_v14  ;;  %v11693_v5 = vadd.f32 %v2635_v37, %v2345_v22  ;;  %vm398_vm7 = vmand %vm302_vm5, %vm350_vm6  ;;  %v1069_v14 = vadd.f32 %v11420_v44, %v11418_v43 }
 0x1cd   : > { %10146 = vmatmul.msk.f32.gmra.mxu1 %vm543_vm1, %v11681_v19  ;;  %v1420_v12 = vpop.f32.mrf.mxu2  ;;  %v4057_v7 = vsel %vm398_vm7, 1, %v17100_v1 }
 0x1ce   : > { %v1826_v49 = vpop.f32.mrf.mxu3  ;;  %v1534_v35 = vadd.f32 %v1420_v12, %v1063_v32  ;;  %4110 = vperm.xlu1 %10779, %v4057_v7   ;;  %v11756_v7 = vld [vmem:[%s10914_s12 + $0x141] sm:$0xff] }
 0x1d0   : > { %v1940_v50 = vadd.f32 %v1826_v49, %v1534_v35  ;;  %v1601_v49 = vld [vmem:[%s10914_s12 + $0x13f] sm:$0xff] }
 0x1d1   : > { %v2235_v58 = vpop.f32.mrf.mxu0 }
 0x1d2   : > { %v2641_v23 = vpop.f32.mrf.mxu1  ;;  %v2346_v54 = vadd.f32 %v2232_v21, %v1940_v50  ;;  %9997 = vmatmul.msk.f32.gmra.mxu2 %vm543_vm1, %v11653_v33  ;;  %v11724_v33 = vld [vmem:[%s17067_s5 + $0x18] sm:$0xff] }
 0x1d3   : > { %10047 = vmatmul.msk.f32.gmra.mxu3 %vm543_vm1, %v1599_v36  ;;  %vm303_vm11 = vcmp.ge.s32.totalorder %v11724_v33, 1  ;;  %vm351_vm12 = vcmp.le.s32.totalorder %v11724_v33, 16  ;;  %v2007_v36 = vld [vmem:[%s10914_s12 + $0x140] sm:$0xff] }
 0x1d4   : > { %10097 = vmatmul.msk.f32.gmra.mxu0 %vm543_vm1, %v2005_v42  ;;  %v11719_v25 = vadd.f32 %v2638_v11, %v2346_v54  ;;  %vm399_vm13 = vmand %vm303_vm11, %vm351_vm12  ;;  %v258_v11 = vld [vmem:[%s17067_s5 + $0x30] sm:$0xff] }
 0x1d5   : > { %10147 = vmatmul.msk.f32.gmra.mxu1 %vm543_vm1, %v11706_v4  ;;  %v1423_v37 = vpop.f32.mrf.mxu2  ;;  %v4058_v40 = vsel %vm399_vm13, 1, %v17100_v1  ;;  %vm306_vm14 = vcmp.ge.s32.totalorder %v258_v11, 1  ;;  %vm354_vm15 = vcmp.le.s32.totalorder %v258_v11, 16 }
 0x1d6   : > { %v1829_v45 = vpop.f32.mrf.mxu3  ;;  %v1535_v27 = vadd.f32 %v1423_v37, %v1066_v38  ;;  %4113 = vperm.xlu1 %10779, %v4058_v40   ;;  %vm402_vm2 = vmand %vm306_vm14, %vm354_vm15  ;;  %v2008_v40 = vld [vmem:[%s10914_s12 + $0x148] sm:$0xff] }
 0x1d7   : > { %v4061_v16 = vsel %vm402_vm2, 1, %v17100_v1 }
 0x1d8   : > { %v1941_v61 = vadd.f32 %v1829_v45, %v1535_v27  ;;  %4122 = vperm.xlu0 %10778, %v4061_v16  }
 0x1d9   : > { %v2238_v9 = vpop.f32.mrf.mxu0 }
 0x1da   : > { %v2644_v30 = vpop.f32.mrf.mxu1  ;;  %v2347_v21 = vadd.f32 %v2235_v58, %v1941_v61  ;;  %9998 = vmatmul.msk.f32.gmra.mxu2 %vm543_vm1, %v11667_v29  ;;  %v259_v29 = vld [vmem:[%s17067_s5 + $0x38] sm:$0xff]  ;;  %v261_v58 = vld [vmem:[%s17067_s5 + $0x48] sm:$0xff] }
 0x1db   : > { %10048 = vmatmul.msk.f32.gmra.mxu3 %vm543_vm1, %v1600_v39  ;;  %vm307_vm3 = vcmp.ge.s32.totalorder %v259_v29, 1  ;;  %vm355_vm4 = vcmp.le.s32.totalorder %v259_v29, 16  ;;  %vm309_vm6 = vcmp.ge.s32.totalorder %v261_v58, 1  ;;  %vm357_vm7 = vcmp.le.s32.totalorder %v261_v58, 16  ;;  %v11786_v61 = vld [vmem:[%s10914_s12 + $0x149] sm:$0xff] }
 0x1dc   : > { %10098 = vmatmul.msk.f32.gmra.mxu0 %vm543_vm1, %v2006_v26  ;;  %v11746_v22 = vadd.f32 %v2641_v23, %v2347_v21  ;;  %vm403_vm5 = vmand %vm307_vm3, %vm355_vm4  ;;  %v1072_v23 = vadd.f32 %v11433_v48, %v11431_v47  ;;  %v11778_v47 = vld [vmem:[%s17067_s5 + $0x20] sm:$0xff]  ;;  %v1075_v21 = vadd.f32 %v11446_v52, %v11444_v51  ;;  %v11809_v51 = vld [vmem:[%s17067_s5 + $0x28] sm:$0xff]  ;;  %v1078_v58 = vadd.f32 %v11459_v56, %v11457_v55 }
 0x1dd   : > { %10148 = vmatmul.msk.f32.gmra.mxu1 %vm543_vm1, %v11733_v3  ;;  %v1426_v31 = vpop.f32.mrf.mxu2  ;;  %v4062_v43 = vsel %vm403_vm5, 1, %v17100_v1  ;;  %vm405_vm8 = vmand %vm309_vm6, %vm357_vm7  ;;  %v1602_v48 = vld [vmem:[%s10914_s12 + $0x147] sm:$0xff]  ;;  %vm304_vm12 = vcmp.ge.s32.totalorder %v11778_v47, 1  ;;  %vm352_vm13 = vcmp.le.s32.totalorder %v11778_v47, 16  ;;  %v1603_v52 = vld [vmem:[%s10914_s12 + $0x14f] sm:$0xff]  ;;  %vm305_vm7 = vcmp.ge.s32.totalorder %v11809_v51, 1 }
 0x1de   : > { %v1832_v32 = vpop.f32.mrf.mxu3  ;;  %v1536_v12 = vadd.f32 %v1426_v31, %v1069_v14  ;;  %4125 = vperm.xlu1 %10779, %v4062_v43   ;;  %v4064_v38 = vsel %vm405_vm8, 1, %v17100_v1  ;;  %vm400_vm14 = vmand %vm304_vm12, %vm352_vm13  ;;  %v264_v26 = vld [vmem:[%s17067_s5 + $0x60] sm:$0xff]  ;;  %vm353_vm8 = vcmp.le.s32.totalorder %v11809_v51, 16  ;;  %v2009_v43 = vld [vmem:[%s10914_s12 + $0x150] sm:$0xff] }
 0x1df   : > { %vm312_vm15 = vcmp.ge.s32.totalorder %v264_v26, 1  ;;  %vm360_vm2 = vcmp.le.s32.totalorder %v264_v26, 16  ;;  %v11840_v55 = vld [vmem:[%s17067_s5 + $0x40] sm:$0xff]  ;;  %v1604_v56 = vld [vmem:[%s10914_s12 + $0x157] sm:$0xff] }
 0x1e0   : > { %v1942_v44 = vadd.f32 %v1832_v32, %v1536_v12  ;;  %4131 = vperm.xlu0 %10778, %v4064_v38   ;;  %vm408_vm3 = vmand %vm312_vm15, %vm360_vm2  ;;  %vm308_vm2 = vcmp.ge.s32.totalorder %v11840_v55, 1 }
 0x1e1   : > { %v2241_v10 = vpop.f32.mrf.mxu0  ;;  %v4067_v31 = vsel %vm408_vm3, 1, %v17100_v1  ;;  %vm356_vm3 = vcmp.le.s32.totalorder %v11840_v55, 16 }
 0x1e2   : > { %v2647_v35 = vpop.f32.mrf.mxu1  ;;  %v2348_v50 = vadd.f32 %v2238_v9, %v1942_v44  ;;  %9999 = vmatmul.msk.f32.gmra.mxu2 %vm543_vm1, %v11681_v19  ;;  %v262_v19 = vld [vmem:[%s17067_s5 + $0x50] sm:$0xff]  ;;  %v4059_v9 = vsel %vm400_vm14, 1, %v17100_v1 }
 0x1e3   : > { %10049 = vmatmul.msk.f32.gmra.mxu3 %vm543_vm1, %v1601_v49  ;;  %vm310_vm9 = vcmp.ge.s32.totalorder %v262_v19, 1  ;;  %vm358_vm10 = vcmp.le.s32.totalorder %v262_v19, 16  ;;  %4116 = vperm.xlu2 %10780, %v4059_v9   ;;  %v11817_v44 = vld [vmem:[%s10914_s12 + $0x151] sm:$0xff] }
 0x1e4   : > { %10099 = vmatmul.msk.f32.gmra.mxu0 %vm543_vm1, %v2007_v36  ;;  %v11769_v42 = vadd.f32 %v2644_v30, %v2348_v50  ;;  %vm406_vm11 = vmand %vm310_vm9, %vm358_vm10  ;;  %v267_v50 = vld [vmem:[%s17067_s5 + $0x78] sm:$0xff]  ;;  %v270_v9 = vld [vmem:[%s17067_s5 + $0x90] sm:$0xff] }
 0x1e5   : > { %10149 = vmatmul.msk.f32.gmra.mxu1 %vm543_vm1, %v11756_v7  ;;  %v1429_v54 = vpop.f32.mrf.mxu2  ;;  %v4065_v45 = vsel %vm406_vm11, 1, %v17100_v1  ;;  %vm401_vm9 = vmand %vm305_vm7, %vm353_vm8  ;;  %vm315_vm10 = vcmp.ge.s32.totalorder %v267_v50, 1  ;;  %vm363_vm11 = vcmp.le.s32.totalorder %v267_v50, 16 }
 0x1e6   : > { %v1835_v57 = vpop.f32.mrf.mxu3  ;;  %v1537_v37 = vadd.f32 %v1429_v54, %v1072_v23  ;;  %4134 = vperm.xlu1 %10779, %v4065_v45   ;;  %vm411_vm12 = vmand %vm315_vm10, %vm363_vm11 }
 0x1e8   : > { %v1943_v13 = vadd.f32 %v1835_v57, %v1537_v37  ;;  %4140 = vperm.xlu0 %10778, %v4067_v31   ;;  %v4070_v57 = vsel %vm411_vm12, 1, %v17100_v1 }
 0x1e9   : > { %v2244_v27 = vpop.f32.mrf.mxu0 }
 0x1ea   : > { %v2650_v39 = vpop.f32.mrf.mxu1  ;;  %v2349_v30 = vadd.f32 %v2241_v10, %v1943_v13  ;;  %10000 = vmatmul.msk.f32.gmra.mxu2 %vm543_vm1, %v11706_v4  ;;  %v265_v4 = vld [vmem:[%s17067_s5 + $0x68] sm:$0xff]  ;;  %v4060_v10 = vsel %vm401_vm9, 1, %v17100_v1  ;;  %v2010_v13 = vld [vmem:[%s10914_s12 + $0x158] sm:$0xff] }
 0x1eb   : > { %10050 = vmatmul.msk.f32.gmra.mxu3 %vm543_vm1, %v1602_v48  ;;  %vm313_vm4 = vcmp.ge.s32.totalorder %v265_v4, 1  ;;  %vm361_vm5 = vcmp.le.s32.totalorder %v265_v4, 16  ;;  %4119 = vperm.xlu2 %10780, %v4060_v10  }
 0x1ec   : > { %10100 = vmatmul.msk.f32.gmra.mxu0 %vm543_vm1, %v2008_v40  ;;  %v11800_v11 = vadd.f32 %v2647_v35, %v2349_v30  ;;  %vm409_vm6 = vmand %vm313_vm4, %vm361_vm5  ;;  %vm318_vm5 = vcmp.ge.s32.totalorder %v270_v9, 1  ;;  %v1081_v30 = vadd.f32 %v11472_v60, %v11470_v59  ;;  %v11871_v59 = vld [vmem:[%s17067_s5 + $0x58] sm:$0xff] }
 0x1ed   : > { %10150 = vmatmul.msk.f32.gmra.mxu1 %vm543_vm1, %v11786_v61  ;;  %v1432_v14 = vpop.f32.mrf.mxu2  ;;  %v4068_v16 = vsel %vm409_vm6, 1, %v17100_v1  ;;  %vm404_vm4 = vmand %vm308_vm2, %vm356_vm3  ;;  %vm366_vm6 = vcmp.le.s32.totalorder %v270_v9, 16  ;;  %v1605_v60 = vld [vmem:[%s10914_s12 + $0x15f] sm:$0xff]  ;;  %vm311_vm11 = vcmp.ge.s32.totalorder %v11871_v59, 1  ;;  %vm359_vm12 = vcmp.le.s32.totalorder %v11871_v59, 16  ;;  %v17439_v9 = vld [vmem:[#allocation32_spill] sm:$0xff] }
 0x1ee   : > { %v1838_v29 = vpop.f32.mrf.mxu3  ;;  %v1538_v32 = vadd.f32 %v1432_v14, %v1075_v21  ;;  %4143 = vperm.xlu1 %10779, %v4068_v16   ;;  %vm414_vm7 = vmand %vm318_vm5, %vm366_vm6  ;;  %v271_v21 = vld [vmem:[%s17067_s5 + $0x98] sm:$0xff] }
 0x1ef   : > { %vm319_vm8 = vcmp.ge.s32.totalorder %v271_v21, 1  ;;  %vm367_vm9 = vcmp.le.s32.totalorder %v271_v21, 16 }
 0x1f0   : > { %v1944_v12 = vadd.f32 %v1838_v29, %v1538_v32  ;;  %4149 = vperm.xlu0 %10778, %v4070_v57   ;;  %v4073_v29 = vsel %vm414_vm7, 1, %v17100_v1  ;;  %vm415_vm10 = vmand %vm319_vm8, %vm367_vm9  ;;  %v1606_v57 = vld [vmem:[%s10914_s12 + $0x167] sm:$0xff] }
 0x1f1   : > { %v2247_v49 = vpop.f32.mrf.mxu0  ;;  %v4074_v32 = vsel %vm415_vm10, 1, %v17100_v1 }
 0x1f2   : > { %v2350_v35 = vadd.f32 %v2244_v27, %v1944_v12  ;;  %10001 = vmatmul.msk.f32.gmra.mxu2 %vm543_vm1, %v11733_v3  ;;  %v2653_v36 = vpop.f32.mrf.mxu1  ;;  %v268_v3 = vld [vmem:[%s17067_s5 + $0x80] sm:$0xff] }
 0x1f3   : > { %10051 = vmatmul.msk.f32.gmra.mxu3 %vm543_vm1, %v1603_v52  ;;  %vm316_vm13 = vcmp.ge.s32.totalorder %v268_v3, 1  ;;  %vm364_vm14 = vcmp.le.s32.totalorder %v268_v3, 16  ;;  %v11848_v27 = vld [vmem:[%s10914_s12 + $0x159] sm:$0xff] }
 0x1f4   : > { %10101 = vmatmul.msk.f32.gmra.mxu0 %vm543_vm1, %v2009_v43  ;;  %v11831_v23 = vadd.f32 %v2650_v39, %v2350_v35  ;;  %vm412_vm15 = vmand %vm316_vm13, %vm364_vm14  ;;  %v4063_v39 = vsel %vm404_vm4, 1, %v17100_v1  ;;  %v2011_v12 = vld [vmem:[%s10914_s12 + $0x160] sm:$0xff]  ;;  %v273_v35 = vld [vmem:[%s17067_s5 + $0xa8] sm:$0xff] }
 0x1f5   : > { %10151 = vmatmul.msk.f32.gmra.mxu1 %vm543_vm1, %v11817_v44  ;;  %v1435_v19 = vpop.f32.mrf.mxu2  ;;  %v4071_v37 = vsel %vm412_vm15, 1, %v17100_v1  ;;  %4128 = vperm.xlu2 %10780, %v4063_v39   ;;  %vm407_vm13 = vmand %vm311_vm11, %vm359_vm12  ;;  %vm321_vm14 = vcmp.ge.s32.totalorder %v273_v35, 1  ;;  %vm369_vm15 = vcmp.le.s32.totalorder %v273_v35, 16 }
 0x1f6   : > { %v1841_v54 = vpop.f32.mrf.mxu3  ;;  %v1539_v38 = vadd.f32 %v1435_v19, %v1078_v58  ;;  %4152 = vperm.xlu1 %10779, %v4071_v37   ;;  %v4066_v43 = vsel %vm407_vm13, 1, %v17100_v1  ;;  %vm417_vm2 = vmand %vm321_vm14, %vm369_vm15 }
 0x1f7   : > { %v4076_v19 = vsel %vm417_vm2, 1, %v17100_v1 }
 0x1f8   : > { %v1945_v48 = vadd.f32 %v1841_v54, %v1539_v38  ;;  %4158 = vperm.xlu0 %10778, %v4073_v29  }
 0x1f9   : > { %v2250_v45 = vpop.f32.mrf.mxu0 }
 0x1fa   : > { %v2351_v40 = vadd.f32 %v2247_v49, %v1945_v48  ;;  %10002 = vmatmul.msk.f32.gmra.mxu2 %vm543_vm1, %v11756_v7  ;;  %v2656_v7 = vpop.f32.mrf.mxu1  ;;  %v11879_v49 = vld [vmem:[%s10914_s12 + $0x161] sm:$0xff] }
 0x1fb   : > { %10052 = vmatmul.msk.f32.gmra.mxu3 %vm543_vm1, %v1604_v56  ;;  %v2012_v48 = vld [vmem:[%s10914_s12 + $0x168] sm:$0xff] }
 0x1fc   : > { %10102 = vmatmul.msk.f32.gmra.mxu0 %vm543_vm1, %v2010_v13  ;;  %v11862_v26 = vadd.f32 %v2653_v36, %v2351_v40  ;;  %v1084_v36 = vadd.f32 %v11485_v0, %v11483_v63  ;;  %v11902_v63 = vld [vmem:[%s17067_s5 + $0x70] sm:$0xff]  ;;  %v276_v40 = vld [vmem:[%s17067_s5 + $0xc0] sm:$0xff] }
 0x1fd   : > { %10152 = vmatmul.msk.f32.gmra.mxu1 %vm543_vm1, %v11848_v27  ;;  %v1438_v4 = vpop.f32.mrf.mxu2  ;;  %4137 = vperm.xlu2 %10780, %v4066_v43   ;;  %vm314_vm6 = vcmp.ge.s32.totalorder %v11902_v63, 1  ;;  %vm362_vm7 = vcmp.le.s32.totalorder %v11902_v63, 16  ;;  %vm324_vm9 = vcmp.ge.s32.totalorder %v276_v40, 1  ;;  %vm372_vm10 = vcmp.le.s32.totalorder %v276_v40, 16  ;;  %v2013_v43 = vld [vmem:[%s10914_s12 + $0x170] sm:$0xff]  ;;  %v2014_v40 = vld [vmem:[%s10914_s12 + $0x178] sm:$0xff] }
 0x1fe   : > { %v1844_v14 = vpop.f32.mrf.mxu3  ;;  %v1540_v31 = vadd.f32 %v1438_v4, %v1081_v30  ;;  %4161 = vperm.xlu1 %10779, %v4074_v32   ;;  %vm410_vm8 = vmand %vm314_vm6, %vm362_vm7  ;;  %v17440_v30 = vld [vmem:[#allocation33_spill] sm:$0xff] }
 0x1ff   : > { %v4069_v13 = vsel %vm410_vm8, 1, %v17100_v1  ;;  %vm420_vm11 = vmand %vm324_vm9, %vm372_vm10  ;;  %v1607_v32 = vld [vmem:[%s10914_s12 + $0x16f] sm:$0xff] }
 0x200   : > { %v1946_v52 = vadd.f32 %v1844_v14, %v1540_v31  ;;  %4167 = vperm.xlu0 %10778, %v4076_v19   ;;  %v4079_v29 = vsel %vm420_vm11, 1, %v17100_v1 }
 0x201   : > { %v2253_v16 = vpop.f32.mrf.mxu0 }
 0x202   : > { %v2352_v10 = vadd.f32 %v2250_v45, %v1946_v52  ;;  %10003 = vmatmul.msk.f32.gmra.mxu2 %vm543_vm1, %v11786_v61  ;;  %v274_v61 = vld [vmem:[%s17067_s5 + $0xb0] sm:$0xff]  ;;  %v2659_v0 = vpop.f32.mrf.mxu1 }
 0x203   : > { %10053 = vmatmul.msk.f32.gmra.mxu3 %vm543_vm1, %v1605_v60  ;;  %vm322_vm3 = vcmp.ge.s32.totalorder %v274_v61, 1  ;;  %vm370_vm4 = vcmp.le.s32.totalorder %v274_v61, 16  ;;  %v11910_v45 = vld [vmem:[%s10914_s12 + $0x169] sm:$0xff] }
 0x204   : > { %10103 = vmatmul.msk.f32.gmra.mxu0 %vm543_vm1, %v2011_v12  ;;  %v11893_v50 = vadd.f32 %v2656_v7, %v2352_v10  ;;  %vm418_vm5 = vmand %vm322_vm3, %vm370_vm4  ;;  %v1087_v7 = vadd.f32 %v17440_v30, %v17439_v9  ;;  %v11933_v60 = vld [vmem:[%s17067_s5 + $0x88] sm:$0xff]  ;;  %v11941_v10 = vld [vmem:[%s10914_s12 + $0x171] sm:$0xff] }
 0x205   : > { %10153 = vmatmul.msk.f32.gmra.mxu1 %vm543_vm1, %v11879_v49  ;;  %v1441_v58 = vpop.f32.mrf.mxu2  ;;  %v4077_v38 = vsel %vm418_vm5, 1, %v17100_v1  ;;  %4146 = vperm.xlu2 %10780, %v4069_v13   ;;  %vm317_vm15 = vcmp.ge.s32.totalorder %v11933_v60, 1  ;;  %vm365_vm2 = vcmp.le.s32.totalorder %v11933_v60, 16  ;;  %v11971_v9 = vld [vmem:[%s10914_s12 + $0x179] sm:$0xff] }
 0x206   : > { %v1847_v3 = vpop.f32.mrf.mxu3  ;;  %v1541_v54 = vadd.f32 %v1441_v58, %v1084_v36  ;;  %4170 = vperm.xlu1 %10779, %v4077_v38   ;;  %vm413_vm3 = vmand %vm317_vm15, %vm365_vm2  ;;  %v279_v58 = vld [vmem:[%s17067_s5 + $0xd8] sm:$0xff] }
 0x207   : > { %v4072_v36 = vsel %vm413_vm3, 1, %v17100_v1  ;;  %vm327_vm4 = vcmp.ge.s32.totalorder %v279_v58, 1  ;;  %vm375_vm5 = vcmp.le.s32.totalorder %v279_v58, 16 }
 0x208   : > { %v1947_v56 = vadd.f32 %v1847_v3, %v1541_v54  ;;  %4176 = vperm.xlu0 %10778, %v4079_v29   ;;  %vm423_vm6 = vmand %vm327_vm4, %vm375_vm5 }
 0x209   : > { %v2256_v37 = vpop.f32.mrf.mxu0 }
 0x20a   : > { %v2353_v39 = vadd.f32 %v2253_v16, %v1947_v56  ;;  %10004 = vmatmul.msk.f32.gmra.mxu2 %vm543_vm1, %v11817_v44  ;;  %v277_v44 = vld [vmem:[%s17067_s5 + $0xc8] sm:$0xff]  ;;  %v2662_v35 = vpop.f32.mrf.mxu1  ;;  %v11963_v56 = vld [vmem:[%s17067_s5 + $0xa0] sm:$0xff] }
 0x20b   : > { %10054 = vmatmul.msk.f32.gmra.mxu3 %vm543_vm1, %v1606_v57  ;;  %vm325_vm12 = vcmp.ge.s32.totalorder %v277_v44, 1  ;;  %vm373_vm13 = vcmp.le.s32.totalorder %v277_v44, 16  ;;  %v17441_v57 = vld [vmem:[#allocation3_spill] sm:$0xff]  ;;  %vm320_vm10 = vcmp.ge.s32.totalorder %v11963_v56, 1  ;;  %vm368_vm11 = vcmp.le.s32.totalorder %v11963_v56, 16  ;;  %v282_v44 = vld [vmem:[%s17067_s5 + $0xf0] sm:$0xff] }
 0x20c   : > { %10104 = vmatmul.msk.f32.gmra.mxu0 %vm543_vm1, %v2012_v48  ;;  %v11924_v21 = vadd.f32 %v2659_v0, %v2353_v39  ;;  %vm421_vm14 = vmand %vm325_vm12, %vm373_vm13  ;;  %v4082_v0 = vsel %vm423_vm6, 1, %v17100_v1  ;;  %vm330_vm13 = vcmp.ge.s32.totalorder %v282_v44, 1 }
 0x20d   : > { %10154 = vmatmul.msk.f32.gmra.mxu1 %vm543_vm1, %v11910_v45  ;;  %v1444_v4 = vpop.f32.mrf.mxu2  ;;  %v4080_v52 = vsel %vm421_vm14, 1, %v17100_v1  ;;  %4155 = vperm.xlu2 %10780, %v4072_v36   ;;  %vm416_vm12 = vmand %vm320_vm10, %vm368_vm11  ;;  %vm378_vm14 = vcmp.le.s32.totalorder %v282_v44, 16  ;;  %v2015_v36 = vld [vmem:[%s10914_s12 + $0x180] sm:$0xff]  ;;  %v2016_v44 = vld [vmem:[%s10914_s12 + $0x188] sm:$0xff] }
 0x20e   : > { %v1850_v14 = vpop.f32.mrf.mxu3  ;;  %v1542_v31 = vadd.f32 %v1444_v4, %v1087_v7  ;;  %4179 = vperm.xlu1 %10779, %v4080_v52   ;;  %v4075_v30 = vsel %vm416_vm12, 1, %v17100_v1  ;;  %vm426_vm15 = vmand %vm330_vm13, %vm378_vm14  ;;  %v11993_v52 = vld [vmem:[%s17067_s5 + $0xb8] sm:$0xff] }
 0x20f   : > { %v4085_v29 = vsel %vm426_vm15, 1, %v17100_v1  ;;  %vm323_vm5 = vcmp.ge.s32.totalorder %v11993_v52, 1  ;;  %vm371_vm6 = vcmp.le.s32.totalorder %v11993_v52, 16 }
 0x210   : > { %v1948_v16 = vadd.f32 %v1850_v14, %v1542_v31  ;;  %4185 = vperm.xlu0 %10778, %v4082_v0   ;;  %v17442_v31 = vld [vmem:[#allocation4_spill] sm:$0xff] }
 0x211   : > { %v2259_v12 = vpop.f32.mrf.mxu0 }
 0x212   : > { %v2354_v61 = vadd.f32 %v2256_v37, %v1948_v16  ;;  %10005 = vmatmul.msk.f32.gmra.mxu2 %vm543_vm1, %v11848_v27  ;;  %v280_v27 = vld [vmem:[%s17067_s5 + $0xe0] sm:$0xff]  ;;  %v1608_v37 = vld [vmem:[%s10914_s12 + $0x177] sm:$0xff] }
 0x213   : > { %10055 = vmatmul.msk.f32.gmra.mxu3 %vm543_vm1, %v1607_v32  ;;  %vm328_vm7 = vcmp.ge.s32.totalorder %v280_v27, 1  ;;  %vm376_vm8 = vcmp.le.s32.totalorder %v280_v27, 16  ;;  %v1609_v16 = vld [vmem:[%s10914_s12 + $0x17f] sm:$0xff] }
 0x214   : > { %10105 = vmatmul.msk.f32.gmra.mxu0 %vm543_vm1, %v2013_v43  ;;  %v11953_v3 = vadd.f32 %v2662_v35, %v2354_v61  ;;  %vm424_vm9 = vmand %vm328_vm7, %vm376_vm8  ;;  %v12001_v61 = vld [vmem:[%s10914_s12 + $0x181] sm:$0xff] }
 0x215   : > { %10155 = vmatmul.msk.f32.gmra.mxu1 %vm543_vm1, %v11941_v10  ;;  %v1447_v19 = vpop.f32.mrf.mxu2  ;;  %v4083_v48 = vsel %vm424_vm9, 1, %v17100_v1  ;;  %4164 = vperm.xlu2 %10780, %v4075_v30   ;;  %vm419_vm7 = vmand %vm323_vm5, %vm371_vm6 }
 0x216   : > { %v1853_v54 = vpop.f32.mrf.mxu3  ;;  %v1543_v38 = vadd.f32 %v1447_v19, %v17441_v57  ;;  %4188 = vperm.xlu1 %10779, %v4083_v48   ;;  %v4078_v58 = vsel %vm419_vm7, 1, %v17100_v1  ;;  %v285_v19 = vld [vmem:[%s17067_s5 + $0x108] sm:$0xff]  ;;  %v278_v48 = vld [vmem:[%s17067_s5 + $0xd0] sm:$0xff] }
 0x217   : > { %vm333_vm8 = vcmp.ge.s32.totalorder %v285_v19, 1  ;;  %vm381_vm9 = vcmp.le.s32.totalorder %v285_v19, 16  ;;  %vm326_vm14 = vcmp.ge.s32.totalorder %v278_v48, 1  ;;  %vm374_vm15 = vcmp.le.s32.totalorder %v278_v48, 16 }
 0x218   : > { %v1949_v13 = vadd.f32 %v1853_v54, %v1543_v38  ;;  %4194 = vperm.xlu0 %10778, %v4085_v29   ;;  %vm429_vm10 = vmand %vm333_vm8, %vm381_vm9  ;;  %v17443_v38 = vld [vmem:[#allocation5_spill] sm:$0xff]  ;;  %v288_v29 = vld [vmem:[%s17067_s5 + $0x120] sm:$0xff] }
 0x219   : > { %v2262_v39 = vpop.f32.mrf.mxu0  ;;  %v4088_v57 = vsel %vm429_vm10, 1, %v17100_v1 }
 0x21a   : > { %v11974_v7 = vadd.f32 %v2259_v12, %v1949_v13  ;;  %10006 = vmatmul.msk.f32.gmra.mxu2 %vm543_vm1, %v11879_v49  ;;  %v283_v49 = vld [vmem:[%s17067_s5 + $0xf8] sm:$0xff]  ;;  %v1610_v13 = vld [vmem:[%s10914_s12 + $0x187] sm:$0xff] }
 0x21b   : > { %10056 = vmatmul.msk.f32.gmra.mxu3 %vm543_vm1, %v1608_v37  ;;  %vm331_vm2 = vcmp.ge.s32.totalorder %v283_v49, 1  ;;  %vm379_vm3 = vcmp.le.s32.totalorder %v283_v49, 16  ;;  %v12027_v49 = vld [vmem:[%s10914_s12 + $0x189] sm:$0xff] }
 0x21c   : > { %10106 = vmatmul.msk.f32.gmra.mxu0 %vm543_vm1, %v2014_v40  ;;  %vm427_vm4 = vmand %vm331_vm2, %vm379_vm3  ;;  %vm336_vm3 = vcmp.ge.s32.totalorder %v288_v29, 1 }
 0x21d   : > { %10156 = vmatmul.msk.f32.gmra.mxu1 %vm543_vm1, %v11971_v9  ;;  %v1450_v4 = vpop.f32.mrf.mxu2  ;;  %v4086_v12 = vsel %vm427_vm4, 1, %v17100_v1  ;;  %4173 = vperm.xlu2 %10780, %v4078_v58   ;;  %vm422_vm2 = vmand %vm326_vm14, %vm374_vm15  ;;  %vm384_vm4 = vcmp.le.s32.totalorder %v288_v29, 16 }
 0x21e   : > { %v1856_v14 = vpop.f32.mrf.mxu3  ;;  %v1544_v32 = vadd.f32 %v1450_v4, %v17442_v31  ;;  %4197 = vperm.xlu1 %10779, %v4086_v12   ;;  %v4081_v4 = vsel %vm422_vm2, 1, %v17100_v1  ;;  %vm432_vm5 = vmand %vm336_vm3, %vm384_vm4  ;;  %v17444_v12 = vld [vmem:[#allocation6_spill] sm:$0xff] }
 0x220   : > { %v1950_v43 = vadd.f32 %v1856_v14, %v1544_v32  ;;  %4203 = vperm.xlu0 %10778, %v4088_v57  }
 0x221   : > { %v2265_v35 = vpop.f32.mrf.mxu0 }
 0x222   : > { %v12004_v27 = vadd.f32 %v2262_v39, %v1950_v43  ;;  %10007 = vmatmul.msk.f32.gmra.mxu2 %vm543_vm1, %v11910_v45  ;;  %v286_v45 = vld [vmem:[%s17067_s5 + $0x110] sm:$0xff] }
 0x223   : > { %10057 = vmatmul.msk.f32.gmra.mxu3 %vm543_vm1, %v1609_v16  ;;  %vm334_vm11 = vcmp.ge.s32.totalorder %v286_v45, 1  ;;  %vm382_vm12 = vcmp.le.s32.totalorder %v286_v45, 16  ;;  %v4091_v16 = vsel %vm432_vm5, 1, %v17100_v1 }
 0x224   : > { %10107 = vmatmul.msk.f32.gmra.mxu0 %vm543_vm1, %v2015_v36  ;;  %vm430_vm13 = vmand %vm334_vm11, %vm382_vm12  ;;  %v1611_v36 = vld [vmem:[%s10914_s12 + $0x18f] sm:$0xff] }
 0x225   : > { %10157 = vmatmul.msk.f32.gmra.mxu1 %vm543_vm1, %v12001_v61  ;;  %v1453_v54 = vpop.f32.mrf.mxu2  ;;  %v4089_v39 = vsel %vm430_vm13, 1, %v17100_v1  ;;  %4182 = vperm.xlu2 %10780, %v4081_v4   ;;  %v1612_v4 = vld [vmem:[%s10914_s12 + $0x197] sm:$0xff] }
 0x226   : > { %v1859_v0 = vpop.f32.mrf.mxu3  ;;  %v1545_v37 = vadd.f32 %v1453_v54, %v17443_v38  ;;  %4206 = vperm.xlu1 %10779, %v4089_v39   ;;  %v2017_v54 = vld [vmem:[%s10914_s12 + $0x190] sm:$0xff] }
 0x228   : > { %v1951_v40 = vadd.f32 %v1859_v0, %v1545_v37  ;;  %4212 = vperm.xlu0 %10778, %v4091_v16   ;;  %v12053_v0 = vld [vmem:[%s10914_s12 + $0x191] sm:$0xff]  ;;  %v2424_v16 = vld [vmem:[%s10914_s12 + $0x199] sm:$0xff] }
 0x229   : > { %v2268_v30 = vpop.f32.mrf.mxu0  ;;  %v291_v37 = vld [vmem:[%s17067_s5 + $0x138] sm:$0xff] }
 0x22a   : > { %v12030_v14 = vadd.f32 %v2265_v35, %v1951_v40  ;;  %10008 = vmatmul.msk.f32.gmra.mxu2 %vm543_vm1, %v11941_v10  ;;  %v289_v10 = vld [vmem:[%s17067_s5 + $0x128] sm:$0xff]  ;;  %vm339_vm12 = vcmp.ge.s32.totalorder %v291_v37, 1  ;;  %vm387_vm13 = vcmp.le.s32.totalorder %v291_v37, 16  ;;  %v17445_v40 = vld [vmem:[#allocation7_spill] sm:$0xff] }
 0x22b   : > { %10058 = vmatmul.msk.f32.gmra.mxu3 %vm543_vm1, %v1610_v13  ;;  %vm337_vm6 = vcmp.ge.s32.totalorder %v289_v10, 1  ;;  %vm385_vm7 = vcmp.le.s32.totalorder %v289_v10, 16  ;;  %v281_v35 = vld [vmem:[%s17067_s5 + $0xe8] sm:$0xff]  ;;  %vm435_vm14 = vmand %vm339_vm12, %vm387_vm13  ;;  %v1613_v37 = vld [vmem:[%s10914_s12 + $0x19f] sm:$0xff] }
 0x22c   : > { %10108 = vmatmul.msk.f32.gmra.mxu0 %vm543_vm1, %v2016_v44  ;;  %vm433_vm8 = vmand %vm337_vm6, %vm385_vm7  ;;  %vm329_vm9 = vcmp.ge.s32.totalorder %v281_v35, 1  ;;  %vm377_vm10 = vcmp.le.s32.totalorder %v281_v35, 16  ;;  %v4094_v39 = vsel %vm435_vm14, 1, %v17100_v1  ;;  %v284_v44 = vld [vmem:[%s17067_s5 + $0x100] sm:$0xff]  ;;  %v294_v35 = vld [vmem:[%s17067_s5 + $0x150] sm:$0xff] }
 0x22d   : > { %10158 = vmatmul.msk.f32.gmra.mxu1 %vm543_vm1, %v12027_v49  ;;  %v1456_v31 = vpop.f32.mrf.mxu2  ;;  %v4092_v58 = vsel %vm433_vm8, 1, %v17100_v1  ;;  %vm425_vm11 = vmand %vm329_vm9, %vm377_vm10  ;;  %vm332_vm4 = vcmp.ge.s32.totalorder %v284_v44, 1  ;;  %vm380_vm5 = vcmp.le.s32.totalorder %v284_v44, 16  ;;  %vm342_vm7 = vcmp.ge.s32.totalorder %v294_v35, 1 }
 0x22e   : > { %v1862_v32 = vpop.f32.mrf.mxu3  ;;  %v1546_v43 = vadd.f32 %v1456_v31, %v17444_v12  ;;  %4215 = vperm.xlu1 %10779, %v4092_v58   ;;  %v4084_v57 = vsel %vm425_vm11, 1, %v17100_v1  ;;  %vm428_vm6 = vmand %vm332_vm4, %vm380_vm5  ;;  %vm390_vm8 = vcmp.le.s32.totalorder %v294_v35, 16  ;;  %v1614_v35 = vld [vmem:[%s10914_s12 + $0x1a7] sm:$0xff] }
 0x22f   : > { %4191 = vperm.xlu2 %10780, %v4084_v57   ;;  %v4087_v12 = vsel %vm428_vm6, 1, %v17100_v1  ;;  %vm438_vm9 = vmand %vm342_vm7, %vm390_vm8  ;;  %v287_v57 = vld [vmem:[%s17067_s5 + $0x118] sm:$0xff] }
 0x230   : > { %v1952_v19 = vadd.f32 %v1862_v32, %v1546_v43  ;;  %4221 = vperm.xlu0 %10778, %v4094_v39   ;;  %v2018_v32 = vld [vmem:[%s10914_s12 + $0x198] sm:$0xff]  ;;  %vm335_vm13 = vcmp.ge.s32.totalorder %v287_v57, 1  ;;  %vm383_vm14 = vcmp.le.s32.totalorder %v287_v57, 16  ;;  %v2019_v39 = vld [vmem:[%s10914_s12 + $0x1a0] sm:$0xff] }
 0x231   : > { %v2271_v45 = vpop.f32.mrf.mxu0 }
 0x232   : > { %v12056_v38 = vadd.f32 %v2268_v30, %v1952_v19  ;;  %10009 = vmatmul.msk.f32.gmra.mxu2 %vm543_vm1, %v11971_v9  ;;  %v292_v9 = vld [vmem:[%s17067_s5 + $0x140] sm:$0xff]  ;;  %v4097_v19 = vsel %vm438_vm9, 1, %v17100_v1 }
 0x233   : > { %10059 = vmatmul.msk.f32.gmra.mxu3 %vm543_vm1, %v1611_v36  ;;  %vm340_vm15 = vcmp.ge.s32.totalorder %v292_v9, 1  ;;  %vm388_vm2 = vcmp.le.s32.totalorder %v292_v9, 16  ;;  %v295_v36 = vld [vmem:[%s17067_s5 + $0x158] sm:$0xff] }
 0x234   : > { %10109 = vmatmul.msk.f32.gmra.mxu0 %vm543_vm1, %v2017_v54  ;;  %vm436_vm3 = vmand %vm340_vm15, %vm388_vm2  ;;  %vm343_vm10 = vcmp.ge.s32.totalorder %v295_v36, 1  ;;  %vm391_vm11 = vcmp.le.s32.totalorder %v295_v36, 16 }
 0x235   : > { %10159 = vmatmul.msk.f32.gmra.mxu1 %vm543_vm1, %v12053_v0  ;;  %v1459_v48 = vpop.f32.mrf.mxu2  ;;  %v4095_v29 = vsel %vm436_vm3, 1, %v17100_v1  ;;  %vm439_vm12 = vmand %vm343_vm10, %vm391_vm11  ;;  %vm4959_vm11 = vcmp.eq.s32.totalorder %v11724_v33, 17 }
 0x236   : > { %v1865_v13 = vpop.f32.mrf.mxu3  ;;  %v1547_v30 = vadd.f32 %v1459_v48, %v17445_v40  ;;  %4224 = vperm.xlu1 %10779, %v4095_v29   ;;  %v4098_v9 = vsel %vm439_vm12, 1, %v17100_v1  ;;  %v2425_v40 = vld [vmem:[%s10914_s12 + $0x1a1] sm:$0xff]  ;;  %vm431_vm15 = vmand %vm335_vm13, %vm383_vm14  ;;  %v298_v29 = vld [vmem:[%s17067_s5 + $0x170] sm:$0xff]  ;;  %vm4911_vm12 = vcmp.eq.s32.totalorder %v11724_v33, 0 }
 0x237   : > { %4200 = vperm.xlu2 %10780, %v4087_v12   ;;  %vm346_vm5 = vcmp.ge.s32.totalorder %v298_v29, 1  ;;  %vm394_vm6 = vcmp.le.s32.totalorder %v298_v29, 16  ;;  %v290_v12 = vld [vmem:[%s17067_s5 + $0x130] sm:$0xff] }
 0x238   : > { %v1953_v10 = vadd.f32 %v1865_v13, %v1547_v30  ;;  %4230 = vperm.xlu0 %10778, %v4097_v19   ;;  %v4090_v30 = vsel %vm431_vm15, 1, %v17100_v1  ;;  %vm442_vm7 = vmand %vm346_vm5, %vm394_vm6  ;;  %vm338_vm8 = vcmp.ge.s32.totalorder %v290_v12, 1  ;;  %vm386_vm9 = vcmp.le.s32.totalorder %v290_v12, 16  ;;  %v2020_v19 = vld [vmem:[%s10914_s12 + $0x1a8] sm:$0xff] }
 0x239   : > { %v2274_v31 = vpop.f32.mrf.mxu0  ;;  %v4101_v36 = vsel %vm442_vm7, 1, %v17100_v1  ;;  %vm434_vm10 = vmand %vm338_vm8, %vm386_vm9 }
 0x23a   : > { %v12080_v43 = vadd.f32 %v2271_v45, %v1953_v10  ;;  %10010 = vmatmul.msk.f32.gmra.mxu2 %vm543_vm1, %v12001_v61  ;;  %v17446_v45 = vld [vmem:[#allocation8_spill] sm:$0xff] }
 0x23b   : > { %10060 = vmatmul.msk.f32.gmra.mxu3 %vm543_vm1, %v1612_v4  ;;  %v297_v4 = vld [vmem:[%s17067_s5 + $0x168] sm:$0xff] }
 0x23c   : > { %10110 = vmatmul.msk.f32.gmra.mxu0 %vm543_vm1, %v2018_v32  ;;  %vm345_vm2 = vcmp.ge.s32.totalorder %v297_v4, 1  ;;  %vm393_vm3 = vcmp.le.s32.totalorder %v297_v4, 16  ;;  %v17447_v32 = vld [vmem:[#allocation9_spill] sm:$0xff]  ;;  %v5295_v4 = vsel %vm4911_vm12, 1, %v17100_v1 }
 0x23d   : > { %10160 = vmatmul.msk.f32.gmra.mxu1 %vm543_vm1, %v2424_v16  ;;  %v1462_v61 = vpop.f32.mrf.mxu2  ;;  %vm441_vm4 = vmand %vm345_vm2, %vm393_vm3  ;;  %vm4912_vm2 = vcmp.eq.s32.totalorder %v11778_v47, 0  ;;  %vm4961_vm3 = vcmp.eq.s32.totalorder %v11809_v51, 17 }
 0x23e   : > { %v1868_v58 = vpop.f32.mrf.mxu3  ;;  %v1548_v54 = vadd.f32 %v1462_v61, %v17446_v45  ;;  %4233 = vperm.xlu1 %10779, %v4098_v9   ;;  %v2426_v45 = vld [vmem:[%s10914_s12 + $0x1a9] sm:$0xff]  ;;  %v5296_v12 = vsel %vm4912_vm2, 1, %v17100_v1 }
 0x23f   : > { %4209 = vperm.xlu2 %10780, %v4090_v30   ;;  %v3191_v30 = vld [vmem:[%s10914_s12 + $0x48] sm:$0xff] }
 0x240   : > { %v1954_v48 = vadd.f32 %v1868_v58, %v1548_v54  ;;  %v4093_v54 = vsel %vm434_vm10, 1, %v17100_v1 }
 0x241   : > { %v2277_v13 = vpop.f32.mrf.mxu0 }
 0x242   : > { %v12103_v44 = vadd.f32 %v2274_v31, %v1954_v48  ;;  %10011 = vmatmul.msk.f32.gmra.mxu2 %vm543_vm1, %v12027_v49  ;;  %v4100_v31 = vsel %vm441_vm4, 1, %v17100_v1  ;;  %v5007_v48 = vsel %vm4959_vm11, 1, %v17100_v1 }
 0x243   : > { %10061 = vmatmul.msk.f32.gmra.mxu3 %vm543_vm1, %v1613_v37  ;;  %4239 = vperm.xlu0 %10778, %v4100_v31  }
 0x244   : > { %10111 = vmatmul.msk.f32.gmra.mxu0 %vm543_vm1, %v2019_v39  ;;  %v17448_v39 = vld [vmem:[#allocation12_spill] sm:$0xff] }
 0x245   : > { %10161 = vmatmul.msk.f32.gmra.mxu1 %vm543_vm1, %v2425_v40  ;;  %v1465_v49 = vpop.f32.mrf.mxu2  ;;  %v2785_v40 = vld [vmem:[%s10914_s12 + $0x47] sm:$0xff] }
 0x246   : > { %v1871_v10 = vpop.f32.mrf.mxu3  ;;  %v1549_v16 = vadd.f32 %v1465_v49, %v17447_v32  ;;  %4242 = vperm.xlu1 %10779, %v4101_v36  }
 0x247   : > { %4218 = vperm.xlu2 %10780, %v4093_v54  }
 0x248   : > { %v1955_v61 = vadd.f32 %v1871_v10, %v1549_v16  ;;  %v3597_v10 = vld [vmem:[%s10914_s12 + $0x49] sm:$0xff] }
 0x249   : > { %v2280_v58 = vpop.f32.mrf.mxu0 }
 0x24a   : > { %v12126_v57 = vadd.f32 %v2277_v13, %v1955_v61  ;;  %10012 = vmatmul.msk.f32.gmra.mxu2 %vm543_vm1, %v12053_v0  ;;  %v293_v0 = vld [vmem:[%s17067_s5 + $0x148] sm:$0xff]  ;;  %v296_v61 = vld [vmem:[%s17067_s5 + $0x160] sm:$0xff] }
 0x24b   : > { %10062 = vmatmul.msk.f32.gmra.mxu3 %vm543_vm1, %v1614_v35  ;;  %5062 = vperm.xlu0 %10778, %v5007_v48   ;;  %vm341_vm13 = vcmp.ge.s32.totalorder %v293_v0, 1  ;;  %vm389_vm14 = vcmp.le.s32.totalorder %v293_v0, 16  ;;  %v17449_v35 = vld [vmem:[#allocation15_spill] sm:$0xff]  ;;  %vm344_vm4 = vcmp.ge.s32.totalorder %v296_v61, 1  ;;  %vm392_vm5 = vcmp.le.s32.totalorder %v296_v61, 16 }
 0x24c   : > { %10112 = vmatmul.msk.f32.gmra.mxu0 %vm543_vm1, %v2020_v19  ;;  %vm437_vm15 = vmand %vm341_vm13, %vm389_vm14  ;;  %v3192_v19 = vld [vmem:[%s10914_s12 + $0x50] sm:$0xff]  ;;  %vm4960_vm14 = vcmp.eq.s32.totalorder %v11778_v47, 17 }
 0x24d   : > { %10162 = vmatmul.msk.f32.gmra.mxu1 %vm543_vm1, %v2426_v45  ;;  %v1468_v37 = vpop.f32.mrf.mxu2  ;;  %v4096_v31 = vsel %vm437_vm15, 1, %v17100_v1  ;;  %v5009_v45 = vsel %vm4961_vm3, 1, %v17100_v1  ;;  %vm440_vm6 = vmand %vm344_vm4, %vm392_vm5  ;;  %vm4913_vm3 = vcmp.eq.s32.totalorder %v11809_v51, 0  ;;  %vm4964_vm5 = vcmp.eq.s32.totalorder %v11840_v55, 17  ;;  %v10792_v55 = vld [vmem:[%s17067_s5 + $0x48] sm:$0xff] }
 0x24e   : > { %v1874_v9 = vpop.f32.mrf.mxu3  ;;  %v1550_v13 = vadd.f32 %v1468_v37, %v17448_v39  ;;  %5350 = vperm.xlu1 %10779, %v5295_v4   ;;  %v4099_v48 = vsel %vm440_vm6, 1, %v17100_v1  ;;  %v17450_v4 = vld [vmem:[#allocation18_spill] sm:$0xff] }
 0x24f   : > { %4227 = vperm.xlu2 %10780, %v4096_v31   ;;  %v3193_v31 = vld [vmem:[%s10914_s12 + $0x58] sm:$0xff] }
 0x250   : > { %v1956_v29 = vadd.f32 %v1874_v9, %v1550_v13  ;;  %v3598_v9 = vld [vmem:[%s10914_s12 + $0x51] sm:$0xff]  ;;  %v10787_v13 = vld [vmem:[%s17067_s5] sm:$0xff] }
 0x251   : > { %v2283_v49 = vpop.f32.mrf.mxu0  ;;  %vm4956_vm7 = vcmp.eq.s32.totalorder %v10787_v13, 17  ;;  %vm4908_vm8 = vcmp.eq.s32.totalorder %v10787_v13, 0  ;;  %v2788_v13 = vld [vmem:[%s10914_s12 + $0x5f] sm:$0xff] }
 0x252   : > { %v12145_v33 = vadd.f32 %v2280_v58, %v1956_v29  ;;  %10165 = vmatmul.msk.f32.vlgmr.msra.gmra.mxu2 %vm543_vm1, %v2785_v40  ;;  %v2786_v58 = vld [vmem:[%s10914_s12 + $0x4f] sm:$0xff] }
 0x253   : > { %10215 = vmatmul.msk.f32.vlgmr.msra.gmra.mxu3 %vm543_vm1, %v3191_v30  ;;  %5353 = vperm.xlu0 %10778, %v5296_v12   ;;  %v5004_v30 = vsel %vm4956_vm7, 1, %v17100_v1  ;;  %vm4965_vm7 = vcmp.eq.s32.totalorder %v10792_v55, 17 }
 0x254   : > { %10265 = vmatmul.msk.f32.vlgmr.msra.gmra.mxu0 %vm543_vm1, %v3597_v10  ;;  %v2787_v10 = vld [vmem:[%s10914_s12 + $0x57] sm:$0xff] }
 0x255   : > { %v1471_v32 = vpop.f32.mrf.mxu2 }
 0x256   : > { %v1877_v16 = vpop.f32.mrf.mxu3  ;;  %v1551_v36 = vadd.f32 %v1471_v32, %v17449_v35  ;;  %5068 = vperm.xlu1 %10779, %v5009_v45   ;;  %v5292_v32 = vsel %vm4908_vm8, 1, %v17100_v1  ;;  %v3599_v35 = vld [vmem:[%s10914_s12 + $0x59] sm:$0xff]  ;;  %vm4917_vm8 = vcmp.eq.s32.totalorder %v10792_v55, 0 }
 0x257   : > { %4236 = vperm.xlu2 %10780, %v4099_v48   ;;  %v12193_v48 = vld [vmem:[%s17067_s5 + $0x10] sm:$0xff]  ;;  %v2792_v55 = vld [vmem:[%s10914_s12 + $0x7f] sm:$0xff] }
 0x258   : > { %v1957_v54 = vadd.f32 %v1877_v16, %v1551_v36  ;;  %vm4958_vm13 = vcmp.eq.s32.totalorder %v12193_v48, 17 }
 0x259   : > { %v2286_v37 = vpop.f32.mrf.mxu0 }
 0x25a   : > { %v12162_v39 = vadd.f32 %v2283_v49, %v1957_v54  ;;  %10166 = vmatmul.msk.f32.gmra.mxu2 %vm543_vm1, %v2786_v58  ;;  %v299_v49 = vld [vmem:[%s17067_s5 + $0x178] sm:$0xff]  ;;  %v10788_v58 = vld [vmem:[%s17067_s5 + $0x8] sm:$0xff] }
 0x25b   : > { %10216 = vmatmul.msk.f32.gmra.mxu3 %vm543_vm1, %v3192_v19  ;;  %5053 = vperm.xlu0 %10778, %v5004_v30   ;;  %vm347_vm9 = vcmp.ge.s32.totalorder %v299_v49, 1  ;;  %vm395_vm10 = vcmp.le.s32.totalorder %v299_v49, 16  ;;  %vm4909_vm12 = vcmp.eq.s32.totalorder %v10788_v58, 0  ;;  %v5008_v49 = vsel %vm4960_vm14, 1, %v17100_v1 }
 0x25c   : > { %10266 = vmatmul.msk.f32.gmra.mxu0 %vm543_vm1, %v3598_v9  ;;  %vm443_vm11 = vmand %vm347_vm9, %vm395_vm10  ;;  %v5293_v54 = vsel %vm4909_vm12, 1, %v17100_v1  ;;  %v17452_v9 = vld [vmem:[#allocation19_spill] sm:$0xff]  ;;  %vm4957_vm6 = vcmp.eq.s32.totalorder %v10788_v58, 17  ;;  %vm4910_vm9 = vcmp.eq.s32.totalorder %v12193_v48, 0 }
 0x25d   : > { %v1474_v0 = vpop.f32.mrf.mxu2  ;;  %v4102_v36 = vsel %vm443_vm11, 1, %v17100_v1  ;;  %vm4967_vm11 = vcmp.eq.s32.totalorder %v11871_v59, 17  ;;  %v10794_v59 = vld [vmem:[%s17067_s5 + $0x60] sm:$0xff] }
 0x25e   : > { %v1880_v40 = vpop.f32.mrf.mxu3  ;;  %v1552_v29 = vadd.f32 %v1474_v0, %v17450_v4  ;;  %5341 = vperm.xlu1 %10779, %v5292_v32   ;;  %v3194_v0 = vld [vmem:[%s10914_s12 + $0x60] sm:$0xff]  ;;  %vm4920_vm14 = vcmp.eq.s32.totalorder %v10794_v59, 0 }
 0x25f   : > { %4245 = vperm.xlu2 %10780, %v4102_v36   ;;  %v2789_v36 = vld [vmem:[%s10914_s12 + $0x67] sm:$0xff] }
 0x260   : > { %v1958_v16 = vadd.f32 %v1880_v40, %v1552_v29  ;;  %v5006_v40 = vsel %vm4958_vm13, 1, %v17100_v1  ;;  %v3600_v29 = vld [vmem:[%s10914_s12 + $0x61] sm:$0xff]  ;;  %vm4968_vm13 = vcmp.eq.s32.totalorder %v10794_v59, 17 }
 0x261   : > { %v2289_v12 = vpop.f32.mrf.mxu0 }
 0x262   : > { %v12180_v61 = vadd.f32 %v2286_v37, %v1958_v16  ;;  %10167 = vmatmul.msk.f32.gmra.mxu2 %vm543_vm1, %v2787_v10 }
 0x263   : > { %10217 = vmatmul.msk.f32.gmra.mxu3 %vm543_vm1, %v3193_v31  ;;  %5344 = vperm.xlu0 %10778, %v5293_v54   ;;  %v10790_v31 = vld [vmem:[%s17067_s5 + $0x30] sm:$0xff] }
 0x264   : > { %17451 = vst [vmem:[#allocation10_spill] sm:$0xff] %v12180_v61  ;;  %10267 = vmatmul.msk.f32.gmra.mxu0 %vm543_vm1, %v3599_v35  ;;  %vm4962_vm15 = vcmp.eq.s32.totalorder %v10790_v31, 17  ;;  %v17454_v35 = vld [vmem:[#allocation20_spill] sm:$0xff]  ;;  %vm4914_vm2 = vcmp.eq.s32.totalorder %v10790_v31, 0  ;;  %v3615_v61 = vld [vmem:[%s10914_s12 + $0xd9] sm:$0xff] }
 0x265   : > { %v1477_v19 = vpop.f32.mrf.mxu2  ;;  %v5010_v16 = vsel %vm4962_vm15, 1, %v17100_v1  ;;  %v2790_v31 = vld [vmem:[%s10914_s12 + $0x6f] sm:$0xff] }
 0x266   : > { %v1883_v45 = vpop.f32.mrf.mxu3  ;;  %v1553_v37 = vadd.f32 %v1477_v19, %v17452_v9  ;;  %5059 = vperm.xlu1 %10779, %v5006_v40   ;;  %v3195_v19 = vld [vmem:[%s10914_s12 + $0x68] sm:$0xff]  ;;  %v10791_v40 = vld [vmem:[%s17067_s5 + $0x38] sm:$0xff] }
 0x267   : > { %5065 = vperm.xlu2 %10780, %v5008_v49   ;;  %vm4915_vm4 = vcmp.eq.s32.totalorder %v10791_v40, 0  ;;  %v17456_v49 = vld [vmem:[#allocation21_spill] sm:$0xff]  ;;  %vm4963_vm12 = vcmp.eq.s32.totalorder %v10791_v40, 17 }
 0x268   : > { %v1959_v30 = vadd.f32 %v1883_v45, %v1553_v37  ;;  %v5298_v45 = vsel %vm4914_vm2, 1, %v17100_v1  ;;  %v3601_v37 = vld [vmem:[%s10914_s12 + $0x69] sm:$0xff] }
 0x269   : > { %v2292_v4 = vpop.f32.mrf.mxu0 }
 0x26a   : > { %v12202_v10 = vadd.f32 %v2289_v12, %v1959_v30  ;;  %10168 = vmatmul.msk.f32.gmra.mxu2 %vm543_vm1, %v2788_v13  ;;  %v5297_v13 = vsel %vm4913_vm3, 1, %v17100_v1  ;;  %vm4970_vm3 = vcmp.eq.s32.totalorder %v11902_v63, 17  ;;  %v10797_v63 = vld [vmem:[%s17067_s5 + $0x78] sm:$0xff] }
 0x26b   : > { %10218 = vmatmul.msk.f32.gmra.mxu3 %vm543_vm1, %v3194_v0  ;;  %5071 = vperm.xlu0 %10778, %v5010_v16  }
 0x26c   : > { %17453 = vst [vmem:[#allocation11_spill] sm:$0xff] %v12202_v10  ;;  %10268 = vmatmul.msk.f32.gmra.mxu0 %vm543_vm1, %v3600_v29  ;;  %v5299_v29 = vsel %vm4915_vm4, 1, %v17100_v1 }
 0x26d   : > { %v1480_v32 = vpop.f32.mrf.mxu2 }
 0x26e   : > { %v1886_v47 = vpop.f32.mrf.mxu3  ;;  %v1554_v12 = vadd.f32 %v1480_v32, %v17454_v35  ;;  %5359 = vperm.xlu1 %10779, %v5298_v45   ;;  %v3196_v32 = vld [vmem:[%s10914_s12 + $0x70] sm:$0xff] }
 0x26f   : > { %5356 = vperm.xlu2 %10780, %v5297_v13   ;;  %v2791_v13 = vld [vmem:[%s10914_s12 + $0x77] sm:$0xff] }
 0x270   : > { %v1960_v54 = vadd.f32 %v1886_v47, %v1554_v12  ;;  %v5012_v47 = vsel %vm4964_vm5, 1, %v17100_v1  ;;  %v3602_v12 = vld [vmem:[%s10914_s12 + $0x71] sm:$0xff]  ;;  %vm4971_vm5 = vcmp.eq.s32.totalorder %v10797_v63, 17 }
 0x271   : > { %v2295_v9 = vpop.f32.mrf.mxu0 }
 0x272   : > { %v12218_v0 = vadd.f32 %v2292_v4, %v1960_v54  ;;  %10169 = vmatmul.msk.f32.gmra.mxu2 %vm543_vm1, %v2789_v36  ;;  %v5005_v36 = vsel %vm4957_vm6, 1, %v17100_v1  ;;  %v5013_v54 = vsel %vm4965_vm7, 1, %v17100_v1  ;;  %vm4923_vm6 = vcmp.eq.s32.totalorder %v10797_v63, 0 }
 0x273   : > { %10219 = vmatmul.msk.f32.gmra.mxu3 %vm543_vm1, %v3195_v19  ;;  %5362 = vperm.xlu0 %10778, %v5299_v29  }
 0x274   : > { %17455 = vst [vmem:[#allocation13_spill] sm:$0xff] %v12218_v0  ;;  %10269 = vmatmul.msk.f32.gmra.mxu0 %vm543_vm1, %v3601_v37  ;;  %v17458_v37 = vld [vmem:[#allocation22_spill] sm:$0xff] }
 0x275   : > { %v1483_v30 = vpop.f32.mrf.mxu2 }
 0x276   : > { %v1889_v51 = vpop.f32.mrf.mxu3  ;;  %v1555_v4 = vadd.f32 %v1483_v30, %v17456_v49  ;;  %5077 = vperm.xlu1 %10779, %v5012_v47   ;;  %v3197_v30 = vld [vmem:[%s10914_s12 + $0x78] sm:$0xff]  ;;  %v10793_v47 = vld [vmem:[%s17067_s5 + $0x50] sm:$0xff] }
 0x277   : > { %5056 = vperm.xlu2 %10780, %v5005_v36   ;;  %vm4918_vm10 = vcmp.eq.s32.totalorder %v10793_v47, 0  ;;  %v17460_v36 = vld [vmem:[#allocation23_spill] sm:$0xff]  ;;  %vm4966_vm4 = vcmp.eq.s32.totalorder %v10793_v47, 17 }
 0x278   : > { %v1961_v16 = vadd.f32 %v1889_v51, %v1555_v4  ;;  %v5301_v51 = vsel %vm4917_vm8, 1, %v17100_v1  ;;  %v3603_v4 = vld [vmem:[%s10914_s12 + $0x79] sm:$0xff] }
 0x279   : > { %v2298_v35 = vpop.f32.mrf.mxu0 }
 0x27a   : > { %v12234_v19 = vadd.f32 %v2295_v9, %v1961_v16  ;;  %10170 = vmatmul.msk.f32.gmra.mxu2 %vm543_vm1, %v2790_v31  ;;  %v5294_v31 = vsel %vm4910_vm9, 1, %v17100_v1  ;;  %vm4973_vm9 = vcmp.eq.s32.totalorder %v11933_v60, 17  ;;  %v10800_v60 = vld [vmem:[%s17067_s5 + $0x90] sm:$0xff] }
 0x27b   : > { %10220 = vmatmul.msk.f32.gmra.mxu3 %vm543_vm1, %v3196_v32  ;;  %5080 = vperm.xlu0 %10778, %v5013_v54  }
 0x27c   : > { %17457 = vst [vmem:[#allocation14_spill] sm:$0xff] %v12234_v19  ;;  %10270 = vmatmul.msk.f32.gmra.mxu0 %vm543_vm1, %v3602_v12  ;;  %v5302_v12 = vsel %vm4918_vm10, 1, %v17100_v1  ;;  %v3614_v19 = vld [vmem:[%s10914_s12 + $0xd1] sm:$0xff] }
 0x27d   : > { %v1486_v45 = vpop.f32.mrf.mxu2 }
 0x27e   : > { %v1892_v58 = vpop.f32.mrf.mxu3  ;;  %v1556_v9 = vadd.f32 %v1486_v45, %v17458_v37  ;;  %5368 = vperm.xlu1 %10779, %v5301_v51   ;;  %v3198_v45 = vld [vmem:[%s10914_s12 + $0x80] sm:$0xff] }
 0x27f   : > { %5347 = vperm.xlu2 %10780, %v5294_v31   ;;  %v2793_v31 = vld [vmem:[%s10914_s12 + $0x87] sm:$0xff] }
 0x280   : > { %v1962_v29 = vadd.f32 %v1892_v58, %v1556_v9  ;;  %v5015_v58 = vsel %vm4967_vm11, 1, %v17100_v1  ;;  %v3604_v9 = vld [vmem:[%s10914_s12 + $0x81] sm:$0xff]  ;;  %vm4974_vm11 = vcmp.eq.s32.totalorder %v10800_v60, 17 }
 0x281   : > { %v2301_v49 = vpop.f32.mrf.mxu0 }
 0x282   : > { %v12250_v32 = vadd.f32 %v2298_v35, %v1962_v29  ;;  %10171 = vmatmul.msk.f32.gmra.mxu2 %vm543_vm1, %v2791_v13  ;;  %v5011_v13 = vsel %vm4963_vm12, 1, %v17100_v1  ;;  %v5016_v29 = vsel %vm4968_vm13, 1, %v17100_v1  ;;  %vm4926_vm12 = vcmp.eq.s32.totalorder %v10800_v60, 0  ;;  %v12365_v60 = vld [vmem:[%s17067_s5 + $0x98] sm:$0xff] }
 0x283   : > { %10221 = vmatmul.msk.f32.gmra.mxu3 %vm543_vm1, %v3197_v30  ;;  %5371 = vperm.xlu0 %10778, %v5302_v12  }
 0x284   : > { %17459 = vst [vmem:[#allocation16_spill] sm:$0xff] %v12250_v32  ;;  %10271 = vmatmul.msk.f32.gmra.mxu0 %vm543_vm1, %v3603_v4  ;;  %v17462_v4 = vld [vmem:[#allocation24_spill] sm:$0xff] }
 0x285   : > { %v1489_v16 = vpop.f32.mrf.mxu2 }
 0x286   : > { %v1895_v48 = vpop.f32.mrf.mxu3  ;;  %v1557_v35 = vadd.f32 %v1489_v16, %v17460_v36  ;;  %5086 = vperm.xlu1 %10779, %v5015_v58   ;;  %v3199_v16 = vld [vmem:[%s10914_s12 + $0x88] sm:$0xff] }
 0x287   : > { %5074 = vperm.xlu2 %10780, %v5011_v13  }
 0x288   : > { %v1963_v54 = vadd.f32 %v1895_v48, %v1557_v35  ;;  %v5304_v48 = vsel %vm4920_vm14, 1, %v17100_v1  ;;  %v3605_v35 = vld [vmem:[%s10914_s12 + $0x89] sm:$0xff]  ;;  %vm4927_vm14 = vcmp.eq.s32.totalorder %v12365_v60, 0 }
 0x289   : > { %v2304_v37 = vpop.f32.mrf.mxu0 }
 0x28a   : > { %v12266_v30 = vadd.f32 %v2301_v49, %v1963_v54  ;;  %10172 = vmatmul.msk.f32.gmra.mxu2 %vm543_vm1, %v2792_v55  ;;  %v10795_v55 = vld [vmem:[%s17067_s5 + $0x40] sm:$0xff]  ;;  %v10796_v54 = vld [vmem:[%s17067_s5 + $0x68] sm:$0xff] }
 0x28b   : > { %10222 = vmatmul.msk.f32.gmra.mxu3 %vm543_vm1, %v3198_v45  ;;  %5089 = vperm.xlu0 %10778, %v5016_v29   ;;  %vm4916_vm15 = vcmp.eq.s32.totalorder %v10795_v55, 0  ;;  %vm4921_vm2 = vcmp.eq.s32.totalorder %v10796_v54, 0  ;;  %v3200_v29 = vld [vmem:[%s10914_s12 + $0x90] sm:$0xff]  ;;  %v5019_v55 = vsel %vm4971_vm5, 1, %v17100_v1  ;;  %vm4969_vm10 = vcmp.eq.s32.totalorder %v10796_v54, 17 }
 0x28c   : > { %17461 = vst [vmem:[#allocation17_spill] sm:$0xff] %v12266_v30  ;;  %10272 = vmatmul.msk.f32.gmra.mxu0 %vm543_vm1, %v3604_v9  ;;  %v5300_v45 = vsel %vm4916_vm15, 1, %v17100_v1  ;;  %v5305_v59 = vsel %vm4921_vm2, 1, %v17100_v1  ;;  %vm4976_vm15 = vcmp.eq.s32.totalorder %v11963_v56, 17  ;;  %v10803_v56 = vld [vmem:[%s17067_s5 + $0xa8] sm:$0xff] }
 0x28d   : > { %v1492_v51 = vpop.f32.mrf.mxu2 }
 0x28e   : > { %v1898_v40 = vpop.f32.mrf.mxu3  ;;  %v1558_v49 = vadd.f32 %v1492_v51, %v17462_v4  ;;  %5377 = vperm.xlu1 %10779, %v5304_v48   ;;  %v17464_v51 = vld [vmem:[#allocation25_spill] sm:$0xff]  ;;  %v5018_v4 = vsel %vm4970_vm3, 1, %v17100_v1  ;;  %v5014_v48 = vsel %vm4966_vm4, 1, %v17100_v1  ;;  %vm4977_vm3 = vcmp.eq.s32.totalorder %v10803_v56, 17 }
 0x28f   : > { %5365 = vperm.xlu2 %10780, %v5300_v45   ;;  %v17466_v45 = vld [vmem:[#allocation26_spill] sm:$0xff]  ;;  %vm4929_vm4 = vcmp.eq.s32.totalorder %v10803_v56, 0 }
 0x290   : > { %v1964_v12 = vadd.f32 %v1898_v40, %v1558_v49  ;;  %v2794_v40 = vld [vmem:[%s10914_s12 + $0x8f] sm:$0xff] }
 0x291   : > { %v2307_v36 = vpop.f32.mrf.mxu0 }
 0x292   : > { %v12284_v58 = vadd.f32 %v2304_v37, %v1964_v12  ;;  %10173 = vmatmul.msk.f32.gmra.mxu2 %vm543_vm1, %v2793_v31 }
 0x293   : > { %10223 = vmatmul.msk.f32.gmra.mxu3 %vm543_vm1, %v3199_v16  ;;  %5380 = vperm.xlu0 %10778, %v5305_v59   ;;  %v3606_v16 = vld [vmem:[%s10914_s12 + $0x91] sm:$0xff]  ;;  %v5307_v59 = vsel %vm4923_vm6, 1, %v17100_v1 }
 0x294   : > { %17463 = vst [vmem:[#allocation32_spill] sm:$0xff] %v12284_v58  ;;  %10273 = vmatmul.msk.f32.gmra.mxu0 %vm543_vm1, %v3605_v35 }
 0x295   : > { %v1495_v9 = vpop.f32.mrf.mxu2 }
 0x296   : > { %v1901_v13 = vpop.f32.mrf.mxu3  ;;  %v1559_v37 = vadd.f32 %v1495_v9, %v17464_v51  ;;  %5095 = vperm.xlu1 %10779, %v5018_v4   ;;  %v2795_v9 = vld [vmem:[%s10914_s12 + $0x97] sm:$0xff] }
 0x297   : > { %5083 = vperm.xlu2 %10780, %v5014_v48  }
 0x298   : > { %v1965_v49 = vadd.f32 %v1901_v13, %v1559_v37  ;;  %v3201_v13 = vld [vmem:[%s10914_s12 + $0x98] sm:$0xff] }
 0x299   : > { %v2310_v31 = vpop.f32.mrf.mxu0 }
 0x29a   : > { %v12300_v12 = vadd.f32 %v2307_v36, %v1965_v49  ;;  %10174 = vmatmul.msk.f32.gmra.mxu2 %vm543_vm1, %v2794_v40  ;;  %v3607_v40 = vld [vmem:[%s10914_s12 + $0x99] sm:$0xff] }
 0x29b   : > { %10224 = vmatmul.msk.f32.gmra.mxu3 %vm543_vm1, %v3200_v29  ;;  %5098 = vperm.xlu0 %10778, %v5019_v55   ;;  %v10798_v29 = vld [vmem:[%s17067_s5 + $0x58] sm:$0xff] }
 0x29c   : > { %17465 = vst [vmem:[#allocation33_spill] sm:$0xff] %v12300_v12  ;;  %10274 = vmatmul.msk.f32.gmra.mxu0 %vm543_vm1, %v3606_v16  ;;  %vm4919_vm7 = vcmp.eq.s32.totalorder %v10798_v29, 0  ;;  %v12326_v16 = vld [vmem:[%s17067_s5 + $0x80] sm:$0xff] }
 0x29d   : > { %v1498_v35 = vpop.f32.mrf.mxu2  ;;  %v5303_v4 = vsel %vm4919_vm7, 1, %v17100_v1  ;;  %vm4924_vm8 = vcmp.eq.s32.totalorder %v12326_v16, 0  ;;  %v2796_v55 = vld [vmem:[%s10914_s12 + $0x9f] sm:$0xff]  ;;  %vm4972_vm2 = vcmp.eq.s32.totalorder %v12326_v16, 17  ;;  %vm4979_vm7 = vcmp.eq.s32.totalorder %v11993_v52, 17 }
 0x29e   : > { %v1904_v47 = vpop.f32.mrf.mxu3  ;;  %v1560_v36 = vadd.f32 %v1498_v35, %v17466_v45  ;;  %5386 = vperm.xlu1 %10779, %v5307_v59   ;;  %v17468_v35 = vld [vmem:[#allocation27_spill] sm:$0xff] }
 0x29f   : > { %5374 = vperm.xlu2 %10780, %v5303_v4   ;;  %v3202_v45 = vld [vmem:[%s10914_s12 + $0xa0] sm:$0xff]  ;;  %v5022_v4 = vsel %vm4974_vm11, 1, %v17100_v1 }
 0x2a0   : > { %v1966_v51 = vadd.f32 %v1904_v47, %v1560_v36  ;;  %v5021_v36 = vsel %vm4973_vm9, 1, %v17100_v1  ;;  %v3608_v59 = vld [vmem:[%s10914_s12 + $0xa1] sm:$0xff] }
 0x2a1   : > { %v2313_v37 = vpop.f32.mrf.mxu0 }
 0x2a2   : > { %v12318_v49 = vadd.f32 %v2310_v31, %v1966_v51  ;;  %10175 = vmatmul.msk.f32.gmra.mxu2 %vm543_vm1, %v2795_v9  ;;  %v5308_v31 = vsel %vm4924_vm8, 1, %v17100_v1  ;;  %v5017_v51 = vsel %vm4969_vm10, 1, %v17100_v1  ;;  %vm4975_vm8 = vcmp.eq.s32.totalorder %v12365_v60, 17  ;;  %v10806_v60 = vld [vmem:[%s17067_s5 + $0xc0] sm:$0xff] }
 0x2a3   : > { %10225 = vmatmul.msk.f32.gmra.mxu3 %vm543_vm1, %v3201_v13  ;;  %5389 = vperm.xlu0 %10778, %v5308_v31   ;;  %v3203_v31 = vld [vmem:[%s10914_s12 + $0xa8] sm:$0xff]  ;;  %v5023_v12 = vsel %vm4975_vm8, 1, %v17100_v1  ;;  %vm4980_vm9 = vcmp.eq.s32.totalorder %v10806_v60, 17  ;;  %vm4932_vm10 = vcmp.eq.s32.totalorder %v10806_v60, 0 }
 0x2a4   : > { %17467 = vst [vmem:[#allocation3_spill] sm:$0xff] %v12318_v49  ;;  %10275 = vmatmul.msk.f32.gmra.mxu0 %vm543_vm1, %v3607_v40  ;;  %v3612_v49 = vld [vmem:[%s10914_s12 + $0xc1] sm:$0xff] }
 0x2a5   : > { %v1501_v48 = vpop.f32.mrf.mxu2 }
 0x2a6   : > { %v1907_v63 = vpop.f32.mrf.mxu3  ;;  %v1561_v47 = vadd.f32 %v1501_v48, %v17468_v35  ;;  %5104 = vperm.xlu1 %10779, %v5021_v36   ;;  %v17470_v48 = vld [vmem:[#allocation28_spill] sm:$0xff]  ;;  %v5310_v35 = vsel %vm4926_vm12, 1, %v17100_v1  ;;  %v10801_v36 = vld [vmem:[%s17067_s5 + $0x70] sm:$0xff] }
 0x2a7   : > { %5092 = vperm.xlu2 %10780, %v5017_v51   ;;  %vm4922_vm13 = vcmp.eq.s32.totalorder %v10801_v36, 0  ;;  %v12360_v51 = vpop.permute.xlu0 %4104 }
 0x2a8   : > { %v1967_v9 = vadd.f32 %v1907_v63, %v1561_v47  ;;  %v2797_v63 = vld [vmem:[%s10914_s12 + $0xa7] sm:$0xff]  ;;  %17472 = vst [vmem:[#allocation6_spill] sm:$0xff] %v12360_v51 }
 0x2a9   : > { %v2316_v13 = vpop.f32.mrf.mxu0 }
 0x2aa   : > { %v12337_v40 = vadd.f32 %v2313_v37, %v1967_v9  ;;  %10176 = vmatmul.msk.f32.gmra.mxu2 %vm543_vm1, %v2796_v55  ;;  %v5306_v9 = vsel %vm4922_vm13, 1, %v17100_v1 }
 0x2ab   : > { %10226 = vmatmul.msk.f32.gmra.mxu3 %vm543_vm1, %v3202_v45  ;;  %5107 = vperm.xlu0 %10778, %v5022_v4   ;;  %v3609_v45 = vld [vmem:[%s10914_s12 + $0xa9] sm:$0xff]  ;;  %v12369_v4 = vpop.permute.xlu1 %4110 }
 0x2ac   : > { %17469 = vst [vmem:[#allocation4_spill] sm:$0xff] %v12337_v40  ;;  %10276 = vmatmul.msk.f32.gmra.mxu0 %vm543_vm1, %v3608_v59  ;;  %v10804_v40 = vld [vmem:[%s17067_s5 + $0x88] sm:$0xff] }
 0x2ad   : > { %v1504_v29 = vpop.f32.mrf.mxu2  ;;  %17473 = vst [vmem:[#allocation7_spill] sm:$0xff] %v12369_v4  ;;  %vm4925_vm5 = vcmp.eq.s32.totalorder %v10804_v40, 0  ;;  %v12413_v40 = vld [vmem:[%s17067_s5 + $0xb0] sm:$0xff] }
 0x2ae   : > { %v1910_v54 = vpop.f32.mrf.mxu3  ;;  %v1562_v37 = vadd.f32 %v1504_v29, %v17470_v48  ;;  %5395 = vperm.xlu1 %10779, %v5310_v35   ;;  %v17474_v48 = vld [vmem:[#allocation29_spill] sm:$0xff]  ;;  %v5024_v35 = vsel %vm4976_vm15, 1, %v17100_v1  ;;  %vm4930_vm6 = vcmp.eq.s32.totalorder %v12413_v40, 0 }
 0x2af   : > { %5383 = vperm.xlu2 %10780, %v5306_v9   ;;  %v3610_v9 = vld [vmem:[%s10914_s12 + $0xb1] sm:$0xff] }
 0x2b0   : > { %v1968_v47 = vadd.f32 %v1910_v54, %v1562_v37  ;;  %v5311_v54 = vsel %vm4927_vm14, 1, %v17100_v1  ;;  %vm4978_vm14 = vcmp.eq.s32.totalorder %v12413_v40, 17  ;;  %v10810_v40 = vld [vmem:[%s17067_s5 + $0xd8] sm:$0xff] }
 0x2b1   : > { %v2319_v55 = vpop.f32.mrf.mxu0  ;;  %vm4983_vm15 = vcmp.eq.s32.totalorder %v10810_v40, 17 }
 0x2b2   : > { %v12355_v59 = vadd.f32 %v2316_v13, %v1968_v47  ;;  %10177 = vmatmul.msk.f32.gmra.mxu2 %vm543_vm1, %v2797_v63  ;;  %v2798_v63 = vld [vmem:[%s10914_s12 + $0xaf] sm:$0xff]  ;;  %v12376_v47 = vpop.permute.xlu2 %4116 }
 0x2b3   : > { %10227 = vmatmul.msk.f32.gmra.mxu3 %vm543_vm1, %v3203_v31  ;;  %5398 = vperm.xlu0 %10778, %v5311_v54   ;;  %v3204_v31 = vld [vmem:[%s10914_s12 + $0xb0] sm:$0xff]  ;;  %17475 = vst [vmem:[#allocation8_spill] sm:$0xff] %v12376_v47  ;;  %v5025_v54 = vsel %vm4977_vm3, 1, %v17100_v1 }
 0x2b4   : > { %17471 = vst [vmem:[#allocation5_spill] sm:$0xff] %v12355_v59  ;;  %10277 = vmatmul.msk.f32.gmra.mxu0 %vm543_vm1, %v3609_v45  ;;  %v5020_v59 = vsel %vm4972_vm2, 1, %v17100_v1  ;;  %vm4935_vm2 = vcmp.eq.s32.totalorder %v10810_v40, 0  ;;  %v12520_v40 = vld [vmem:[%s17067_s5 + $0xe0] sm:$0xff] }
 0x2b5   : > { %v1507_v13 = vpop.f32.mrf.mxu2 }
 0x2b6   : > { %v1913_v29 = vpop.f32.mrf.mxu3  ;;  %v1563_v37 = vadd.f32 %v1507_v13, %v17474_v48  ;;  %5113 = vperm.xlu1 %10779, %v5024_v35   ;;  %v12390_v48 = vpop.permute.xlu0 %4107 }
 0x2b7   : > { %5101 = vperm.xlu2 %10780, %v5020_v59   ;;  %17477 = vst [vmem:[#allocation12_spill] sm:$0xff] %v12390_v48  ;;  %v5313_v59 = vsel %vm4929_vm4, 1, %v17100_v1  ;;  %v12396_v35 = vpop.permute.xlu1 %4113  ;;  %vm4936_vm4 = vcmp.eq.s32.totalorder %v12520_v40, 0 }
 0x2b8   : > { %v1969_v45 = vadd.f32 %v1913_v29, %v1563_v37  ;;  %17479 = vst [vmem:[#allocation15_spill] sm:$0xff] %v12396_v35 }
 0x2b9   : > { %v2322_v36 = vpop.f32.mrf.mxu0 }
 0x2ba   : > { %v12381_v13 = vadd.f32 %v2319_v55, %v1969_v45  ;;  %10178 = vmatmul.msk.f32.gmra.mxu2 %vm543_vm1, %v2798_v63  ;;  %v17478_v55 = vld [vmem:[#allocation30_spill] sm:$0xff]  ;;  %v12403_v56 = vpop.permute.xlu2 %4119 }
 0x2bb   : > { %10228 = vmatmul.msk.f32.gmra.mxu3 %vm543_vm1, %v3204_v31  ;;  %5116 = vperm.xlu0 %10778, %v5025_v54   ;;  %v2799_v63 = vld [vmem:[%s10914_s12 + $0xb7] sm:$0xff]  ;;  %17480 = vst [vmem:[#allocation18_spill] sm:$0xff] %v12403_v56 }
 0x2bc   : > { %17476 = vst [vmem:[#allocation9_spill] sm:$0xff] %v12381_v13  ;;  %10278 = vmatmul.msk.f32.gmra.mxu0 %vm543_vm1, %v3610_v9  ;;  %v3205_v31 = vld [vmem:[%s10914_s12 + $0xb8] sm:$0xff] }
 0x2bd   : > { %v1510_v16 = vpop.f32.mrf.mxu2  ;;  %v3611_v13 = vld [vmem:[%s10914_s12 + $0xb9] sm:$0xff] }
 0x2be   : > { %v1916_v29 = vpop.f32.mrf.mxu3  ;;  %v1564_v37 = vadd.f32 %v1510_v16, %v17478_v55  ;;  %5404 = vperm.xlu1 %10779, %v5313_v59   ;;  %v5309_v16 = vsel %vm4925_vm5, 1, %v17100_v1 }
 0x2bf   : > { %5392 = vperm.xlu2 %10780, %v5309_v16   ;;  %v12427_v58 = vpop.permute.xlu1 %4125 }
 0x2c0   : > { %v1970_v45 = vadd.f32 %v1916_v29, %v1564_v37  ;;  %v17482_v37 = vld [vmem:[#allocation31_spill] sm:$0xff]  ;;  %17484 = vst [vmem:[#allocation21_spill] sm:$0xff] %v12427_v58 }
 0x2c1   : > { %v2325_v9 = vpop.f32.mrf.mxu0 }
 0x2c2   : > { %v12405_v54 = vadd.f32 %v2322_v36, %v1970_v45  ;;  %10179 = vmatmul.msk.f32.gmra.mxu2 %vm543_vm1, %v2799_v63  ;;  %v5314_v36 = vsel %vm4930_vm6, 1, %v17100_v1  ;;  %v2800_v63 = vld [vmem:[%s10914_s12 + $0xbf] sm:$0xff]  ;;  %v12422_v45 = vpop.permute.xlu0 %4122  ;;  %v12434_v52 = vpop.permute.xlu2 %4128 }
 0x2c3   : > { %10229 = vmatmul.msk.f32.gmra.mxu3 %vm543_vm1, %v3205_v31  ;;  %5407 = vperm.xlu0 %10778, %v5314_v36   ;;  %v5027_v31 = vsel %vm4979_vm7, 1, %v17100_v1  ;;  %17483 = vst [vmem:[#allocation20_spill] sm:$0xff] %v12422_v45 }
 0x2c4   : > { %17481 = vst [vmem:[#allocation19_spill] sm:$0xff] %v12405_v54  ;;  %10279 = vmatmul.msk.f32.gmra.mxu0 %vm543_vm1, %v3611_v13  ;;  %v3206_v13 = vld [vmem:[%s10914_s12 + $0xc0] sm:$0xff] }
 0x2c5   : > { %v1513_v29 = vpop.f32.mrf.mxu2  ;;  %17486 = vst [vmem:[#allocation23_spill] sm:$0xff] %v12434_v52 }
 0x2c6   : > { %v1919_v55 = vpop.f32.mrf.mxu3  ;;  %v1565_v59 = vadd.f32 %v1513_v29, %v17482_v37  ;;  %5122 = vperm.xlu1 %10779, %v5027_v31   ;;  %v17487_v37 = vld [vmem:[#allocation34_spill] sm:$0xff] }
 0x2c7   : > { %5110 = vperm.xlu2 %10780, %v5023_v12   ;;  %v3613_v12 = vld [vmem:[%s10914_s12 + $0xc9] sm:$0xff]  ;;  %v12456_v60 = vpop.permute.xlu1 %4134 }
 0x2c8   : > { %v1971_v16 = vadd.f32 %v1919_v55, %v1565_v59  ;;  %17490 = vst [vmem:[#allocation26_spill] sm:$0xff] %v12456_v60 }
 0x2c9   : > { %v2328_v54 = vpop.f32.mrf.mxu0 }
 0x2ca   : > { %v12429_v29 = vadd.f32 %v2325_v9, %v1971_v16  ;;  %10180 = vmatmul.msk.f32.gmra.mxu2 %vm543_vm1, %v2800_v63  ;;  %v5028_v9 = vsel %vm4980_vm9, 1, %v17100_v1  ;;  %v2801_v63 = vld [vmem:[%s10914_s12 + $0xc7] sm:$0xff]  ;;  %v12449_v32 = vpop.permute.xlu0 %4131 }
 0x2cb   : > { %10230 = vmatmul.msk.f32.gmra.mxu3 %vm543_vm1, %v3206_v13  ;;  %5125 = vperm.xlu0 %10778, %v5028_v9   ;;  %v3207_v13 = vld [vmem:[%s10914_s12 + $0xc8] sm:$0xff]  ;;  %17488 = vst [vmem:[#allocation24_spill] sm:$0xff] %v12449_v32  ;;  %v10842_v9 = vmov 0.0  }
 0x2cc   : > { %17485 = vst [vmem:[#allocation22_spill] sm:$0xff] %v12429_v29  ;;  %10280 = vmatmul.msk.f32.gmra.mxu0 %vm543_vm1, %v3612_v49  ;;  %v5316_v49 = vsel %vm4932_vm10, 1, %v17100_v1  ;;  %v10807_v29 = vld [vmem:[%s17067_s5 + $0xa0] sm:$0xff] }
 0x2cd   : > { %v1516_v55 = vpop.f32.mrf.mxu2  ;;  %vm4928_vm11 = vcmp.eq.s32.totalorder %v10807_v29, 0  ;;  %v12461_v29 = vld [vmem:[%s17067_s5 + $0xc8] sm:$0xff]  ;;  %4757 = vst.msk [vmem:[#allocation2 + $0x28] sm:$0xff] %vm543_vm1, %v10842_v9 }
 0x2ce   : > { %v1922_v36 = vpop.f32.mrf.mxu3  ;;  %v1566_v59 = vadd.f32 %v1516_v55, %v17487_v37  ;;  %5413 = vperm.xlu1 %10779, %v5316_v49   ;;  %v5312_v30 = vsel %vm4928_vm11, 1, %v17100_v1  ;;  %vm4933_vm12 = vcmp.eq.s32.totalorder %v12461_v29, 0  ;;  %v3208_v49 = vld [vmem:[%s10914_s12 + $0xd0] sm:$0xff]  ;;  %4754 = vst.msk [vmem:[#allocation2 + $0x10] sm:$0xff] %vm543_vm1, %v10842_v9  ;;  %vm4981_vm6 = vcmp.eq.s32.totalorder %v12461_v29, 17 }
 0x2cf   : > { %5401 = vperm.xlu2 %10780, %v5312_v30   ;;  %v5317_v37 = vsel %vm4933_vm12, 1, %v17100_v1  ;;  %v12472_v30 = vld [vmem:[%s17067_s5 + $0xd0] sm:$0xff]  ;;  %4755 = vst.msk [vmem:[#allocation2 + $0x18] sm:$0xff] %vm543_vm1, %v10842_v9  ;;  %vm4984_vm12 = vcmp.eq.s32.totalorder %v12520_v40, 17  ;;  %v10817_v40 = vld [vmem:[%s17067_s5 + $0x108] sm:$0xff] }
 0x2d0   : > { %v1972_v31 = vadd.f32 %v1922_v36, %v1566_v59  ;;  %v12466_v59 = vpop.permute.xlu2 %4137  ;;  %vm4982_vm13 = vcmp.eq.s32.totalorder %v12472_v30, 17  ;;  %4756 = vst.msk [vmem:[#allocation2 + $0x20] sm:$0xff] %vm543_vm1, %v10842_v9  ;;  %v10814_v29 = vld [vmem:[%s17067_s5 + $0xf0] sm:$0xff]  ;;  %vm4934_vm9 = vcmp.eq.s32.totalorder %v12472_v30, 0  ;;  %v12573_v30 = vld [vmem:[%s17067_s5 + $0xf8] sm:$0xff] }
 0x2d1   : > { %v3811_v16 = vpop.f32.mrf.mxu0  ;;  %17491 = vst [vmem:[#allocation27_spill] sm:$0xff] %v12466_v59  ;;  %vm4986_vm7 = vcmp.eq.s32.totalorder %v10814_v29, 17  ;;  %vm4938_vm8 = vcmp.eq.s32.totalorder %v10814_v29, 0  ;;  %vm4939_vm10 = vcmp.eq.s32.totalorder %v12573_v30, 0 }
 0x2d2   : > { %v12451_v55 = vadd.f32 %v2328_v54, %v1972_v31  ;;  %10181 = vmatmul.msk.f32.gmra.mxu2 %vm543_vm1, %v2801_v63  ;;  %v5030_v31 = vsel %vm4982_vm13, 1, %v17100_v1  ;;  %4758 = vst.msk [vmem:[#allocation2 + $0x1b0] sm:$0xff] %vm543_vm1, %v10842_v9  ;;  %vm4989_vm13 = vcmp.eq.s32.totalorder %v10817_v40, 17 }
 0x2d3   : > { %10231 = vmatmul.msk.f32.gmra.mxu3 %vm543_vm1, %v3207_v13  ;;  %5416 = vperm.xlu0 %10778, %v5317_v37   ;;  %v2802_v13 = vld [vmem:[%s10914_s12 + $0xcf] sm:$0xff]  ;;  %4759 = vst.msk [vmem:[#allocation2 + $0x1b8] sm:$0xff] %vm543_vm1, %v10842_v9 }
 0x2d4   : > { %17489 = vst [vmem:[#allocation25_spill] sm:$0xff] %v12451_v55  ;;  %10281 = vmatmul.msk.f32.gmra.mxu0 %vm543_vm1, %v3613_v12 }
 0x2d5   : > { %v2999_v54 = vpop.f32.mrf.mxu2  ;;  %4760 = vst.msk [vmem:[#allocation2 + $0x1c0] sm:$0xff] %vm543_vm1, %v10842_v9 }
 0x2d6   : > { %v3405_v36 = vpop.f32.mrf.mxu3  ;;  %v3143_v63 = vadd.f32 %v2999_v54, %v11527_v8  ;;  %5131 = vperm.xlu1 %10779, %v5030_v31   ;;  %v5026_v8 = vsel %vm4978_vm14, 1, %v17100_v1  ;;  %4761 = vst.msk [vmem:[#allocation2 + $0x1c8] sm:$0xff] %vm543_vm1, %v10842_v9  ;;  %v3209_v31 = vld [vmem:[%s10914_s12 + $0xd8] sm:$0xff]  ;;  %vm4941_vm14 = vcmp.eq.s32.totalorder %v10817_v40, 0 }
 0x2d7   : > { %5119 = vperm.xlu2 %10780, %v5026_v8  }
 0x2d8   : > { %v3549_v12 = vadd.f32 %v3405_v36, %v3143_v63  ;;  %v12490_v36 = vpop.permute.xlu0 %4140  ;;  %v12498_v63 = vpop.permute.xlu1 %4143 }
 0x2d9   : > { %v3814_v55 = vpop.f32.mrf.mxu0  ;;  %17492 = vst [vmem:[#allocation28_spill] sm:$0xff] %v12490_v36  ;;  %v12505_v8 = vpop.permute.xlu2 %4146 }
 0x2da   : > { %v12483_v54 = vadd.f32 %v3811_v16, %v3549_v12  ;;  %10182 = vmatmul.msk.f32.gmra.mxu2 %vm543_vm1, %v2802_v13  ;;  %17493 = vst [vmem:[#allocation29_spill] sm:$0xff] %v12498_v63  ;;  %v5319_v12 = vsel %vm4935_vm2, 1, %v17100_v1  ;;  %v10811_v63 = vld [vmem:[%s17067_s5 + $0xb8] sm:$0xff] }
 0x2db   : > { %10232 = vmatmul.msk.f32.gmra.mxu3 %vm543_vm1, %v3208_v49  ;;  %v2803_v49 = vld [vmem:[%s10914_s12 + $0xd7] sm:$0xff]  ;;  %17494 = vst [vmem:[#allocation30_spill] sm:$0xff] %v12505_v8  ;;  %vm4931_vm3 = vcmp.eq.s32.totalorder %v10811_v63, 0  ;;  %v2804_v63 = vld [vmem:[%s10914_s12 + $0xdf] sm:$0xff] }
 0x2dc   : > { %10282 = vmatmul.msk.f32.gmra.mxu0 %vm543_vm1, %v3614_v19  ;;  %v5031_v19 = vsel %vm4983_vm15, 1, %v17100_v1  ;;  %v3616_v8 = vld [vmem:[%s10914_s12 + $0xe1] sm:$0xff] }
 0x2dd   : > { %v3002_v16 = vpop.f32.mrf.mxu2  ;;  %5134 = vperm.xlu0 %10778, %v5031_v19  }
 0x2de   : > { %v3408_v37 = vpop.f32.mrf.mxu3  ;;  %v3144_v13 = vadd.f32 %v3002_v16, %v11538_v17  ;;  %5422 = vperm.xlu1 %10779, %v5319_v12   ;;  %v5315_v17 = vsel %vm4931_vm3, 1, %v17100_v1 }
 0x2df   : > { %5410 = vperm.xlu2 %10780, %v5315_v17  }
 0x2e0   : > { %v3550_v0 = vadd.f32 %v3408_v37, %v3144_v13  ;;  %v3210_v13 = vld [vmem:[%s10914_s12 + $0xe0] sm:$0xff] }
 0x2e1   : > { %v3817_v10 = vpop.f32.mrf.mxu0 }
 0x2e2   : > { %v12512_v9 = vadd.f32 %v3814_v55, %v3550_v0  ;;  %10183 = vmatmul.msk.f32.gmra.mxu2 %vm543_vm1, %v2803_v49  ;;  %v5320_v0 = vsel %vm4936_vm4, 1, %v17100_v1  ;;  %v12524_v55 = vpop.permute.xlu0 %4149  ;;  %vm4987_vm4 = vcmp.eq.s32.totalorder %v12573_v30, 17 }
 0x2e3   : > { %10233 = vmatmul.msk.f32.gmra.mxu3 %vm543_vm1, %v3209_v31  ;;  %17495 = vst [vmem:[#allocation31_spill] sm:$0xff] %v12524_v55  ;;  %v12536_v31 = vpop.permute.xlu1 %4152  ;;  %v5318_v55 = vsel %vm4934_vm9, 1, %v17100_v1 }
 0x2e4   : > { %10283 = vmatmul.msk.f32.gmra.mxu0 %vm543_vm1, %v3615_v61  ;;  %v12530_v61 = vld [vmem:[%s17067_s5 + $0xe8] sm:$0xff]  ;;  %17496 = vst [vmem:[#allocation34_spill] sm:$0xff] %v12536_v31 }
 0x2e5   : > { %v3005_v16 = vpop.f32.mrf.mxu2  ;;  %5425 = vperm.xlu0 %10778, %v5320_v0   ;;  %vm4985_vm5 = vcmp.eq.s32.totalorder %v12530_v61, 17  ;;  %v3617_v31 = vld [vmem:[%s10914_s12 + $0xe9] sm:$0xff]  ;;  %vm4937_vm15 = vcmp.eq.s32.totalorder %v12530_v61, 0 }
 0x2e6   : > { %v3411_v37 = vpop.f32.mrf.mxu3  ;;  %v3145_v19 = vadd.f32 %v3005_v16, %v11549_v34  ;;  %v5033_v49 = vsel %vm4985_vm5, 1, %v17100_v1  ;;  %v5029_v34 = vsel %vm4981_vm6, 1, %v17100_v1  ;;  %v12541_v16 = vpop.permute.xlu2 %4155  ;;  %v12626_v61 = vld [vmem:[%s17067_s5 + $0x110] sm:$0xff] }
 0x2e7   : > { %5140 = vperm.xlu1 %10779, %v5033_v49   ;;  %17497 = vst [vmem:[#allocation35_spill] sm:$0xff] %v12541_v16  ;;  %5128 = vperm.xlu2 %10780, %v5029_v34   ;;  %v5034_v49 = vsel %vm4986_vm7, 1, %v17100_v1  ;;  %vm4942_vm2 = vcmp.eq.s32.totalorder %v12626_v61, 0 }
 0x2e8   : > { %v3551_v12 = vadd.f32 %v3411_v37, %v3145_v19 }
 0x2e9   : > { %v3820_v17 = vpop.f32.mrf.mxu0 }
 0x2ea   : > { %v12543_v0 = vadd.f32 %v3817_v10, %v3551_v12  ;;  %10184 = vmatmul.msk.f32.gmra.mxu2 %vm543_vm1, %v2804_v63  ;;  %v2805_v63 = vld [vmem:[%s10914_s12 + $0xe7] sm:$0xff] }
 0x2eb   : > { %10234 = vmatmul.msk.f32.gmra.mxu3 %vm543_vm1, %v3210_v13  ;;  %v3211_v12 = vld [vmem:[%s10914_s12 + $0xe8] sm:$0xff]  ;;  %v5322_v13 = vsel %vm4938_vm8, 1, %v17100_v1  ;;  %v12561_v36 = vpop.permute.xlu1 %4161 }
 0x2ec   : > { %10284 = vmatmul.msk.f32.gmra.mxu0 %vm543_vm1, %v3616_v8  ;;  %v12556_v8 = vpop.permute.xlu0 %4158  ;;  %17499 = vst [vmem:[#allocation37_spill] sm:$0xff] %v12561_v36  ;;  %v5321_v36 = vsel %vm4937_vm15, 1, %v17100_v1 }
 0x2ed   : > { %v3008_v37 = vpop.f32.mrf.mxu2  ;;  %5143 = vperm.xlu0 %10778, %v5034_v49   ;;  %17498 = vst [vmem:[#allocation36_spill] sm:$0xff] %v12556_v8 }
 0x2ee   : > { %v3414_v19 = vpop.f32.mrf.mxu3  ;;  %v3146_v10 = vadd.f32 %v3008_v37, %v11560_v53  ;;  %v12568_v29 = vpop.permute.xlu2 %4164 }
 0x2ef   : > { %5431 = vperm.xlu1 %10779, %v5322_v13   ;;  %17500 = vst [vmem:[#allocation38_spill] sm:$0xff] %v12568_v29  ;;  %5419 = vperm.xlu2 %10780, %v5318_v55   ;;  %v2806_v55 = vld [vmem:[%s10914_s12 + $0xef] sm:$0xff]  ;;  %v3619_v29 = vld [vmem:[%s10914_s12 + $0xf9] sm:$0xff] }
 0x2f0   : > { %v3552_v34 = vadd.f32 %v3414_v19, %v3146_v10  ;;  %v5323_v19 = vsel %vm4939_vm10, 1, %v17100_v1  ;;  %v3212_v10 = vld [vmem:[%s10914_s12 + $0xf0] sm:$0xff]  ;;  %vm4990_vm10 = vcmp.eq.s32.totalorder %v12626_v61, 17  ;;  %v10823_v61 = vld [vmem:[%s17067_s5 + $0x138] sm:$0xff] }
 0x2f1   : > { %v3823_v16 = vpop.f32.mrf.mxu0 }
 0x2f2   : > { %v12563_v53 = vadd.f32 %v3820_v17, %v3552_v34  ;;  %10185 = vmatmul.msk.f32.gmra.mxu2 %vm543_vm1, %v2805_v63  ;;  %v3618_v34 = vld [vmem:[%s10914_s12 + $0xf1] sm:$0xff] }
 0x2f3   : > { %10235 = vmatmul.msk.f32.gmra.mxu3 %vm543_vm1, %v3211_v12 }
 0x2f4   : > { %10285 = vmatmul.msk.f32.gmra.mxu0 %vm543_vm1, %v3617_v31  ;;  %v12581_v31 = vld [vmem:[%s17067_s5 + $0x100] sm:$0xff] }
 0x2f5   : > { %v3011_v17 = vpop.f32.mrf.mxu2  ;;  %5434 = vperm.xlu0 %10778, %v5323_v19   ;;  %vm4988_vm11 = vcmp.eq.s32.totalorder %v12581_v31, 17  ;;  %vm4940_vm7 = vcmp.eq.s32.totalorder %v12581_v31, 0  ;;  %v12677_v31 = vld [vmem:[%s17067_s5 + $0x128] sm:$0xff] }
 0x2f6   : > { %v3417_v37 = vpop.f32.mrf.mxu3  ;;  %v3147_v49 = vadd.f32 %v3011_v17, %v11571_v6  ;;  %v5036_v63 = vsel %vm4988_vm11, 1, %v17100_v1  ;;  %v5032_v6 = vsel %vm4984_vm12, 1, %v17100_v1  ;;  %v12590_v17 = vpop.permute.xlu0 %4167  ;;  %vm4945_vm8 = vcmp.eq.s32.totalorder %v12677_v31, 0 }
 0x2f7   : > { %5149 = vperm.xlu1 %10779, %v5036_v63   ;;  %17501 = vst [vmem:[#allocation39_spill] sm:$0xff] %v12590_v17  ;;  %5137 = vperm.xlu2 %10780, %v5032_v6   ;;  %vm4995_vm11 = vcmp.eq.s32.totalorder %v10823_v61, 17  ;;  %vm4947_vm12 = vcmp.eq.s32.totalorder %v10823_v61, 0 }
 0x2f8   : > { %v3553_v12 = vadd.f32 %v3417_v37, %v3147_v49  ;;  %v12597_v37 = vpop.permute.xlu1 %4170 }
 0x2f9   : > { %v3826_v13 = vpop.f32.mrf.mxu0  ;;  %17502 = vst [vmem:[#allocation40_spill] sm:$0xff] %v12597_v37  ;;  %v5325_v37 = vsel %vm4941_vm14, 1, %v17100_v1 }
 0x2fa   : > { %v12592_v19 = vadd.f32 %v3823_v16, %v3553_v12  ;;  %10186 = vmatmul.msk.f32.gmra.mxu2 %vm543_vm1, %v2806_v55  ;;  %v5037_v16 = vsel %vm4989_vm13, 1, %v17100_v1  ;;  %v12603_v12 = vpop.permute.xlu2 %4173 }
 0x2fb   : > { %10236 = vmatmul.msk.f32.gmra.mxu3 %vm543_vm1, %v3212_v10  ;;  %17503 = vst [vmem:[#allocation41_spill] sm:$0xff] %v12603_v12  ;;  %v2807_v10 = vld [vmem:[%s10914_s12 + $0xf7] sm:$0xff]  ;;  %v5324_v12 = vsel %vm4940_vm7, 1, %v17100_v1 }
 0x2fc   : > { %10286 = vmatmul.msk.f32.gmra.mxu0 %vm543_vm1, %v3618_v34  ;;  %v3213_v34 = vld [vmem:[%s10914_s12 + $0xf8] sm:$0xff] }
 0x2fd   : > { %v3014_v49 = vpop.f32.mrf.mxu2  ;;  %5152 = vperm.xlu0 %10778, %v5037_v16   ;;  %v2808_v16 = vld [vmem:[%s10914_s12 + $0xff] sm:$0xff] }
 0x2fe   : > { %v3420_v63 = vpop.f32.mrf.mxu3  ;;  %v3148_v55 = vadd.f32 %v3014_v49, %v11582_v46  ;;  %v10313_v46 = vld [vmem:[%s17065_s3 + $0x4] sm:$0xf]  ;;  %v5326_v49 = vsel %vm4942_vm2, 1, %v17100_v1  ;;  %vm4993_vm2 = vcmp.eq.s32.totalorder %v12677_v31, 17  ;;  %v10826_v31 = vld [vmem:[%s17067_s5 + $0x150] sm:$0xff] }
 0x2ff   : > { %5440 = vperm.xlu1 %10779, %v5325_v37   ;;  %10314 = vmatpush.msk.msra.mxu1 %vm17352_vm0, %v10313_v46  ;;  %v12621_v37 = vpop.permute.xlu0 %4176 }
 0x300   : > { %v3554_v6 = vadd.f32 %v3420_v63, %v3148_v55  ;;  %17504 = vst [vmem:[#allocation42_spill] sm:$0xff] %v12621_v37  ;;  %5428 = vperm.xlu2 %10780, %v5321_v36   ;;  %v12630_v63 = vpop.permute.xlu1 %4179  ;;  %v12636_v36 = vld [vmem:[%s17067_s5 + $0x118] sm:$0xff]  ;;  %v3214_v55 = vld [vmem:[%s10914_s12 + $0x100] sm:$0xff] }
 0x301   : > { %v3829_v17 = vpop.f32.mrf.mxu0  ;;  %17505 = vst [vmem:[#allocation43_spill] sm:$0xff] %v12630_v63  ;;  %vm4991_vm3 = vcmp.eq.s32.totalorder %v12636_v36, 17  ;;  %v3620_v37 = vld [vmem:[%s10914_s12 + $0x101] sm:$0xff]  ;;  %v3621_v63 = vld [vmem:[%s10914_s12 + $0x109] sm:$0xff]  ;;  %vm4943_vm13 = vcmp.eq.s32.totalorder %v12636_v36, 0 }
 0x302   : > { %v12612_v8 = vadd.f32 %v3826_v13, %v3554_v6  ;;  %10187 = vmatmul.msk.f32.gmra.mxu2 %vm543_vm1, %v2807_v10  ;;  %v5039_v10 = vsel %vm4991_vm3, 1, %v17100_v1  ;;  %v12728_v36 = vld [vmem:[%s17067_s5 + $0x140] sm:$0xff]  ;;  %vm4998_vm3 = vcmp.eq.s32.totalorder %v10826_v31, 17 }
 0x303   : > { %10237 = vmatmul.msk.f32.gmra.mxu3 %vm543_vm1, %v3213_v34  ;;  %v12642_v34 = vpop.permute.xlu2 %4182  ;;  %vm4948_vm14 = vcmp.eq.s32.totalorder %v12728_v36, 0 }
 0x304   : > { %10287 = vmatmul.msk.f32.gmra.mxu0 %vm543_vm1, %v3619_v29  ;;  %17506 = vst [vmem:[#allocation44_spill] sm:$0xff] %v12642_v34  ;;  %v5332_v61 = vsel %vm4948_vm14, 1, %v17100_v1 }
 0x305   : > { %v3017_v13 = vpop.f32.mrf.mxu2  ;;  %5443 = vperm.xlu0 %10778, %v5326_v49  }
 0x306   : > { %v3423_v40 = vpop.f32.mrf.mxu3  ;;  %v3149_v29 = vadd.f32 %v3017_v13, %v11593_v18  ;;  %v5035_v18 = vsel %vm4987_vm4, 1, %v17100_v1  ;;  %vm4950_vm4 = vcmp.eq.s32.totalorder %v10826_v31, 0 }
 0x307   : > { %5158 = vperm.xlu1 %10779, %v5039_v10   ;;  %v12656_v10 = vpop.permute.xlu0 %4185 }
 0x308   : > { %v3555_v6 = vadd.f32 %v3423_v40, %v3149_v29  ;;  %5146 = vperm.xlu2 %10780, %v5035_v18   ;;  %v10820_v40 = vld [vmem:[%s17067_s5 + $0x120] sm:$0xff]  ;;  %17507 = vst [vmem:[#allocation45_spill] sm:$0xff] %v12656_v10 }
 0x309   : > { %v3832_v46 = vpop.f32.mrf.mxu0  ;;  %vm4992_vm5 = vcmp.eq.s32.totalorder %v10820_v40, 17  ;;  %vm4944_vm6 = vcmp.eq.s32.totalorder %v10820_v40, 0 }
 0x30a   : > { %v12647_v13 = vadd.f32 %v3829_v17, %v3555_v6  ;;  %10188 = vmatmul.msk.f32.gmra.mxu2 %vm543_vm1, %v2808_v16  ;;  %v5040_v29 = vsel %vm4992_vm5, 1, %v17100_v1  ;;  %v2809_v16 = vld [vmem:[%s10914_s12 + $0x107] sm:$0xff]  ;;  %v12662_v6 = vpop.permute.xlu1 %4188 }
 0x30b   : > { %10238 = vmatmul.msk.f32.gmra.mxu3 %vm543_vm1, %v3214_v55  ;;  %v3215_v55 = vld [vmem:[%s10914_s12 + $0x108] sm:$0xff]  ;;  %17508 = vst [vmem:[#allocation46_spill] sm:$0xff] %v12662_v6  ;;  %v12667_v10 = vpop.permute.xlu2 %4191 }
 0x30c   : > { %10288 = vmatmul.msk.f32.gmra.mxu0 %vm543_vm1, %v3620_v37  ;;  %v5328_v37 = vsel %vm4944_vm6, 1, %v17100_v1  ;;  %17509 = vst [vmem:[#allocation47_spill] sm:$0xff] %v12667_v10 }
 0x30d   : > { %v3020_v30 = vpop.f32.mrf.mxu2  ;;  %5161 = vperm.xlu0 %10778, %v5040_v29   ;;  %v3216_v29 = vld [vmem:[%s10914_s12 + $0x110] sm:$0xff] }
 0x30e   : > { %v3426_v49 = vpop.f32.mrf.mxu3  ;;  %v3150_v17 = vadd.f32 %v3020_v30, %v11604_v15 }
 0x30f   : > { %5449 = vperm.xlu1 %10779, %v5328_v37  }
 0x310   : > { %v3556_v18 = vadd.f32 %v3426_v49, %v3150_v17  ;;  %5437 = vperm.xlu2 %10780, %v5324_v12   ;;  %v2810_v12 = vld [vmem:[%s10914_s12 + $0x10f] sm:$0xff] }
 0x311   : > { %v3835_v34 = vpop.f32.mrf.mxu0 }
 0x312   : > { %v12669_v15 = vadd.f32 %v3832_v46, %v3556_v18  ;;  %10189 = vmatmul.msk.f32.gmra.mxu2 %vm543_vm1, %v2809_v16  ;;  %v5329_v46 = vsel %vm4945_vm8, 1, %v17100_v1  ;;  %v12691_v16 = vpop.permute.xlu0 %4194  ;;  %v3622_v18 = vld [vmem:[%s10914_s12 + $0x111] sm:$0xff]  ;;  %vm4996_vm8 = vcmp.eq.s32.totalorder %v12728_v36, 17  ;;  %v10829_v36 = vld [vmem:[%s17067_s5 + $0x168] sm:$0xff] }
 0x313   : > { %10239 = vmatmul.msk.f32.gmra.mxu3 %vm543_vm1, %v3215_v55  ;;  %17510 = vst [vmem:[#allocation48_spill] sm:$0xff] %v12691_v16  ;;  %v5327_v16 = vsel %vm4943_vm13, 1, %v17100_v1 }
 0x314   : > { %10289 = vmatmul.msk.f32.gmra.mxu0 %vm543_vm1, %v3621_v63  ;;  %v12685_v63 = vld [vmem:[%s17067_s5 + $0x130] sm:$0xff] }
 0x315   : > { %v3023_v40 = vpop.f32.mrf.mxu2  ;;  %5452 = vperm.xlu0 %10778, %v5329_v46   ;;  %vm4994_vm9 = vcmp.eq.s32.totalorder %v12685_v63, 17  ;;  %vm4946_vm5 = vcmp.eq.s32.totalorder %v12685_v63, 0 }
 0x316   : > { %v3429_v30 = vpop.f32.mrf.mxu3  ;;  %v3151_v49 = vadd.f32 %v3023_v40, %v11615_v41  ;;  %v5042_v17 = vsel %vm4994_vm9, 1, %v17100_v1  ;;  %v5038_v41 = vsel %vm4990_vm10, 1, %v17100_v1  ;;  %v12696_v40 = vpop.permute.xlu1 %4197  ;;  %vm5001_vm9 = vcmp.eq.s32.totalorder %v10829_v36, 17 }
 0x317   : > { %5167 = vperm.xlu1 %10779, %v5042_v17   ;;  %17511 = vst [vmem:[#allocation49_spill] sm:$0xff] %v12696_v40  ;;  %vm4953_vm10 = vcmp.eq.s32.totalorder %v10829_v36, 0 }
 0x318   : > { %v3557_v55 = vadd.f32 %v3429_v30, %v3151_v49  ;;  %v12703_v30 = vpop.permute.xlu2 %4200  ;;  %5155 = vperm.xlu2 %10780, %v5038_v41   ;;  %v3623_v41 = vld [vmem:[%s10914_s12 + $0x119] sm:$0xff] }
 0x319   : > { %v3838_v37 = vpop.f32.mrf.mxu0  ;;  %17512 = vst [vmem:[#allocation50_spill] sm:$0xff] %v12703_v30 }
 0x31a   : > { %v12698_v46 = vadd.f32 %v3835_v34, %v3557_v55  ;;  %10190 = vmatmul.msk.f32.gmra.mxu2 %vm543_vm1, %v2810_v12  ;;  %v5043_v34 = vsel %vm4995_vm11, 1, %v17100_v1  ;;  %v2811_v12 = vld [vmem:[%s10914_s12 + $0x117] sm:$0xff]  ;;  %v12716_v10 = vpop.permute.xlu0 %4203 }
 0x31b   : > { %10240 = vmatmul.msk.f32.gmra.mxu3 %vm543_vm1, %v3216_v29  ;;  %v3217_v29 = vld [vmem:[%s10914_s12 + $0x118] sm:$0xff]  ;;  %17513 = vst [vmem:[#allocation51_spill] sm:$0xff] %v12716_v10  ;;  %v5330_v10 = vsel %vm4946_vm5, 1, %v17100_v1  ;;  %vm17348_vm5 = vcmp.eq.s32.totalorder %v12360_v51, 1 }
 0x31c   : > { %10290 = vmatmul.msk.f32.gmra.mxu0 %vm543_vm1, %v3622_v18  ;;  %v5331_v18 = vsel %vm4947_vm12, 1, %v17100_v1 }
 0x31d   : > { %v3026_v49 = vpop.f32.mrf.mxu2  ;;  %5170 = vperm.xlu0 %10778, %v5043_v34   ;;  %v2812_v34 = vld [vmem:[%s10914_s12 + $0x11f] sm:$0xff] }
 0x31e   : > { %v3432_v17 = vpop.f32.mrf.mxu3  ;;  %v3152_v55 = vadd.f32 %v3026_v49, %v11626_v62  ;;  %v12723_v62 = vpop.permute.xlu1 %4206 }
 0x31f   : > { %5458 = vperm.xlu1 %10779, %v5331_v18   ;;  %17514 = vst [vmem:[#allocation52_spill] sm:$0xff] %v12723_v62  ;;  %v3625_v62 = vld [vmem:[%s10914_s12 + $0x129] sm:$0xff] }
 0x320   : > { %v3558_v40 = vadd.f32 %v3432_v17, %v3152_v55  ;;  %5446 = vperm.xlu2 %10780, %v5327_v16   ;;  %v12732_v49 = vpop.permute.xlu2 %4209  ;;  %v12738_v16 = vld [vmem:[%s17067_s5 + $0x148] sm:$0xff]  ;;  %v3218_v55 = vld [vmem:[%s10914_s12 + $0x120] sm:$0xff] }
 0x321   : > { %v3841_v30 = vpop.f32.mrf.mxu0  ;;  %17515 = vst [vmem:[#allocation53_spill] sm:$0xff] %v12732_v49  ;;  %vm4997_vm15 = vcmp.eq.s32.totalorder %v12738_v16, 17  ;;  %vm4949_vm11 = vcmp.eq.s32.totalorder %v12738_v16, 0  ;;  %v10830_v16 = vld [vmem:[%s17067_s5 + $0x170] sm:$0xff] }
 0x322   : > { %v12718_v6 = vadd.f32 %v3838_v37, %v3558_v40  ;;  %10191 = vmatmul.msk.f32.gmra.mxu2 %vm543_vm1, %v2811_v12  ;;  %v5045_v12 = vsel %vm4997_vm15, 1, %v17100_v1  ;;  %vm4954_vm12 = vcmp.eq.s32.totalorder %v10830_v16, 0 }
 0x323   : > { %10241 = vmatmul.msk.f32.gmra.mxu3 %vm543_vm1, %v3217_v29 }
 0x324   : > { %10291 = vmatmul.msk.f32.gmra.mxu0 %vm543_vm1, %v3623_v41  ;;  %v3624_v41 = vld [vmem:[%s10914_s12 + $0x121] sm:$0xff] }
 0x325   : > { %v3029_v37 = vpop.f32.mrf.mxu2  ;;  %5461 = vperm.xlu0 %10778, %v5332_v61   ;;  %v12752_v61 = vpop.permute.xlu0 %4212 }
 0x326   : > { %v3435_v40 = vpop.f32.mrf.mxu3  ;;  %v3153_v17 = vadd.f32 %v3029_v37, %v11637_v2  ;;  %v5041_v2 = vsel %vm4993_vm2, 1, %v17100_v1  ;;  %17516 = vst [vmem:[#allocation54_spill] sm:$0xff] %v12752_v61  ;;  %vm5002_vm2 = vcmp.eq.s32.totalorder %v10830_v16, 17 }
 0x327   : > { %5176 = vperm.xlu1 %10779, %v5045_v12   ;;  %v12758_v12 = vpop.permute.xlu1 %4215 }
 0x328   : > { %v3559_v29 = vadd.f32 %v3435_v40, %v3153_v17  ;;  %5164 = vperm.xlu2 %10780, %v5041_v2   ;;  %17517 = vst [vmem:[#allocation55_spill] sm:$0xff] %v12758_v12  ;;  %v12764_v2 = vpop.permute.xlu2 %4218 }
 0x329   : > { %v3844_v18 = vpop.f32.mrf.mxu0  ;;  %17518 = vst [vmem:[#allocation56_spill] sm:$0xff] %v12764_v2 }
 0x32a   : > { %v12747_v37 = vadd.f32 %v3841_v30, %v3559_v29  ;;  %10192 = vmatmul.msk.f32.gmra.mxu2 %vm543_vm1, %v2812_v34  ;;  %v5046_v30 = vsel %vm4998_vm3, 1, %v17100_v1  ;;  %v3219_v29 = vld [vmem:[%s10914_s12 + $0x128] sm:$0xff] }
 0x32b   : > { %10242 = vmatmul.msk.f32.gmra.mxu3 %vm543_vm1, %v3218_v55  ;;  %v2813_v55 = vld [vmem:[%s10914_s12 + $0x127] sm:$0xff] }
 0x32c   : > { %10292 = vmatmul.msk.f32.gmra.mxu0 %vm543_vm1, %v3624_v41  ;;  %v5334_v41 = vsel %vm4950_vm4, 1, %v17100_v1  ;;  %vm17350_vm4 = vcmp.eq.s32.totalorder %v12390_v48, 1 }
 0x32d   : > { %v3032_v40 = vpop.f32.mrf.mxu2  ;;  %5179 = vperm.xlu0 %10778, %v5046_v30  }
 0x32e   : > { %v3438_v17 = vpop.f32.mrf.mxu3  ;;  %v3154_v34 = vadd.f32 %v3032_v40, %v11648_v20  ;;  %v12777_v20 = vld [vmem:[%s17067_s5 + $0x158] sm:$0xff] }
 0x32f   : > { %5467 = vperm.xlu1 %10779, %v5334_v41   ;;  %vm4951_vm6 = vcmp.eq.s32.totalorder %v12777_v20, 0  ;;  %v3626_v41 = vld [vmem:[%s10914_s12 + $0x131] sm:$0xff]  ;;  %vm4999_vm14 = vcmp.eq.s32.totalorder %v12777_v20, 17 }
 0x330   : > { %v3560_v61 = vadd.f32 %v3438_v17, %v3154_v34  ;;  %5455 = vperm.xlu2 %10780, %v5330_v10   ;;  %v12787_v10 = vld [vmem:[%s17067_s5 + $0x160] sm:$0xff]  ;;  %v3220_v17 = vld [vmem:[%s10914_s12 + $0x130] sm:$0xff]  ;;  %v12793_v34 = vpop.permute.xlu1 %4224 }
 0x331   : > { %v3847_v49 = vpop.f32.mrf.mxu0  ;;  %vm5000_vm7 = vcmp.eq.s32.totalorder %v12787_v10, 17  ;;  %17520 = vst [vmem:[#allocation58_spill] sm:$0xff] %v12793_v34  ;;  %v3627_v34 = vld [vmem:[%s10914_s12 + $0x139] sm:$0xff]  ;;  %vm4952_vm15 = vcmp.eq.s32.totalorder %v12787_v10, 0 }
 0x332   : > { %v12769_v12 = vadd.f32 %v3844_v18, %v3560_v61  ;;  %10193 = vmatmul.msk.f32.gmra.mxu2 %vm543_vm1, %v2813_v55  ;;  %v5335_v18 = vsel %vm4951_vm6, 1, %v17100_v1  ;;  %v12781_v61 = vpop.permute.xlu0 %4221  ;;  %v5048_v30 = vsel %vm5000_vm7, 1, %v17100_v1  ;;  %vm17346_vm6 = vcmp.eq.s32.totalorder %v12369_v4, 1 }
 0x333   : > { %10243 = vmatmul.msk.f32.gmra.mxu3 %vm543_vm1, %v3219_v29  ;;  %17519 = vst [vmem:[#allocation57_spill] sm:$0xff] %v12781_v61  ;;  %v5333_v61 = vsel %vm4949_vm11, 1, %v17100_v1  ;;  %vm17344_vm7 = vcmp.eq.s32.totalorder %v12396_v35, 1  ;;  %vm17335_vm11 = vcmp.eq.s32.totalorder %v12427_v58, 1 }
 0x334   : > { %10293 = vmatmul.msk.f32.gmra.mxu0 %vm543_vm1, %v3625_v62  ;;  %v2814_v62 = vld [vmem:[%s10914_s12 + $0x12f] sm:$0xff] }
 0x335   : > { %v3035_v63 = vpop.f32.mrf.mxu2  ;;  %5470 = vperm.xlu0 %10778, %v5335_v18  }
 0x336   : > { %v3441_v31 = vpop.f32.mrf.mxu3  ;;  %v3155_v40 = vadd.f32 %v3035_v63, %v11662_v24  ;;  %v5044_v24 = vsel %vm4996_vm8, 1, %v17100_v1  ;;  %v12798_v63 = vpop.permute.xlu2 %4227  ;;  %vm17342_vm8 = vcmp.eq.s32.totalorder %v12376_v47, 1 }
 0x337   : > { %5185 = vperm.xlu1 %10779, %v5048_v30   ;;  %17521 = vst [vmem:[#allocation59_spill] sm:$0xff] %v12798_v63  ;;  %v5049_v30 = vsel %vm5001_vm9, 1, %v17100_v1  ;;  %vm17339_vm9 = vcmp.eq.s32.totalorder %v12403_v56, 1 }
 0x338   : > { %v3561_v55 = vadd.f32 %v3441_v31, %v3155_v40  ;;  %5173 = vperm.xlu2 %10780, %v5044_v24   ;;  %v12818_v2 = vpop.permute.xlu1 %4233 }
 0x339   : > { %v3850_v29 = vpop.f32.mrf.mxu0  ;;  %17523 = vst [vmem:[#allocation61_spill] sm:$0xff] %v12818_v2  ;;  %v3223_v2 = vld [vmem:[%s10914_s12 + $0x148] sm:$0xff] }
 0x33a   : > { %v12800_v18 = vadd.f32 %v3847_v49, %v3561_v55  ;;  %10194 = vmatmul.msk.f32.gmra.mxu2 %vm543_vm1, %v2814_v62  ;;  %v2815_v62 = vld [vmem:[%s10914_s12 + $0x137] sm:$0xff] }
 0x33b   : > { %10244 = vmatmul.msk.f32.gmra.mxu3 %vm543_vm1, %v3220_v17  ;;  %v3221_v55 = vld [vmem:[%s10914_s12 + $0x138] sm:$0xff]  ;;  %v5337_v17 = vsel %vm4953_vm10, 1, %v17100_v1  ;;  %vm17337_vm10 = vcmp.eq.s32.totalorder %v12422_v45, 1 }
 0x33c   : > { %10294 = vmatmul.msk.f32.gmra.mxu0 %vm543_vm1, %v3626_v41  ;;  %v12813_v41 = vpop.permute.xlu0 %4230 }
 0x33d   : > { %v3038_v31 = vpop.f32.mrf.mxu2  ;;  %5188 = vperm.xlu0 %10778, %v5049_v30   ;;  %17522 = vst [vmem:[#allocation60_spill] sm:$0xff] %v12813_v41 }
 0x33e   : > { %v3444_v40 = vpop.f32.mrf.mxu3  ;;  %v3156_v49 = vadd.f32 %v3038_v31, %v11676_v28  ;;  %v12825_v36 = vpop.permute.xlu2 %4236 }
 0x33f   : > { %5476 = vperm.xlu1 %10779, %v5337_v17   ;;  %17524 = vst [vmem:[#allocation62_spill] sm:$0xff] %v12825_v36 }
 0x340   : > { %v3562_v24 = vadd.f32 %v3444_v40, %v3156_v49  ;;  %5464 = vperm.xlu2 %10780, %v5333_v61   ;;  %v2816_v61 = vld [vmem:[%s10914_s12 + $0x13f] sm:$0xff] }
 0x341   : > { %v3853_v63 = vpop.f32.mrf.mxu0  ;;  %v3222_v49 = vld [vmem:[%s10914_s12 + $0x140] sm:$0xff] }
 0x342   : > { %v12820_v28 = vadd.f32 %v3850_v29, %v3562_v24  ;;  %10195 = vmatmul.msk.f32.gmra.mxu2 %vm543_vm1, %v2815_v62  ;;  %v5338_v29 = vsel %vm4954_vm12, 1, %v17100_v1  ;;  %v3628_v24 = vld [vmem:[%s10914_s12 + $0x141] sm:$0xff]  ;;  %vm17170_vm12 = vcmp.eq.s32.totalorder %v12434_v52, 1 }
 0x343   : > { %10245 = vmatmul.msk.f32.gmra.mxu3 %vm543_vm1, %v3221_v55 }
 0x344   : > { %10295 = vmatmul.msk.f32.gmra.mxu0 %vm543_vm1, %v3627_v34  ;;  %v12835_v34 = vld [vmem:[%s17067_s5 + $0x178] sm:$0xff] }
 0x345   : > { %v3041_v31 = vpop.f32.mrf.mxu2  ;;  %5479 = vperm.xlu0 %10778, %v5338_v29   ;;  %vm5003_vm13 = vcmp.eq.s32.totalorder %v12835_v34, 17  ;;  %vm4955_vm3 = vcmp.eq.s32.totalorder %v12835_v34, 0 }
 0x346   : > { %v3447_v40 = vpop.f32.mrf.mxu3  ;;  %v3157_v30 = vadd.f32 %v3041_v31, %v11693_v5  ;;  %v5051_v62 = vsel %vm5003_vm13, 1, %v17100_v1  ;;  %v5047_v5 = vsel %vm4999_vm14, 1, %v17100_v1  ;;  %v12844_v31 = vpop.permute.xlu0 %4239  ;;  %v2817_v1 = vld [vmem:[%s10914_s12 + $0x147] sm:$0xff]  ;;  %vm17172_vm13 = vcmp.eq.s32.totalorder %v12449_v32, 1 }
 0x347   : > { %5194 = vperm.xlu1 %10779, %v5051_v62   ;;  %17525 = vst [vmem:[#allocation63_spill] sm:$0xff] %v12844_v31  ;;  %v12853_v36 = vpop.permute.xlu2 %4245  ;;  %vm17174_vm14 = vcmp.eq.s32.totalorder %v12456_v60, 1  ;;  %v17613_v60 = vld [vmem:[#allocation34_spill] sm:$0xff] }
 0x348   : > { %v3563_v55 = vadd.f32 %v3447_v40, %v3157_v30  ;;  %v12851_v40 = vpop.permute.xlu1 %4242  ;;  %5182 = vperm.xlu2 %10780, %v5047_v5   ;;  %17527 = vst [vmem:[#allocation65_spill] sm:$0xff] %v12853_v36  ;;  %v2818_v36 = vld [vmem:[%s10914_s12 + $0x14f] sm:$0xff] }
 0x349   : > { %v3856_v17 = vpop.f32.mrf.mxu0  ;;  %17526 = vst [vmem:[#allocation64_spill] sm:$0xff] %v12851_v40  ;;  %v3224_v40 = vld [vmem:[%s10914_s12 + $0x150] sm:$0xff] }
 0x34a   : > { %v12846_v29 = vadd.f32 %v3853_v63, %v3563_v55  ;;  %10196 = vmatmul.msk.f32.gmra.mxu2 %vm543_vm1, %v2816_v61  ;;  %v3629_v61 = vld [vmem:[%s10914_s12 + $0x149] sm:$0xff] }
 0x34b   : > { %10246 = vmatmul.msk.f32.gmra.mxu3 %vm543_vm1, %v3222_v49  ;;  %v17528_v49 = vmov 0  }
 0x34c   : > { %10296 = vmatmul.msk.f32.gmra.mxu0 %vm543_vm1, %v3628_v24  ;;  %v5336_v55 = vsel %vm4952_vm15, 1, %v17528_v49  ;;  %v12861_v24 = vpop.f32.mrf.mxu1  ;;  %vm17222_vm15 = vcmp.eq.s32.totalorder %v12466_v59, 1 }
 0x34d   : > { %v3044_v30 = vpop.f32.mrf.mxu2 }
 0x34e   : > { %v3450_v62 = vpop.f32.mrf.mxu3  ;;  %v3158_v20 = vadd.f32 %v3044_v30, %v11719_v25  ;;  %v12868_v25 = vpop.permute.xlu0 %5062 }
 0x34f   : > { %17529 = vst [vmem:[#allocation66_spill] sm:$0xff] %v12868_v25  ;;  %v12875_v41 = vpop.permute.xlu2 %5065 }
 0x350   : > { %v3564_v31 = vadd.f32 %v3450_v62, %v3158_v20  ;;  %5473 = vperm.xlu2 %10780, %v5336_v55   ;;  %v12870_v20 = vpop.permute.xlu1 %5350  ;;  %17531 = vst [vmem:[#allocation68_spill] sm:$0xff] %v12875_v41  ;;  %v3225_v41 = vld [vmem:[%s10914_s12 + $0x158] sm:$0xff] }
 0x351   : > { %v3859_v63 = vpop.f32.mrf.mxu0  ;;  %17530 = vst [vmem:[#allocation67_spill] sm:$0xff] %v12870_v20 }
 0x352   : > { %v12863_v5 = vadd.f32 %v3856_v17, %v3564_v31  ;;  %10197 = vmatmul.msk.f32.gmra.mxu2 %vm543_vm1, %v2817_v1  ;;  %v5050_v31 = vsel %vm5002_vm2, 1, %v17528_v49 }
 0x353   : > { %10247 = vmatmul.msk.f32.gmra.mxu3 %vm543_vm1, %v3223_v2  ;;  %v3630_v2 = vld [vmem:[%s10914_s12 + $0x151] sm:$0xff] }
 0x354   : > { %10297 = vmatmul.msk.f32.gmra.mxu0 %vm543_vm1, %v3629_v61 }
 0x355   : > { %v3047_v30 = vpop.f32.mrf.mxu2 }
 0x356   : > { %v3453_v62 = vpop.f32.mrf.mxu3  ;;  %v3159_v10 = vadd.f32 %v3047_v30, %v11746_v22  ;;  %v12884_v22 = vpop.f32.mrf.mxu1 }
 0x358   : > { %v3565_v17 = vadd.f32 %v3453_v62, %v3159_v10  ;;  %5191 = vperm.xlu2 %10780, %v5050_v31   ;;  %v12886_v62 = vpop.permute.xlu0 %5353  ;;  %v2819_v10 = vld [vmem:[%s10914_s12 + $0x157] sm:$0xff]  ;;  %v12891_v20 = vpop.permute.xlu1 %5068 }
 0x359   : > { %v3862_v1 = vpop.f32.mrf.mxu0  ;;  %17532 = vst [vmem:[#allocation69_spill] sm:$0xff] %v12886_v62 }
 0x35a   : > { %v12879_v61 = vadd.f32 %v3859_v63, %v3565_v17  ;;  %10198 = vmatmul.msk.f32.gmra.mxu2 %vm543_vm1, %v2818_v36  ;;  %17533 = vst [vmem:[#allocation70_spill] sm:$0xff] %v12891_v20  ;;  %v5339_v17 = vsel %vm4955_vm3, 1, %v17528_v49  ;;  %v2820_v49 = vld [vmem:[%s10914_s12 + $0x15f] sm:$0xff] }
 0x35b   : > { %10248 = vmatmul.msk.f32.gmra.mxu3 %vm543_vm1, %v3224_v40  ;;  %v3631_v40 = vld [vmem:[%s10914_s12 + $0x159] sm:$0xff] }
 0x35c   : > { %10298 = vmatmul.msk.f32.gmra.mxu0 %vm543_vm1, %v3630_v2  ;;  %v12896_v2 = vpop.permute.xlu2 %5356 }
 0x35d   : > { %v3050_v55 = vpop.f32.mrf.mxu2  ;;  %17534 = vst [vmem:[#allocation71_spill] sm:$0xff] %v12896_v2 }
 0x35e   : > { %v3456_v30 = vpop.f32.mrf.mxu3  ;;  %v3160_v16 = vadd.f32 %v3050_v55, %v11769_v42 }
 0x360   : > { %v3566_v63 = vadd.f32 %v3456_v30, %v3160_v16  ;;  %5482 = vperm.xlu2 %10780, %v5339_v17   ;;  %v12903_v30 = vpop.f32.mrf.mxu1  ;;  %v3226_v16 = vld [vmem:[%s10914_s12 + $0x160] sm:$0xff]  ;;  %v12908_v2 = vpop.permute.xlu0 %5053 }
 0x361   : > { %v3865_v36 = vpop.f32.mrf.mxu0  ;;  %17535 = vst [vmem:[#allocation72_spill] sm:$0xff] %v12908_v2  ;;  %v3634_v2 = vld [vmem:[%s10914_s12 + $0x171] sm:$0xff] }
 0x362   : > { %v12898_v31 = vadd.f32 %v3862_v1, %v3566_v63  ;;  %10199 = vmatmul.msk.f32.gmra.mxu2 %vm543_vm1, %v2819_v10  ;;  %v3632_v10 = vld [vmem:[%s10914_s12 + $0x161] sm:$0xff] }
 0x363   : > { %10249 = vmatmul.msk.f32.gmra.mxu3 %vm543_vm1, %v3225_v41  ;;  %v12911_v41 = vpop.permute.xlu1 %5341 }
 0x364   : > { %10299 = vmatmul.msk.f32.gmra.mxu0 %vm543_vm1, %v3631_v40  ;;  %17536 = vst [vmem:[#allocation73_spill] sm:$0xff] %v12911_v41 }
 0x365   : > { %v3053_v42 = vpop.f32.mrf.mxu2 }
 0x366   : > { %v3459_v55 = vpop.f32.mrf.mxu3  ;;  %v3161_v34 = vadd.f32 %v3053_v42, %v11800_v11  ;;  %v12918_v11 = vpop.permute.xlu2 %5056 }
 0x367   : > { %17537 = vst [vmem:[#allocation74_spill] sm:$0xff] %v12918_v11 }
 0x368   : > { %v3567_v1 = vadd.f32 %v3459_v55, %v3161_v34  ;;  %v2821_v55 = vld [vmem:[%s10914_s12 + $0x167] sm:$0xff]  ;;  %v12923_v20 = vpop.f32.mrf.mxu1  ;;  %v12926_v41 = vpop.permute.xlu0 %5344 }
 0x369   : > { %v3868_v63 = vpop.f32.mrf.mxu0  ;;  %v3227_v34 = vld [vmem:[%s10914_s12 + $0x168] sm:$0xff]  ;;  %17538 = vst [vmem:[#allocation75_spill] sm:$0xff] %v12926_v41  ;;  %v3228_v41 = vld [vmem:[%s10914_s12 + $0x170] sm:$0xff] }
 0x36a   : > { %v12913_v40 = vadd.f32 %v3865_v36, %v3567_v1  ;;  %10200 = vmatmul.msk.f32.gmra.mxu2 %vm543_vm1, %v2820_v49  ;;  %v3633_v49 = vld [vmem:[%s10914_s12 + $0x169] sm:$0xff] }
 0x36b   : > { %10250 = vmatmul.msk.f32.gmra.mxu3 %vm543_vm1, %v3226_v16 }
 0x36c   : > { %10300 = vmatmul.msk.f32.gmra.mxu0 %vm543_vm1, %v3632_v10 }
 0x36d   : > { %v3056_v17 = vpop.f32.mrf.mxu2 }
 0x36e   : > { %v3462_v42 = vpop.f32.mrf.mxu3  ;;  %v3162_v62 = vadd.f32 %v3056_v17, %v11831_v23  ;;  %v12933_v23 = vpop.permute.xlu1 %5059 }
 0x36f   : > { %17539 = vst [vmem:[#allocation76_spill] sm:$0xff] %v12933_v23  ;;  %v12935_v11 = vpop.permute.xlu2 %5347  ;;  %v3229_v23 = vld [vmem:[%s10914_s12 + $0x178] sm:$0xff] }
 0x370   : > { %v3568_v36 = vadd.f32 %v3462_v42, %v3162_v62  ;;  %17540 = vst [vmem:[#allocation77_spill] sm:$0xff] %v12935_v11  ;;  %v2822_v42 = vld [vmem:[%s10914_s12 + $0x16f] sm:$0xff] }
 0x371   : > { %v3871_v1 = vpop.f32.mrf.mxu0 }
 0x372   : > { %v12928_v16 = vadd.f32 %v3868_v63, %v3568_v36  ;;  %10201 = vmatmul.msk.f32.gmra.mxu2 %vm543_vm1, %v2821_v55  ;;  %v12941_v55 = vpop.f32.mrf.mxu1 }
 0x373   : > { %10251 = vmatmul.msk.f32.gmra.mxu3 %vm543_vm1, %v3227_v34 }
 0x374   : > { %10301 = vmatmul.msk.f32.gmra.mxu0 %vm543_vm1, %v3633_v49  ;;  %v12948_v49 = vpop.permute.xlu0 %5071 }
 0x375   : > { %v3059_v10 = vpop.f32.mrf.mxu2  ;;  %17542 = vst [vmem:[#allocation79_spill] sm:$0xff] %v12948_v49 }
 0x376   : > { %v3465_v17 = vpop.f32.mrf.mxu3  ;;  %v3163_v62 = vadd.f32 %v3059_v10, %v11862_v26  ;;  %v12950_v11 = vpop.permute.xlu1 %5359 }
 0x377   : > { %17543 = vst [vmem:[#allocation80_spill] sm:$0xff] %v12950_v11 }
 0x378   : > { %v3569_v63 = vadd.f32 %v3465_v17, %v3163_v62  ;;  %v2823_v62 = vld [vmem:[%s10914_s12 + $0x177] sm:$0xff] }
 0x379   : > { %v3874_v36 = vpop.f32.mrf.mxu0 }
 0x37a   : > { %v12943_v34 = vadd.f32 %v3871_v1, %v3569_v63  ;;  %10202 = vmatmul.msk.f32.gmra.mxu2 %vm543_vm1, %v2822_v42  ;;  %v12955_v1 = vpop.permute.xlu2 %5074 }
 0x37b   : > { %10252 = vmatmul.msk.f32.gmra.mxu3 %vm543_vm1, %v3228_v41  ;;  %17544 = vst [vmem:[#allocation81_spill] sm:$0xff] %v12955_v1  ;;  %v3635_v41 = vld [vmem:[%s10914_s12 + $0x179] sm:$0xff] }
 0x37c   : > { %17541 = vst [vmem:[#allocation78_spill] sm:$0xff] %v12943_v34  ;;  %10302 = vmatmul.msk.f32.gmra.mxu0 %vm543_vm1, %v3634_v2  ;;  %v12963_v2 = vpop.f32.mrf.mxu1  ;;  %v12965_v11 = vpop.permute.xlu0 %5362  ;;  %v3643_v34 = vld [vmem:[%s10914_s12 + $0x1b9] sm:$0xff] }
 0x37d   : > { %v3062_v26 = vpop.f32.mrf.mxu2  ;;  %17546 = vst [vmem:[#allocation83_spill] sm:$0xff] %v12965_v11 }
 0x37e   : > { %v3468_v10 = vpop.f32.mrf.mxu3  ;;  %v3164_v17 = vadd.f32 %v3062_v26, %v11893_v50 }
 0x380   : > { %v3570_v63 = vadd.f32 %v3468_v10, %v3164_v17  ;;  %v2824_v10 = vld [vmem:[%s10914_s12 + $0x17f] sm:$0xff] }
 0x381   : > { %v3877_v42 = vpop.f32.mrf.mxu0  ;;  %v3230_v17 = vld [vmem:[%s10914_s12 + $0x180] sm:$0xff] }
 0x382   : > { %v12958_v25 = vadd.f32 %v3874_v36, %v3570_v63  ;;  %10203 = vmatmul.msk.f32.gmra.mxu2 %vm543_vm1, %v2823_v62  ;;  %v12970_v36 = vpop.permute.xlu1 %5077  ;;  %v12973_v49 = vpop.permute.xlu2 %5365 }
 0x383   : > { %10253 = vmatmul.msk.f32.gmra.mxu3 %vm543_vm1, %v3229_v23  ;;  %17547 = vst [vmem:[#allocation84_spill] sm:$0xff] %v12970_v36  ;;  %v3636_v23 = vld [vmem:[%s10914_s12 + $0x181] sm:$0xff] }
 0x384   : > { %17545 = vst [vmem:[#allocation82_spill] sm:$0xff] %v12958_v25  ;;  %10303 = vmatmul.msk.f32.gmra.mxu0 %vm543_vm1, %v3635_v41  ;;  %v12980_v11 = vpop.f32.mrf.mxu1  ;;  %v3231_v36 = vld [vmem:[%s10914_s12 + $0x188] sm:$0xff]  ;;  %v12985_v25 = vpop.permute.xlu0 %5080 }
 0x385   : > { %v3065_v50 = vpop.f32.mrf.mxu2  ;;  %17548 = vst [vmem:[#allocation85_spill] sm:$0xff] %v12973_v49  ;;  %v3232_v49 = vld [vmem:[%s10914_s12 + $0x190] sm:$0xff] }
 0x386   : > { %v3471_v26 = vpop.f32.mrf.mxu3  ;;  %v3165_v1 = vadd.f32 %v3065_v50, %v11924_v21  ;;  %17550 = vst [vmem:[#allocation87_spill] sm:$0xff] %v12985_v25 }
 0x388   : > { %v3571_v63 = vadd.f32 %v3471_v26, %v3165_v1  ;;  %v2825_v26 = vld [vmem:[%s10914_s12 + $0x187] sm:$0xff] }
 0x389   : > { %v3880_v62 = vpop.f32.mrf.mxu0 }
 0x38a   : > { %v12975_v41 = vadd.f32 %v3877_v42, %v3571_v63  ;;  %10204 = vmatmul.msk.f32.gmra.mxu2 %vm543_vm1, %v2824_v10  ;;  %v3637_v10 = vld [vmem:[%s10914_s12 + $0x189] sm:$0xff] }
 0x38b   : > { %10254 = vmatmul.msk.f32.gmra.mxu3 %vm543_vm1, %v3230_v17  ;;  %v12990_v17 = vpop.permute.xlu1 %5368 }
 0x38c   : > { %17549 = vst [vmem:[#allocation86_spill] sm:$0xff] %v12975_v41  ;;  %10304 = vmatmul.msk.f32.gmra.mxu0 %vm543_vm1, %v3636_v23  ;;  %v3234_v41 = vld [vmem:[%s10914_s12 + $0x1a0] sm:$0xff] }
 0x38d   : > { %v3068_v21 = vpop.f32.mrf.mxu2  ;;  %17552 = vst [vmem:[#allocation89_spill] sm:$0xff] %v12990_v17  ;;  %v13005_v17 = vpop.f32.mrf.mxu1 }
 0x38e   : > { %v3474_v50 = vpop.f32.mrf.mxu3  ;;  %v3166_v1 = vadd.f32 %v3068_v21, %v11953_v3  ;;  %v12997_v3 = vpop.permute.xlu2 %5083 }
 0x38f   : > { %17554 = vst [vmem:[#allocation91_spill] sm:$0xff] %v12997_v3 }
 0x390   : > { %v3572_v42 = vadd.f32 %v3474_v50, %v3166_v1  ;;  %v2826_v1 = vld [vmem:[%s10914_s12 + $0x18f] sm:$0xff] }
 0x391   : > { %v12987_v63 = vpop.f32.mrf.mxu0 }
 0x392   : > { %17551 = vst [vmem:[#allocation88_spill] sm:$0xff] %v12987_v63  ;;  %v12992_v23 = vadd.f32 %v3880_v62, %v3572_v42  ;;  %10205 = vmatmul.msk.f32.gmra.mxu2 %vm543_vm1, %v2825_v26  ;;  %v3638_v26 = vld [vmem:[%s10914_s12 + $0x191] sm:$0xff]  ;;  %v13010_v42 = vpop.permute.xlu0 %5371 }
 0x393   : > { %10255 = vmatmul.msk.f32.gmra.mxu3 %vm543_vm1, %v3231_v36  ;;  %17557 = vst [vmem:[#allocation94_spill] sm:$0xff] %v13010_v42  ;;  %v13015_v36 = vpop.permute.xlu1 %5086 }
 0x394   : > { %17553 = vst [vmem:[#allocation90_spill] sm:$0xff] %v12992_v23  ;;  %10305 = vmatmul.msk.f32.gmra.mxu0 %vm543_vm1, %v3637_v10  ;;  %v2827_v23 = vld [vmem:[%s10914_s12 + $0x197] sm:$0xff] }
 0x395   : > { %v12999_v21 = vpop.f32.mrf.mxu2  ;;  %17558 = vst [vmem:[#allocation95_spill] sm:$0xff] %v13015_v36  ;;  %v13028_v63 = vpop.f32.mrf.mxu1 }
 0x396   : > { %v13001_v50 = vpop.f32.mrf.mxu3  ;;  %v13021_v25 = vpop.permute.xlu2 %5374 }
 0x397   : > { %17555 = vst [vmem:[#allocation92_spill] sm:$0xff] %v13001_v50 }
 0x398   : > { %17561 = vst [vmem:[#allocation98_spill] sm:$0xff] %v13021_v25 }
 0x399   : > { %v13007_v62 = vpop.f32.mrf.mxu0 }
 0x39a   : > { %17556 = vst [vmem:[#allocation93_spill] sm:$0xff] %v13007_v62  ;;  %10206 = vmatmul.msk.f32.gmra.mxu2 %vm543_vm1, %v2826_v1  ;;  %v3233_v62 = vld [vmem:[%s10914_s12 + $0x198] sm:$0xff] }
 0x39b   : > { %10256 = vmatmul.msk.f32.gmra.mxu3 %vm543_vm1, %v3232_v49  ;;  %v3639_v1 = vld [vmem:[%s10914_s12 + $0x199] sm:$0xff]  ;;  %v13033_v49 = vpop.permute.xlu0 %5089  ;;  %v13039_v36 = vpop.permute.xlu1 %5377 }
 0x39c   : > { %10306 = vmatmul.msk.f32.gmra.mxu0 %vm543_vm1, %v3638_v26  ;;  %17563 = vst [vmem:[#allocation100_spill] sm:$0xff] %v13033_v49 }
 0x39d   : > { %v13017_v10 = vpop.f32.mrf.mxu2  ;;  %17566 = vst [vmem:[#allocation103_spill] sm:$0xff] %v13039_v36 }
 0x39e   : > { %17559 = vst [vmem:[#allocation96_spill] sm:$0xff] %v13017_v10  ;;  %v13019_v3 = vpop.f32.mrf.mxu3 }
 0x39f   : > { %17560 = vst [vmem:[#allocation97_spill] sm:$0xff] %v13019_v3  ;;  %v13043_v3 = vpop.permute.xlu2 %5092 }
 0x3a0   : > { %17567 = vst [vmem:[#allocation104_spill] sm:$0xff] %v13043_v3  ;;  %v2829_v3 = vld [vmem:[%s10914_s12 + $0x1a7] sm:$0xff] }
 0x3a1   : > { %v13025_v42 = vpop.f32.mrf.mxu0 }
 0x3a2   : > { %17562 = vst [vmem:[#allocation99_spill] sm:$0xff] %v13025_v42  ;;  %10207 = vmatmul.msk.f32.gmra.mxu2 %vm543_vm1, %v2827_v23  ;;  %v2828_v42 = vld [vmem:[%s10914_s12 + $0x19f] sm:$0xff] }
 0x3a3   : > { %10257 = vmatmul.msk.f32.gmra.mxu3 %vm543_vm1, %v3233_v62  ;;  %v3640_v62 = vld [vmem:[%s10914_s12 + $0x1a1] sm:$0xff]  ;;  %v13061_v50 = vpop.permute.xlu1 %5095 }
 0x3a4   : > { %10307 = vmatmul.msk.f32.gmra.mxu0 %vm543_vm1, %v3639_v1  ;;  %v13051_v1 = vpop.f32.mrf.mxu1  ;;  %17572 = vst [vmem:[#allocation109_spill] sm:$0xff] %v13061_v50  ;;  %v2830_v50 = vld [vmem:[%s10914_s12 + $0x1af] sm:$0xff] }
 0x3a5   : > { %v13035_v26 = vpop.f32.mrf.mxu2 }
 0x3a6   : > { %17564 = vst [vmem:[#allocation101_spill] sm:$0xff] %v13035_v26  ;;  %v13037_v25 = vpop.f32.mrf.mxu3 }
 0x3a7   : > { %17565 = vst [vmem:[#allocation102_spill] sm:$0xff] %v13037_v25  ;;  %v13057_v25 = vpop.permute.xlu0 %5380  ;;  %v13066_v26 = vpop.permute.xlu2 %5383 }
 0x3a8   : > { %17571 = vst [vmem:[#allocation108_spill] sm:$0xff] %v13057_v25 }
 0x3a9   : > { %v13045_v23 = vpop.f32.mrf.mxu0  ;;  %17574 = vst [vmem:[#allocation111_spill] sm:$0xff] %v13066_v26 }
 0x3aa   : > { %17568 = vst [vmem:[#allocation105_spill] sm:$0xff] %v13045_v23  ;;  %10208 = vmatmul.msk.f32.gmra.mxu2 %vm543_vm1, %v2828_v42  ;;  %v3235_v23 = vld [vmem:[%s10914_s12 + $0x1a8] sm:$0xff] }
 0x3ab   : > { %10258 = vmatmul.msk.f32.gmra.mxu3 %vm543_vm1, %v3234_v41  ;;  %v3641_v41 = vld [vmem:[%s10914_s12 + $0x1a9] sm:$0xff]  ;;  %v13084_v10 = vpop.permute.xlu1 %5386 }
 0x3ac   : > { %10308 = vmatmul.msk.f32.gmra.mxu0 %vm543_vm1, %v3640_v62  ;;  %17579 = vst [vmem:[#allocation116_spill] sm:$0xff] %v13084_v10 }
 0x3ad   : > { %v13053_v49 = vpop.f32.mrf.mxu2 }
 0x3ae   : > { %17569 = vst [vmem:[#allocation106_spill] sm:$0xff] %v13053_v49  ;;  %v13055_v36 = vpop.f32.mrf.mxu3 }
 0x3af   : > { %17570 = vst [vmem:[#allocation107_spill] sm:$0xff] %v13055_v36  ;;  %v13075_v36 = vpop.f32.mrf.mxu1  ;;  %v13079_v49 = vpop.permute.xlu0 %5098 }
 0x3b0   : > { %17577 = vst [vmem:[#allocation114_spill] sm:$0xff] %v13079_v49  ;;  %v3237_v49 = vld [vmem:[%s10914_s12 + $0x1b8] sm:$0xff] }
 0x3b1   : > { %v13063_v42 = vpop.f32.mrf.mxu0 }
 0x3b2   : > { %17573 = vst [vmem:[#allocation110_spill] sm:$0xff] %v13063_v42  ;;  %10209 = vmatmul.msk.f32.gmra.mxu2 %vm543_vm1, %v2829_v3  ;;  %v3236_v42 = vld [vmem:[%s10914_s12 + $0x1b0] sm:$0xff] }
 0x3b3   : > { %10259 = vmatmul.msk.f32.gmra.mxu3 %vm543_vm1, %v3235_v23  ;;  %v3642_v3 = vld [vmem:[%s10914_s12 + $0x1b1] sm:$0xff]  ;;  %v13089_v23 = vpop.permute.xlu2 %5101 }
 0x3b4   : > { %10309 = vmatmul.msk.f32.gmra.mxu0 %vm543_vm1, %v3641_v41  ;;  %17580 = vst [vmem:[#allocation117_spill] sm:$0xff] %v13089_v23 }
 0x3b5   : > { %v13071_v62 = vpop.f32.mrf.mxu2 }
 0x3b6   : > { %17575 = vst [vmem:[#allocation112_spill] sm:$0xff] %v13071_v62  ;;  %v13073_v25 = vpop.f32.mrf.mxu3  ;;  %v2831_v62 = vld [vmem:[%s10914_s12 + $0x1b7] sm:$0xff] }
 0x3b7   : > { %17576 = vst [vmem:[#allocation113_spill] sm:$0xff] %v13073_v25  ;;  %v13100_v10 = vpop.f32.mrf.mxu1 }
 0x3b9   : > { %v13081_v26 = vpop.f32.mrf.mxu0 }
 0x3ba   : > { %17578 = vst [vmem:[#allocation115_spill] sm:$0xff] %v13081_v26  ;;  %10210 = vmatmul.msk.f32.gmra.mxu2 %vm543_vm1, %v2830_v50  ;;  %v13102_v50 = vpop.permute.xlu0 %5389 }
 0x3bb   : > { %10260 = vmatmul.msk.f32.gmra.mxu3 %vm543_vm1, %v3236_v42  ;;  %17584 = vst [vmem:[#allocation121_spill] sm:$0xff] %v13102_v50  ;;  %v13107_v42 = vpop.permute.xlu1 %5104  ;;  %v3238_v50 = vld [vmem:[%s10914_s12 + $0x1c0] sm:$0xff] }
 0x3bc   : > { %10310 = vmatmul.msk.f32.gmra.mxu0 %vm543_vm1, %v3642_v3  ;;  %17585 = vst [vmem:[#allocation122_spill] sm:$0xff] %v13107_v42  ;;  %v13112_v3 = vld [vmem:[%s17064_s2] ss:$0 sm:$0xff]  ;;  %v3644_v42 = vld [vmem:[%s10914_s12 + $0x1c1] sm:$0xff] }
 0x3bd   : > { %v13091_v41 = vpop.f32.mrf.mxu2  ;;  %v13251_v56 = vadd.f32 %v13112_v3, %v12698_v46 }
 0x3be   : > { %17581 = vst [vmem:[#allocation118_spill] sm:$0xff] %v13091_v41  ;;  %v13093_v25 = vpop.f32.mrf.mxu3  ;;  %v13132_v41 = vadd.f32 %v13112_v3, %v12483_v54 }
 0x3bf   : > { %17582 = vst [vmem:[#allocation119_spill] sm:$0xff] %v13093_v25  ;;  %v13118_v25 = vpop.permute.xlu2 %5392 }
 0x3c0   : > { %17587 = vst [vmem:[#allocation124_spill] sm:$0xff] %v13118_v25  ;;  %v13156_v25 = vadd.f32 %v12884_v22, %v12004_v27  ;;  %v4295_v27 = vsel %vm17348_vm5, %v13132_v41, 0.0 }
 0x3c1   : > { %v13097_v26 = vpop.f32.mrf.mxu0  ;;  %17589 = vst [vmem:[#allocation126_spill] sm:$0xff] %v13132_v41 }
 0x3c2   : > { %17583 = vst [vmem:[#allocation120_spill] sm:$0xff] %v13097_v26  ;;  %10211 = vmatmul.msk.f32.gmra.mxu2 %vm543_vm1, %v2831_v62  ;;  %v13122_v62 = vadd.f32 %v13112_v3, %v12512_v9  ;;  %v13144_v9 = vadd.f32 %v12861_v24, %v11974_v7  ;;  %v13164_v7 = vadd.f32 %v12923_v20, %v12056_v38  ;;  %v13167_v24 = vpop.f32.mrf.mxu1 }
 0x3c3   : > { %10261 = vmatmul.msk.f32.gmra.mxu3 %vm543_vm1, %v3237_v49  ;;  %v2832_v49 = vld [vmem:[%s10914_s12 + $0x1bf] sm:$0xff]  ;;  %v13183_v38 = vadd.f32 %v13112_v3, %v12592_v19  ;;  %17599 = vst [vmem:[#allocation136_spill] sm:$0xff] %v13251_v56 }
 0x3c4   : > { %10311 = vmatmul.msk.f32.gmra.mxu0 %vm543_vm1, %v3643_v34  ;;  %17588 = vst [vmem:[#allocation125_spill] sm:$0xff] %v13122_v62  ;;  %v4296_v54 = vsel %vm17350_vm4, %v13122_v62, 0.0 }
 0x3c5   : > { %v13114_v23 = vpop.f32.mrf.mxu2  ;;  %17593 = vst [vmem:[#allocation130_spill] sm:$0xff] %v13183_v38 }
 0x3c6   : > { %v13116_v26 = vpop.f32.mrf.mxu3 }
 0x3c7   : > { %17586 = vst [vmem:[#allocation123_spill] sm:$0xff] %v13116_v26  ;;  %v13136_v26 = vadd.f32 %v13112_v3, %v12543_v0  ;;  %v13151_v0 = vadd.f32 %v13112_v3, %v12563_v53  ;;  %v13169_v53 = vpop.permute.xlu0 %5107  ;;  %v13214_v4 = vpop.permute.xlu2 %5110 }
 0x3c8   : > { %17592 = vst [vmem:[#allocation129_spill] sm:$0xff] %v13169_v53 }
 0x3c9   : > { %v13127_v34 = vpop.f32.mrf.mxu0  ;;  %17590 = vst [vmem:[#allocation127_spill] sm:$0xff] %v13136_v26  ;;  %v4298_v19 = vsel %vm17344_vm7, %v13151_v0, 0.0 }
 0x3ca   : > { %10212 = vmatmul.msk.f32.gmra.mxu2 %vm543_vm1, %v2832_v49  ;;  %17591 = vst [vmem:[#allocation128_spill] sm:$0xff] %v13151_v0  ;;  %v13198_v49 = vpop.permute.xlu1 %5395  ;;  %v4448_v48 = vmul.f32 %v4298_v19, %v4298_v19  ;;  %v17603_v0 = vld [vmem:[#allocation29_spill] sm:$0xff] }
 0x3cb   : > { %10262 = vmatmul.msk.f32.gmra.mxu3 %vm543_vm1, %v3238_v50  ;;  %v13160_v50 = vadd.f32 %v12903_v30, %v12030_v14  ;;  %v4297_v14 = vsel %vm17346_vm6, %v13136_v26, 0.0  ;;  %v13195_v30 = vadd.f32 %v12980_v11, %v12126_v57  ;;  %17594 = vst [vmem:[#allocation131_spill] sm:$0xff] %v13198_v49  ;;  %v13211_v57 = vadd.f32 %v13005_v17, %v12145_v33 }
 0x3cc   : > { %10312 = vmatmul.msk.f32.gmra.mxu0 %vm543_vm1, %v3644_v42  ;;  %v13173_v42 = vadd.f32 %v12941_v55, %v12080_v43  ;;  %v13191_v43 = vadd.f32 %v12963_v2, %v12103_v44  ;;  %v4446_v55 = vmul.f32 %v4296_v54, %v4296_v54  ;;  %v13207_v44 = vadd.f32 %v13112_v3, %v12612_v8 }
 0x3cd   : > { %v13185_v20 = vpop.f32.mrf.mxu2  ;;  %v4445_v11 = vmul.f32 %v4295_v27, %v4295_v27  ;;  %v4447_v2 = vmul.f32 %v4297_v14, %v4297_v14  ;;  %17596 = vst [vmem:[#allocation133_spill] sm:$0xff] %v13214_v4  ;;  %v4299_v8 = vsel %vm17342_vm8, %v13183_v38, 0.0  ;;  %v13225_v33 = vadd.f32 %v13112_v3, %v12647_v13 }
 0x3ce   : > { %v13187_v22 = vpop.f32.mrf.mxu3  ;;  %17595 = vst [vmem:[#allocation132_spill] sm:$0xff] %v13207_v44  ;;  %v4344_v17 = vsel %vm543_vm1, %v4296_v54, 0.0  ;;  %v4494_v35 = vsel %vm543_vm1, %v4446_v55, 0.0  ;;  %v13232_v4 = vadd.f32 %v13028_v63, %v12162_v39  ;;  %v4343_v49 = vsel %vm543_vm1, %v4295_v27, 0.0 }
 0x3cf   : > { %17597 = vst [vmem:[#allocation134_spill] sm:$0xff] %v13225_v33  ;;  %v4300_v47 = vsel %vm17339_vm9, %v13207_v44, 0.0  ;;  %v13240_v13 = vadd.f32 %v13112_v3, %v12669_v15  ;;  %v4493_v54 = vsel %vm543_vm1, %v4445_v11, 0.0  ;;  %v4346_v55 = vsel %vm543_vm1, %v4297_v14, 0.0  ;;  %v17600_v11 = vld [vmem:[#allocation28_spill] sm:$0xff] }
 0x3d0   : > { %v4496_v53 = vsel %vm543_vm1, %v4447_v2, 0.0  ;;  %v4449_v39 = vmul.f32 %v4299_v8, %v4299_v8  ;;  %v4345_v63 = vadd.f32 %v4344_v17, %v4343_v49  ;;  %v4495_v38 = vadd.f32 %v4494_v35, %v4493_v54  ;;  %v13260_v35 = vpop.permute.xlu0 %5398  ;;  %v13262_v17 = vpop.f32.mrf.mxu1 }
 0x3d1   : > { %v13216_v51 = vpop.f32.mrf.mxu0  ;;  %17598 = vst [vmem:[#allocation135_spill] sm:$0xff] %v13240_v13  ;;  %v4301_v27 = vsel %vm17337_vm10, %v13225_v33, 0.0  ;;  %vm17182_vm2 = vcmp.eq.s32.totalorder %v17600_v11, 1  ;;  %v4348_v14 = vsel %vm543_vm1, %v4298_v19, 0.0  ;;  %v4498_v2 = vsel %vm543_vm1, %v4448_v48, 0.0 }
 0x3d2   : > { %v4450_v49 = vmul.f32 %v4300_v47, %v4300_v47  ;;  %17601 = vst [vmem:[#allocation137_spill] sm:$0xff] %v13260_v35  ;;  %v4347_v54 = vadd.f32 %v4346_v55, %v4345_v63  ;;  %v4497_v45 = vadd.f32 %v4496_v53, %v4495_v38  ;;  %v4302_v46 = vsel %vm17335_vm11, %v13240_v13, 0.0  ;;  %v13274_v35 = vpop.permute.xlu1 %5113  ;;  %v17606_v63 = vld [vmem:[#allocation10_spill] sm:$0xff]  ;;  %v13291_v13 = vpop.permute.xlu2 %5401 }
 0x3d3   : > { %v13269_v33 = vadd.f32 %v13112_v3, %v12718_v6  ;;  %vm17186_vm3 = vcmp.eq.s32.totalorder %v17603_v0, 1  ;;  %v4350_v19 = vsel %vm543_vm1, %v4299_v8, 0.0  ;;  %v4500_v48 = vsel %vm543_vm1, %v4449_v39, 0.0  ;;  %17604 = vst [vmem:[#allocation139_spill] sm:$0xff] %v13274_v35 }
 0x3d4   : > { %v4451_v26 = vmul.f32 %v4301_v27, %v4301_v27  ;;  %v4349_v53 = vadd.f32 %v4348_v14, %v4347_v54  ;;  %v4499_v38 = vadd.f32 %v4498_v2, %v4497_v45  ;;  %v4303_v55 = vsel %vm17170_vm12, %v13251_v56, 0.0  ;;  %17607 = vst [vmem:[#allocation10_spill] sm:$0xff] %v13291_v13  ;;  %v17609_v54 = vld [vmem:[#allocation30_spill] sm:$0xff] }
 0x3d5   : > { %v13253_v15 = vpop.f32.mrf.mxu2  ;;  %17602 = vst [vmem:[#allocation138_spill] sm:$0xff] %v13269_v33  ;;  %v13283_v6 = vadd.f32 %v13112_v3, %v12747_v37  ;;  %v13287_v8 = vadd.f32 %v13051_v1, %v17606_v63  ;;  %v4352_v39 = vsel %vm543_vm1, %v4300_v47, 0.0  ;;  %v4502_v58 = vsel %vm543_vm1, %v4450_v49, 0.0 }
 0x3d6   : > { %v13255_v44 = vpop.f32.mrf.mxu3  ;;  %v4452_v35 = vmul.f32 %v4302_v46, %v4302_v46  ;;  %v4351_v45 = vadd.f32 %v4350_v19, %v4349_v53  ;;  %v4501_v14 = vadd.f32 %v4500_v48, %v4499_v38  ;;  %v4304_v2 = vsel %vm17172_vm13, %v13269_v33, 0.0  ;;  %v17611_v38 = vld [vmem:[#allocation31_spill] sm:$0xff] }
 0x3d7   : > { %17605 = vst [vmem:[#allocation140_spill] sm:$0xff] %v13283_v6  ;;  %v13298_v37 = vadd.f32 %v13112_v3, %v12769_v12  ;;  %vm17189_vm12 = vcmp.eq.s32.totalorder %v17609_v54, 1  ;;  %v4354_v1 = vsel %vm543_vm1, %v4301_v27, 0.0  ;;  %v4504_v47 = vsel %vm543_vm1, %v4451_v26, 0.0  ;;  %v17624_v54 = vld [vmem:[#allocation37_spill] sm:$0xff] }
 0x3d8   : > { %v4453_v49 = vmul.f32 %v4303_v55, %v4303_v55  ;;  %v4353_v63 = vadd.f32 %v4352_v39, %v4351_v45  ;;  %v4503_v52 = vadd.f32 %v4502_v58, %v4501_v14  ;;  %v4305_v19 = vsel %vm17174_vm14, %v13283_v6, 0.0  ;;  %v13327_v6 = vpop.permute.xlu0 %5116 }
 0x3d9   : > { %v13276_v62 = vpop.f32.mrf.mxu0  ;;  %17608 = vst [vmem:[#allocation141_spill] sm:$0xff] %v13298_v37  ;;  %v13308_v48 = vadd.f32 %v13112_v3, %v12800_v18  ;;  %vm17198_vm13 = vcmp.eq.s32.totalorder %v17611_v38, 1  ;;  %v4356_v27 = vsel %vm543_vm1, %v4302_v46, 0.0  ;;  %v4506_v26 = vsel %vm543_vm1, %v4452_v35, 0.0 }
 0x3da   : > { %v4454_v39 = vmul.f32 %v4304_v2, %v4304_v2  ;;  %v4355_v58 = vadd.f32 %v4354_v1, %v4353_v63  ;;  %v4505_v45 = vadd.f32 %v4504_v47, %v4503_v52  ;;  %v4306_v14 = vsel %vm17222_vm15, %v13298_v37, 0.0  ;;  %17614 = vst [vmem:[#allocation144_spill] sm:$0xff] %v13327_v6  ;;  %v17616_v63 = vld [vmem:[#allocation11_spill] sm:$0xff] }
 0x3db   : > { %17610 = vst [vmem:[#allocation142_spill] sm:$0xff] %v13308_v48  ;;  %v13322_v18 = vadd.f32 %v13112_v3, %v12820_v28  ;;  %vm17200_vm14 = vcmp.eq.s32.totalorder %v17613_v60, 1  ;;  %v4358_v32 = vsel %vm543_vm1, %v4303_v55, 0.0  ;;  %v4508_v13 = vsel %vm543_vm1, %v4453_v49, 0.0  ;;  %v13342_v49 = vpop.f32.mrf.mxu1  ;;  %v17630_v60 = vld [vmem:[#allocation39_spill] sm:$0xff] }
 0x3dc   : > { %v4455_v46 = vmul.f32 %v4305_v19, %v4305_v19  ;;  %v4357_v52 = vadd.f32 %v4356_v27, %v4355_v58  ;;  %v4507_v1 = vadd.f32 %v4506_v26, %v4505_v45  ;;  %v4307_v47 = vsel %vm17182_vm2, %v13308_v48, 0.0  ;;  %v13346_v26 = vpop.permute.xlu1 %5404  ;;  %v13358_v48 = vpop.permute.xlu2 %5119 }
 0x3dd   : > { %v13310_v53 = vpop.f32.mrf.mxu2  ;;  %17612 = vst [vmem:[#allocation143_spill] sm:$0xff] %v13322_v18  ;;  %v13336_v28 = vadd.f32 %v13112_v3, %v12846_v29  ;;  %v13340_v55 = vadd.f32 %v13075_v36, %v17616_v63  ;;  %v4360_v59 = vsel %vm543_vm1, %v4304_v2, 0.0  ;;  %v4510_v6 = vsel %vm543_vm1, %v4454_v39, 0.0  ;;  %v17619_v36 = vld [vmem:[#allocation35_spill] sm:$0xff] }
 0x3de   : > { %v13312_v12 = vpop.f32.mrf.mxu3  ;;  %v4456_v27 = vmul.f32 %v4306_v14, %v4306_v14  ;;  %17617 = vst [vmem:[#allocation11_spill] sm:$0xff] %v13346_v26  ;;  %v4359_v58 = vadd.f32 %v4358_v32, %v4357_v52  ;;  %v4509_v45 = vadd.f32 %v4508_v13, %v4507_v1  ;;  %v4308_v29 = vsel %vm17186_vm3, %v13322_v18, 0.0 }
 0x3df   : > { %17615 = vst [vmem:[#allocation145_spill] sm:$0xff] %v13336_v28  ;;  %v13353_v11 = vadd.f32 %v13112_v3, %v12863_v5  ;;  %vm17204_vm2 = vcmp.eq.s32.totalorder %v17619_v36, 1  ;;  %v4362_v63 = vsel %vm543_vm1, %v4305_v19, 0.0  ;;  %v4512_v2 = vsel %vm543_vm1, %v4455_v46, 0.0  ;;  %v17622_v19 = vld [vmem:[#allocation36_spill] sm:$0xff] }
 0x3e0   : > { %v4457_v39 = vmul.f32 %v4307_v47, %v4307_v47  ;;  %17620 = vst [vmem:[#allocation147_spill] sm:$0xff] %v13358_v48  ;;  %v4361_v26 = vadd.f32 %v4360_v59, %v4359_v58  ;;  %v4511_v32 = vadd.f32 %v4510_v6, %v4509_v45  ;;  %v4309_v13 = vsel %vm17189_vm12, %v13336_v28, 0.0 }
 0x3e1   : > { %v13329_v35 = vpop.f32.mrf.mxu0  ;;  %17618 = vst [vmem:[#allocation146_spill] sm:$0xff] %v13353_v11  ;;  %v13365_v52 = vadd.f32 %v13112_v3, %v12879_v61  ;;  %vm17219_vm3 = vcmp.eq.s32.totalorder %v17622_v19, 1  ;;  %v4364_v46 = vsel %vm543_vm1, %v4306_v14, 0.0  ;;  %v4514_v0 = vsel %vm543_vm1, %v4456_v27, 0.0 }
 0x3e2   : > { %v4458_v59 = vmul.f32 %v4308_v29, %v4308_v29  ;;  %v4363_v6 = vadd.f32 %v4362_v63, %v4361_v26  ;;  %v4513_v58 = vadd.f32 %v4512_v2, %v4511_v32  ;;  %v4310_v45 = vsel %vm17198_vm13, %v13353_v11, 0.0  ;;  %v13399_v11 = vpop.permute.xlu0 %5407 }
 0x3e3   : > { %17621 = vst [vmem:[#allocation148_spill] sm:$0xff] %v13365_v52  ;;  %v13379_v61 = vadd.f32 %v13112_v3, %v12898_v31  ;;  %vm17220_vm12 = vcmp.eq.s32.totalorder %v17624_v54, 1  ;;  %v4366_v48 = vsel %vm543_vm1, %v4307_v47, 0.0  ;;  %v4516_v28 = vsel %vm543_vm1, %v4457_v39, 0.0  ;;  %v17627_v31 = vld [vmem:[#allocation13_spill] sm:$0xff]  ;;  %v17649_v54 = vld [vmem:[#allocation43_spill] sm:$0xff] }
 0x3e4   : > { %v4459_v14 = vmul.f32 %v4309_v13, %v4309_v13  ;;  %v4365_v27 = vadd.f32 %v4364_v46, %v4363_v6  ;;  %v4515_v26 = vadd.f32 %v4514_v0, %v4513_v58  ;;  %v4311_v63 = vsel %vm17200_vm14, %v13365_v52, 0.0  ;;  %17628 = vst [vmem:[#allocation13_spill] sm:$0xff] %v13399_v11  ;;  %v17629_v0 = vld [vmem:[#allocation38_spill] sm:$0xff]  ;;  %v2710_v58 = vpop.f32.mrf.mxu1 }
 0x3e5   : > { %v13367_v5 = vpop.f32.mrf.mxu2  ;;  %17623 = vst [vmem:[#allocation149_spill] sm:$0xff] %v13379_v61  ;;  %v13391_v2 = vadd.f32 %v13112_v3, %v12913_v40  ;;  %v13395_v32 = vadd.f32 %v13100_v10, %v17627_v31  ;;  %v4368_v47 = vsel %vm543_vm1, %v4308_v29, 0.0  ;;  %v4518_v39 = vsel %vm543_vm1, %v4458_v59, 0.0  ;;  %v13408_v59 = vpop.permute.xlu1 %5122 }
 0x3e6   : > { %v13369_v1 = vpop.f32.mrf.mxu3  ;;  %v4460_v38 = vmul.f32 %v4310_v45, %v4310_v45  ;;  %vm17227_vm13 = vcmp.eq.s32.totalorder %v17629_v0, 1  ;;  %v4367_v46 = vadd.f32 %v4366_v48, %v4365_v27  ;;  %v4517_v6 = vadd.f32 %v4516_v28, %v4515_v26  ;;  %17631 = vst [vmem:[#allocation152_spill] sm:$0xff] %v13408_v59 }
 0x3e7   : > { %17626 = vst [vmem:[#allocation151_spill] sm:$0xff] %v13391_v2  ;;  %v4312_v40 = vsel %vm17204_vm2, %v13379_v61, 0.0  ;;  %vm17241_vm14 = vcmp.eq.s32.totalorder %v17630_v60, 1  ;;  %v4370_v10 = vsel %vm543_vm1, %v4309_v13, 0.0  ;;  %v4520_v29 = vsel %vm543_vm1, %v4459_v14, 0.0  ;;  %v17633_v13 = vld [vmem:[#allocation40_spill] sm:$0xff] }
 0x3e8   : > { %v4461_v31 = vmul.f32 %v4311_v63, %v4311_v63  ;;  %v4369_v52 = vadd.f32 %v4368_v47, %v4367_v46  ;;  %v4519_v11 = vadd.f32 %v4518_v39, %v4517_v6  ;;  %v4313_v48 = vsel %vm17219_vm3, %v13391_v2, 0.0  ;;  %v13424_v47 = vpop.permute.xlu2 %5410  ;;  %v17635_v6 = vld [vmem:[#allocation14_spill] sm:$0xff]  ;;  %v17660_v60 = vld [vmem:[#allocation93_spill] sm:$0xff] }
 0x3e9   : > { %v13384_v18 = vpop.f32.mrf.mxu0  ;;  %v13415_v28 = vadd.f32 %v13112_v3, %v12928_v16  ;;  %vm17237_vm2 = vcmp.eq.s32.totalorder %v17633_v13, 1  ;;  %v4372_v14 = vsel %vm543_vm1, %v4310_v45, 0.0  ;;  %v4522_v36 = vsel %vm543_vm1, %v4460_v38, 0.0  ;;  %17634 = vst [vmem:[#allocation154_spill] sm:$0xff] %v13424_v47  ;;  %v17636_v45 = vld [vmem:[#allocation78_spill] sm:$0xff]  ;;  %v17638_v47 = vld [vmem:[#allocation96_spill] sm:$0xff] }
 0x3ea   : > { %17625 = vst [vmem:[#allocation150_spill] sm:$0xff] %v13384_v18  ;;  %v4462_v39 = vmul.f32 %v4312_v40, %v4312_v40  ;;  %v3167_v46 = vadd.f32 %v12999_v21, %v13144_v9  ;;  %v13430_v16 = vadd.f32 %v13167_v24, %v17635_v6  ;;  %v4371_v19 = vadd.f32 %v4370_v10, %v4369_v52  ;;  %v17668_v13 = vld [vmem:[#allocation45_spill] sm:$0xff] }
 0x3eb   : > { %17632 = vst [vmem:[#allocation153_spill] sm:$0xff] %v13415_v28  ;;  %v4521_v59 = vadd.f32 %v4520_v29, %v4519_v11  ;;  %v4374_v2 = vsel %vm543_vm1, %v4311_v63, 0.0  ;;  %v4524_v61 = vsel %vm543_vm1, %v4461_v31, 0.0  ;;  %v4463_v37 = vmul.f32 %v4313_v48, %v4313_v48  ;;  %v17640_v11 = vld [vmem:[#allocation101_spill] sm:$0xff]  ;;  %v17642_v31 = vld [vmem:[#allocation82_spill] sm:$0xff] }
 0x3ec   : > { %v13436_v38 = vadd.f32 %v13112_v3, %v17636_v45  ;;  %v3168_v33 = vadd.f32 %v17638_v47, %v13156_v25  ;;  %v4373_v21 = vadd.f32 %v4372_v14, %v4371_v19  ;;  %v4314_v24 = vsel %vm17220_vm12, %v13415_v28, 0.0  ;;  %v17641_v63 = vld [vmem:[#allocation41_spill] sm:$0xff]  ;;  %v17644_v47 = vld [vmem:[#allocation92_spill] sm:$0xff]  ;;  %v17646_v14 = vld [vmem:[#allocation42_spill] sm:$0xff] }
 0x3ed   : > { %v13417_v27 = vpop.f32.mrf.mxu2  ;;  %v4523_v9 = vadd.f32 %v4522_v36, %v4521_v59  ;;  %v3169_v52 = vadd.f32 %v17640_v11, %v13160_v50  ;;  %vm17242_vm3 = vcmp.eq.s32.totalorder %v17641_v63, 1  ;;  %v4376_v10 = vsel %vm543_vm1, %v4312_v40, 0.0  ;;  %v17645_v36 = vld [vmem:[#allocation16_spill] sm:$0xff]  ;;  %v13461_v11 = vpop.permute.xlu0 %5125  ;;  %v17650_v28 = vld [vmem:[#allocation86_spill] sm:$0xff] }
 0x3ee   : > { %v13419_v26 = vpop.f32.mrf.mxu3  ;;  %17637 = vst [vmem:[#allocation14_spill] sm:$0xff] %v13436_v38  ;;  %v4526_v29 = vsel %vm543_vm1, %v4462_v39, 0.0  ;;  %v13452_v25 = vadd.f32 %v13112_v3, %v17642_v31  ;;  %v3573_v19 = vadd.f32 %v17644_v47, %v3167_v46  ;;  %v13457_v59 = vadd.f32 %v13262_v17, %v17645_v36  ;;  %v17648_v46 = vld [vmem:[#allocation97_spill] sm:$0xff] }
 0x3ef   : > { %vm17253_vm12 = vcmp.eq.s32.totalorder %v17646_v14, 1  ;;  %v4375_v6 = vadd.f32 %v4374_v2, %v4373_v21  ;;  %v4525_v50 = vadd.f32 %v4524_v61, %v4523_v9  ;;  %v4378_v45 = vsel %vm543_vm1, %v4313_v48, 0.0  ;;  %17647 = vst [vmem:[#allocation101_spill] sm:$0xff] %v13461_v11  ;;  %v17652_v2 = vld [vmem:[#allocation102_spill] sm:$0xff]  ;;  %v17653_v9 = vld [vmem:[#allocation17_spill] sm:$0xff]  ;;  %v17654_v11 = vld [vmem:[#allocation44_spill] sm:$0xff] }
 0x3f0   : > { %17643 = vst [vmem:[#allocation96_spill] sm:$0xff] %v13452_v25  ;;  %v4528_v40 = vsel %vm543_vm1, %v4463_v37, 0.0  ;;  %v4464_v39 = vmul.f32 %v4314_v24, %v4314_v24  ;;  %v4315_v31 = vsel %vm17227_vm13, %v13436_v38, 0.0  ;;  %v3574_v47 = vadd.f32 %v17648_v46, %v3168_v33  ;;  %v13483_v33 = vpop.permute.xlu1 %5413  ;;  %v13494_v41 = vpop.permute.xlu2 %5128 }
 0x3f1   : > { %v13440_v56 = vpop.f32.mrf.mxu0  ;;  %vm17248_vm15 = vcmp.eq.s32.totalorder %v17649_v54, 1  ;;  %v4377_v17 = vadd.f32 %v4376_v10, %v4375_v6  ;;  %v4527_v36 = vadd.f32 %v4526_v29, %v4525_v50  ;;  %v13471_v61 = vadd.f32 %v13112_v3, %v17650_v28  ;;  %17655 = vst [vmem:[#allocation92_spill] sm:$0xff] %v13483_v33  ;;  %v17656_v28 = vld [vmem:[#allocation88_spill] sm:$0xff]  ;;  %v17681_v54 = vld [vmem:[#allocation49_spill] sm:$0xff] }
 0x3f2   : > { %17639 = vst [vmem:[#allocation78_spill] sm:$0xff] %v13440_v56  ;;  %v3575_v48 = vadd.f32 %v17652_v2, %v3169_v52  ;;  %v13480_v0 = vadd.f32 %v13342_v49, %v17653_v9  ;;  %vm17251_vm13 = vcmp.eq.s32.totalorder %v17654_v11, 1  ;;  %v4316_v10 = vsel %vm17241_vm14, %v13452_v25, 0.0  ;;  %v17657_v52 = vld [vmem:[#allocation106_spill] sm:$0xff]  ;;  %v17658_v50 = vld [vmem:[#allocation32_spill] sm:$0xff]  ;;  %v2713_v2 = vpop.f32.mrf.mxu1 }
 0x3f3   : > { %17651 = vst [vmem:[#allocation82_spill] sm:$0xff] %v13471_v61  ;;  %v3979_v29 = vadd.f32 %v17656_v28, %v3573_v19  ;;  %v3170_v6 = vadd.f32 %v17657_v52, %v13164_v7  ;;  %v13492_v46 = vadd.f32 %v2710_v58, %v17658_v50  ;;  %v4379_v38 = vadd.f32 %v4378_v45, %v4377_v17  ;;  %v17661_v19 = vld [vmem:[#allocation112_spill] sm:$0xff]  ;;  %v17662_v45 = vld [vmem:[#allocation90_spill] sm:$0xff]  ;;  %v17663_v17 = vld [vmem:[#allocation99_spill] sm:$0xff] }
 0x3f4   : > { %v4529_v49 = vadd.f32 %v4528_v40, %v4527_v36  ;;  %v4465_v9 = vmul.f32 %v4315_v31, %v4315_v31  ;;  %17659 = vst [vmem:[#allocation16_spill] sm:$0xff] %v13494_v41  ;;  %v4380_v33 = vsel %vm543_vm1, %v4314_v24, 0.0  ;;  %v4530_v56 = vsel %vm543_vm1, %v4464_v39, 0.0  ;;  %v17666_v36 = vld [vmem:[#allocation118_spill] sm:$0xff]  ;;  %v17667_v50 = vld [vmem:[#allocation33_spill] sm:$0xff] }
 0x3f5   : > { %v13474_v21 = vpop.f32.mrf.mxu2  ;;  %v3980_v25 = vadd.f32 %v17660_v60, %v3574_v47  ;;  %v3171_v28 = vadd.f32 %v17661_v19, %v13173_v42  ;;  %v4466_v7 = vmul.f32 %v4316_v10, %v4316_v10  ;;  %v4317_v58 = vsel %vm17237_vm2, %v13471_v61, 0.0  ;;  %v17665_v47 = vld [vmem:[#allocation107_spill] sm:$0xff] }
 0x3f6   : > { %v13476_v37 = vpop.f32.mrf.mxu3  ;;  %v13508_v40 = vadd.f32 %v13112_v3, %v17662_v45  ;;  %v3981_v24 = vadd.f32 %v17663_v17, %v3575_v48  ;;  %v4382_v39 = vsel %vm543_vm1, %v4315_v31, 0.0  ;;  %v13513_v60 = vadd.f32 %v13112_v3, %v3979_v29  ;;  %v17669_v17 = vld [vmem:[#allocation113_spill] sm:$0xff] }
 0x3f7   : > { %v3576_v42 = vadd.f32 %v17665_v47, %v3170_v6  ;;  %v3172_v52 = vadd.f32 %v17666_v36, %v13191_v43  ;;  %v13519_v19 = vadd.f32 %v2713_v2, %v17667_v50  ;;  %vm17333_vm2 = vcmp.eq.s32.totalorder %v17668_v13, 1  ;;  %v17670_v47 = vld [vmem:[#allocation46_spill] sm:$0xff]  ;;  %v17674_v36 = vld [vmem:[#allocation47_spill] sm:$0xff] }
 0x3f8   : > { %17664 = vst [vmem:[#allocation97_spill] sm:$0xff] %v13513_v60  ;;  %v4381_v41 = vadd.f32 %v4380_v33, %v4379_v38  ;;  %v4531_v45 = vadd.f32 %v4530_v56, %v4529_v49  ;;  %v4532_v61 = vsel %vm543_vm1, %v4465_v9, 0.0  ;;  %v4384_v48 = vsel %vm543_vm1, %v4316_v10, 0.0 }
 0x3f9   : > { %v13501_v18 = vpop.f32.mrf.mxu0  ;;  %v4467_v31 = vmul.f32 %v4317_v58, %v4317_v58  ;;  %v13525_v29 = vadd.f32 %v13112_v3, %v3980_v25  ;;  %v3577_v6 = vadd.f32 %v17669_v17, %v3171_v28  ;;  %vm17254_vm14 = vcmp.eq.s32.totalorder %v17670_v47, 1  ;;  %v13540_v25 = vpop.permute.xlu0 %5416  ;;  %v17673_v28 = vld [vmem:[#allocation119_spill] sm:$0xff] }
 0x3fa   : > { %v4383_v43 = vadd.f32 %v4382_v39, %v4381_v41  ;;  %v4534_v2 = vsel %vm543_vm1, %v4466_v7, 0.0  ;;  %v4318_v38 = vsel %vm17242_vm3, %v13508_v40, 0.0  ;;  %v13534_v56 = vadd.f32 %v13112_v3, %v3981_v24  ;;  %17671 = vst [vmem:[#allocation86_spill] sm:$0xff] %v13540_v25  ;;  %v17672_v41 = vld [vmem:[#allocation105_spill] sm:$0xff]  ;;  %v13553_v25 = vpop.permute.xlu1 %5131  ;;  %v17722_v47 = vld [vmem:[#allocation63_spill] sm:$0xff] }
 0x3fb   : > { %v4319_v49 = vsel %vm17253_vm12, %v13513_v60, 0.0  ;;  %v3982_v9 = vadd.f32 %v17672_v41, %v3576_v42  ;;  %v3578_v7 = vadd.f32 %v17673_v28, %v3172_v52  ;;  %v3173_v39 = vadd.f32 %v13114_v23, %v13195_v30  ;;  %17675 = vst [vmem:[#allocation102_spill] sm:$0xff] %v13553_v25  ;;  %v17676_v52 = vld [vmem:[#allocation110_spill] sm:$0xff]  ;;  %v17679_v41 = vld [vmem:[#allocation123_spill] sm:$0xff] }
 0x3fc   : > { %vm17255_vm3 = vcmp.eq.s32.totalorder %v17674_v36, 1  ;;  %v4533_v24 = vadd.f32 %v4532_v61, %v4531_v45  ;;  %v4385_v50 = vadd.f32 %v4384_v48, %v4383_v43  ;;  %v4386_v17 = vsel %vm543_vm1, %v4317_v58, 0.0 }
 0x3fd   : > { %v13536_v33 = vpop.f32.mrf.mxu2  ;;  %v3174_v63 = vadd.f32 %v13185_v20, %v13211_v57  ;;  %v4536_v14 = vsel %vm543_vm1, %v4467_v31, 0.0  ;;  %v4468_v60 = vmul.f32 %v4318_v38, %v4318_v38  ;;  %v4320_v42 = vsel %vm17248_vm15, %v13525_v29, 0.0  ;;  %v13566_v57 = vpop.permute.xlu2 %5419  ;;  %v17678_v31 = vld [vmem:[#allocation115_spill] sm:$0xff] }
 0x3fe   : > { %v13538_v10 = vpop.f32.mrf.mxu3  ;;  %v3983_v23 = vadd.f32 %v17676_v52, %v3577_v6  ;;  %v4535_v61 = vadd.f32 %v4534_v2, %v4533_v24  ;;  %v4388_v45 = vsel %vm543_vm1, %v4318_v38, 0.0  ;;  %v4469_v58 = vmul.f32 %v4319_v49, %v4319_v49  ;;  %17677 = vst [vmem:[#allocation17_spill] sm:$0xff] %v13566_v57  ;;  %v17680_v2 = vld [vmem:[#allocation48_spill] sm:$0xff] }
 0x3ff   : > { %v4321_v20 = vsel %vm17251_vm13, %v13534_v56, 0.0  ;;  %v13569_v48 = vadd.f32 %v13112_v3, %v3982_v9  ;;  %v3984_v43 = vadd.f32 %v17678_v31, %v3578_v7  ;;  %v3579_v28 = vadd.f32 %v17679_v41, %v3173_v39 }
 0x400   : > { %v3175_v6 = vadd.f32 %v13253_v15, %v13232_v4  ;;  %vm17256_vm15 = vcmp.eq.s32.totalorder %v17680_v2, 1  ;;  %v4387_v38 = vadd.f32 %v4386_v17, %v4385_v50  ;;  %v4537_v24 = vadd.f32 %v4536_v14, %v4535_v61 }
 0x401   : > { %v13560_v30 = vpop.f32.mrf.mxu0  ;;  %v4470_v52 = vmul.f32 %v4320_v42, %v4320_v42  ;;  %v3580_v11 = vadd.f32 %v13187_v22, %v3174_v63  ;;  %vm17257_vm13 = vcmp.eq.s32.totalorder %v17681_v54, 1  ;;  %v4538_v57 = vsel %vm543_vm1, %v4468_v60, 0.0  ;;  %v13600_v31 = vpop.permute.xlu0 %5134  ;;  %v17709_v54 = vld [vmem:[#allocation5_spill] sm:$0xff] }
 0x402   : > { %v4390_v9 = vsel %vm543_vm1, %v4319_v49, 0.0  ;;  %v13581_v7 = vadd.f32 %v13112_v3, %v3983_v23  ;;  %v3176_v39 = vadd.f32 %v13310_v53, %v13287_v8  ;;  %v4389_v4 = vadd.f32 %v4388_v45, %v4387_v38  ;;  %v17682_v49 = vld [vmem:[#allocation120_spill] sm:$0xff]  ;;  %v17683_v53 = vld [vmem:[#allocation50_spill] sm:$0xff]  ;;  %17684 = vst [vmem:[#allocation88_spill] sm:$0xff] %v13600_v31 }
 0x403   : > { %v4540_v15 = vsel %vm543_vm1, %v4469_v58, 0.0  ;;  %v4392_v14 = vsel %vm543_vm1, %v4320_v42, 0.0  ;;  %v4471_v50 = vmul.f32 %v4321_v20, %v4321_v20  ;;  %v4322_v63 = vsel %vm17333_vm2, %v13569_v48, 0.0 }
 0x404   : > { %v13593_v60 = vadd.f32 %v13112_v3, %v3984_v43  ;;  %v3985_v23 = vadd.f32 %v17682_v49, %v3579_v28  ;;  %v3581_v8 = vadd.f32 %v13255_v44, %v3175_v6  ;;  %vm17258_vm12 = vcmp.eq.s32.totalorder %v17683_v53, 1 }
 0x405   : > { %v3113_v17 = vpop.f32.mrf.mxu2  ;;  %v4539_v61 = vadd.f32 %v4538_v57, %v4537_v24  ;;  %v4391_v45 = vadd.f32 %v4390_v9, %v4389_v4  ;;  %v4542_v42 = vsel %vm543_vm1, %v4470_v52, 0.0  ;;  %v3986_v58 = vadd.f32 %v13127_v34, %v3580_v11  ;;  %v13612_v11 = vpop.f32.mrf.mxu1  ;;  %v17686_v9 = vld [vmem:[#allocation51_spill] sm:$0xff] }
 0x406   : > { %v13587_v22 = vpop.f32.mrf.mxu3  ;;  %v4394_v41 = vsel %vm543_vm1, %v4321_v20, 0.0  ;;  %v4323_v43 = vsel %vm17254_vm14, %v13581_v7, 0.0  ;;  %v3582_v28 = vadd.f32 %v13312_v12, %v3176_v39  ;;  %v3177_v44 = vadd.f32 %v13367_v5, %v13340_v55  ;;  %v13614_v52 = vpop.permute.xlu1 %5422 }
 0x407   : > { %v4541_v57 = vadd.f32 %v4540_v15, %v4539_v61  ;;  %v4393_v38 = vadd.f32 %v4392_v14, %v4391_v45  ;;  %v4544_v24 = vsel %vm543_vm1, %v4471_v50, 0.0  ;;  %v4472_v34 = vmul.f32 %v4322_v63, %v4322_v63  ;;  %17685 = vst [vmem:[#allocation106_spill] sm:$0xff] %v13614_v52  ;;  %v13629_v50 = vpop.permute.xlu2 %5137 }
 0x408   : > { %v4324_v20 = vsel %vm17255_vm3, %v13593_v60, 0.0  ;;  %v13620_v12 = vadd.f32 %v13112_v3, %v3985_v23  ;;  %v3987_v55 = vadd.f32 %v13216_v51, %v3581_v8  ;;  %v3178_v5 = vadd.f32 %v13417_v27, %v13395_v32  ;;  %17687 = vst [vmem:[#allocation32_spill] sm:$0xff] %v13629_v50 }
 0x409   : > { %v13609_v6 = vpop.f32.mrf.mxu0  ;;  %vm17260_vm14 = vcmp.eq.s32.totalorder %v17686_v9, 1  ;;  %v4543_v39 = vadd.f32 %v4542_v42, %v4541_v57  ;;  %v4395_v4 = vadd.f32 %v4394_v41, %v4393_v38  ;;  %v4473_v15 = vmul.f32 %v4323_v43, %v4323_v43 }
 0x40a   : > { %v13627_v14 = vadd.f32 %v13112_v3, %v3986_v58  ;;  %v4396_v49 = vsel %vm543_vm1, %v4322_v63, 0.0  ;;  %v3988_v23 = vadd.f32 %v13276_v62, %v3582_v28  ;;  %v3583_v61 = vadd.f32 %v13369_v1, %v3177_v44 }
 0x40b   : > { %v3179_v51 = vadd.f32 %v13474_v21, %v13430_v16  ;;  %v4545_v32 = vadd.f32 %v4544_v24, %v4543_v39  ;;  %v4546_v27 = vsel %vm543_vm1, %v4472_v34, 0.0  ;;  %v4398_v8 = vsel %vm543_vm1, %v4323_v43, 0.0  ;;  %v17688_v16 = vld [vmem:[#allocation52_spill] sm:$0xff]  ;;  %v17689_v24 = vld [vmem:[#allocation53_spill] sm:$0xff]  ;;  %v13661_v39 = vpop.permute.xlu0 %5425 }
 0x40c   : > { %v4474_v45 = vmul.f32 %v4324_v20, %v4324_v20  ;;  %v4325_v41 = vsel %vm17256_vm15, %v13620_v12, 0.0  ;;  %v13642_v63 = vadd.f32 %v13112_v3, %v3987_v55  ;;  %v3584_v62 = vadd.f32 %v13419_v26, %v3178_v5  ;;  %17690 = vst [vmem:[#allocation93_spill] sm:$0xff] %v13661_v39  ;;  %v17764_v39 = vld [vmem:[#allocation97_spill] sm:$0xff] }
 0x40d   : > { %v3116_v42 = vpop.f32.mrf.mxu2  ;;  %v3180_v1 = vadd.f32 %v13536_v33, %v13457_v59  ;;  %vm17332_vm3 = vcmp.eq.s32.totalorder %v17688_v16, 1  ;;  %v4397_v21 = vadd.f32 %v4396_v49, %v4395_v4  ;;  %v4548_v43 = vsel %vm543_vm1, %v4473_v15, 0.0  ;;  %v17691_v15 = vld [vmem:[#allocation150_spill] sm:$0xff] }
 0x40e   : > { %v3522_v58 = vpop.f32.mrf.mxu3  ;;  %v4400_v28 = vsel %vm543_vm1, %v4324_v20, 0.0  ;;  %v4326_v44 = vsel %vm17257_vm13, %v13627_v14, 0.0  ;;  %v13654_v57 = vadd.f32 %v13112_v3, %v3988_v23  ;;  %v3989_v38 = vadd.f32 %v13329_v35, %v3583_v61 }
 0x40f   : > { %v3585_v26 = vadd.f32 %v13476_v37, %v3179_v51  ;;  %v3181_v59 = vadd.f32 %v3113_v17, %v13480_v0  ;;  %vm17261_vm15 = vcmp.eq.s32.totalorder %v17689_v24, 1  ;;  %v4547_v34 = vadd.f32 %v4546_v27, %v4545_v32  ;;  %v17692_v17 = vld [vmem:[#allocation54_spill] sm:$0xff]  ;;  %v13671_v32 = vpop.f32.mrf.mxu1  ;;  %v13673_v27 = vpop.permute.xlu1 %5140 }
 0x410   : > { %v4399_v55 = vadd.f32 %v4398_v8, %v4397_v21  ;;  %v4550_v20 = vsel %vm543_vm1, %v4474_v45, 0.0  ;;  %v4475_v5 = vmul.f32 %v4325_v41, %v4325_v41  ;;  %v4327_v4 = vsel %vm17258_vm12, %v13642_v63, 0.0  ;;  %17693 = vst [vmem:[#allocation112_spill] sm:$0xff] %v13673_v27 }
 0x411   : > { %v3931_v33 = vpop.f32.mrf.mxu0  ;;  %v3990_v35 = vadd.f32 %v17691_v15, %v3584_v62  ;;  %v3586_v37 = vadd.f32 %v13538_v10, %v3180_v1  ;;  %v3182_v0 = vadd.f32 %v3116_v42, %v13492_v46  ;;  %vm17331_vm13 = vcmp.eq.s32.totalorder %v17692_v17, 1  ;;  %v17694_v10 = vld [vmem:[#allocation78_spill] sm:$0xff]  ;;  %v17695_v62 = vld [vmem:[#allocation55_spill] sm:$0xff] }
 0x412   : > { %v4549_v49 = vadd.f32 %v4548_v43, %v4547_v34  ;;  %v4401_v23 = vadd.f32 %v4400_v28, %v4399_v55  ;;  %v4402_v61 = vsel %vm543_vm1, %v4325_v41, 0.0  ;;  %v4476_v51 = vmul.f32 %v4326_v44, %v4326_v44  ;;  %v13686_v55 = vpop.permute.xlu2 %5428 }
 0x413   : > { %v4328_v8 = vsel %vm17260_vm14, %v13654_v57, 0.0  ;;  %v13679_v45 = vadd.f32 %v13112_v3, %v3989_v38  ;;  %v3991_v46 = vadd.f32 %v17694_v10, %v3585_v26  ;;  %v3587_v42 = vadd.f32 %v13587_v22, %v3181_v59  ;;  %17696 = vst [vmem:[#allocation90_spill] sm:$0xff] %v13686_v55  ;;  %v17758_v55 = vld [vmem:[#allocation151_spill] sm:$0xff] }
 0x414   : > { %vm17263_vm12 = vcmp.eq.s32.totalorder %v17695_v62, 1  ;;  %v4551_v1 = vadd.f32 %v4550_v20, %v4549_v49  ;;  %v4552_v41 = vsel %vm543_vm1, %v4475_v5, 0.0  ;;  %v4404_v21 = vsel %vm543_vm1, %v4326_v44, 0.0 }
 0x415   : > { %v4477_v43 = vmul.f32 %v4327_v4, %v4327_v4  ;;  %v3119_v28 = vpop.f32.mrf.mxu2  ;;  %v13689_v15 = vadd.f32 %v13112_v3, %v3990_v35  ;;  %v3992_v38 = vadd.f32 %v13501_v18, %v3586_v37  ;;  %v3588_v26 = vadd.f32 %v3522_v58, %v3182_v0  ;;  %v17697_v58 = vld [vmem:[#allocation3_spill] sm:$0xff]  ;;  %v17698_v37 = vld [vmem:[#allocation56_spill] sm:$0xff] }
 0x416   : > { %v3525_v34 = vpop.f32.mrf.mxu3  ;;  %v3183_v22 = vadd.f32 %v3119_v28, %v13519_v19  ;;  %v4403_v59 = vadd.f32 %v4402_v61, %v4401_v23  ;;  %v4554_v20 = vsel %vm543_vm1, %v4476_v51, 0.0  ;;  %v4406_v5 = vsel %vm543_vm1, %v4327_v4, 0.0 }
 0x417   : > { %v4478_v49 = vmul.f32 %v4328_v8, %v4328_v8  ;;  %v4329_v44 = vsel %vm17332_vm3, %v13679_v45, 0.0  ;;  %v13699_v10 = vadd.f32 %v13112_v3, %v3991_v46  ;;  %v3993_v35 = vadd.f32 %v13560_v30, %v3587_v42 }
 0x418   : > { %v3589_v9 = vadd.f32 %v3525_v34, %v3183_v22  ;;  %v2778_v19 = vadd.f32 %v13612_v11, %v17697_v58  ;;  %vm17325_vm14 = vcmp.eq.s32.totalorder %v17698_v37, 1  ;;  %v4553_v0 = vadd.f32 %v4552_v41, %v4551_v1  ;;  %v13714_v34 = vpop.permute.xlu0 %5143  ;;  %v17704_v37 = vld [vmem:[#allocation4_spill] sm:$0xff] }
 0x419   : > { %v3934_v18 = vpop.f32.mrf.mxu0  ;;  %v4405_v23 = vadd.f32 %v4404_v21, %v4403_v59  ;;  %v4556_v4 = vsel %vm543_vm1, %v4477_v43, 0.0  ;;  %v4330_v61 = vsel %vm17261_vm15, %v13689_v15, 0.0  ;;  %v13710_v51 = vadd.f32 %v13112_v3, %v3992_v38  ;;  %17699 = vst [vmem:[#allocation99_spill] sm:$0xff] %v13714_v34  ;;  %v17700_v38 = vld [vmem:[#allocation57_spill] sm:$0xff] }
 0x41a   : > { %v3994_v30 = vadd.f32 %v13609_v6, %v3588_v26  ;;  %v4555_v46 = vadd.f32 %v4554_v20, %v4553_v0  ;;  %v4408_v28 = vsel %vm543_vm1, %v4328_v8, 0.0  ;;  %v4479_v11 = vmul.f32 %v4329_v44, %v4329_v44  ;;  %v13725_v20 = vpop.permute.xlu1 %5431 }
 0x41b   : > { %v4407_v42 = vadd.f32 %v4406_v5, %v4405_v23  ;;  %v4558_v1 = vsel %vm543_vm1, %v4478_v49, 0.0  ;;  %v4331_v41 = vsel %vm17331_vm13, %v13699_v10, 0.0  ;;  %v13721_v21 = vadd.f32 %v13112_v3, %v3993_v35  ;;  %17701 = vst [vmem:[#allocation107_spill] sm:$0xff] %v13725_v20 }
 0x41c   : > { %v3995_v43 = vadd.f32 %v3931_v33, %v3589_v9  ;;  %vm17267_vm15 = vcmp.eq.s32.totalorder %v17700_v38, 1  ;;  %v4557_v6 = vadd.f32 %v4556_v4, %v4555_v46  ;;  %v4410_v26 = vsel %vm543_vm1, %v4329_v44, 0.0  ;;  %v2722_v9 = vpop.f32.mrf.mxu1  ;;  %v13735_v4 = vpop.permute.xlu2 %5146 }
 0x41d   : > { %v4480_v22 = vmul.f32 %v4330_v61, %v4330_v61  ;;  %v3122_v8 = vpop.f32.mrf.mxu2  ;;  %v4409_v5 = vadd.f32 %v4408_v28, %v4407_v42  ;;  %v4332_v49 = vsel %vm17263_vm12, %v13710_v51, 0.0  ;;  %v13731_v58 = vadd.f32 %v13112_v3, %v3994_v30  ;;  %17702 = vst [vmem:[#allocation118_spill] sm:$0xff] %v13735_v4 }
 0x41e   : > { %v3528_v59 = vpop.f32.mrf.mxu3  ;;  %v3184_v35 = vadd.f32 %v3122_v8, %v2778_v19  ;;  %v4559_v33 = vadd.f32 %v4558_v1, %v4557_v6  ;;  %v4560_v0 = vsel %vm543_vm1, %v4479_v11, 0.0  ;;  %v4412_v44 = vsel %vm543_vm1, %v4330_v61, 0.0  ;;  %v17703_v19 = vld [vmem:[#allocation58_spill] sm:$0xff] }
 0x41f   : > { %v4481_v23 = vmul.f32 %v4331_v41, %v4331_v41  ;;  %v4411_v46 = vadd.f32 %v4410_v26, %v4409_v5  ;;  %v4333_v42 = vsel %vm17325_vm14, %v13721_v21, 0.0  ;;  %v13741_v28 = vadd.f32 %v13112_v3, %v3995_v43 }
 0x420   : > { %v3590_v30 = vadd.f32 %v3528_v59, %v3184_v35  ;;  %vm17282_vm12 = vcmp.eq.s32.totalorder %v17703_v19, 1  ;;  %v4562_v1 = vsel %vm543_vm1, %v4480_v22, 0.0  ;;  %v4414_v11 = vsel %vm543_vm1, %v4331_v41, 0.0 }
 0x421   : > { %v3937_v62 = vpop.f32.mrf.mxu0  ;;  %v4482_v61 = vmul.f32 %v4332_v49, %v4332_v49  ;;  %v4561_v6 = vadd.f32 %v4560_v0, %v4559_v33  ;;  %v4413_v8 = vadd.f32 %v4412_v44, %v4411_v46  ;;  %v4334_v26 = vsel %vm17267_vm15, %v13731_v58, 0.0  ;;  %v17705_v0 = vld [vmem:[#allocation59_spill] sm:$0xff] }
 0x422   : > { %v3996_v5 = vadd.f32 %v3934_v18, %v3590_v30  ;;  %v2779_v43 = vadd.f32 %v13671_v32, %v17704_v37  ;;  %v4564_v59 = vsel %vm543_vm1, %v4481_v23, 0.0  ;;  %v4416_v35 = vsel %vm543_vm1, %v4332_v49, 0.0 }
 0x423   : > { %v4483_v17 = vmul.f32 %v4333_v42, %v4333_v42  ;;  %v4563_v24 = vadd.f32 %v4562_v1, %v4561_v6  ;;  %v4415_v22 = vadd.f32 %v4414_v11, %v4413_v8  ;;  %v4335_v41 = vsel %vm17282_vm12, %v13741_v28, 0.0  ;;  %v13765_v11 = vpop.permute.xlu0 %5434 }
 0x424   : > { %v13757_v33 = vadd.f32 %v13112_v3, %v3996_v5  ;;  %vm17274_vm15 = vcmp.eq.s32.totalorder %v17705_v0, 1  ;;  %v4566_v18 = vsel %vm543_vm1, %v4482_v61, 0.0  ;;  %v4418_v32 = vsel %vm543_vm1, %v4333_v42, 0.0  ;;  %17706 = vst [vmem:[#allocation33_spill] sm:$0xff] %v13765_v11  ;;  %v13769_v61 = vpop.permute.xlu1 %5149 }
 0x425   : > { %v4484_v37 = vmul.f32 %v4334_v26, %v4334_v26  ;;  %v3125_v44 = vpop.f32.mrf.mxu2  ;;  %v4565_v49 = vadd.f32 %v4564_v59, %v4563_v24  ;;  %v4417_v46 = vadd.f32 %v4416_v35, %v4415_v22  ;;  %v4568_v6 = vsel %vm543_vm1, %v4483_v17, 0.0  ;;  %17707 = vst [vmem:[#allocation113_spill] sm:$0xff] %v13769_v61  ;;  %v2725_v22 = vpop.f32.mrf.mxu1  ;;  %v17755_v61 = vld [vmem:[#allocation149_spill] sm:$0xff] }
 0x426   : > { %v3531_v23 = vpop.f32.mrf.mxu3  ;;  %v4336_v30 = vsel %vm17274_vm15, %v13757_v33, 0.0  ;;  %v3185_v1 = vadd.f32 %v3125_v44, %v2779_v43  ;;  %v4420_v8 = vsel %vm543_vm1, %v4334_v26, 0.0  ;;  %v4485_v5 = vmul.f32 %v4335_v41, %v4335_v41  ;;  %v13773_v43 = vpop.permute.xlu2 %5437 }
 0x427   : > { %v4567_v42 = vadd.f32 %v4566_v18, %v4565_v49  ;;  %v4419_v19 = vadd.f32 %v4418_v32, %v4417_v46  ;;  %v4570_v24 = vsel %vm543_vm1, %v4484_v37, 0.0  ;;  %v4422_v59 = vsel %vm543_vm1, %v4335_v41, 0.0  ;;  %17708 = vst [vmem:[#allocation105_spill] sm:$0xff] %v13773_v43  ;;  %v17710_v37 = vld [vmem:[#allocation60_spill] sm:$0xff] }
 0x428   : > { %v3591_v38 = vadd.f32 %v3531_v23, %v3185_v1  ;;  %v4486_v35 = vmul.f32 %v4336_v30, %v4336_v30  ;;  %v4572_v26 = vsel %vm543_vm1, %v4485_v5, 0.0  ;;  %v4424_v53 = vsel %vm543_vm1, %v4336_v30, 0.0  ;;  %v17754_v43 = vld [vmem:[#allocation148_spill] sm:$0xff] }
 0x429   : > { %v3940_v16 = vpop.f32.mrf.mxu0  ;;  %v4569_v44 = vadd.f32 %v4568_v6, %v4567_v42  ;;  %v4421_v0 = vadd.f32 %v4420_v8, %v4419_v19  ;;  %v2780_v18 = vadd.f32 %v2722_v9, %v17709_v54  ;;  %vm17275_vm15 = vcmp.eq.s32.totalorder %v17710_v37, 1 }
 0x42a   : > { %v3997_v17 = vadd.f32 %v3937_v62, %v3591_v38  ;;  %v4574_v41 = vsel %vm543_vm1, %v4486_v35, 0.0  ;;  %v17713_v35 = vld [vmem:[#allocation9_spill] sm:$0xff]  ;;  %vm17285_vm12 = vcmp.eq.s32.totalorder %v17722_v47, 1 }
 0x42b   : > { %v4571_v32 = vadd.f32 %v4570_v24, %v4569_v44  ;;  %v4423_v23 = vadd.f32 %v4422_v59, %v4421_v0  ;;  %v13788_v42 = vpop.permute.xlu0 %5152  ;;  %v2781_v44 = vadd.f32 %v2725_v22, %v17713_v35 }
 0x42c   : > { %v13779_v49 = vadd.f32 %v13112_v3, %v3997_v17  ;;  %17711 = vst [vmem:[#allocation119_spill] sm:$0xff] %v13788_v42  ;;  %v13790_v24 = vpop.permute.xlu1 %5440 }
 0x42d   : > { %v3128_v46 = vpop.f32.mrf.mxu2  ;;  %v4573_v6 = vadd.f32 %v4572_v26, %v4571_v32  ;;  %v4425_v19 = vadd.f32 %v4424_v53, %v4423_v23  ;;  %17712 = vst [vmem:[#allocation110_spill] sm:$0xff] %v13790_v24  ;;  %v2728_v17 = vpop.f32.mrf.mxu1  ;;  %v17715_v23 = vld [vmem:[#allocation61_spill] sm:$0xff] }
 0x42e   : > { %v3534_v1 = vpop.f32.mrf.mxu3  ;;  %v4337_v62 = vsel %vm17275_vm15, %v13779_v49, 0.0  ;;  %v3186_v38 = vadd.f32 %v3128_v46, %v2780_v18  ;;  %v13793_v26 = vpop.permute.xlu2 %5155  ;;  %v13798_v18 = vld [vmem:[%s17064_s2] ss:$0 sm:$0xff]  ;;  %vm17277_vm15 = vcmp.eq.s32.totalorder %v17715_v23, 1  ;;  %v17759_v24 = vld [vmem:[#allocation153_spill] sm:$0xff] }
 0x42f   : > { %v4426_v54 = vsel %vm543_vm1, %v4337_v62, 0.0  ;;  %v4487_v9 = vmul.f32 %v4337_v62, %v4337_v62  ;;  %v4575_v0 = vadd.f32 %v4574_v41, %v4573_v6  ;;  %17714 = vst [vmem:[#allocation115_spill] sm:$0xff] %v13793_v26  ;;  %v10412_v26 = vld [vmem:[%s17065_s3 + $0x8] sm:$0xf] }
 0x430   : > { %v4427_v30 = vadd.f32 %v4426_v54, %v4425_v19  ;;  %v3592_v3 = vadd.f32 %v3534_v1, %v3186_v38  ;;  %10413 = vmatpush.msk.msrb.mxu3 %vm17352_vm0, %v10412_v26  ;;  %v17762_v26 = vld [vmem:[#allocation96_spill] sm:$0xff] }
 0x431   : > { %v3943_v8 = vpop.f32.mrf.mxu0  ;;  %v4576_v5 = vsel %vm543_vm1, %v4487_v9, 0.0 }
 0x432   : > { %v4577_v59 = vadd.f32 %v4576_v5, %v4575_v0  ;;  %v3998_v53 = vadd.f32 %v3940_v16, %v3592_v3  ;;  %v17716_v3 = vld [vmem:[#allocation19_spill] sm:$0xff] }
 0x433   : > { %v2782_v5 = vadd.f32 %v2728_v17, %v17716_v3  ;;  %v17721_v3 = vld [vmem:[#allocation22_spill] sm:$0xff] }
 0x434   : > { %v13801_v32 = vadd.f32 %v13798_v18, %v3998_v53  ;;  %v13810_v53 = vpop.permute.xlu0 %5443  ;;  %v13812_v35 = vpop.permute.xlu1 %5158 }
 0x435   : > { %v3131_v41 = vpop.f32.mrf.mxu2  ;;  %17717 = vst [vmem:[#allocation123_spill] sm:$0xff] %v13810_v53  ;;  %v5688_v53 = vld [vmem:[%s17065_s3] sm:$0xf] }
 0x436   : > { %v3537_v46 = vpop.f32.mrf.mxu3  ;;  %v4338_v16 = vsel %vm17277_vm15, %v13801_v32, 0.0  ;;  %v3187_v22 = vadd.f32 %v3131_v41, %v2781_v44  ;;  %17718 = vst [vmem:[#allocation120_spill] sm:$0xff] %v13812_v35  ;;  %v17719_v44 = vld [vmem:[#allocation62_spill] sm:$0xff]  ;;  %10363 = vmatpush.msk.msrb.mxu2 %vm17352_vm0, %v5688_v53  ;;  %v10462_v53 = vld [vmem:[%s17065_s3 + $0xc] sm:$0xf] }
 0x437   : > { %v4428_v1 = vsel %vm543_vm1, %v4338_v16, 0.0  ;;  %v4488_v6 = vmul.f32 %v4338_v16, %v4338_v16  ;;  %vm17322_vm15 = vcmp.eq.s32.totalorder %v17719_v44, 1  ;;  %v17760_v35 = vld [vmem:[#allocation14_spill] sm:$0xff]  ;;  %10463 = vmatpush.msk.msrb.mxu0 %vm17352_vm0, %v10462_v53 }
 0x438   : > { %v4429_v19 = vadd.f32 %v4428_v1, %v4427_v30  ;;  %v3593_v62 = vadd.f32 %v3537_v46, %v3187_v22  ;;  %v13818_v30 = vpop.permute.xlu2 %5446  ;;  %v2731_v46 = vpop.f32.mrf.mxu1 }
 0x439   : > { %v4578_v38 = vsel %vm543_vm1, %v4488_v6, 0.0  ;;  %v3946_v0 = vpop.f32.mrf.mxu0  ;;  %17720 = vst [vmem:[#allocation150_spill] sm:$0xff] %v13818_v30  ;;  %v2783_v37 = vadd.f32 %v2731_v46, %v17721_v3  ;;  %v17726_v3 = vld [vmem:[#allocation25_spill] sm:$0xff] }
 0x43a   : > { %v4579_v54 = vadd.f32 %v4578_v38, %v4577_v59  ;;  %v3999_v9 = vadd.f32 %v3943_v8, %v3593_v62  ;;  %v17752_v30 = vld [vmem:[#allocation145_spill] sm:$0xff] }
 0x43c   : > { %v13815_v23 = vadd.f32 %v13798_v18, %v3999_v9 }
 0x43d   : > { %v3134_v41 = vpop.f32.mrf.mxu2 }
 0x43e   : > { %v3540_v16 = vpop.f32.mrf.mxu3  ;;  %v4339_v8 = vsel %vm17322_vm15, %v13815_v23, 0.0  ;;  %v3188_v59 = vadd.f32 %v3134_v41, %v2782_v5 }
 0x43f   : > { %v4430_v17 = vsel %vm543_vm1, %v4339_v8, 0.0  ;;  %v4489_v22 = vmul.f32 %v4339_v8, %v4339_v8  ;;  %v13835_v8 = vpop.permute.xlu1 %5449 }
 0x440   : > { %v4431_v1 = vadd.f32 %v4430_v17, %v4429_v19  ;;  %v3594_v6 = vadd.f32 %v3540_v16, %v3188_v59  ;;  %v13833_v16 = vpop.permute.xlu0 %5161  ;;  %17724 = vst [vmem:[#allocation3_spill] sm:$0xff] %v13835_v8  ;;  %v13838_v59 = vpop.permute.xlu2 %5164 }
 0x441   : > { %v4580_v62 = vsel %vm543_vm1, %v4489_v22, 0.0  ;;  %v3949_v36 = vpop.f32.mrf.mxu0  ;;  %17723 = vst [vmem:[#allocation78_spill] sm:$0xff] %v13833_v16  ;;  %v2734_v22 = vpop.f32.mrf.mxu1  ;;  %v17745_v16 = vld [vmem:[#allocation135_spill] sm:$0xff] }
 0x442   : > { %v4581_v38 = vadd.f32 %v4580_v62, %v4579_v54  ;;  %v4000_v9 = vadd.f32 %v3946_v0, %v3594_v6  ;;  %17725 = vst [vmem:[#allocation4_spill] sm:$0xff] %v13838_v59  ;;  %v2784_v47 = vadd.f32 %v2734_v22, %v17726_v3 }
 0x444   : > { %v13827_v2 = vadd.f32 %v13798_v18, %v4000_v9 }
 0x445   : > { %v3137_v44 = vpop.f32.mrf.mxu2 }
 0x446   : > { %v3543_v5 = vpop.f32.mrf.mxu3  ;;  %v4340_v41 = vsel %vm17285_vm12, %v13827_v2, 0.0  ;;  %v3189_v19 = vadd.f32 %v3137_v44, %v2783_v37  ;;  %v17727_v44 = vld [vmem:[#allocation64_spill] sm:$0xff] }
 0x447   : > { %v4432_v54 = vsel %vm543_vm1, %v4340_v41, 0.0  ;;  %v4490_v0 = vmul.f32 %v4340_v41, %v4340_v41  ;;  %vm17289_vm12 = vcmp.eq.s32.totalorder %v17727_v44, 1 }
 0x448   : > { %v4433_v46 = vadd.f32 %v4432_v54, %v4431_v1  ;;  %v3595_v17 = vadd.f32 %v3543_v5, %v3189_v19 }
 0x449   : > { %v4582_v6 = vsel %vm543_vm1, %v4490_v0, 0.0  ;;  %v3952_v54 = vpop.f32.mrf.mxu0  ;;  %v13850_v0 = vpop.permute.xlu0 %5452 }
 0x44a   : > { %v4583_v62 = vadd.f32 %v4582_v6, %v4581_v38  ;;  %v4001_v9 = vadd.f32 %v3949_v36, %v3595_v17  ;;  %17728 = vst [vmem:[#allocation5_spill] sm:$0xff] %v13850_v0  ;;  %v13852_v17 = vpop.permute.xlu1 %5167  ;;  %v13855_v6 = vpop.permute.xlu2 %5455 }
 0x44b   : > { %17729 = vst [vmem:[#allocation9_spill] sm:$0xff] %v13852_v17 }
 0x44c   : > { %v13843_v37 = vadd.f32 %v13798_v18, %v4001_v9  ;;  %17730 = vst [vmem:[#allocation19_spill] sm:$0xff] %v13855_v6 }
 0x44d   : > { %v3140_v13 = vpop.f32.mrf.mxu2 }
 0x44e   : > { %v3546_v8 = vpop.f32.mrf.mxu3  ;;  %v4341_v41 = vsel %vm17289_vm12, %v13843_v37, 0.0  ;;  %v3190_v1 = vadd.f32 %v3140_v13, %v2784_v47  ;;  %v17731_v13 = vld [vmem:[#allocation65_spill] sm:$0xff] }
 0x44f   : > { %v4434_v5 = vsel %vm543_vm1, %v4341_v41, 0.0  ;;  %v4491_v19 = vmul.f32 %v4341_v41, %v4341_v41  ;;  %vm17311_vm12 = vcmp.eq.s32.totalorder %v17731_v13, 1 }
 0x450   : > { %v4435_v38 = vadd.f32 %v4434_v5, %v4433_v46  ;;  %v3596_v36 = vadd.f32 %v3546_v8, %v3190_v1 }
 0x451   : > { %v4584_v22 = vsel %vm543_vm1, %v4491_v19, 0.0  ;;  %v13866_v6 = vpop.permute.xlu0 %5170 }
 0x452   : > { %v4585_v9 = vadd.f32 %v4584_v22, %v4583_v62  ;;  %v4002_v3 = vadd.f32 %v3952_v54, %v3596_v36  ;;  %17732 = vst [vmem:[#allocation22_spill] sm:$0xff] %v13866_v6  ;;  %v13868_v62 = vpop.permute.xlu1 %5458  ;;  %v17744_v6 = vld [vmem:[#allocation134_spill] sm:$0xff] }
 0x453   : > { %17733 = vst [vmem:[#allocation25_spill] sm:$0xff] %v13868_v62 }
 0x454   : > { %v13858_v44 = vadd.f32 %v13798_v18, %v4002_v3  ;;  %v13870_v18 = vpop.permute.xlu2 %5173 }
 0x455   : > { %17734 = vst [vmem:[#allocation155_spill] sm:$0xff] %v13870_v18 }
 0x456   : > { %v4342_v47 = vsel %vm17311_vm12, %v13858_v44, 0.0 }
 0x457   : > { %v4436_v8 = vsel %vm543_vm1, %v4342_v47, 0.0  ;;  %v4492_v46 = vmul.f32 %v4342_v47, %v4342_v47 }
 0x458   : > { %v4437_v41 = vadd.f32 %v4436_v8, %v4435_v38 }
 0x459   : > { %v4586_v1 = vsel %vm543_vm1, %v4492_v46, 0.0  ;;  %v13872_v8 = vpop.permute.xlu0 %5461 }
 0x45a   : > { %v4438_v5 = vrot.slane %v4437_v41, 4  ;;  %v4587_v19 = vadd.f32 %v4586_v1, %v4585_v9  ;;  %17735 = vst [vmem:[#allocation156_spill] sm:$0xff] %v13872_v8  ;;  %v13874_v46 = vpop.permute.xlu1 %5176 }
 0x45b   : > { %17736 = vst [vmem:[#allocation157_spill] sm:$0xff] %v13874_v46  ;;  %v17749_v46 = vld [vmem:[#allocation141_spill] sm:$0xff] }
 0x45c   : > { %v4439_v54 = vadd.f32 %v4438_v5, %v4437_v41  ;;  %v4588_v36 = vrot.slane %v4587_v19, 4  ;;  %v13876_v9 = vpop.permute.xlu2 %5464  ;;  %v17746_v5 = vld [vmem:[#allocation136_spill] sm:$0xff] }
 0x45d   : > { %17737 = vst [vmem:[#allocation158_spill] sm:$0xff] %v13876_v9  ;;  %v17743_v9 = vld [vmem:[#allocation132_spill] sm:$0xff] }
 0x45e   : > { %v4440_v22 = vrot.slane %v4439_v54, 2  ;;  %v4589_v3 = vadd.f32 %v4588_v36, %v4587_v19  ;;  %v17740_v19 = vld [vmem:[#allocation127_spill] sm:$0xff] }
 0x460   : > { %v4441_v13 = vadd.f32 %v4440_v22, %v4439_v54  ;;  %v4590_v17 = vrot.slane %v4589_v3, 2 }
 0x461   : > { %v13894_v36 = vpop.permute.xlu0 %5179 }
 0x462   : > { %v4442_v0 = vrot.slane %v4441_v13, 1  ;;  %v4591_v59 = vadd.f32 %v4590_v17, %v4589_v3  ;;  %v13896_v22 = vpop.permute.xlu1 %5467  ;;  %v17751_v17 = vld [vmem:[#allocation143_spill] sm:$0xff] }
 0x464   : > { %v4443_v47 = vadd.f32 %v4442_v0, %v4441_v13  ;;  %v4592_v38 = vrot.slane %v4591_v59, 1  ;;  %v13898_v3 = vpop.permute.xlu2 %5182  ;;  %v17739_v13 = vld [vmem:[#allocation125_spill] sm:$0xff] }
 0x466   : > { %v13878_v1 = vmul.f32 0.00390625, %v4443_v47  ;;  %v4593_v62 = vadd.f32 %v4592_v38, %v4591_v59  ;;  %v17738_v47 = vld [vmem:[#allocation126_spill] sm:$0xff]  ;;  %v17748_v59 = vld [vmem:[#allocation140_spill] sm:$0xff] }
 0x467   : > { %v17750_v38 = vld [vmem:[#allocation142_spill] sm:$0xff] }
 0x468   : > { %v4594_v18 = vmul.f32 0.00390625, %v4593_v62  ;;  %v4595_v41 = vmul.f32 %v13878_v1, %v13878_v1  ;;  %v17765_v27 = vsub.f32 %v13757_v33, %v13878_v1  ;;  %v17767_v52 = vsub.f32 %v13779_v49, %v13878_v1 }
 0x469   : > { %v13946_v11 = vpop.permute.xlu0 %5470 }
 0x46a   : > { %v4596_v62 = vsub.f32 %v4594_v18, %v4595_v41  ;;  %v17741_v18 = vld [vmem:[#allocation128_spill] sm:$0xff]  ;;  %v17747_v41 = vld [vmem:[#allocation138_spill] sm:$0xff]  ;;  %17756 = vst [vmem:[#allocation126_spill] sm:$0xff] %v13946_v11  ;;  %v13948_v20 = vpop.permute.xlu1 %5185  ;;  %v17781_v11 = vsub.f32 %v17744_v6, %v13878_v1 }
 0x46b   : > { %17757 = vst [vmem:[#allocation125_spill] sm:$0xff] %v13948_v20  ;;  %v17769_v20 = vsub.f32 %v13827_v2, %v13878_v1 }
 0x46c   : > { %v4645_v54 = vadd.f32 1e-05, %v4596_v62  ;;  %v17742_v62 = vld [vmem:[#allocation130_spill] sm:$0xff]  ;;  %v13959_v4 = vpop.permute.xlu2 %5473 }
 0x46d   : > { %17761 = vst [vmem:[#allocation127_spill] sm:$0xff] %v13959_v4 }
 0x46e   : > { %10783 = vrsqrt.f32 %v4645_v54  ;;  %vm4652_vm12 = vweird.f32 %v4645_v54 }
 0x474   : > { %v10784_v0 = vpop.eup %10783 }
 0x475   : > { %v4647_v8 = vmul.f32 %v10784_v0, %v4645_v54  ;;  %vm4653_vm15 = vweird.f32 %v10784_v0 }
 0x476   : > { %vm4654_vm14 = vmor %vm4652_vm12, %vm4653_vm15  ;;  %vm5238_vm12 = vcmp.eq.s32.totalorder %v13894_v36, 1  ;;  %vm5239_vm15 = vcmp.eq.s32.totalorder %v13898_v3, 1 }
 0x477   : > { %v4648_v42 = vmul.f32 %v10784_v0, %v4647_v8  ;;  %v17753_v8 = vld [vmem:[#allocation146_spill] sm:$0xff] }
 0x479   : > { %v4649_v34 = vmul.f32 0.5, %v4648_v42  ;;  %v17763_v42 = vld [vmem:[#allocation82_spill] sm:$0xff] }
 0x47b   : > { %v4650_v50 = vsub.f32 1.5, %v4649_v34 }
 0x47d   : > { %v4651_v34 = vmul.f32 %v10784_v0, %v4650_v50  ;;  %v14057_v50 = vpop.permute.xlu0 %5188 }
 0x47e   : > { %17775 = vst [vmem:[#allocation132_spill] sm:$0xff] %v14057_v50 }
 0x47f   : > { %v13997_v53 = vsel %vm4654_vm14, %v10784_v0, %v4651_v34  ;;  %v17768_v34 = vsub.f32 %v13801_v32, %v13878_v1  ;;  %vm5526_vm14 = vcmp.eq.s32.totalorder %v13896_v22, 1 }
 0x480   : > { %v14009_v4 = vmul.f32 %v13997_v53, %v17765_v27  ;;  %v14015_v0 = vmul.f32 %v13997_v53, %v17767_v52  ;;  %v14027_v33 = vmul.f32 %v13997_v53, %v17769_v20  ;;  %v17771_v27 = vsub.f32 %v13843_v37, %v13878_v1 }
 0x481   : > { %v14021_v54 = vmul.f32 %v13997_v53, %v17768_v34  ;;  %v17772_v52 = vsub.f32 %v13858_v44, %v13878_v1  ;;  %v17773_v34 = vsub.f32 %v17738_v47, %v13878_v1  ;;  %v17774_v20 = vsub.f32 %v17739_v13, %v13878_v1  ;;  %v14059_v47 = vpop.permute.xlu1 %5476 }
 0x482   : > { %17766 = vst [vmem:[#allocation128_spill] sm:$0xff] %v14009_v4  ;;  %v14033_v49 = vmul.f32 %v13997_v53, %v17771_v27  ;;  %v17326_v27 = vmax.f32 %v14009_v4, 0.0  ;;  %v4746_v31 = vmax.f32 %v14015_v0, 0.0  ;;  %v17777_v13 = vsub.f32 %v17740_v19, %v13878_v1 }
 0x483   : > { %17770 = vst [vmem:[#allocation130_spill] sm:$0xff] %v14027_v33  ;;  %v14039_v32 = vmul.f32 %v13997_v53, %v17772_v52  ;;  %v14045_v2 = vmul.f32 %v13997_v53, %v17773_v34  ;;  %v14051_v37 = vmul.f32 %v13997_v53, %v17774_v20  ;;  %v17778_v0 = vsub.f32 %v17741_v18, %v13878_v1  ;;  %v14076_v52 = vpop.permute.xlu2 %5191 }
 0x484   : > { %17776 = vst [vmem:[#allocation134_spill] sm:$0xff] %v14059_v47  ;;  %v14067_v20 = vmul.f32 %v13997_v53, %v17777_v13  ;;  %v17779_v19 = vsub.f32 %v17742_v62, %v13878_v1  ;;  %v17780_v18 = vsub.f32 %v17743_v9, %v13878_v1  ;;  %v14097_v34 = vmul.f32 %v13997_v53, %v17781_v11 }
 0x485   : > { %v14073_v44 = vmul.f32 %v13997_v53, %v17778_v0  ;;  %4805 = vst.msk [vmem:[#allocation2 + $0x178] sm:$0xff] %vm543_vm1, %v17326_v27  ;;  %v17782_v27 = vsub.f32 %v17745_v16, %v13878_v1  ;;  %v17783_v9 = vsub.f32 %v17746_v5, %v13878_v1  ;;  %v17784_v11 = vsub.f32 %v17747_v41, %v13878_v1 }
 0x486   : > { %v14085_v13 = vmul.f32 %v13997_v53, %v17779_v19  ;;  %v14091_v0 = vmul.f32 %v13997_v53, %v17780_v18  ;;  %4806 = vst.msk [vmem:[#allocation2 + $0x180] sm:$0xff] %vm543_vm1, %v4746_v31  ;;  %v17786_v18 = vsub.f32 %v17749_v46, %v13878_v1  ;;  %v17788_v41 = vsub.f32 %v17750_v38, %v13878_v1 }
 0x487   : > { %v14103_v62 = vmul.f32 %v13997_v53, %v17782_v27  ;;  %v14112_v6 = vmul.f32 %v13997_v53, %v17783_v9  ;;  %v14118_v16 = vmul.f32 %v13997_v53, %v17784_v11  ;;  %v17785_v27 = vsub.f32 %v17748_v59, %v13878_v1 }
 0x488   : > { %v14130_v5 = vmul.f32 %v13997_v53, %v17786_v18  ;;  %v17787_v9 = vmax.f32 %v14021_v54, 0.0  ;;  %v14139_v11 = vmul.f32 %v13997_v53, %v17788_v41  ;;  %v17790_v59 = vsub.f32 %v17751_v17, %v13878_v1 }
 0x489   : > { %v14124_v19 = vmul.f32 %v13997_v53, %v17785_v27  ;;  %v17792_v46 = vsub.f32 %v17752_v30, %v13878_v1  ;;  %v17796_v41 = vmax.f32 %v14027_v33, 0.0  ;;  %v17797_v17 = vsub.f32 %v17754_v43, %v13878_v1  ;;  %v5195_v47 = vpop.permute.xlu1 %5194 }
 0x48a   : > { %4807 = vst.msk [vmem:[#allocation2 + $0x188] sm:$0xff] %vm543_vm1, %v17787_v9  ;;  %v14145_v27 = vmul.f32 %v13997_v53, %v17790_v59  ;;  %v17794_v9 = vsub.f32 %v17753_v8, %v13878_v1  ;;  %v17799_v30 = vsub.f32 %v17755_v61, %v13878_v1  ;;  %v17801_v8 = vsub.f32 %v17758_v55, %v13878_v1 }
 0x48b   : > { %17789 = vst [vmem:[#allocation135_spill] sm:$0xff] %v14139_v11  ;;  %v14151_v18 = vmul.f32 %v13997_v53, %v17792_v46  ;;  %v14166_v59 = vmul.f32 %v13997_v53, %v17797_v17  ;;  %v17803_v17 = vmax.f32 %v14033_v49, 0.0  ;;  %v17804_v61 = vsub.f32 %v17760_v35, %v13878_v1 }
 0x48c   : > { %17791 = vst [vmem:[#allocation136_spill] sm:$0xff] %v14145_v27  ;;  %v14157_v38 = vmul.f32 %v13997_v53, %v17794_v9  ;;  %v14172_v46 = vmul.f32 %v13997_v53, %v17799_v30  ;;  %v14178_v9 = vmul.f32 %v13997_v53, %v17801_v8  ;;  %v17805_v55 = vsub.f32 %v17762_v26, %v13878_v1 }
 0x48d   : > { %17793 = vst [vmem:[#allocation138_spill] sm:$0xff] %v14151_v18  ;;  %v14193_v30 = vmul.f32 %v13997_v53, %v17804_v61  ;;  %v17808_v61 = vmax.f32 %v14039_v32, 0.0  ;;  %v17809_v26 = vsub.f32 %v17764_v39, %v13878_v1  ;;  %v17833_v33 = vsub.f32 %v13699_v10, %v13878_v1 }
 0x48e   : > { %17795 = vst [vmem:[#allocation140_spill] sm:$0xff] %v14157_v38  ;;  %v14199_v8 = vmul.f32 %v13997_v53, %v17805_v55  ;;  %v17846_v36 = vmax.f32 %v14021_v54, 0.0  ;;  %vm5243_vm3 = vcmp.eq.s32.totalorder %v5195_v47, 1  ;;  %v17850_v3 = vmax.f32 %v14039_v32, 0.0 }
 0x48f   : > { %4809 = vst.msk [vmem:[#allocation2 + $0x198] sm:$0xff] %vm543_vm1, %v17796_v41  ;;  %v17802_v41 = vsub.f32 %v17759_v24, %v13878_v1  ;;  %v17806_v24 = vsub.f32 %v17763_v42, %v13878_v1  ;;  %v14220_v55 = vmul.f32 %v13997_v53, %v17809_v26  ;;  %v17811_v42 = vsub.f32 %v13525_v29, %v13878_v1 }
 0x490   : > { %17798 = vst [vmem:[#allocation141_spill] sm:$0xff] %v14166_v59  ;;  %v17817_v26 = vsub.f32 %v13581_v7, %v13878_v1  ;;  %v17340_v32 = vmax.f32 %v14091_v0, 0.0 }
 0x491   : > { %17800 = vst [vmem:[#allocation142_spill] sm:$0xff] %v14172_v46  ;;  %v14184_v43 = vmul.f32 %v13997_v53, %v17802_v41  ;;  %v14205_v41 = vmul.f32 %v13997_v53, %v17806_v24  ;;  %v14226_v24 = vmul.f32 %v13997_v53, %v17811_v42  ;;  %v17819_v42 = vsub.f32 %v13593_v60, %v13878_v1  ;;  %v4854_v4 = vld [vmem:[#allocation2 + $0x182] sm:$0xff] }
 0x492   : > { %4810 = vst.msk [vmem:[#allocation2 + $0x1a0] sm:$0xff] %vm543_vm1, %v17803_v17  ;;  %v17807_v17 = vsub.f32 %v13508_v40, %v13878_v1  ;;  %v17813_v40 = vsub.f32 %v13534_v56, %v13878_v1  ;;  %v14244_v29 = vmul.f32 %v13997_v53, %v17817_v26  ;;  %v17825_v26 = vsub.f32 %v13642_v63, %v13878_v1  ;;  %v4903_v50 = vld [vmem:[#allocation2 + $0x186] sm:$0xff] }
 0x493   : > { %4811 = vst.msk [vmem:[#allocation2 + $0x1a8] sm:$0xff] %vm543_vm1, %v17808_v61  ;;  %v17815_v61 = vsub.f32 %v13569_v48, %v13878_v1  ;;  %v14250_v56 = vmul.f32 %v13997_v53, %v17819_v42  ;;  %v17827_v42 = vsub.f32 %v13654_v57, %v13878_v1  ;;  %v14292_v57 = vmul.f32 %v13997_v53, %v17833_v33  ;;  %v5480_v33 = vpop.permute.xlu0 %5479 }
 0x494   : > { %v14211_v35 = vmul.f32 %v13997_v53, %v17807_v17  ;;  %17810 = vst [vmem:[#allocation143_spill] sm:$0xff] %v14220_v55  ;;  %v14232_v17 = vmul.f32 %v13997_v53, %v17813_v40  ;;  %v17821_v40 = vsub.f32 %v13620_v12, %v13878_v1  ;;  %v14268_v60 = vmul.f32 %v13997_v53, %v17825_v26  ;;  %v4902_v26 = vld [vmem:[#allocation2 + $0x17e] sm:$0xff] }
 0x495   : > { %17812 = vst [vmem:[#allocation145_spill] sm:$0xff] %v14226_v24  ;;  %v14238_v39 = vmul.f32 %v13997_v53, %v17815_v61  ;;  %v17823_v61 = vsub.f32 %v13627_v14, %v13878_v1  ;;  %v14274_v12 = vmul.f32 %v13997_v53, %v17827_v42  ;;  %v17835_v42 = vsub.f32 %v13710_v51, %v13878_v1 }
 0x496   : > { %17814 = vst [vmem:[#allocation146_spill] sm:$0xff] %v14232_v17  ;;  %v14256_v48 = vmul.f32 %v13997_v53, %v17821_v40  ;;  %v17829_v40 = vsub.f32 %v13679_v45, %v13878_v1  ;;  %v5286_v51 = vsel %vm5238_vm12, %v4902_v26, %v4746_v31  ;;  %vm5242_vm12 = vcmp.eq.s32.totalorder %v14076_v52, 1 }
 0x497   : > { %17816 = vst [vmem:[#allocation148_spill] sm:$0xff] %v14238_v39  ;;  %v14262_v7 = vmul.f32 %v13997_v53, %v17823_v61  ;;  %v17831_v61 = vsub.f32 %v13689_v15, %v13878_v1  ;;  %v14298_v45 = vmul.f32 %v13997_v53, %v17835_v42  ;;  %v17841_v42 = vsub.f32 %v13741_v28, %v13878_v1 }
 0x498   : > { %17818 = vst [vmem:[#allocation149_spill] sm:$0xff] %v14244_v29  ;;  %v14280_v14 = vmul.f32 %v13997_v53, %v17829_v40  ;;  %v17837_v40 = vsub.f32 %v13721_v21, %v13878_v1  ;;  %v5574_v31 = vsel %vm5526_vm14, %v4854_v4, %v5286_v51  ;;  %v14335_v28 = vsel %vm5239_vm15, %v4903_v50, %v17846_v36  ;;  %v17896_v29 = vld [vmem:[#allocation131_spill] sm:$0xff] }
 0x499   : > { %17820 = vst [vmem:[#allocation151_spill] sm:$0xff] %v14250_v56  ;;  %v14286_v63 = vmul.f32 %v13997_v53, %v17831_v61  ;;  %v17839_v61 = vsub.f32 %v13731_v58, %v13878_v1  ;;  %v14318_v21 = vmul.f32 %v13997_v53, %v17841_v42  ;;  %vm5530_vm13 = vcmp.eq.s32.totalorder %v5480_v33, 1  ;;  %v14342_v54 = vld [vmem:[#allocation2 + $0x19a] sm:$0xff] }
 0x49a   : > { %17822 = vst [vmem:[#allocation153_spill] sm:$0xff] %v14256_v48  ;;  %v14304_v15 = vmul.f32 %v13997_v53, %v17837_v40  ;;  %v17843_v40 = vsub.f32 %v13815_v23, %v13878_v1  ;;  %v4906_v23 = vld [vmem:[#allocation2 + $0x19e] sm:$0xff]  ;;  %v4907_v26 = vld [vmem:[#allocation2 + $0x1a6] sm:$0xff]  ;;  %v17848_v42 = vmax.f32 %v14033_v49, 0.0  ;;  %v17349_v4 = vmax.f32 %v14051_v37, 0.0 }
 0x49b   : > { %17824 = vst [vmem:[#allocation14_spill] sm:$0xff] %v14262_v7  ;;  %v14310_v10 = vmul.f32 %v13997_v53, %v17839_v61  ;;  %v17351_v61 = vmax.f32 %v14045_v2, 0.0  ;;  %v4858_v1 = vld [vmem:[#allocation2 + $0x1a2] sm:$0xff]  ;;  %v5291_v50 = vsel %vm5243_vm3, %v4907_v26, %v17850_v3  ;;  %v17347_v51 = vmax.f32 %v14067_v20, 0.0  ;;  %v17853_v3 = vld [vmem:[#allocation73_spill] sm:$0xff] }
 0x49c   : > { %17826 = vst [vmem:[#allocation96_spill] sm:$0xff] %v14268_v60  ;;  %v14324_v58 = vmul.f32 %v13997_v53, %v17843_v40  ;;  %v4859_v53 = vld [vmem:[#allocation2 + $0x1aa] sm:$0xff]  ;;  %v5290_v22 = vsel %vm5242_vm12, %v4906_v23, %v17848_v42  ;;  %v17345_v49 = vmax.f32 %v14073_v44, 0.0  ;;  %v17338_v40 = vmax.f32 %v14097_v34, 0.0  ;;  %v17851_v42 = vld [vmem:[#allocation66_spill] sm:$0xff]  ;;  %v17868_v26 = vld [vmem:[#allocation87_spill] sm:$0xff] }
 0x49d   : > { %17828 = vst [vmem:[#allocation82_spill] sm:$0xff] %v14274_v12  ;;  %v5578_v52 = vsel %vm5530_vm13, %v4858_v1, %v5290_v22  ;;  %v17336_v36 = vmax.f32 %v14112_v6, 0.0  ;;  %v17343_v23 = vmax.f32 %v14118_v16, 0.0  ;;  %v17353_v1 = vmax.f32 %v14124_v19, 0.0  ;;  %v17852_v22 = vld [vmem:[#allocation72_spill] sm:$0xff] }
 0x49e   : > { %17830 = vst [vmem:[#allocation97_spill] sm:$0xff] %v14280_v14  ;;  %vm5199_vm13 = vcmp.eq.s32.totalorder %v17851_v42, 1  ;;  %vm5196_vm3 = vcmp.eq.s32.totalorder %v17852_v22, 1  ;;  %vm5484_vm15 = vcmp.eq.s32.totalorder %v17853_v3, 1  ;;  %v17888_v14 = vld [vmem:[#allocation122_spill] sm:$0xff]  ;;  %v17893_v60 = vmax.f32 %v14172_v46, 0.0 }
 0x49f   : > { %17832 = vst [vmem:[#allocation159_spill] sm:$0xff] %v14286_v63  ;;  %v17874_v63 = vmax.f32 %v14145_v27, 0.0  ;;  %vm5213_vm5 = vcmp.eq.s32.totalorder %v17888_v14, 1  ;;  %v17895_v12 = vmax.f32 %v14051_v37, 0.0  ;;  %vm5502_vm7 = vcmp.eq.s32.totalorder %v17896_v29, 1  ;;  %v17902_v22 = vld [vmem:[#allocation139_spill] sm:$0xff] }
 0x4a0   : > { %17834 = vst [vmem:[#allocation160_spill] sm:$0xff] %v14292_v57  ;;  %v17884_v57 = vmax.f32 %v14157_v38, 0.0  ;;  %v17900_v37 = vmax.f32 %v14073_v44, 0.0  ;;  %v17907_v42 = vld [vmem:[#allocation10_spill] sm:$0xff]  ;;  %v17908_v3 = vld [vmem:[#allocation144_spill] sm:$0xff] }
 0x4a1   : > { %17836 = vst [vmem:[#allocation161_spill] sm:$0xff] %v14298_v45  ;;  %v17889_v45 = vmax.f32 %v14166_v59, 0.0  ;;  %v17894_v59 = vmax.f32 %v14045_v2, 0.0  ;;  %v17899_v2 = vmax.f32 %v14067_v20, 0.0  ;;  %v17903_v20 = vmax.f32 %v14184_v43, 0.0 }
 0x4a2   : > { %17838 = vst [vmem:[#allocation162_spill] sm:$0xff] %v14304_v15  ;;  %v14327_v15 = vld [vmem:[#allocation2 + $0x17a] sm:$0xff] }
 0x4a3   : > { %17840 = vst [vmem:[#allocation163_spill] sm:$0xff] %v14310_v10  ;;  %v5483_v10 = vpop.permute.xlu2 %5482 }
 0x4a4   : > { %17842 = vst [vmem:[#allocation164_spill] sm:$0xff] %v14318_v21  ;;  %vm5531_vm14 = vcmp.eq.s32.totalorder %v5483_v10, 1  ;;  %v17341_v10 = vmax.f32 %v14085_v13, 0.0  ;;  %v17873_v21 = vld [vmem:[#allocation95_spill] sm:$0xff] }
 0x4a5   : > { %17844 = vst [vmem:[#allocation165_spill] sm:$0xff] %v14324_v58  ;;  %v5579_v47 = vsel %vm5531_vm14, %v4859_v53, %v5291_v50  ;;  %v17355_v53 = vmax.f32 %v14130_v5, 0.0  ;;  %v17866_v50 = vld [vmem:[#allocation83_spill] sm:$0xff]  ;;  %v17871_v58 = vld [vmem:[#allocation89_spill] sm:$0xff] }
 0x4a6   : > { %17845 = vst [vmem:[#allocation166_spill] sm:$0xff] %v14327_v15 }
 0x4a7   : > { %17847 = vst [vmem:[#allocation167_spill] sm:$0xff] %v14335_v28  ;;  %v17869_v28 = vmax.f32 %v14139_v11, 0.0 }
 0x4a8   : > { %5622 = vst.msk [vmem:[#allocation2 + $0x180] sm:$0xff] %vm543_vm1, %v5574_v31  ;;  %v17334_v31 = vmax.f32 %v14103_v62, 0.0 }
 0x4a9   : > { %17849 = vst [vmem:[#allocation168_spill] sm:$0xff] %v14342_v54  ;;  %v17879_v54 = vmax.f32 %v14151_v18, 0.0 }
 0x4aa   : > { %4764 = vst.msk [vmem:[#allocation2 + $0x30] sm:$0xff] %vm543_vm1, %v17351_v61  ;;  %v17870_v61 = vld [vmem:[#allocation85_spill] sm:$0xff] }
 0x4ab   : > { %5626 = vst.msk [vmem:[#allocation2 + $0x1a0] sm:$0xff] %vm543_vm1, %v5578_v52  ;;  %v17854_v52 = vld [vmem:[#allocation67_spill] sm:$0xff] }
 0x4ac   : > { %5627 = vst.msk [vmem:[#allocation2 + $0x1a8] sm:$0xff] %vm543_vm1, %v5579_v47  ;;  %v17855_v47 = vld [vmem:[#allocation68_spill] sm:$0xff] }
 0x4ad   : > { %4765 = vst.msk [vmem:[#allocation2 + $0x38] sm:$0xff] %vm543_vm1, %v17349_v4  ;;  %vm5200_vm14 = vcmp.eq.s32.totalorder %v17855_v47, 1  ;;  %v17864_v4 = vld [vmem:[#allocation81_spill] sm:$0xff] }
 0x4ae   : > { %4766 = vst.msk [vmem:[#allocation2 + $0x40] sm:$0xff] %vm543_vm1, %v17347_v51  ;;  %v17863_v51 = vld [vmem:[#allocation79_spill] sm:$0xff] }
 0x4af   : > { %v5634_v33 = vld [vmem:[#allocation2 + $0x180] sm:$0xff]  ;;  %4767 = vst.msk [vmem:[#allocation2 + $0x48] sm:$0xff] %vm543_vm1, %v17345_v49  ;;  %v17862_v49 = vld [vmem:[#allocation77_spill] sm:$0xff] }
 0x4b0   : > { %5637 = vst.msk [vmem:[#allocation2 + $0x1b0] sm:$0xff] %vm543_vm1, %v5634_v33  ;;  %v17856_v33 = vld [vmem:[#allocation70_spill] sm:$0xff]  ;;  %vm5486_vm6 = vcmp.eq.s32.totalorder %v17862_v49, 1  ;;  %v17912_v49 = vmax.f32 %v14103_v62, 0.0 }
 0x4b1   : > { %4768 = vst.msk [vmem:[#allocation2 + $0x50] sm:$0xff] %vm543_vm1, %v17341_v10  ;;  %vm5201_vm2 = vcmp.eq.s32.totalorder %v17856_v33, 1  ;;  %v17860_v10 = vld [vmem:[#allocation69_spill] sm:$0xff] }
 0x4b2   : > { %4769 = vst.msk [vmem:[#allocation2 + $0x58] sm:$0xff] %vm543_vm1, %v17340_v32  ;;  %v17865_v32 = vld [vmem:[#allocation80_spill] sm:$0xff] }
 0x4b3   : > { %4770 = vst.msk [vmem:[#allocation2 + $0x60] sm:$0xff] %vm543_vm1, %v17338_v40  ;;  %v17859_v40 = vld [vmem:[#allocation76_spill] sm:$0xff] }
 0x4b4   : > { %4771 = vst.msk [vmem:[#allocation2 + $0x68] sm:$0xff] %vm543_vm1, %v17334_v31  ;;  %v17857_v31 = vld [vmem:[#allocation74_spill] sm:$0xff]  ;;  %vm5198_vm9 = vcmp.eq.s32.totalorder %v17859_v40, 1  ;;  %v4860_v38 = vld [vmem:[#allocation2 + $0x2e] sm:$0xff] }
 0x4b5   : > { %4772 = vst.msk [vmem:[#allocation2 + $0x70] sm:$0xff] %vm543_vm1, %v17336_v36  ;;  %vm5197_vm11 = vcmp.eq.s32.totalorder %v17857_v31, 1  ;;  %v17858_v36 = vld [vmem:[#allocation75_spill] sm:$0xff]  ;;  %v4812_v15 = vld [vmem:[#allocation2 + $0x32] sm:$0xff]  ;;  %v5244_v11 = vsel %vm5196_vm3, %v4860_v38, %v17894_v59  ;;  %vm5216_vm3 = vcmp.eq.s32.totalorder %v17902_v22, 1 }
 0x4b6   : > { %4773 = vst.msk [vmem:[#allocation2 + $0x78] sm:$0xff] %vm543_vm1, %v17343_v23  ;;  %vm5485_vm10 = vcmp.eq.s32.totalorder %v17858_v36, 1  ;;  %v17861_v23 = vld [vmem:[#allocation71_spill] sm:$0xff]  ;;  %v4861_v55 = vld [vmem:[#allocation2 + $0x36] sm:$0xff] }
 0x4b7   : > { %4774 = vst.msk [vmem:[#allocation2 + $0x80] sm:$0xff] %vm543_vm1, %v17353_v1  ;;  %v17867_v1 = vld [vmem:[#allocation84_spill] sm:$0xff]  ;;  %v4813_v7 = vld [vmem:[#allocation2 + $0x3a] sm:$0xff]  ;;  %v5245_v14 = vsel %vm5197_vm11, %v4861_v55, %v17895_v12  ;;  %v14491_v55 = vsel %vm5484_vm15, %v4812_v15, %v5244_v11  ;;  %v17901_v31 = vld [vmem:[#allocation137_spill] sm:$0xff]  ;;  %v17905_v15 = vmax.f32 %v14091_v0, 0.0  ;;  %vm17914_vm15 = vcmp.eq.s32.totalorder %v17860_v10, 1 }
 0x4b8   : > { %4775 = vst.msk [vmem:[#allocation2 + $0x88] sm:$0xff] %vm543_vm1, %v17355_v53  ;;  %vm5204_vm8 = vcmp.eq.s32.totalorder %v17867_v1, 1  ;;  %v17872_v53 = vld [vmem:[#allocation91_spill] sm:$0xff]  ;;  %v14495_v12 = vsel %vm5485_vm10, %v4813_v7, %v5245_v14  ;;  %vm5503_vm11 = vcmp.eq.s32.totalorder %v17901_v31, 1  ;;  %v17920_v10 = vmax.f32 %v14118_v16, 0.0  ;;  %v18004_v22 = vld [vmem:[#allocation93_spill] sm:$0xff] }
 0x4b9   : > { %4776 = vst.msk [vmem:[#allocation2 + $0x90] sm:$0xff] %vm543_vm1, %v17869_v28  ;;  %v4814_v48 = vld [vmem:[#allocation2 + $0x42] sm:$0xff]  ;;  %v17883_v28 = vld [vmem:[#allocation114_spill] sm:$0xff] }
 0x4ba   : > { %4777 = vst.msk [vmem:[#allocation2 + $0x98] sm:$0xff] %vm543_vm1, %v17874_v63  ;;  %vm5211_vm0 = vcmp.eq.s32.totalorder %v17883_v28, 1  ;;  %v4816_v18 = vld [vmem:[#allocation2 + $0x52] sm:$0xff]  ;;  %v4817_v27 = vld [vmem:[#allocation2 + $0x5a] sm:$0xff]  ;;  %v4863_v25 = vld [vmem:[#allocation2 + $0x46] sm:$0xff] }
 0x4bb   : > { %4778 = vst.msk [vmem:[#allocation2 + $0xa0] sm:$0xff] %vm543_vm1, %v17879_v54  ;;  %v4815_v54 = vld [vmem:[#allocation2 + $0x4a] sm:$0xff]  ;;  %v4862_v17 = vld [vmem:[#allocation2 + $0x3e] sm:$0xff]  ;;  %v4865_v46 = vld [vmem:[#allocation2 + $0x56] sm:$0xff]  ;;  %v5247_v59 = vsel %vm5199_vm13, %v4863_v25, %v17900_v37  ;;  %v17904_v25 = vmax.f32 %v14085_v13, 0.0  ;;  %vm5217_vm13 = vcmp.eq.s32.totalorder %v17908_v3, 1 }
 0x4bc   : > { %4779 = vst.msk [vmem:[#allocation2 + $0xa8] sm:$0xff] %vm543_vm1, %v17884_v57  ;;  %v4818_v57 = vld [vmem:[#allocation2 + $0x62] sm:$0xff]  ;;  %v4819_v24 = vld [vmem:[#allocation2 + $0x6a] sm:$0xff]  ;;  %v5246_v38 = vsel %vm5198_vm9, %v4862_v17, %v17899_v2  ;;  %v5249_v7 = vsel %vm5201_vm2, %v4865_v46, %v17905_v15  ;;  %vm17906_vm9 = vcmp.eq.s32.totalorder %v17854_v52, 1  ;;  %v17909_v13 = vmax.f32 %v14193_v30, 0.0 }
 0x4bd   : > { %4780 = vst.msk [vmem:[#allocation2 + $0xb0] sm:$0xff] %vm543_vm1, %v17889_v45  ;;  %v17892_v63 = vld [vmem:[#allocation129_spill] sm:$0xff]  ;;  %v4866_v17 = vld [vmem:[#allocation2 + $0x5e] sm:$0xff]  ;;  %v4867_v40 = vld [vmem:[#allocation2 + $0x66] sm:$0xff]  ;;  %v14512_v14 = vsel %vm5486_vm6, %v4814_v48, %v5246_v38  ;;  %v14516_v36 = vsel %vm17906_vm9, %v4815_v54, %v5247_v59  ;;  %v17910_v46 = vmax.f32 %v14097_v34, 0.0  ;;  %vm17911_vm6 = vcmp.eq.s32.totalorder %v17863_v51, 1 }
 0x4be   : > { %vm5214_vm4 = vcmp.eq.s32.totalorder %v17892_v63, 1  ;;  %4781 = vst.msk [vmem:[#allocation2 + $0xb8] sm:$0xff] %vm543_vm1, %v17893_v60  ;;  %v4820_v39 = vld [vmem:[#allocation2 + $0x72] sm:$0xff]  ;;  %v4821_v45 = vld [vmem:[#allocation2 + $0x7a] sm:$0xff]  ;;  %v17898_v60 = vmax.f32 %v14178_v9, 0.0  ;;  %vm17913_vm2 = vcmp.eq.s32.totalorder %v17864_v4, 1 }
 0x4bf   : > { %v17897_v28 = vld [vmem:[#allocation133_spill] sm:$0xff]  ;;  %v4822_v56 = vld [vmem:[#allocation2 + $0x82] sm:$0xff]  ;;  %4783 = vst.msk [vmem:[#allocation2 + $0xc8] sm:$0xff] %vm543_vm1, %v17903_v20  ;;  %v5250_v48 = vsel %vm17911_vm6, %v4866_v17, %v17910_v46  ;;  %v5251_v52 = vsel %vm17913_vm2, %v4867_v40, %v17912_v49  ;;  %v17918_v34 = vmax.f32 %v14199_v8, 0.0  ;;  %v17919_v38 = vmax.f32 %v14112_v6, 0.0 }
 0x4c0   : > { %vm5215_vm12 = vcmp.eq.s32.totalorder %v17897_v28, 1  ;;  %4782 = vst.msk [vmem:[#allocation2 + $0xc0] sm:$0xff] %vm543_vm1, %v17898_v60  ;;  %v4864_v63 = vld [vmem:[#allocation2 + $0x4e] sm:$0xff]  ;;  %v4869_v33 = vld [vmem:[#allocation2 + $0x76] sm:$0xff]  ;;  %v17916_v60 = vld [vmem:[#allocation11_spill] sm:$0xff]  ;;  %vm17921_vm6 = vcmp.eq.s32.totalorder %v17868_v26, 1 }
 0x4c1   : > { %v4823_v44 = vld [vmem:[#allocation2 + $0x8a] sm:$0xff]  ;;  %v5248_v11 = vsel %vm5200_vm14, %v4864_v63, %v17904_v25  ;;  %4784 = vst.msk [vmem:[#allocation2 + $0xd0] sm:$0xff] %vm543_vm1, %v17909_v13  ;;  %v4824_v0 = vld [vmem:[#allocation2 + $0x92] sm:$0xff]  ;;  %vm17915_vm14 = vcmp.eq.s32.totalorder %v17861_v23, 1  ;;  %v17917_v2 = vld [vmem:[#allocation147_spill] sm:$0xff]  ;;  %vm17922_vm2 = vcmp.eq.s32.totalorder %v17865_v32, 1 }
 0x4c2   : > { %v4868_v47 = vld [vmem:[#allocation2 + $0x6e] sm:$0xff]  ;;  %v14533_v63 = vsel %vm17914_vm15, %v4816_v18, %v5248_v11  ;;  %v14537_v54 = vsel %vm17915_vm14, %v4817_v27, %v5249_v7  ;;  %vm5218_vm10 = vcmp.eq.s32.totalorder %v17917_v2, 1  ;;  %4785 = vst.msk [vmem:[#allocation2 + $0xd8] sm:$0xff] %vm543_vm1, %v17918_v34  ;;  %v4825_v62 = vld [vmem:[#allocation2 + $0x9a] sm:$0xff]  ;;  %v4871_v4 = vld [vmem:[#allocation2 + $0x86] sm:$0xff]  ;;  %v5253_v27 = vsel %vm17921_vm6, %v4869_v33, %v17920_v10 }
 0x4c3   : > { %v4870_v51 = vld [vmem:[#allocation2 + $0x7e] sm:$0xff]  ;;  %v5252_v18 = vsel %vm5204_vm8, %v4868_v47, %v17919_v38  ;;  %v14554_v23 = vsel %vm17922_vm2, %v4818_v57, %v5250_v48  ;;  %vm17923_vm15 = vcmp.eq.s32.totalorder %v17866_v50, 1  ;;  %v17924_v59 = vld [vmem:[#allocation13_spill] sm:$0xff]  ;;  %v17925_v20 = vld [vmem:[#allocation152_spill] sm:$0xff]  ;;  %v17926_v6 = vmax.f32 %v14205_v41, 0.0  ;;  %5580 = vst.msk [vmem:[#allocation2 + $0x30] sm:$0xff] %vm543_vm1, %v14491_v55 }
 0x4c4   : > { %v14558_v37 = vsel %vm17923_vm15, %v4819_v24, %v5251_v52  ;;  %v4826_v16 = vld [vmem:[#allocation2 + $0xa2] sm:$0xff]  ;;  %v4872_v1 = vld [vmem:[#allocation2 + $0x8e] sm:$0xff]  ;;  %v4873_v26 = vld [vmem:[#allocation2 + $0x96] sm:$0xff]  ;;  %v17927_v17 = vmax.f32 %v14124_v19, 0.0  ;;  %vm17928_vm8 = vcmp.eq.s32.totalorder %v17872_v53, 1  ;;  %v17929_v50 = vmax.f32 %v14130_v5, 0.0 }
 0x4c5   : > { %4786 = vst.msk [vmem:[#allocation2 + $0xe0] sm:$0xff] %vm543_vm1, %v17926_v6  ;;  %vm17930_vm6 = vcmp.eq.s32.totalorder %v17873_v21, 1  ;;  %vm17931_vm2 = vcmp.eq.s32.totalorder %v17870_v61, 1  ;;  %vm17932_vm15 = vcmp.eq.s32.totalorder %v17871_v58, 1  ;;  %v17933_v25 = vld [vmem:[#allocation154_spill] sm:$0xff]  ;;  %v17934_v11 = vld [vmem:[#allocation101_spill] sm:$0xff] }
 0x4c6   : > { %v5254_v32 = vsel %vm17928_vm8, %v4870_v51, %v17927_v17  ;;  %v5255_v24 = vsel %vm17930_vm6, %v4871_v4, %v17929_v50  ;;  %v14575_v57 = vsel %vm17931_vm2, %v4820_v39, %v5252_v18  ;;  %v14579_v40 = vsel %vm17932_vm15, %v4821_v45, %v5253_v27  ;;  %v4827_v5 = vld [vmem:[#allocation2 + $0xaa] sm:$0xff]  ;;  %v4874_v53 = vld [vmem:[#allocation2 + $0x9e] sm:$0xff]  ;;  %v4828_v38 = vld [vmem:[#allocation2 + $0xb2] sm:$0xff]  ;;  %5581 = vst.msk [vmem:[#allocation2 + $0x38] sm:$0xff] %vm543_vm1, %v14495_v12 }
 0x4c7   : > { %v17935_v19 = vmax.f32 %v14211_v35, 0.0  ;;  %v4875_v21 = vld [vmem:[#allocation2 + $0xa6] sm:$0xff]  ;;  %v17944_v33 = vld [vmem:[#allocation94_spill] sm:$0xff]  ;;  %v4876_v18 = vld [vmem:[#allocation2 + $0xae] sm:$0xff]  ;;  %5582 = vst.msk [vmem:[#allocation2 + $0x40] sm:$0xff] %vm543_vm1, %v14512_v14 }
 0x4c8   : > { %v17936_v15 = vld [vmem:[#allocation135_spill] sm:$0xff]  ;;  %v17938_v61 = vld [vmem:[#allocation100_spill] sm:$0xff]  ;;  %vm17945_vm2 = vcmp.eq.s32.totalorder %v17944_v33, 1  ;;  %v17946_v48 = vld [vmem:[#allocation98_spill] sm:$0xff]  ;;  %5583 = vst.msk [vmem:[#allocation2 + $0x48] sm:$0xff] %vm543_vm1, %v14516_v36 }
 0x4c9   : > { %4787 = vst.msk [vmem:[#allocation2 + $0xe8] sm:$0xff] %vm543_vm1, %v17935_v19  ;;  %v17937_v7 = vmax.f32 %v17936_v15, 0.0  ;;  %vm17939_vm8 = vcmp.eq.s32.totalorder %v17938_v61, 1  ;;  %v17940_v13 = vld [vmem:[#allocation136_spill] sm:$0xff]  ;;  %v14596_v46 = vsel %vm17945_vm2, %v4822_v56, %v5254_v32  ;;  %vm17947_vm15 = vcmp.eq.s32.totalorder %v17946_v48, 1  ;;  %v17950_v51 = vld [vmem:[#allocation143_spill] sm:$0xff] }
 0x4ca   : > { %v17941_v58 = vmax.f32 %v17940_v13, 0.0  ;;  %v17942_v45 = vld [vmem:[#allocation104_spill] sm:$0xff]  ;;  %v14600_v49 = vsel %vm17947_vm15, %v4823_v44, %v5255_v24  ;;  %v17951_v4 = vmax.f32 %v17950_v51, 0.0  ;;  %v4877_v10 = vld [vmem:[#allocation2 + $0xb6] sm:$0xff]  ;;  %v17959_v50 = vld [vmem:[#allocation103_spill] sm:$0xff]  ;;  %5584 = vst.msk [vmem:[#allocation2 + $0x50] sm:$0xff] %vm543_vm1, %v14533_v63 }
 0x4cb   : > { %v5256_v39 = vsel %vm17939_vm8, %v4872_v1, %v17937_v7  ;;  %vm17943_vm6 = vcmp.eq.s32.totalorder %v17942_v45, 1  ;;  %v17948_v52 = vld [vmem:[#allocation92_spill] sm:$0xff]  ;;  %v17952_v27 = vld [vmem:[#allocation138_spill] sm:$0xff]  ;;  %v17954_v1 = vld [vmem:[#allocation109_spill] sm:$0xff]  ;;  %5585 = vst.msk [vmem:[#allocation2 + $0x58] sm:$0xff] %vm543_vm1, %v14537_v54 }
 0x4cc   : > { %v5257_v47 = vsel %vm17943_vm6, %v4873_v26, %v17941_v58  ;;  %v17949_v34 = vld [vmem:[#allocation16_spill] sm:$0xff]  ;;  %4788 = vst.msk [vmem:[#allocation2 + $0xf0] sm:$0xff] %vm543_vm1, %v17951_v4  ;;  %v17953_v6 = vmax.f32 %v17952_v27, 0.0  ;;  %vm17955_vm8 = vcmp.eq.s32.totalorder %v17954_v1, 1  ;;  %vm17960_vm6 = vcmp.eq.s32.totalorder %v17959_v50, 1  ;;  %v17963_v7 = vld [vmem:[#allocation86_spill] sm:$0xff] }
 0x4cd   : > { %vm5221_vm9 = vcmp.eq.s32.totalorder %v17949_v34, 1  ;;  %v17956_v26 = vld [vmem:[#allocation140_spill] sm:$0xff]  ;;  %v14617_v24 = vsel %vm17960_vm6, %v4824_v0, %v5256_v39  ;;  %vm5509_vm15 = vcmp.eq.s32.totalorder %v17963_v7, 1  ;;  %v17964_v61 = vld [vmem:[#allocation102_spill] sm:$0xff]  ;;  %v17965_v13 = vld [vmem:[#allocation145_spill] sm:$0xff]  ;;  %v17997_v27 = vmax.f32 %v14193_v30, 0.0 }
 0x4ce   : > { %v5258_v56 = vsel %vm17955_vm8, %v4874_v53, %v17953_v6  ;;  %v17957_v17 = vmax.f32 %v17956_v26, 0.0  ;;  %v17961_v19 = vld [vmem:[#allocation108_spill] sm:$0xff]  ;;  %vm5222_vm14 = vcmp.eq.s32.totalorder %v17964_v61, 1  ;;  %v17966_v58 = vmax.f32 %v17965_v13, 0.0  ;;  %v4829_v53 = vld [vmem:[#allocation2 + $0xba] sm:$0xff]  ;;  %v17967_v33 = vld [vmem:[#allocation141_spill] sm:$0xff] }
 0x4cf   : > { %vm17962_vm2 = vcmp.eq.s32.totalorder %v17961_v19, 1  ;;  %v4878_v45 = vld [vmem:[#allocation2 + $0xbe] sm:$0xff]  ;;  %v17969_v48 = vld [vmem:[#allocation117_spill] sm:$0xff]  ;;  %v17976_v1 = vld [vmem:[#allocation116_spill] sm:$0xff]  ;;  %v18002_v50 = vmax.f32 %v14199_v8, 0.0  ;;  %5586 = vst.msk [vmem:[#allocation2 + $0x60] sm:$0xff] %vm543_vm1, %v14554_v23 }
 0x4d0   : > { %v5259_v32 = vsel %vm5211_vm0, %v4875_v21, %v17957_v17  ;;  %v14621_v15 = vsel %vm17962_vm2, %v4825_v62, %v5257_v47  ;;  %4789 = vst.msk [vmem:[#allocation2 + $0xf8] sm:$0xff] %vm543_vm1, %v17966_v58  ;;  %v17968_v21 = vmax.f32 %v17967_v33, 0.0  ;;  %vm17970_vm0 = vcmp.eq.s32.totalorder %v17969_v48, 1  ;;  %v17971_v39 = vld [vmem:[#allocation142_spill] sm:$0xff]  ;;  %v17974_v47 = vld [vmem:[#allocation111_spill] sm:$0xff]  ;;  %v17978_v17 = vld [vmem:[#allocation17_spill] sm:$0xff] }
 0x4d1   : > { %v17972_v4 = vmax.f32 %v17971_v39, 0.0  ;;  %vm17975_vm8 = vcmp.eq.s32.totalorder %v17974_v47, 1  ;;  %vm17977_vm6 = vcmp.eq.s32.totalorder %v17976_v1, 1  ;;  %vm5510_vm2 = vcmp.eq.s32.totalorder %v17978_v17, 1  ;;  %v17979_v44 = vld [vmem:[#allocation153_spill] sm:$0xff]  ;;  %v17980_v19 = vld [vmem:[#allocation146_spill] sm:$0xff] }
 0x4d2   : > { %v5260_v0 = vsel %vm17970_vm0, %v4876_v18, %v17968_v21  ;;  %v14638_v6 = vsel %vm17975_vm8, %v4826_v16, %v5258_v56  ;;  %v14642_v26 = vsel %vm17977_vm6, %v4827_v5, %v5259_v32  ;;  %v17981_v58 = vmax.f32 %v17980_v19, 0.0  ;;  %v4830_v18 = vld [vmem:[#allocation2 + $0xc2] sm:$0xff]  ;;  %v17984_v56 = vld [vmem:[#allocation121_spill] sm:$0xff]  ;;  %v18015_v2 = vld [vmem:[#allocation90_spill] sm:$0xff]  ;;  %5587 = vst.msk [vmem:[#allocation2 + $0x68] sm:$0xff] %vm543_vm1, %v14558_v37 }
 0x4d3   : > { %v5261_v62 = vsel %vm5213_vm5, %v4877_v10, %v17972_v4  ;;  %v4879_v33 = vld [vmem:[#allocation2 + $0xc6] sm:$0xff]  ;;  %v17982_v10 = vmax.f32 %v14178_v9, 0.0  ;;  %vm17985_vm5 = vcmp.eq.s32.totalorder %v17984_v56, 1  ;;  %v17989_v4 = vld [vmem:[#allocation14_spill] sm:$0xff]  ;;  %v17995_v21 = vld [vmem:[#allocation149_spill] sm:$0xff]  ;;  %vm18013_vm6 = vcmp.eq.s32.totalorder %v17925_v20, 1 }
 0x4d4   : > { %4790 = vst.msk [vmem:[#allocation2 + $0x100] sm:$0xff] %vm543_vm1, %v17981_v58  ;;  %v14655_v48 = vsel %vm17985_vm5, %v4828_v38, %v5260_v0  ;;  %v17986_v5 = vld [vmem:[#allocation124_spill] sm:$0xff]  ;;  %v17996_v56 = vmax.f32 %v17995_v21, 0.0  ;;  %vm5513_vm5 = vcmp.eq.s32.totalorder %v18015_v2, 1  ;;  %v18021_v20 = vld [vmem:[#allocation99_spill] sm:$0xff]  ;;  %v18064_v55 = vld [vmem:[#allocation22_spill] sm:$0xff] }
 0x4d5   : > { %v5262_v16 = vsel %vm5214_vm4, %v4878_v45, %v17982_v10  ;;  %vm17987_vm0 = vcmp.eq.s32.totalorder %v17986_v5, 1  ;;  %v17988_v39 = vld [vmem:[#allocation88_spill] sm:$0xff]  ;;  %v17992_v45 = vmax.f32 %v14184_v43, 0.0  ;;  %v4832_v5 = vld [vmem:[#allocation2 + $0xd2] sm:$0xff]  ;;  %v4882_v10 = vld [vmem:[#allocation2 + $0xde] sm:$0xff]  ;;  %5588 = vst.msk [vmem:[#allocation2 + $0x70] sm:$0xff] %vm543_vm1, %v14575_v57 }
 0x4d6   : > { %v14659_v32 = vsel %vm17987_vm0, %v4829_v53, %v5261_v62  ;;  %vm5223_vm8 = vcmp.eq.s32.totalorder %v17988_v39, 1  ;;  %v17990_v47 = vld [vmem:[#allocation148_spill] sm:$0xff]  ;;  %v14672_v0 = vsel %vm5502_vm7, %v4830_v18, %v5262_v16  ;;  %v17993_v53 = vld [vmem:[#allocation106_spill] sm:$0xff]  ;;  %4792 = vst.msk [vmem:[#allocation2 + $0x110] sm:$0xff] %vm543_vm1, %v17996_v56  ;;  %v18000_v16 = vld [vmem:[#allocation151_spill] sm:$0xff]  ;;  %vm18019_vm0 = vcmp.eq.s32.totalorder %v17934_v11, 1 }
 0x4d7   : > { %v17991_v1 = vmax.f32 %v17990_v47, 0.0  ;;  %v4831_v9 = vld [vmem:[#allocation2 + $0xca] sm:$0xff]  ;;  %v5263_v38 = vsel %vm5215_vm12, %v4879_v33, %v17992_v45  ;;  %vm5511_vm4 = vcmp.eq.s32.totalorder %v17993_v53, 1  ;;  %v17999_v18 = vld [vmem:[#allocation82_spill] sm:$0xff]  ;;  %v18001_v45 = vmax.f32 %v18000_v16, 0.0  ;;  %v18067_v12 = vld [vmem:[#allocation155_spill] sm:$0xff] }
 0x4d8   : > { %v4880_v58 = vld [vmem:[#allocation2 + $0xce] sm:$0xff]  ;;  %v14685_v29 = vsel %vm5503_vm11, %v4831_v9, %v5263_v38  ;;  %v4833_v56 = vld [vmem:[#allocation2 + $0xda] sm:$0xff]  ;;  %vm18003_vm12 = vcmp.eq.s32.totalorder %v17907_v42, 1  ;;  %vm5512_vm11 = vcmp.eq.s32.totalorder %v18004_v22, 1  ;;  %v4834_v38 = vld [vmem:[#allocation2 + $0xe2] sm:$0xff]  ;;  %v18007_v33 = vmax.f32 %v14205_v41, 0.0 }
 0x4d9   : > { %4791 = vst.msk [vmem:[#allocation2 + $0x108] sm:$0xff] %vm543_vm1, %v17991_v1  ;;  %v17994_v62 = vld [vmem:[#allocation96_spill] sm:$0xff]  ;;  %v4881_v1 = vld [vmem:[#allocation2 + $0xd6] sm:$0xff]  ;;  %v5264_v43 = vsel %vm5216_vm3, %v4880_v58, %v17997_v27  ;;  %v18006_v58 = vmax.f32 %v17979_v44, 0.0  ;;  %vm18008_vm3 = vcmp.eq.s32.totalorder %v17916_v60, 1  ;;  %v18012_v9 = vmax.f32 %v14211_v35, 0.0 }
 0x4da   : > { %v17998_v28 = vld [vmem:[#allocation32_spill] sm:$0xff]  ;;  %4793 = vst.msk [vmem:[#allocation2 + $0x118] sm:$0xff] %vm543_vm1, %v18001_v45  ;;  %v5265_v30 = vsel %vm5217_vm13, %v4881_v1, %v18002_v50  ;;  %v14698_v31 = vsel %vm18003_vm12, %v4832_v5, %v5264_v43  ;;  %v18005_v27 = vld [vmem:[#allocation97_spill] sm:$0xff]  ;;  %v5266_v8 = vsel %vm5218_vm10, %v4882_v10, %v18007_v33  ;;  %v18010_v50 = vld [vmem:[#allocation159_spill] sm:$0xff]  ;;  %v18011_v1 = vmax.f32 %v17989_v4, 0.0 }
 0x4db   : > { %vm5224_vm7 = vcmp.eq.s32.totalorder %v17998_v28, 1  ;;  %4794 = vst.msk [vmem:[#allocation2 + $0x120] sm:$0xff] %vm543_vm1, %v18006_v58  ;;  %v4883_v45 = vld [vmem:[#allocation2 + $0xe6] sm:$0xff]  ;;  %v14711_v42 = vsel %vm18008_vm3, %v4833_v56, %v5265_v30  ;;  %v4884_v58 = vld [vmem:[#allocation2 + $0xee] sm:$0xff]  ;;  %vm18014_vm10 = vcmp.eq.s32.totalorder %v17924_v59, 1  ;;  %v18017_v56 = vmax.f32 %v17994_v62, 0.0 }
 0x4dc   : > { %v18009_v3 = vld [vmem:[#allocation112_spill] sm:$0xff]  ;;  %4795 = vst.msk [vmem:[#allocation2 + $0x128] sm:$0xff] %vm543_vm1, %v18011_v1  ;;  %v5267_v41 = vsel %vm18013_vm6, %v4883_v45, %v18012_v9  ;;  %v14724_v60 = vsel %vm18014_vm10, %v4834_v38, %v5266_v8  ;;  %v4836_v30 = vld [vmem:[#allocation2 + $0xf2] sm:$0xff]  ;;  %v18018_v5 = vmax.f32 %v17950_v51, 0.0  ;;  %vm18020_vm12 = vcmp.eq.s32.totalorder %v17933_v25, 1  ;;  %v4837_v8 = vld [vmem:[#allocation2 + $0xfa] sm:$0xff] }
 0x4dd   : > { %vm5225_vm13 = vcmp.eq.s32.totalorder %v18009_v3, 1  ;;  %v4835_v43 = vld [vmem:[#allocation2 + $0xea] sm:$0xff]  ;;  %4796 = vst.msk [vmem:[#allocation2 + $0x130] sm:$0xff] %vm543_vm1, %v18017_v56  ;;  %v4885_v1 = vld [vmem:[#allocation2 + $0xf6] sm:$0xff]  ;;  %vm5226_vm3 = vcmp.eq.s32.totalorder %v18021_v20, 1  ;;  %v18023_v45 = vmax.f32 %v17999_v18, 0.0 }
 0x4de   : > { %v18016_v10 = vld [vmem:[#allocation160_spill] sm:$0xff]  ;;  %v5268_v35 = vsel %vm18019_vm0, %v4884_v58, %v18018_v5  ;;  %v14737_v59 = vsel %vm18020_vm12, %v4835_v43, %v5267_v41  ;;  %v18022_v9 = vld [vmem:[#allocation161_spill] sm:$0xff]  ;;  %v4886_v56 = vld [vmem:[#allocation2 + $0xfe] sm:$0xff]  ;;  %v18024_v33 = vmax.f32 %v17965_v13, 0.0  ;;  %vm18025_vm6 = vcmp.eq.s32.totalorder %v17948_v52, 1  ;;  %5589 = vst.msk [vmem:[#allocation2 + $0x78] sm:$0xff] %vm543_vm1, %v14579_v40 }
 0x4df   : > { %4797 = vst.msk [vmem:[#allocation2 + $0x138] sm:$0xff] %vm543_vm1, %v18023_v45  ;;  %v14750_v25 = vsel %vm18025_vm6, %v4836_v30, %v5268_v35  ;;  %v18026_v51 = vld [vmem:[#allocation107_spill] sm:$0xff]  ;;  %v18027_v5 = vld [vmem:[#allocation162_spill] sm:$0xff]  ;;  %v18028_v58 = vmax.f32 %v18005_v27, 0.0  ;;  %v18029_v38 = vmax.f32 %v17980_v19, 0.0  ;;  %v18033_v43 = vmax.f32 %v17990_v47, 0.0 }
 0x4e0   : > { %v5269_v11 = vsel %vm5221_vm9, %v4885_v1, %v18024_v33  ;;  %vm5514_vm10 = vcmp.eq.s32.totalorder %v18026_v51, 1  ;;  %v4838_v41 = vld [vmem:[#allocation2 + $0x102] sm:$0xff]  ;;  %v18030_v13 = vld [vmem:[#allocation118_spill] sm:$0xff]  ;;  %v18032_v1 = vmax.f32 %v18010_v50, 0.0  ;;  %v4839_v35 = vld [vmem:[#allocation2 + $0x10a] sm:$0xff]  ;;  %v18037_v30 = vmax.f32 %v17995_v21, 0.0 }
 0x4e1   : > { %4798 = vst.msk [vmem:[#allocation2 + $0x140] sm:$0xff] %vm543_vm1, %v18028_v58  ;;  %v4887_v45 = vld [vmem:[#allocation2 + $0x106] sm:$0xff]  ;;  %v5270_v34 = vsel %vm5222_vm14, %v4886_v56, %v18029_v38  ;;  %v14763_v52 = vsel %vm5509_vm15, %v4837_v8, %v5269_v11  ;;  %vm5227_vm9 = vcmp.eq.s32.totalorder %v18030_v13, 1  ;;  %v4888_v58 = vld [vmem:[#allocation2 + $0x10e] sm:$0xff]  ;;  %v18036_v56 = vmax.f32 %v18016_v10, 0.0  ;;  %v18046_v3 = vld [vmem:[#allocation110_spill] sm:$0xff] }
 0x4e2   : > { %v18031_v33 = vld [vmem:[#allocation163_spill] sm:$0xff]  ;;  %4799 = vst.msk [vmem:[#allocation2 + $0x148] sm:$0xff] %vm543_vm1, %v18032_v1  ;;  %v5271_v61 = vsel %vm5223_vm8, %v4887_v45, %v18033_v43  ;;  %v14776_v7 = vsel %vm5510_vm2, %v4838_v41, %v5270_v34  ;;  %v18034_v19 = vld [vmem:[#allocation33_spill] sm:$0xff]  ;;  %v18035_v38 = vld [vmem:[#allocation164_spill] sm:$0xff]  ;;  %v5272_v39 = vsel %vm5224_vm7, %v4888_v58, %v18037_v30  ;;  %v18040_v45 = vmax.f32 %v18022_v9, 0.0 }
 0x4e3   : > { %vm5515_vm14 = vcmp.eq.s32.totalorder %v18034_v19, 1  ;;  %4800 = vst.msk [vmem:[#allocation2 + $0x150] sm:$0xff] %vm543_vm1, %v18036_v56  ;;  %v4840_v11 = vld [vmem:[#allocation2 + $0x112] sm:$0xff]  ;;  %v14789_v17 = vsel %vm5511_vm4, %v4839_v35, %v5271_v61  ;;  %v4841_v34 = vld [vmem:[#allocation2 + $0x11a] sm:$0xff]  ;;  %v18041_v8 = vmax.f32 %v18000_v16, 0.0  ;;  %v18044_v35 = vmax.f32 %v18027_v5, 0.0 }
 0x4e4   : > { %v4889_v1 = vld [vmem:[#allocation2 + $0x116] sm:$0xff]  ;;  %4801 = vst.msk [vmem:[#allocation2 + $0x158] sm:$0xff] %vm543_vm1, %v18040_v45  ;;  %v4890_v56 = vld [vmem:[#allocation2 + $0x11e] sm:$0xff]  ;;  %v14802_v53 = vsel %vm5512_vm11, %v4840_v11, %v5272_v39  ;;  %v4891_v61 = vld [vmem:[#allocation2 + $0x126] sm:$0xff]  ;;  %v18045_v45 = vmax.f32 %v17979_v44, 0.0  ;;  %vm5517_vm4 = vcmp.eq.s32.totalorder %v18046_v3, 1 }
 0x4e5   : > { %v18038_v47 = vld [vmem:[#allocation113_spill] sm:$0xff]  ;;  %v5273_v21 = vsel %vm5225_vm13, %v4889_v1, %v18041_v8  ;;  %v18043_v30 = vld [vmem:[#allocation119_spill] sm:$0xff]  ;;  %4802 = vst.msk [vmem:[#allocation2 + $0x160] sm:$0xff] %vm543_vm1, %v18044_v35  ;;  %v18048_v11 = vmax.f32 %v18031_v33, 0.0  ;;  %v18049_v35 = vmax.f32 %v17989_v4, 0.0  ;;  %v18054_v13 = vld [vmem:[#allocation150_spill] sm:$0xff] }
 0x4e6   : > { %vm5228_vm15 = vcmp.eq.s32.totalorder %v18038_v47, 1  ;;  %v18039_v43 = vld [vmem:[#allocation165_spill] sm:$0xff]  ;;  %vm5229_vm8 = vcmp.eq.s32.totalorder %v18043_v30, 1  ;;  %v4842_v58 = vld [vmem:[#allocation2 + $0x122] sm:$0xff]  ;;  %v5274_v16 = vsel %vm5226_vm3, %v4890_v56, %v18045_v45  ;;  %v14815_v22 = vsel %vm5513_vm5, %v4841_v34, %v5273_v21  ;;  %v18073_v36 = vld [vmem:[#allocation126_spill] sm:$0xff]  ;;  %5590 = vst.msk [vmem:[#allocation2 + $0x80] sm:$0xff] %vm543_vm1, %v14596_v46 }
 0x4e7   : > { %v4748_v41 = vmax.f32 %v18039_v43, 0.0  ;;  %v18042_v28 = vld [vmem:[#allocation105_spill] sm:$0xff]  ;;  %v18047_v8 = vld [vmem:[#allocation115_spill] sm:$0xff]  ;;  %4803 = vst.msk [vmem:[#allocation2 + $0x168] sm:$0xff] %vm543_vm1, %v18048_v11  ;;  %v5275_v44 = vsel %vm5227_vm9, %v4891_v61, %v18049_v35  ;;  %v14828_v2 = vsel %vm5514_vm10, %v4842_v58, %v5274_v16  ;;  %v18051_v34 = vld [vmem:[#allocation120_spill] sm:$0xff]  ;;  %v18052_v56 = vmax.f32 %v18035_v38, 0.0 }
 0x4e8   : > { %vm5516_vm2 = vcmp.eq.s32.totalorder %v18042_v28, 1  ;;  %vm5230_vm7 = vcmp.eq.s32.totalorder %v18047_v8, 1  ;;  %v4843_v1 = vld [vmem:[#allocation2 + $0x12a] sm:$0xff]  ;;  %v18050_v20 = vld [vmem:[#allocation123_spill] sm:$0xff]  ;;  %vm5231_vm13 = vcmp.eq.s32.totalorder %v18051_v34, 1  ;;  %v4844_v21 = vld [vmem:[#allocation2 + $0x132] sm:$0xff] }
 0x4e9   : > { %v4892_v39 = vld [vmem:[#allocation2 + $0x12e] sm:$0xff]  ;;  %vm5518_vm11 = vcmp.eq.s32.totalorder %v18050_v20, 1  ;;  %4804 = vst.msk [vmem:[#allocation2 + $0x170] sm:$0xff] %vm543_vm1, %v18052_v56  ;;  %v4893_v45 = vld [vmem:[#allocation2 + $0x136] sm:$0xff]  ;;  %v18053_v11 = vmax.f32 %v17994_v62, 0.0  ;;  %v14841_v51 = vsel %vm5515_vm14, %v4843_v1, %v5275_v44  ;;  %vm5519_vm5 = vcmp.eq.s32.totalorder %v18054_v13, 1 }
 0x4ea   : > { %v18055_v58 = vld [vmem:[#allocation78_spill] sm:$0xff]  ;;  %4808 = vst.msk [vmem:[#allocation2 + $0x190] sm:$0xff] %vm543_vm1, %v4748_v41  ;;  %v18056_v35 = vmax.f32 %v17999_v18, 0.0  ;;  %v18057_v47 = vld [vmem:[#allocation3_spill] sm:$0xff]  ;;  %v18058_v1 = vld [vmem:[#allocation4_spill] sm:$0xff]  ;;  %v18059_v56 = vmax.f32 %v18005_v27, 0.0 }
 0x4eb   : > { %v5276_v4 = vsel %vm5228_vm15, %v4892_v39, %v18053_v11  ;;  %vm5232_vm0 = vcmp.eq.s32.totalorder %v18055_v58, 1  ;;  %v4845_v61 = vld [vmem:[#allocation2 + $0x13a] sm:$0xff]  ;;  %vm5520_vm12 = vcmp.eq.s32.totalorder %v18057_v47, 1  ;;  %vm5233_vm3 = vcmp.eq.s32.totalorder %v18058_v1, 1  ;;  %v4846_v39 = vld [vmem:[#allocation2 + $0x142] sm:$0xff]  ;;  %v18060_v28 = vld [vmem:[#allocation5_spill] sm:$0xff] }
 0x4ec   : > { %v4894_v16 = vld [vmem:[#allocation2 + $0x13e] sm:$0xff]  ;;  %v5277_v62 = vsel %vm5229_vm8, %v4893_v45, %v18056_v35  ;;  %v14854_v19 = vsel %vm5516_vm2, %v4844_v21, %v5276_v4  ;;  %v4895_v44 = vld [vmem:[#allocation2 + $0x146] sm:$0xff]  ;;  %vm5521_vm6 = vcmp.eq.s32.totalorder %v18060_v28, 1  ;;  %v18061_v30 = vld [vmem:[#allocation9_spill] sm:$0xff]  ;;  %v18062_v4 = vmax.f32 %v18010_v50, 0.0  ;;  %5591 = vst.msk [vmem:[#allocation2 + $0x88] sm:$0xff] %vm543_vm1, %v14600_v49 }
 0x4ed   : > { %v5278_v11 = vsel %vm5230_vm7, %v4894_v16, %v18059_v56  ;;  %v14864_v18 = vsel %vm5517_vm4, %v4845_v61, %v5277_v62  ;;  %vm5234_vm10 = vcmp.eq.s32.totalorder %v18061_v30, 1  ;;  %v4847_v21 = vld [vmem:[#allocation2 + $0x14a] sm:$0xff]  ;;  %v18063_v3 = vld [vmem:[#allocation19_spill] sm:$0xff]  ;;  %vm5235_vm14 = vcmp.eq.s32.totalorder %v18064_v55, 1  ;;  %v4848_v61 = vld [vmem:[#allocation2 + $0x152] sm:$0xff]  ;;  %5592 = vst.msk [vmem:[#allocation2 + $0x90] sm:$0xff] %vm543_vm1, %v14617_v24 }
 0x4ee   : > { %v4896_v45 = vld [vmem:[#allocation2 + $0x14e] sm:$0xff]  ;;  %v5279_v27 = vsel %vm5231_vm13, %v4895_v44, %v18062_v4  ;;  %v14876_v8 = vsel %vm5518_vm11, %v4846_v39, %v5278_v11  ;;  %vm5522_vm9 = vcmp.eq.s32.totalorder %v18063_v3, 1  ;;  %v4897_v16 = vld [vmem:[#allocation2 + $0x156] sm:$0xff]  ;;  %v18065_v35 = vmax.f32 %v18016_v10, 0.0  ;;  %v4898_v39 = vld [vmem:[#allocation2 + $0x15e] sm:$0xff]  ;;  %5593 = vst.msk [vmem:[#allocation2 + $0x98] sm:$0xff] %vm543_vm1, %v14621_v15 }
 0x4ef   : > { %v14888_v34 = vsel %vm5519_vm5, %v4847_v21, %v5279_v27  ;;  %v18066_v20 = vld [vmem:[#allocation25_spill] sm:$0xff]  ;;  %vm5236_vm2 = vcmp.eq.s32.totalorder %v18067_v12, 1  ;;  %v4849_v62 = vld [vmem:[#allocation2 + $0x15a] sm:$0xff]  ;;  %v18068_v44 = vmax.f32 %v18022_v9, 0.0  ;;  %v18069_v13 = vld [vmem:[#allocation156_spill] sm:$0xff]  ;;  %v18071_v21 = vmax.f32 %v18027_v5, 0.0 }
 0x4f0   : > { %v5280_v50 = vsel %vm5232_vm0, %v4896_v45, %v18065_v35  ;;  %vm5523_vm15 = vcmp.eq.s32.totalorder %v18066_v20, 1  ;;  %vm5524_vm8 = vcmp.eq.s32.totalorder %v18069_v13, 1  ;;  %v18070_v14 = vld [vmem:[#allocation157_spill] sm:$0xff]  ;;  %v4850_v56 = vld [vmem:[#allocation2 + $0x162] sm:$0xff]  ;;  %v18072_v47 = vld [vmem:[#allocation158_spill] sm:$0xff]  ;;  %vm5527_vm11 = vcmp.eq.s32.totalorder %v18073_v36, 1 }
 0x4f1   : > { %v5281_v10 = vsel %vm5233_vm3, %v4897_v16, %v18068_v44  ;;  %v14900_v58 = vsel %vm5520_vm12, %v4848_v61, %v5280_v50  ;;  %vm5237_vm4 = vcmp.eq.s32.totalorder %v18070_v14, 1  ;;  %v4899_v11 = vld [vmem:[#allocation2 + $0x166] sm:$0xff]  ;;  %v5282_v9 = vsel %vm5234_vm10, %v4898_v39, %v18071_v21  ;;  %v4852_v4 = vld [vmem:[#allocation2 + $0x172] sm:$0xff]  ;;  %5594 = vst.msk [vmem:[#allocation2 + $0xa0] sm:$0xff] %vm543_vm1, %v14638_v6 }
 0x4f2   : > { %v5569_v1 = vsel %vm5521_vm6, %v4849_v62, %v5281_v10  ;;  %vm5525_vm7 = vcmp.eq.s32.totalorder %v18072_v47, 1  ;;  %v4851_v45 = vld [vmem:[#allocation2 + $0x16a] sm:$0xff]  ;;  %v18074_v61 = vmax.f32 %v18031_v33, 0.0  ;;  %v5570_v30 = vsel %vm5522_vm9, %v4850_v56, %v5282_v9  ;;  %v18076_v63 = vld [vmem:[#allocation127_spill] sm:$0xff]  ;;  %v4856_v35 = vld [vmem:[#allocation2 + $0x192] sm:$0xff]  ;;  %5595 = vst.msk [vmem:[#allocation2 + $0xa8] sm:$0xff] %vm543_vm1, %v14642_v26 }
 0x4f3   : > { %v4900_v27 = vld [vmem:[#allocation2 + $0x16e] sm:$0xff]  ;;  %vm5528_vm5 = vcmp.eq.s32.totalorder %v18076_v63, 1  ;;  %v4901_v50 = vld [vmem:[#allocation2 + $0x176] sm:$0xff]  ;;  %v18077_v62 = vmax.f32 %v18035_v38, 0.0  ;;  %v18081_v12 = vld [vmem:[#allocation167_spill] sm:$0xff]  ;;  %5596 = vst.msk [vmem:[#allocation2 + $0xb0] sm:$0xff] %vm543_vm1, %v14655_v48 }
 0x4f4   : > { %v5283_v5 = vsel %vm5235_vm14, %v4899_v11, %v18074_v61  ;;  %v18075_v28 = vld [vmem:[#allocation125_spill] sm:$0xff]  ;;  %v18078_v3 = vld [vmem:[#allocation132_spill] sm:$0xff]  ;;  %v18082_v23 = vld [vmem:[#allocation134_spill] sm:$0xff]  ;;  %5597 = vst.msk [vmem:[#allocation2 + $0xb8] sm:$0xff] %vm543_vm1, %v14659_v32  ;;  %vm18087_vm3 = vcmask 1043456  }
 0x4f5   : > { %vm5240_vm13 = vcmp.eq.s32.totalorder %v18075_v28, 1  ;;  %v4855_v16 = vld [vmem:[#allocation2 + $0x18a] sm:$0xff]  ;;  %v5284_v33 = vsel %vm5236_vm2, %v4900_v27, %v18077_v62  ;;  %v5571_v55 = vsel %vm5523_vm15, %v4851_v45, %v5283_v5  ;;  %vm5241_vm0 = vcmp.eq.s32.totalorder %v18078_v3, 1  ;;  %v4905_v39 = vld [vmem:[#allocation2 + $0x196] sm:$0xff]  ;;  %5598 = vst.msk [vmem:[#allocation2 + $0xc0] sm:$0xff] %vm543_vm1, %v14672_v0  ;;  %v5698_v27 = vld [vmem:[#allocation2 + $0x60] sm:$0xff] }
 0x4f6   : > { %v4904_v54 = vld [vmem:[#allocation2 + $0x18e] sm:$0xff]  ;;  %v5572_v38 = vsel %vm5524_vm8, %v4852_v4, %v5284_v33  ;;  %v5575_v20 = vsel %vm5527_vm11, %v4855_v16, %v18081_v12  ;;  %vm5529_vm12 = vcmp.eq.s32.totalorder %v18082_v23, 1  ;;  %v18083_v21 = vld [vmem:[#allocation130_spill] sm:$0xff]  ;;  %5599 = vst.msk [vmem:[#allocation2 + $0xc8] sm:$0xff] %vm543_vm1, %v14685_v29  ;;  %v6364_v61 = vld [vmem:[#allocation2 + $0x61] sm:$0xff] }
 0x4f7   : > { %v18079_v44 = vld [vmem:[#allocation128_spill] sm:$0xff]  ;;  %v5288_v11 = vsel %vm5240_vm13, %v4904_v54, %v4748_v41  ;;  %v18084_v14 = vmax.f32 %v18083_v21, 0.0  ;;  %v18085_v45 = vld [vmem:[#allocation166_spill] sm:$0xff]  ;;  %5600 = vst.msk [vmem:[#allocation2 + $0xd0] sm:$0xff] %vm543_vm1, %v14698_v31  ;;  %v10512_v57 = vld [vmem:[%s17065_s3 + $0x10] sm:$0xf] }
 0x4f8   : > { %v18080_v10 = vmax.f32 %v18079_v44, 0.0  ;;  %v5576_v37 = vsel %vm5528_vm5, %v4856_v35, %v5288_v11  ;;  %v18086_v36 = vld [vmem:[#allocation168_spill] sm:$0xff]  ;;  %5601 = vst.msk [vmem:[#allocation2 + $0xd8] sm:$0xff] %vm543_vm1, %v14711_v42  ;;  %10513 = vmatpush.msk.msrb.mxu1 %vm18087_vm3, %v10512_v57  ;;  %v5629_v46 = vld [vmem:[#allocation2 + $0x50] sm:$0xff]  ;;  %v15029_v49 = vld [vmem:[#allocation2 + $0x58] sm:$0xff] }
 0x4f9   : > { %v5289_v9 = vsel %vm5241_vm0, %v4905_v39, %v18084_v14  ;;  %5602 = vst.msk [vmem:[#allocation2 + $0xe0] sm:$0xff] %vm543_vm1, %v14724_v60  ;;  %v5628_v40 = vld [vmem:[#allocation2 + $0x48] sm:$0xff]  ;;  %v6762_v29 = vld [vmem:[#allocation2 + $0x37] sm:$0xff]  ;;  %v6771_v63 = vld [vmem:[#allocation2 + $0x7f] sm:$0xff] }
 0x4fa   : > { %v5285_v56 = vsel %vm5237_vm4, %v4901_v50, %v18080_v10  ;;  %v5577_v4 = vsel %vm5529_vm12, %v18086_v36, %v5289_v9  ;;  %5603 = vst.msk [vmem:[#allocation2 + $0xe8] sm:$0xff] %vm543_vm1, %v14737_v59  ;;  %v6763_v59 = vld [vmem:[#allocation2 + $0x3f] sm:$0xff]  ;;  %v6765_v41 = vld [vmem:[#allocation2 + $0x4f] sm:$0xff]  ;;  %v6770_v5 = vld [vmem:[#allocation2 + $0x77] sm:$0xff] }
 0x4fb   : > { %v5573_v13 = vsel %vm5525_vm7, %v18085_v45, %v5285_v56  ;;  %5604 = vst.msk [vmem:[#allocation2 + $0xf0] sm:$0xff] %vm543_vm1, %v14750_v25  ;;  %v5692_v25 = vld [vmem:[#allocation2 + $0x30] sm:$0xff]  ;;  %v6359_v43 = vld [vmem:[#allocation2 + $0x39] sm:$0xff]  ;;  %v6772_v50 = vld [vmem:[#allocation2 + $0x87] sm:$0xff] }
 0x4fc   : > { %5605 = vst.msk [vmem:[#allocation2 + $0xf8] sm:$0xff] %vm543_vm1, %v14763_v52  ;;  %v6358_v52 = vld [vmem:[#allocation2 + $0x31] sm:$0xff]  ;;  %v6365_v28 = vld [vmem:[#allocation2 + $0x69] sm:$0xff]  ;;  %v6367_v33 = vld [vmem:[#allocation2 + $0x79] sm:$0xff] }
 0x4fd   : > { %5606 = vst.msk [vmem:[#allocation2 + $0x100] sm:$0xff] %vm543_vm1, %v14776_v7  ;;  %v6764_v7 = vld [vmem:[#allocation2 + $0x47] sm:$0xff]  ;;  %v6769_v47 = vld [vmem:[#allocation2 + $0x6f] sm:$0xff]  ;;  %v5701_v62 = vld [vmem:[#allocation2 + $0x78] sm:$0xff] }
 0x4fe   : > { %5607 = vst.msk [vmem:[#allocation2 + $0x108] sm:$0xff] %vm543_vm1, %v14789_v17  ;;  %v5693_v17 = vld [vmem:[#allocation2 + $0x38] sm:$0xff]  ;;  %v5700_v16 = vld [vmem:[#allocation2 + $0x70] sm:$0xff]  ;;  %v5702_v3 = vld [vmem:[#allocation2 + $0x80] sm:$0xff] }
 0x4ff   : > { %5608 = vst.msk [vmem:[#allocation2 + $0x110] sm:$0xff] %vm543_vm1, %v14802_v53  ;;  %v5694_v53 = vld [vmem:[#allocation2 + $0x40] sm:$0xff]  ;;  %v6366_v35 = vld [vmem:[#allocation2 + $0x71] sm:$0xff]  ;;  %v5703_v44 = vld [vmem:[#allocation2 + $0x88] sm:$0xff] }
 0x500   : > { %5609 = vst.msk [vmem:[#allocation2 + $0x118] sm:$0xff] %vm543_vm1, %v14815_v22  ;;  %v6360_v22 = vld [vmem:[#allocation2 + $0x41] sm:$0xff]  ;;  %v6774_v39 = vld [vmem:[#allocation2 + $0x97] sm:$0xff]  ;;  %v6369_v10 = vld [vmem:[#allocation2 + $0x89] sm:$0xff] }
 0x501   : > { %5610 = vst.msk [vmem:[#allocation2 + $0x120] sm:$0xff] %vm543_vm1, %v14828_v2  ;;  %v6766_v2 = vld [vmem:[#allocation2 + $0x57] sm:$0xff]  ;;  %v6368_v54 = vld [vmem:[#allocation2 + $0x81] sm:$0xff]  ;;  %v6777_v9 = vld [vmem:[#allocation2 + $0xaf] sm:$0xff] }
 0x502   : > { %5611 = vst.msk [vmem:[#allocation2 + $0x128] sm:$0xff] %vm543_vm1, %v14841_v51  ;;  %v6361_v51 = vld [vmem:[#allocation2 + $0x49] sm:$0xff]  ;;  %v6775_v56 = vld [vmem:[#allocation2 + $0x9f] sm:$0xff]  ;;  %v6370_v12 = vld [vmem:[#allocation2 + $0x91] sm:$0xff] }
 0x503   : > { %5612 = vst.msk [vmem:[#allocation2 + $0x130] sm:$0xff] %vm543_vm1, %v14854_v19  ;;  %v6767_v19 = vld [vmem:[#allocation2 + $0x5f] sm:$0xff]  ;;  %vm18088_vm6 = vmmov %vm18087_vm3 }
 0x504   : > { %5613 = vst.msk [vmem:[#allocation2 + $0x138] sm:$0xff] %vm543_vm1, %v14864_v18  ;;  %v6362_v18 = vld [vmem:[#allocation2 + $0x51] sm:$0xff]  ;;  %v6371_v14 = vld [vmem:[#allocation2 + $0x99] sm:$0xff]  ;;  %vm18089_vm10 = vmmov %vm18087_vm3 }
 0x505   : > { %5614 = vst.msk [vmem:[#allocation2 + $0x140] sm:$0xff] %vm543_vm1, %v14876_v8  ;;  %v5705_v21 = vld [vmem:[#allocation2 + $0x98] sm:$0xff]  ;;  %vm18090_vm9 = vmmov %vm18087_vm3 }
 0x506   : > { %5615 = vst.msk [vmem:[#allocation2 + $0x148] sm:$0xff] %vm543_vm1, %v14888_v34  ;;  %v6768_v34 = vld [vmem:[#allocation2 + $0x67] sm:$0xff]  ;;  %vm18091_vm14 = vmmov %vm18087_vm3 }
 0x507   : > { %5616 = vst.msk [vmem:[#allocation2 + $0x150] sm:$0xff] %vm543_vm1, %v14900_v58 }
 0x508   : > { %5617 = vst.msk [vmem:[#allocation2 + $0x158] sm:$0xff] %vm543_vm1, %v5569_v1  ;;  %v6363_v1 = vld [vmem:[#allocation2 + $0x59] sm:$0xff] }
 0x509   : > { %5618 = vst.msk [vmem:[#allocation2 + $0x160] sm:$0xff] %vm543_vm1, %v5570_v30  ;;  %v5699_v30 = vld [vmem:[#allocation2 + $0x68] sm:$0xff] }
 0x50a   : > { %5619 = vst.msk [vmem:[#allocation2 + $0x168] sm:$0xff] %vm543_vm1, %v5571_v55  ;;  %v6773_v55 = vld [vmem:[#allocation2 + $0x8f] sm:$0xff] }
 0x50b   : > { %5620 = vst.msk [vmem:[#allocation2 + $0x170] sm:$0xff] %vm543_vm1, %v5572_v38  ;;  %v5704_v38 = vld [vmem:[#allocation2 + $0x90] sm:$0xff] }
 0x50c   : > { %5621 = vst.msk [vmem:[#allocation2 + $0x178] sm:$0xff] %vm543_vm1, %v5573_v13 }
 0x50d   : > { %5623 = vst.msk [vmem:[#allocation2 + $0x188] sm:$0xff] %vm543_vm1, %v5575_v20  ;;  %v6776_v20 = vld [vmem:[#allocation2 + $0xa7] sm:$0xff] }
 0x50e   : > { %5624 = vst.msk [vmem:[#allocation2 + $0x190] sm:$0xff] %vm543_vm1, %v5576_v37 }
 0x50f   : > { %5625 = vst.msk [vmem:[#allocation2 + $0x198] sm:$0xff] %vm543_vm1, %v5577_v4 }
 0x510   : > { %5631 = vst.msk [vmem:[#allocation2 + $0x18] sm:$0xff] %vm543_vm1, %v5628_v40 }
 0x511   : > { %5632 = vst.msk [vmem:[#allocation2 + $0x20] sm:$0xff] %vm543_vm1, %v5629_v46 }
 0x512   : > { %5633 = vst.msk [vmem:[#allocation2 + $0x28] sm:$0xff] %vm543_vm1, %v15029_v49 }
 0x514   : > { %v15065_v8 = vld [vmem:[#allocation2 + $0x188] sm:$0xff] }
 0x515   : > { %v15068_v58 = vld [vmem:[#allocation2 + $0x190] sm:$0xff]  ;;  %5638 = vst.msk [vmem:[#allocation2 + $0x1b8] sm:$0xff] %vm543_vm1, %v15065_v8 }
 0x516   : > { %5639 = vst.msk [vmem:[#allocation2 + $0x1c0] sm:$0xff] %vm543_vm1, %v15068_v58 }
 0x517   : > { %v5689_v24 = vld [vmem:[#allocation2 + $0x18] sm:$0xff] }
 0x518   : > { %v5640_v15 = vld [vmem:[#allocation2 + $0x17] sm:$0xff]  ;;  %10315 = vmatmul.msk.f32.vlgmr.msra.gmra.mxu1 %vm543_vm1, %v5689_v24  ;;  %v5690_v48 = vld [vmem:[#allocation2 + $0x20] sm:$0xff] }
 0x519   : > { %10364 = vmatmul.msk.f32.vlgmr.msrb.gmra.mxu2 %vm543_vm1, %v5640_v15  ;;  %v6355_v6 = vld [vmem:[#allocation2 + $0x19] sm:$0xff]  ;;  %v6761_v26 = vld [vmem:[#allocation2 + $0x2f] sm:$0xff]  ;;  %v6356_v0 = vld [vmem:[#allocation2 + $0x21] sm:$0xff] }
 0x51a   : > { %10414 = vmatmul.msk.f32.vlgmr.msrb.gmra.mxu3 %vm543_vm1, %v6355_v6  ;;  %10464 = vmatmul.msk.f32.vlgmr.msrb.gmra.mxu0 %vm543_vm1, %v6761_v26  ;;  %v5641_v32 = vld [vmem:[#allocation2 + $0x1f] sm:$0xff]  ;;  %v5691_v31 = vld [vmem:[#allocation2 + $0x28] sm:$0xff] }
 0x51b   : > { %v5642_v42 = vld [vmem:[#allocation2 + $0x27] sm:$0xff] }
 0x51c   : > { %v6357_v60 = vld [vmem:[#allocation2 + $0x29] sm:$0xff] }
 0x520   : > { %10316 = vmatmul.msk.f32.gmra.mxu1 %vm543_vm1, %v5690_v48 }
 0x521   : > { %10365 = vmatmul.msk.f32.gmra.mxu2 %vm543_vm1, %v5641_v32 }
 0x522   : > { %10415 = vmatmul.msk.f32.gmra.mxu3 %vm543_vm1, %v6356_v0  ;;  %10465 = vmatmul.msk.f32.gmra.mxu0 %vm543_vm1, %v6762_v29  ;;  %v5707_v0 = vld [vmem:[#allocation2 + $0xa8] sm:$0xff] }
 0x528   : > { %10317 = vmatmul.msk.f32.gmra.mxu1 %vm543_vm1, %v5691_v31 }
 0x529   : > { %10366 = vmatmul.msk.f32.gmra.mxu2 %vm543_vm1, %v5642_v42  ;;  %v6779_v42 = vld [vmem:[#allocation2 + $0xbf] sm:$0xff] }
 0x52a   : > { %10416 = vmatmul.msk.f32.gmra.mxu3 %vm543_vm1, %v6357_v60  ;;  %10466 = vmatmul.msk.f32.gmra.mxu0 %vm543_vm1, %v6763_v59 }
 0x530   : > { %10318 = vmatmul.msk.f32.gmra.mxu1 %vm543_vm1, %v5692_v25 }
 0x531   : > { %10367 = vmatmul.msk.f32.gmra.mxu2 %vm543_vm1, %v6761_v26 }
 0x532   : > { %10417 = vmatmul.msk.f32.gmra.mxu3 %vm543_vm1, %v6358_v52  ;;  %10467 = vmatmul.msk.f32.gmra.mxu0 %vm543_vm1, %v6764_v7 }
 0x538   : > { %10319 = vmatmul.msk.f32.gmra.mxu1 %vm543_vm1, %v5693_v17 }
 0x539   : > { %10368 = vmatmul.msk.f32.gmra.mxu2 %vm543_vm1, %v6762_v29  ;;  %v6373_v29 = vld [vmem:[#allocation2 + $0xa9] sm:$0xff] }
 0x53a   : > { %10418 = vmatmul.msk.f32.gmra.mxu3 %vm543_vm1, %v6359_v43  ;;  %10468 = vmatmul.msk.f32.gmra.mxu0 %vm543_vm1, %v6765_v41  ;;  %v5708_v43 = vld [vmem:[#allocation2 + $0xb0] sm:$0xff] }
 0x540   : > { %10320 = vmatmul.msk.f32.gmra.mxu1 %vm543_vm1, %v5694_v53  ;;  %v6780_v53 = vld [vmem:[#allocation2 + $0xc7] sm:$0xff] }
 0x541   : > { %10369 = vmatmul.msk.f32.gmra.mxu2 %vm543_vm1, %v6763_v59 }
 0x542   : > { %10419 = vmatmul.msk.f32.gmra.mxu3 %vm543_vm1, %v6360_v22  ;;  %10469 = vmatmul.msk.f32.gmra.mxu0 %vm543_vm1, %v6766_v2 }
 0x548   : > { %10321 = vmatmul.msk.f32.gmra.mxu1 %vm543_vm1, %v5628_v40  ;;  %v5706_v40 = vld [vmem:[#allocation2 + $0xa0] sm:$0xff] }
 0x549   : > { %10370 = vmatmul.msk.f32.gmra.mxu2 %vm543_vm1, %v6764_v7 }
 0x54a   : > { %10420 = vmatmul.msk.f32.gmra.mxu3 %vm543_vm1, %v6361_v51  ;;  %10470 = vmatmul.msk.f32.gmra.mxu0 %vm543_vm1, %v6767_v19 }
 0x550   : > { %10322 = vmatmul.msk.f32.gmra.mxu1 %vm543_vm1, %v5629_v46  ;;  %v6372_v46 = vld [vmem:[#allocation2 + $0xa1] sm:$0xff] }
 0x551   : > { %10371 = vmatmul.msk.f32.gmra.mxu2 %vm543_vm1, %v6765_v41  ;;  %v6374_v41 = vld [vmem:[#allocation2 + $0xb1] sm:$0xff] }
 0x552   : > { %10421 = vmatmul.msk.f32.gmra.mxu3 %vm543_vm1, %v6362_v18  ;;  %10471 = vmatmul.msk.f32.gmra.mxu0 %vm543_vm1, %v6768_v34 }
 0x558   : > { %10323 = vmatmul.msk.f32.gmra.mxu1 %vm543_vm1, %v15029_v49  ;;  %v6778_v49 = vld [vmem:[#allocation2 + $0xb7] sm:$0xff] }
 0x559   : > { %10372 = vmatmul.msk.f32.gmra.mxu2 %vm543_vm1, %v6766_v2 }
 0x55a   : > { %10422 = vmatmul.msk.f32.gmra.mxu3 %vm543_vm1, %v6363_v1  ;;  %10472 = vmatmul.msk.f32.gmra.mxu0 %vm543_vm1, %v6769_v47 }
 0x560   : > { %10324 = vmatmul.msk.f32.gmra.mxu1 %vm543_vm1, %v5698_v27  ;;  %v6375_v27 = vld [vmem:[#allocation2 + $0xb9] sm:$0xff] }
 0x561   : > { %10373 = vmatmul.msk.f32.gmra.mxu2 %vm543_vm1, %v6767_v19 }
 0x562   : > { %10423 = vmatmul.msk.f32.gmra.mxu3 %vm543_vm1, %v6364_v61  ;;  %10473 = vmatmul.msk.f32.gmra.mxu0 %vm543_vm1, %v6770_v5  ;;  %v6781_v61 = vld [vmem:[#allocation2 + $0xcf] sm:$0xff] }
 0x568   : > { %10325 = vmatmul.msk.f32.gmra.mxu1 %vm543_vm1, %v5699_v30 }
 0x569   : > { %10374 = vmatmul.msk.f32.gmra.mxu2 %vm543_vm1, %v6768_v34 }
 0x56a   : > { %10424 = vmatmul.msk.f32.gmra.mxu3 %vm543_vm1, %v6365_v28  ;;  %10474 = vmatmul.msk.f32.gmra.mxu0 %vm543_vm1, %v6771_v63 }
 0x570   : > { %10326 = vmatmul.msk.f32.gmra.mxu1 %vm543_vm1, %v5700_v16 }
 0x571   : > { %10375 = vmatmul.msk.f32.gmra.mxu2 %vm543_vm1, %v6769_v47  ;;  %v5709_v47 = vld [vmem:[#allocation2 + $0xb8] sm:$0xff] }
 0x572   : > { %10425 = vmatmul.msk.f32.gmra.mxu3 %vm543_vm1, %v6366_v35  ;;  %10475 = vmatmul.msk.f32.gmra.mxu0 %vm543_vm1, %v6772_v50 }
 0x578   : > { %10327 = vmatmul.msk.f32.gmra.mxu1 %vm543_vm1, %v5701_v62  ;;  %v5710_v62 = vld [vmem:[#allocation2 + $0xc0] sm:$0xff] }
 0x579   : > { %10376 = vmatmul.msk.f32.gmra.mxu2 %vm543_vm1, %v6770_v5 }
 0x57a   : > { %10426 = vmatmul.msk.f32.gmra.mxu3 %vm543_vm1, %v6367_v33  ;;  %10476 = vmatmul.msk.f32.gmra.mxu0 %vm543_vm1, %v6773_v55  ;;  %v6376_v33 = vld [vmem:[#allocation2 + $0xc1] sm:$0xff] }
 0x580   : > { %10328 = vmatmul.msk.f32.gmra.mxu1 %vm543_vm1, %v5702_v3 }
 0x581   : > { %10377 = vmatmul.msk.f32.gmra.mxu2 %vm543_vm1, %v6771_v63 }
 0x582   : > { %10427 = vmatmul.msk.f32.gmra.mxu3 %vm543_vm1, %v6368_v54  ;;  %10477 = vmatmul.msk.f32.gmra.mxu0 %vm543_vm1, %v6774_v39 }
 0x588   : > { %10329 = vmatmul.msk.f32.gmra.mxu1 %vm543_vm1, %v5703_v44 }
 0x589   : > { %10378 = vmatmul.msk.f32.gmra.mxu2 %vm543_vm1, %v6772_v50 }
 0x58a   : > { %10428 = vmatmul.msk.f32.gmra.mxu3 %vm543_vm1, %v6369_v10  ;;  %10478 = vmatmul.msk.f32.gmra.mxu0 %vm543_vm1, %v6775_v56 }
 0x590   : > { %10330 = vmatmul.msk.f32.gmra.mxu1 %vm543_vm1, %v5704_v38 }
 0x591   : > { %10379 = vmatmul.msk.f32.gmra.mxu2 %vm543_vm1, %v6773_v55  ;;  %v6782_v55 = vld [vmem:[#allocation2 + $0xd7] sm:$0xff] }
 0x592   : > { %10429 = vmatmul.msk.f32.gmra.mxu3 %vm543_vm1, %v6370_v12  ;;  %10479 = vmatmul.msk.f32.gmra.mxu0 %vm543_vm1, %v6776_v20  ;;  %v5711_v12 = vld [vmem:[#allocation2 + $0xc8] sm:$0xff] }
 0x595   : > { %v5903_v23 = vpop.f32.mrf.mxu1 }
 0x597   : > { %v6975_v11 = vpop.f32.mrf.mxu0 }
 0x598   : > { %10331 = vmatmul.msk.f32.gmra.mxu1 %vm543_vm1, %v5705_v21 }
 0x599   : > { %10380 = vmatmul.msk.f32.gmra.mxu2 %vm543_vm1, %v6774_v39 }
 0x59a   : > { %10430 = vmatmul.msk.f32.gmra.mxu3 %vm543_vm1, %v6371_v14  ;;  %10480 = vmatmul.msk.f32.gmra.mxu0 %vm543_vm1, %v6777_v9 }
 0x59c   : > { %v6211_v45 = vpop.f32.mrf.mxu2 }
 0x59d   : > { %v6212_v13 = vadd.f32 %v6211_v45, %v5903_v23  ;;  %v6569_v37 = vpop.f32.mrf.mxu3  ;;  %v5906_v36 = vpop.f32.mrf.mxu1  ;;  %v6783_v23 = vld [vmem:[#allocation2 + $0xdf] sm:$0xff] }
 0x59f   : > { %v6713_v4 = vadd.f32 %v6569_v37, %v6212_v13  ;;  %v6978_v57 = vpop.f32.mrf.mxu0 }
 0x5a0   : > { %10332 = vmatmul.msk.f32.gmra.mxu1 %vm543_vm1, %v5706_v40 }
 0x5a1   : > { %10381 = vmatmul.msk.f32.gmra.mxu2 %vm543_vm1, %v6775_v56  ;;  %v15118_v31 = vadd.f32 %v6975_v11, %v6713_v4  ;;  %v6378_v4 = vld [vmem:[#allocation2 + $0xd1] sm:$0xff] }
 0x5a2   : > { %10431 = vmatmul.msk.f32.gmra.mxu3 %vm543_vm1, %v6372_v46  ;;  %10481 = vmatmul.msk.f32.gmra.mxu0 %vm543_vm1, %v6778_v49 }
 0x5a4   : > { %v6214_v24 = vpop.f32.mrf.mxu2 }
 0x5a5   : > { %v6215_v15 = vadd.f32 %v6214_v24, %v5906_v36  ;;  %v6572_v6 = vpop.f32.mrf.mxu3  ;;  %v5909_v26 = vpop.f32.mrf.mxu1  ;;  %v5712_v36 = vld [vmem:[#allocation2 + $0xd0] sm:$0xff] }
 0x5a7   : > { %v6714_v48 = vadd.f32 %v6572_v6, %v6215_v15  ;;  %v6981_v32 = vpop.f32.mrf.mxu0 }
 0x5a8   : > { %10333 = vmatmul.msk.f32.gmra.mxu1 %vm543_vm1, %v5707_v0  ;;  %v6785_v0 = vld [vmem:[#allocation2 + $0xef] sm:$0xff] }
 0x5a9   : > { %10382 = vmatmul.msk.f32.gmra.mxu2 %vm543_vm1, %v6776_v20  ;;  %v15125_v22 = vadd.f32 %v6978_v57, %v6714_v48  ;;  %v6377_v20 = vld [vmem:[#allocation2 + $0xc9] sm:$0xff]  ;;  %v5713_v48 = vld [vmem:[#allocation2 + $0xd8] sm:$0xff] }
 0x5aa   : > { %10432 = vmatmul.msk.f32.gmra.mxu3 %vm543_vm1, %v6373_v29  ;;  %10482 = vmatmul.msk.f32.gmra.mxu0 %vm543_vm1, %v6779_v42  ;;  %v6784_v57 = vld [vmem:[#allocation2 + $0xe7] sm:$0xff] }
 0x5ac   : > { %v6217_v60 = vpop.f32.mrf.mxu2 }
 0x5ad   : > { %v6218_v59 = vadd.f32 %v6217_v60, %v5909_v26  ;;  %v6575_v25 = vpop.f32.mrf.mxu3  ;;  %v5912_v52 = vpop.f32.mrf.mxu1 }
 0x5af   : > { %v6715_v7 = vadd.f32 %v6575_v25, %v6218_v59  ;;  %v6984_v17 = vpop.f32.mrf.mxu0 }
 0x5b0   : > { %10334 = vmatmul.msk.f32.gmra.mxu1 %vm543_vm1, %v5708_v43  ;;  %v6380_v43 = vld [vmem:[#allocation2 + $0xe1] sm:$0xff] }
 0x5b1   : > { %10383 = vmatmul.msk.f32.gmra.mxu2 %vm543_vm1, %v6777_v9  ;;  %v15132_v5 = vadd.f32 %v6981_v32, %v6715_v7  ;;  %v6379_v32 = vld [vmem:[#allocation2 + $0xd9] sm:$0xff] }
 0x5b2   : > { %10433 = vmatmul.msk.f32.gmra.mxu3 %vm543_vm1, %v6374_v41  ;;  %10483 = vmatmul.msk.f32.gmra.mxu0 %vm543_vm1, %v6780_v53  ;;  %v6786_v41 = vld [vmem:[#allocation2 + $0xf7] sm:$0xff] }
 0x5b4   : > { %v6220_v2 = vpop.f32.mrf.mxu2 }
 0x5b5   : > { %v6221_v51 = vadd.f32 %v6220_v2, %v5912_v52  ;;  %v6578_v19 = vpop.f32.mrf.mxu3  ;;  %v5915_v18 = vpop.f32.mrf.mxu1 }
 0x5b7   : > { %v6716_v34 = vadd.f32 %v6578_v19, %v6221_v51  ;;  %v6987_v1 = vpop.f32.mrf.mxu0 }
 0x5b8   : > { %10335 = vmatmul.msk.f32.gmra.mxu1 %vm543_vm1, %v5709_v47 }
 0x5b9   : > { %10384 = vmatmul.msk.f32.gmra.mxu2 %vm543_vm1, %v6778_v49  ;;  %v15138_v54 = vadd.f32 %v6984_v17, %v6716_v34  ;;  %v5714_v17 = vld [vmem:[#allocation2 + $0xe0] sm:$0xff] }
 0x5ba   : > { %10434 = vmatmul.msk.f32.gmra.mxu3 %vm543_vm1, %v6375_v27  ;;  %10484 = vmatmul.msk.f32.gmra.mxu0 %vm543_vm1, %v6781_v61  ;;  %v6381_v27 = vld [vmem:[#allocation2 + $0xe9] sm:$0xff] }
 0x5bc   : > { %v6223_v30 = vpop.f32.mrf.mxu2 }
 0x5bd   : > { %v6224_v28 = vadd.f32 %v6223_v30, %v5915_v18  ;;  %v6581_v63 = vpop.f32.mrf.mxu3  ;;  %v5918_v16 = vpop.f32.mrf.mxu1 }
 0x5bf   : > { %v6717_v35 = vadd.f32 %v6581_v63, %v6224_v28  ;;  %v6990_v50 = vpop.f32.mrf.mxu0 }
 0x5c0   : > { %10336 = vmatmul.msk.f32.gmra.mxu1 %vm543_vm1, %v5710_v62  ;;  %v5716_v62 = vld [vmem:[#allocation2 + $0xf0] sm:$0xff] }
 0x5c1   : > { %10385 = vmatmul.msk.f32.gmra.mxu2 %vm543_vm1, %v6779_v42  ;;  %v15144_v9 = vadd.f32 %v6987_v1, %v6717_v35  ;;  %v5715_v1 = vld [vmem:[#allocation2 + $0xe8] sm:$0xff] }
 0x5c2   : > { %10435 = vmatmul.msk.f32.gmra.mxu3 %vm543_vm1, %v6376_v33  ;;  %10485 = vmatmul.msk.f32.gmra.mxu0 %vm543_vm1, %v6782_v55  ;;  %v6382_v33 = vld [vmem:[#allocation2 + $0xf1] sm:$0xff] }
 0x5c4   : > { %v6226_v3 = vpop.f32.mrf.mxu2 }
 0x5c5   : > { %v6227_v39 = vadd.f32 %v6226_v3, %v5918_v16  ;;  %v6584_v44 = vpop.f32.mrf.mxu3  ;;  %v5921_v10 = vpop.f32.mrf.mxu1  ;;  %v6788_v3 = vld [vmem:[#allocation2 + $0x107] sm:$0xff] }
 0x5c7   : > { %v6718_v56 = vadd.f32 %v6584_v44, %v6227_v39  ;;  %v6993_v38 = vpop.f32.mrf.mxu0 }
 0x5c8   : > { %10337 = vmatmul.msk.f32.gmra.mxu1 %vm543_vm1, %v5711_v12 }
 0x5c9   : > { %10386 = vmatmul.msk.f32.gmra.mxu2 %vm543_vm1, %v6780_v53  ;;  %v15150_v15 = vadd.f32 %v6990_v50, %v6718_v56 }
 0x5ca   : > { %10436 = vmatmul.msk.f32.gmra.mxu3 %vm543_vm1, %v6377_v20  ;;  %10486 = vmatmul.msk.f32.gmra.mxu0 %vm543_vm1, %v6783_v23  ;;  %v5717_v20 = vld [vmem:[#allocation2 + $0xf8] sm:$0xff] }
 0x5cc   : > { %v6229_v11 = vpop.f32.mrf.mxu2 }
 0x5cd   : > { %v6230_v21 = vadd.f32 %v6229_v11, %v5921_v10  ;;  %v6587_v14 = vpop.f32.mrf.mxu3  ;;  %v5924_v45 = vpop.f32.mrf.mxu1  ;;  %v6789_v11 = vld [vmem:[#allocation2 + $0x10f] sm:$0xff] }
 0x5cf   : > { %v6719_v13 = vadd.f32 %v6587_v14, %v6230_v21  ;;  %v6996_v37 = vpop.f32.mrf.mxu0 }
 0x5d0   : > { %10338 = vmatmul.msk.f32.gmra.mxu1 %vm543_vm1, %v5712_v36 }
 0x5d1   : > { %10387 = vmatmul.msk.f32.gmra.mxu2 %vm543_vm1, %v6781_v61  ;;  %v15156_v52 = vadd.f32 %v6993_v38, %v6719_v13  ;;  %v6787_v61 = vld [vmem:[#allocation2 + $0xff] sm:$0xff] }
 0x5d2   : > { %10437 = vmatmul.msk.f32.gmra.mxu3 %vm543_vm1, %v6378_v4  ;;  %10487 = vmatmul.msk.f32.gmra.mxu0 %vm543_vm1, %v6784_v57 }
 0x5d4   : > { %v6232_v40 = vpop.f32.mrf.mxu2 }
 0x5d5   : > { %v6233_v46 = vadd.f32 %v6232_v40, %v5924_v45  ;;  %v6590_v49 = vpop.f32.mrf.mxu3  ;;  %v5927_v24 = vpop.f32.mrf.mxu1  ;;  %v6384_v40 = vld [vmem:[#allocation2 + $0x101] sm:$0xff] }
 0x5d7   : > { %v6720_v6 = vadd.f32 %v6590_v49, %v6233_v46  ;;  %v6999_v26 = vpop.f32.mrf.mxu0  ;;  %v6790_v46 = vld [vmem:[#allocation2 + $0x117] sm:$0xff] }
 0x5d8   : > { %10339 = vmatmul.msk.f32.gmra.mxu1 %vm543_vm1, %v5713_v48 }
 0x5d9   : > { %10388 = vmatmul.msk.f32.gmra.mxu2 %vm543_vm1, %v6782_v55  ;;  %v15162_v47 = vadd.f32 %v6996_v37, %v6720_v6 }
 0x5da   : > { %10438 = vmatmul.msk.f32.gmra.mxu3 %vm543_vm1, %v6379_v32  ;;  %10488 = vmatmul.msk.f32.gmra.mxu0 %vm543_vm1, %v6785_v0 }
 0x5dc   : > { %v6235_v29 = vpop.f32.mrf.mxu2 }
 0x5dd   : > { %v6236_v42 = vadd.f32 %v6235_v29, %v5927_v24  ;;  %v6593_v60 = vpop.f32.mrf.mxu3  ;;  %v5930_v59 = vpop.f32.mrf.mxu1  ;;  %v5719_v29 = vld [vmem:[#allocation2 + $0x108] sm:$0xff] }
 0x5df   : > { %v6721_v25 = vadd.f32 %v6593_v60, %v6236_v42  ;;  %v7002_v7 = vpop.f32.mrf.mxu0  ;;  %v6385_v42 = vld [vmem:[#allocation2 + $0x109] sm:$0xff]  ;;  %v6791_v60 = vld [vmem:[#allocation2 + $0x11f] sm:$0xff] }
 0x5e0   : > { %10340 = vmatmul.msk.f32.gmra.mxu1 %vm543_vm1, %v5714_v17 }
 0x5e1   : > { %10389 = vmatmul.msk.f32.gmra.mxu2 %vm543_vm1, %v6783_v23  ;;  %v15170_v55 = vadd.f32 %v6999_v26, %v6721_v25  ;;  %v6383_v23 = vld [vmem:[#allocation2 + $0xf9] sm:$0xff] }
 0x5e2   : > { %10439 = vmatmul.msk.f32.gmra.mxu3 %vm543_vm1, %v6380_v43  ;;  %10489 = vmatmul.msk.f32.gmra.mxu0 %vm543_vm1, %v6786_v41 }
 0x5e4   : > { %v6238_v53 = vpop.f32.mrf.mxu2 }
 0x5e5   : > { %v6239_v2 = vadd.f32 %v6238_v53, %v5930_v59  ;;  %v6596_v51 = vpop.f32.mrf.mxu3  ;;  %v5933_v19 = vpop.f32.mrf.mxu1 }
 0x5e7   : > { %v6722_v18 = vadd.f32 %v6596_v51, %v6239_v2  ;;  %v7005_v34 = vpop.f32.mrf.mxu0  ;;  %v5720_v2 = vld [vmem:[#allocation2 + $0x110] sm:$0xff] }
 0x5e8   : > { %10341 = vmatmul.msk.f32.gmra.mxu1 %vm543_vm1, %v5715_v1  ;;  %v6386_v51 = vld [vmem:[#allocation2 + $0x111] sm:$0xff] }
 0x5e9   : > { %10390 = vmatmul.msk.f32.gmra.mxu2 %vm543_vm1, %v6784_v57  ;;  %v15177_v21 = vadd.f32 %v7002_v7, %v6722_v18  ;;  %v5718_v57 = vld [vmem:[#allocation2 + $0x100] sm:$0xff] }
 0x5ea   : > { %10440 = vmatmul.msk.f32.gmra.mxu3 %vm543_vm1, %v6381_v27  ;;  %10490 = vmatmul.msk.f32.gmra.mxu0 %vm543_vm1, %v6787_v61 }
 0x5ec   : > { %v6241_v30 = vpop.f32.mrf.mxu2 }
 0x5ed   : > { %v6242_v28 = vadd.f32 %v6241_v30, %v5933_v19  ;;  %v6599_v63 = vpop.f32.mrf.mxu3  ;;  %v5936_v16 = vpop.f32.mrf.mxu1  ;;  %v6792_v19 = vld [vmem:[#allocation2 + $0x127] sm:$0xff] }
 0x5ef   : > { %v6723_v35 = vadd.f32 %v6599_v63, %v6242_v28  ;;  %v7008_v50 = vpop.f32.mrf.mxu0  ;;  %v5721_v63 = vld [vmem:[#allocation2 + $0x118] sm:$0xff] }
 0x5f0   : > { %10342 = vmatmul.msk.f32.gmra.mxu1 %vm543_vm1, %v5716_v62 }
 0x5f1   : > { %10391 = vmatmul.msk.f32.gmra.mxu2 %vm543_vm1, %v6785_v0  ;;  %v15184_v49 = vadd.f32 %v7005_v34, %v6723_v35  ;;  %v6793_v35 = vld [vmem:[#allocation2 + $0x12f] sm:$0xff] }
 0x5f2   : > { %10441 = vmatmul.msk.f32.gmra.mxu3 %vm543_vm1, %v6382_v33  ;;  %10491 = vmatmul.msk.f32.gmra.mxu0 %vm543_vm1, %v6788_v3 }
 0x5f4   : > { %v6244_v39 = vpop.f32.mrf.mxu2 }
 0x5f5   : > { %v6245_v44 = vadd.f32 %v6244_v39, %v5936_v16  ;;  %v6602_v10 = vpop.f32.mrf.mxu3  ;;  %v5939_v56 = vpop.f32.mrf.mxu1  ;;  %v6387_v16 = vld [vmem:[#allocation2 + $0x119] sm:$0xff] }
 0x5f7   : > { %v6724_v38 = vadd.f32 %v6602_v10, %v6245_v44  ;;  %v7011_v12 = vpop.f32.mrf.mxu0 }
 0x5f8   : > { %10343 = vmatmul.msk.f32.gmra.mxu1 %vm543_vm1, %v5717_v20 }
 0x5f9   : > { %10392 = vmatmul.msk.f32.gmra.mxu2 %vm543_vm1, %v6786_v41  ;;  %v15190_v25 = vadd.f32 %v7008_v50, %v6724_v38  ;;  %v6388_v38 = vld [vmem:[#allocation2 + $0x121] sm:$0xff] }
 0x5fa   : > { %10442 = vmatmul.msk.f32.gmra.mxu3 %vm543_vm1, %v6383_v23  ;;  %10492 = vmatmul.msk.f32.gmra.mxu0 %vm543_vm1, %v6789_v11 }
 0x5fc   : > { %v6247_v14 = vpop.f32.mrf.mxu2 }
 0x5fd   : > { %v6248_v45 = vadd.f32 %v6247_v14, %v5939_v56  ;;  %v6605_v13 = vpop.f32.mrf.mxu3  ;;  %v5942_v37 = vpop.f32.mrf.mxu1  ;;  %v5722_v56 = vld [vmem:[#allocation2 + $0x120] sm:$0xff] }
 0x5ff   : > { %v6725_v36 = vadd.f32 %v6605_v13, %v6248_v45  ;;  %v7014_v4 = vpop.f32.mrf.mxu0 }
 0x600   : > { %10344 = vmatmul.msk.f32.gmra.mxu1 %vm543_vm1, %v5718_v57  ;;  %v6795_v57 = vld [vmem:[#allocation2 + $0x13f] sm:$0xff] }
 0x601   : > { %10393 = vmatmul.msk.f32.gmra.mxu2 %vm543_vm1, %v6787_v61  ;;  %v15196_v27 = vadd.f32 %v7011_v12, %v6725_v36  ;;  %v6794_v12 = vld [vmem:[#allocation2 + $0x137] sm:$0xff]  ;;  %v5723_v36 = vld [vmem:[#allocation2 + $0x128] sm:$0xff] }
 0x602   : > { %10443 = vmatmul.msk.f32.gmra.mxu3 %vm543_vm1, %v6384_v40  ;;  %10493 = vmatmul.msk.f32.gmra.mxu0 %vm543_vm1, %v6790_v46 }
 0x604   : > { %v6250_v24 = vpop.f32.mrf.mxu2 }
 0x605   : > { %v6251_v6 = vadd.f32 %v6250_v24, %v5942_v37  ;;  %v6608_v26 = vpop.f32.mrf.mxu3  ;;  %v5945_v48 = vpop.f32.mrf.mxu1 }
 0x607   : > { %v6726_v32 = vadd.f32 %v6608_v26, %v6251_v6  ;;  %v7017_v0 = vpop.f32.mrf.mxu0 }
 0x608   : > { %10345 = vmatmul.msk.f32.gmra.mxu1 %vm543_vm1, %v5719_v29  ;;  %v6390_v29 = vld [vmem:[#allocation2 + $0x131] sm:$0xff] }
 0x609   : > { %10394 = vmatmul.msk.f32.gmra.mxu2 %vm543_vm1, %v6788_v3  ;;  %v15202_v39 = vadd.f32 %v7014_v4, %v6726_v32  ;;  %v6389_v4 = vld [vmem:[#allocation2 + $0x129] sm:$0xff] }
 0x60a   : > { %10444 = vmatmul.msk.f32.gmra.mxu3 %vm543_vm1, %v6385_v42  ;;  %10494 = vmatmul.msk.f32.gmra.mxu0 %vm543_vm1, %v6791_v60  ;;  %v5724_v32 = vld [vmem:[#allocation2 + $0x130] sm:$0xff]  ;;  %v6796_v42 = vld [vmem:[#allocation2 + $0x147] sm:$0xff] }
 0x60c   : > { %v6253_v59 = vpop.f32.mrf.mxu2 }
 0x60d   : > { %v6254_v7 = vadd.f32 %v6253_v59, %v5945_v48  ;;  %v6611_v17 = vpop.f32.mrf.mxu3  ;;  %v5948_v43 = vpop.f32.mrf.mxu1 }
 0x60f   : > { %v6727_v41 = vadd.f32 %v6611_v17, %v6254_v7  ;;  %v7020_v53 = vpop.f32.mrf.mxu0 }
 0x610   : > { %10346 = vmatmul.msk.f32.gmra.mxu1 %vm543_vm1, %v5720_v2  ;;  %v5725_v2 = vld [vmem:[#allocation2 + $0x138] sm:$0xff] }
 0x611   : > { %10395 = vmatmul.msk.f32.gmra.mxu2 %vm543_vm1, %v6789_v11  ;;  %v15208_v13 = vadd.f32 %v7017_v0, %v6727_v41 }
 0x612   : > { %10445 = vmatmul.msk.f32.gmra.mxu3 %vm543_vm1, %v6386_v51  ;;  %10495 = vmatmul.msk.f32.gmra.mxu0 %vm543_vm1, %v6792_v19 }
 0x614   : > { %v6256_v18 = vpop.f32.mrf.mxu2 }
 0x615   : > { %v6257_v34 = vadd.f32 %v6256_v18, %v5948_v43  ;;  %v6614_v1 = vpop.f32.mrf.mxu3  ;;  %v5951_v61 = vpop.f32.mrf.mxu1 }
 0x617   : > { %v6728_v30 = vadd.f32 %v6614_v1, %v6257_v34  ;;  %v7023_v28 = vpop.f32.mrf.mxu0 }
 0x618   : > { %10347 = vmatmul.msk.f32.gmra.mxu1 %vm543_vm1, %v5721_v63 }
 0x619   : > { %10396 = vmatmul.msk.f32.gmra.mxu2 %vm543_vm1, %v6790_v46  ;;  %v15218_v0 = vadd.f32 %v7020_v53, %v6728_v30  ;;  %v6391_v53 = vld [vmem:[#allocation2 + $0x139] sm:$0xff] }
 0x61a   : > { %10446 = vmatmul.msk.f32.gmra.mxu3 %vm543_vm1, %v6387_v16  ;;  %10496 = vmatmul.msk.f32.gmra.mxu0 %vm543_vm1, %v6793_v35  ;;  %v5726_v16 = vld [vmem:[#allocation2 + $0x140] sm:$0xff] }
 0x61c   : > { %v6259_v50 = vpop.f32.mrf.mxu2 }
 0x61d   : > { %v6260_v62 = vadd.f32 %v6259_v50, %v5951_v61  ;;  %v6617_v33 = vpop.f32.mrf.mxu3  ;;  %v5954_v3 = vpop.f32.mrf.mxu1 }
 0x61f   : > { %v6729_v44 = vadd.f32 %v6617_v33, %v6260_v62  ;;  %v7026_v10 = vpop.f32.mrf.mxu0 }
 0x620   : > { %10348 = vmatmul.msk.f32.gmra.mxu1 %vm543_vm1, %v5722_v56 }
 0x621   : > { %10397 = vmatmul.msk.f32.gmra.mxu2 %vm543_vm1, %v6791_v60  ;;  %v15228_v51 = vadd.f32 %v7023_v28, %v6729_v44  ;;  %v6798_v28 = vld [vmem:[#allocation2 + $0x157] sm:$0xff] }
 0x622   : > { %10447 = vmatmul.msk.f32.gmra.mxu3 %vm543_vm1, %v6388_v38  ;;  %10497 = vmatmul.msk.f32.gmra.mxu0 %vm543_vm1, %v6794_v12 }
 0x624   : > { %v6262_v20 = vpop.f32.mrf.mxu2 }
 0x625   : > { %v6263_v23 = vadd.f32 %v6262_v20, %v5954_v3  ;;  %v6620_v11 = vpop.f32.mrf.mxu3  ;;  %v5957_v14 = vpop.f32.mrf.mxu1  ;;  %v6393_v20 = vld [vmem:[#allocation2 + $0x149] sm:$0xff] }
 0x627   : > { %v6730_v45 = vadd.f32 %v6620_v11, %v6263_v23  ;;  %v15210_v37 = vpop.f32.mrf.mxu0  ;;  %v6799_v23 = vld [vmem:[#allocation2 + $0x15f] sm:$0xff] }
 0x628   : > { %10349 = vmatmul.msk.f32.gmra.mxu1 %vm543_vm1, %v5723_v36 }
 0x629   : > { %10398 = vmatmul.msk.f32.gmra.mxu2 %vm543_vm1, %v6792_v19  ;;  %v6797_v19 = vld [vmem:[#allocation2 + $0x14f] sm:$0xff]  ;;  %v15237_v50 = vadd.f32 %v7026_v10, %v6730_v45 }
 0x62a   : > { %10448 = vmatmul.msk.f32.gmra.mxu3 %vm543_vm1, %v6389_v4  ;;  %10498 = vmatmul.msk.f32.gmra.mxu0 %vm543_vm1, %v6795_v57 }
 0x62c   : > { %v6265_v40 = vpop.f32.mrf.mxu2 }
 0x62d   : > { %v6266_v46 = vadd.f32 %v6265_v40, %v5957_v14  ;;  %v6623_v24 = vpop.f32.mrf.mxu3  ;;  %v5960_v6 = vpop.f32.mrf.mxu1  ;;  %v5728_v40 = vld [vmem:[#allocation2 + $0x150] sm:$0xff] }
 0x62f   : > { %v6731_v26 = vadd.f32 %v6623_v24, %v6266_v46  ;;  %v15216_v48 = vpop.f32.mrf.mxu0  ;;  %v6394_v46 = vld [vmem:[#allocation2 + $0x151] sm:$0xff]  ;;  %v6800_v24 = vld [vmem:[#allocation2 + $0x167] sm:$0xff] }
 0x630   : > { %10350 = vmatmul.msk.f32.gmra.mxu1 %vm543_vm1, %v5724_v32 }
 0x631   : > { %10399 = vmatmul.msk.f32.gmra.mxu2 %vm543_vm1, %v6793_v35  ;;  %v6392_v35 = vld [vmem:[#allocation2 + $0x141] sm:$0xff]  ;;  %v15247_v10 = vadd.f32 %v15210_v37, %v6731_v26 }
 0x632   : > { %10449 = vmatmul.msk.f32.gmra.mxu3 %vm543_vm1, %v6390_v29  ;;  %10499 = vmatmul.msk.f32.gmra.mxu0 %vm543_vm1, %v6796_v42 }
 0x634   : > { %v6268_v60 = vpop.f32.mrf.mxu2 }
 0x635   : > { %v6269_v59 = vadd.f32 %v6268_v60, %v5960_v6  ;;  %v6626_v7 = vpop.f32.mrf.mxu3  ;;  %v5963_v17 = vpop.f32.mrf.mxu1 }
 0x637   : > { %v6732_v43 = vadd.f32 %v6626_v7, %v6269_v59  ;;  %v15224_v41 = vpop.f32.mrf.mxu0  ;;  %v5729_v59 = vld [vmem:[#allocation2 + $0x158] sm:$0xff] }
 0x638   : > { %10351 = vmatmul.msk.f32.gmra.mxu1 %vm543_vm1, %v5725_v2  ;;  %v6395_v7 = vld [vmem:[#allocation2 + $0x159] sm:$0xff] }
 0x639   : > { %10400 = vmatmul.msk.f32.gmra.mxu2 %vm543_vm1, %v6794_v12  ;;  %v5727_v12 = vld [vmem:[#allocation2 + $0x148] sm:$0xff]  ;;  %v15256_v6 = vadd.f32 %v15216_v48, %v6732_v43 }
 0x63a   : > { %10450 = vmatmul.msk.f32.gmra.mxu3 %vm543_vm1, %v6391_v53  ;;  %10500 = vmatmul.msk.f32.gmra.mxu0 %vm543_vm1, %v6797_v19 }
 0x63c   : > { %v6271_v18 = vpop.f32.mrf.mxu2 }
 0x63d   : > { %v6272_v34 = vadd.f32 %v6271_v18, %v5963_v17  ;;  %v6629_v1 = vpop.f32.mrf.mxu3  ;;  %v5966_v61 = vpop.f32.mrf.mxu1  ;;  %v6801_v17 = vld [vmem:[#allocation2 + $0x16f] sm:$0xff] }
 0x63f   : > { %v6733_v30 = vadd.f32 %v6629_v1, %v6272_v34  ;;  %v15232_v63 = vpop.f32.mrf.mxu0  ;;  %v5730_v1 = vld [vmem:[#allocation2 + $0x160] sm:$0xff] }
 0x640   : > { %10352 = vmatmul.msk.f32.gmra.mxu1 %vm543_vm1, %v5726_v16  ;;  %v6802_v16 = vld [vmem:[#allocation2 + $0x177] sm:$0xff] }
 0x641   : > { %10401 = vmatmul.msk.f32.gmra.mxu2 %vm543_vm1, %v6795_v57  ;;  %v15267_v53 = vadd.f32 %v15224_v41, %v6733_v30 }
 0x642   : > { %10451 = vmatmul.msk.f32.gmra.mxu3 %vm543_vm1, %v6392_v35  ;;  %10501 = vmatmul.msk.f32.gmra.mxu0 %vm543_vm1, %v6798_v28 }
 0x644   : > { %v6274_v62 = vpop.f32.mrf.mxu2 }
 0x645   : > { %v6275_v33 = vadd.f32 %v6274_v62, %v5966_v61  ;;  %v6632_v3 = vpop.f32.mrf.mxu3  ;;  %v5969_v44 = vpop.f32.mrf.mxu1  ;;  %v6396_v61 = vld [vmem:[#allocation2 + $0x161] sm:$0xff] }
 0x647   : > { %v6734_v56 = vadd.f32 %v6632_v3, %v6275_v33  ;;  %v15240_v38 = vpop.f32.mrf.mxu0 }
 0x648   : > { %10353 = vmatmul.msk.f32.gmra.mxu1 %vm543_vm1, %v5727_v12  ;;  %v6397_v12 = vld [vmem:[#allocation2 + $0x169] sm:$0xff] }
 0x649   : > { %10402 = vmatmul.msk.f32.gmra.mxu2 %vm543_vm1, %v6796_v42  ;;  %v15278_v62 = vadd.f32 %v15232_v63, %v6734_v56 }
 0x64a   : > { %10452 = vmatmul.msk.f32.gmra.mxu3 %vm543_vm1, %v6393_v20  ;;  %10502 = vmatmul.msk.f32.gmra.mxu0 %vm543_vm1, %v6799_v23  ;;  %v6803_v20 = vld [vmem:[#allocation2 + $0x17f] sm:$0xff] }
 0x64c   : > { %v6277_v11 = vpop.f32.mrf.mxu2 }
 0x64d   : > { %v6278_v14 = vadd.f32 %v6277_v11, %v5969_v44  ;;  %v6635_v45 = vpop.f32.mrf.mxu3  ;;  %v5972_v36 = vpop.f32.mrf.mxu1  ;;  %v5731_v44 = vld [vmem:[#allocation2 + $0x168] sm:$0xff] }
 0x64f   : > { %v6735_v4 = vadd.f32 %v6635_v45, %v6278_v14  ;;  %v15249_v57 = vpop.f32.mrf.mxu0  ;;  %v10562_v45 = vld [vmem:[%s17065_s3 + $0x14] sm:$0xf] }
 0x650   : > { %10354 = vmatmul.msk.f32.gmra.mxu1 %vm543_vm1, %v5728_v40  ;;  %10563 = vmatpush.msk.msra.mxu2 %vm18088_vm6, %v10562_v45 }
 0x651   : > { %10403 = vmatmul.msk.f32.gmra.mxu2 %vm543_vm1, %v6797_v19 }
 0x652   : > { %10453 = vmatmul.msk.f32.gmra.mxu3 %vm543_vm1, %v6394_v46  ;;  %10503 = vmatmul.msk.f32.gmra.mxu0 %vm543_vm1, %v6800_v24  ;;  %v5732_v46 = vld [vmem:[#allocation2 + $0x170] sm:$0xff] }
 0x654   : > { %v6280_v37 = vpop.f32.mrf.mxu2 }
 0x655   : > { %v6281_v26 = vadd.f32 %v6280_v37, %v5972_v36  ;;  %v6638_v32 = vpop.f32.mrf.mxu3  ;;  %v5975_v29 = vpop.f32.mrf.mxu1  ;;  %v15294_v36 = vadd.f32 %v15240_v38, %v6735_v4  ;;  %v6398_v37 = vld [vmem:[#allocation2 + $0x171] sm:$0xff] }
 0x657   : > { %v15258_v42 = vadd.f32 %v6638_v32, %v6281_v26  ;;  %v15260_v60 = vpop.f32.mrf.mxu0  ;;  %v6804_v26 = vld [vmem:[#allocation2 + $0x187] sm:$0xff] }
 0x658   : > { %10355 = vmatmul.msk.f32.gmra.mxu1 %vm543_vm1, %v5729_v59 }
 0x659   : > { %10404 = vmatmul.msk.f32.gmra.mxu2 %vm543_vm1, %v6798_v28 }
 0x65a   : > { %10454 = vmatmul.msk.f32.gmra.mxu3 %vm543_vm1, %v6395_v7  ;;  %10504 = vmatmul.msk.f32.gmra.mxu0 %vm543_vm1, %v6801_v17 }
 0x65c   : > { %v6283_v48 = vpop.f32.mrf.mxu2 }
 0x65d   : > { %v6284_v43 = vadd.f32 %v6283_v48, %v5975_v29  ;;  %v6641_v2 = vpop.f32.mrf.mxu3  ;;  %v5978_v19 = vpop.f32.mrf.mxu1  ;;  %v5733_v48 = vld [vmem:[#allocation2 + $0x178] sm:$0xff] }
 0x65f   : > { %v15269_v18 = vadd.f32 %v6641_v2, %v6284_v43  ;;  %v15271_v34 = vpop.f32.mrf.mxu0  ;;  %v15316_v43 = vadd.f32 %v15249_v57, %v15258_v42  ;;  %v6399_v2 = vld [vmem:[#allocation2 + $0x179] sm:$0xff] }
 0x660   : > { %10356 = vmatmul.msk.f32.gmra.mxu1 %vm543_vm1, %v5730_v1  ;;  %v10712_v1 = vld [vmem:[%s17065_s3 + $0x20] sm:$0xf] }
 0x661   : > { %10405 = vmatmul.msk.f32.gmra.mxu2 %vm543_vm1, %v6799_v23  ;;  %10713 = vmatpush.msk.msra.mxu1 %vm18091_vm14, %v10712_v1 }
 0x662   : > { %10455 = vmatmul.msk.f32.gmra.mxu3 %vm543_vm1, %v6396_v61  ;;  %10505 = vmatmul.msk.f32.gmra.mxu0 %vm543_vm1, %v6802_v16 }
 0x664   : > { %v6286_v35 = vpop.f32.mrf.mxu2 }
 0x665   : > { %v6287_v28 = vadd.f32 %v6286_v35, %v5978_v19  ;;  %v6644_v41 = vpop.f32.mrf.mxu3  ;;  %v5981_v30 = vpop.f32.mrf.mxu1  ;;  %v6805_v19 = vld [vmem:[#allocation2 + $0x18f] sm:$0xff] }
 0x667   : > { %v15280_v33 = vadd.f32 %v6644_v41, %v6287_v28  ;;  %v15282_v3 = vpop.f32.mrf.mxu0  ;;  %v5734_v41 = vld [vmem:[#allocation2 + $0x180] sm:$0xff] }
 0x668   : > { %10357 = vmatmul.msk.f32.gmra.mxu1 %vm543_vm1, %v5731_v44  ;;  %v15335_v44 = vadd.f32 %v15260_v60, %v15269_v18  ;;  %v6401_v60 = vld [vmem:[#allocation2 + $0x189] sm:$0xff]  ;;  %v6807_v18 = vld [vmem:[#allocation2 + $0x19f] sm:$0xff] }
 0x669   : > { %10406 = vmatmul.msk.f32.gmra.mxu2 %vm543_vm1, %v6800_v24  ;;  %v10612_v24 = vld [vmem:[%s17065_s3 + $0x18] sm:$0xf] }
 0x66a   : > { %10456 = vmatmul.msk.f32.gmra.mxu3 %vm543_vm1, %v6397_v12  ;;  %10506 = vmatmul.msk.f32.gmra.mxu0 %vm543_vm1, %v6803_v20  ;;  %v6806_v12 = vld [vmem:[#allocation2 + $0x197] sm:$0xff] }
 0x66b   : > { %10613 = vmatpush.msk.msra.mxu3 %vm18089_vm10, %v10612_v24  ;;  %v5735_v24 = vld [vmem:[#allocation2 + $0x188] sm:$0xff] }
 0x66c   : > { %v6289_v23 = vpop.f32.mrf.mxu2 }
 0x66d   : > { %v6290_v11 = vadd.f32 %v6289_v23, %v5981_v30  ;;  %v6647_v14 = vpop.f32.mrf.mxu3  ;;  %v5984_v63 = vpop.f32.mrf.mxu1  ;;  %v6400_v30 = vld [vmem:[#allocation2 + $0x181] sm:$0xff] }
 0x66f   : > { %v15288_v56 = vadd.f32 %v6647_v14, %v6290_v11  ;;  %v15296_v40 = vpop.f32.mrf.mxu0 }
 0x670   : > { %10358 = vmatmul.msk.f32.gmra.mxu1 %vm543_vm1, %v5732_v46 }
 0x671   : > { %10407 = vmatmul.msk.f32.gmra.mxu2 %vm543_vm1, %v6801_v17  ;;  %v10662_v17 = vld [vmem:[%s17065_s3 + $0x1c] sm:$0xf] }
 0x672   : > { %10457 = vmatmul.msk.f32.gmra.mxu3 %vm543_vm1, %v6398_v37  ;;  %10507 = vmatmul.msk.f32.gmra.mxu0 %vm543_vm1, %v6804_v26 }
 0x673   : > { %10663 = vmatpush.msk.msra.mxu0 %vm18090_vm9, %v10662_v17  ;;  %v5736_v17 = vld [vmem:[#allocation2 + $0x190] sm:$0xff] }
 0x674   : > { %v6292_v38 = vpop.f32.mrf.mxu2 }
 0x675   : > { %v6293_v4 = vadd.f32 %v6292_v38, %v5984_v63  ;;  %v6650_v32 = vpop.f32.mrf.mxu3  ;;  %v5987_v29 = vpop.f32.mrf.mxu1 }
 0x677   : > { %v15307_v59 = vadd.f32 %v6650_v32, %v6293_v4  ;;  %v15309_v7 = vpop.f32.mrf.mxu0 }
 0x678   : > { %10359 = vmatmul.msk.f32.gmra.mxu1 %vm543_vm1, %v5733_v48 }
 0x679   : > { %10408 = vmatmul.msk.f32.gmra.mxu2 %vm543_vm1, %v6802_v16 }
 0x67a   : > { %10458 = vmatmul.msk.f32.gmra.mxu3 %vm543_vm1, %v6399_v2  ;;  %10508 = vmatmul.msk.f32.gmra.mxu0 %vm543_vm1, %v6805_v19 }
 0x67c   : > { %v6295_v61 = vpop.f32.mrf.mxu2 }
 0x67d   : > { %v6296_v57 = vadd.f32 %v6295_v61, %v5987_v29  ;;  %v6653_v42 = vpop.f32.mrf.mxu3  ;;  %v5990_v35 = vpop.f32.mrf.mxu1 }
 0x67f   : > { %v15327_v28 = vadd.f32 %v6653_v42, %v6296_v57  ;;  %v15329_v16 = vpop.f32.mrf.mxu0 }
 0x680   : > { %10360 = vmatmul.msk.f32.gmra.mxu1 %vm543_vm1, %v5734_v41  ;;  %v7167_v41 = vld [vmem:[#allocation2 + $0x30] sm:$0xff] }
 0x681   : > { %10409 = vmatmul.msk.f32.gmra.mxu2 %vm543_vm1, %v6803_v20  ;;  %v15348_v20 = vadd.f32 %v15271_v34, %v15280_v33  ;;  %v6808_v34 = vld [vmem:[#allocation2 + $0x1a7] sm:$0xff]  ;;  %v15361_v33 = vadd.f32 %v15282_v3, %v15288_v56  ;;  %v15373_v56 = vadd.f32 %v15296_v40, %v15307_v59 }
 0x682   : > { %10459 = vmatmul.msk.f32.gmra.mxu3 %vm543_vm1, %v6400_v30  ;;  %10509 = vmatmul.msk.f32.gmra.mxu0 %vm543_vm1, %v6806_v12  ;;  %v7979_v30 = vld [vmem:[#allocation2 + $0x47] sm:$0xff] }
 0x683   : > { %v8385_v12 = vld [vmem:[#allocation2 + $0x48] sm:$0xff] }
 0x684   : > { %v6298_v23 = vpop.f32.mrf.mxu2 }
 0x685   : > { %v6299_v11 = vadd.f32 %v6298_v23, %v5990_v35  ;;  %v6656_v14 = vpop.f32.mrf.mxu3  ;;  %v5993_v63 = vpop.f32.mrf.mxu1 }
 0x687   : > { %v15339_v45 = vadd.f32 %v6656_v14, %v6299_v11  ;;  %v15341_v46 = vpop.f32.mrf.mxu0 }
 0x688   : > { %10361 = vmatmul.msk.f32.gmra.mxu1 %vm543_vm1, %v5735_v24 }
 0x689   : > { %10410 = vmatmul.msk.f32.gmra.mxu2 %vm543_vm1, %v6804_v26  ;;  %v6402_v26 = vld [vmem:[#allocation2 + $0x191] sm:$0xff] }
 0x68a   : > { %10460 = vmatmul.msk.f32.gmra.mxu3 %vm543_vm1, %v6401_v60  ;;  %10510 = vmatmul.msk.f32.gmra.mxu0 %vm543_vm1, %v6807_v18  ;;  %v7168_v60 = vld [vmem:[#allocation2 + $0x38] sm:$0xff] }
 0x68b   : > { %v7574_v18 = vld [vmem:[#allocation2 + $0x39] sm:$0xff] }
 0x68c   : > { %v6301_v37 = vpop.f32.mrf.mxu2 }
 0x68d   : > { %v6302_v38 = vadd.f32 %v6301_v37, %v5993_v63  ;;  %v6659_v4 = vpop.f32.mrf.mxu3  ;;  %v5996_v32 = vpop.f32.mrf.mxu1  ;;  %v7980_v37 = vld [vmem:[#allocation2 + $0x4f] sm:$0xff] }
 0x68f   : > { %v15351_v29 = vadd.f32 %v6659_v4, %v6302_v38  ;;  %v15353_v48 = vpop.f32.mrf.mxu0  ;;  %v8386_v38 = vld [vmem:[#allocation2 + $0x50] sm:$0xff] }
 0x690   : > { %10362 = vmatmul.msk.f32.gmra.mxu1 %vm543_vm1, %v5736_v17 }
 0x691   : > { %10411 = vmatmul.msk.f32.gmra.mxu2 %vm543_vm1, %v6805_v19  ;;  %v7573_v19 = vld [vmem:[#allocation2 + $0x31] sm:$0xff] }
 0x692   : > { %10461 = vmatmul.msk.f32.gmra.mxu3 %vm543_vm1, %v6402_v26  ;;  %10511 = vmatmul.msk.f32.gmra.mxu0 %vm543_vm1, %v6808_v34 }
 0x694   : > { %v6304_v2 = vpop.f32.mrf.mxu2 }
 0x695   : > { %v6305_v1 = vadd.f32 %v6304_v2, %v5996_v32  ;;  %v6662_v61 = vpop.f32.mrf.mxu3  ;;  %v5999_v57 = vpop.f32.mrf.mxu1  ;;  %v15385_v32 = vadd.f32 %v15309_v7, %v15327_v28  ;;  %v7169_v2 = vld [vmem:[#allocation2 + $0x40] sm:$0xff] }
 0x697   : > { %v15363_v42 = vadd.f32 %v6662_v61, %v6305_v1  ;;  %v15365_v35 = vpop.f32.mrf.mxu0  ;;  %v7575_v1 = vld [vmem:[#allocation2 + $0x41] sm:$0xff]  ;;  %v7981_v61 = vld [vmem:[#allocation2 + $0x57] sm:$0xff] }
 0x698   : > { %10514 = vmatmul.msk.f32.vlgmr.msrb.gmra.mxu1 %vm543_vm1, %v7167_v41 }
 0x699   : > { %10564 = vmatmul.msk.f32.vlgmr.msra.gmra.mxu2 %vm543_vm1, %v7573_v19 }
 0x69a   : > { %10614 = vmatmul.msk.f32.vlgmr.msra.gmra.mxu3 %vm543_vm1, %v7979_v30  ;;  %10664 = vmatmul.msk.f32.vlgmr.msra.gmra.mxu0 %vm543_vm1, %v8385_v12  ;;  %v15397_v30 = vadd.f32 %v15329_v16, %v15339_v45 }
 0x69c   : > { %v6307_v3 = vpop.f32.mrf.mxu2 }
 0x69d   : > { %v6308_v23 = vadd.f32 %v6307_v3, %v5999_v57  ;;  %v6665_v11 = vpop.f32.mrf.mxu3  ;;  %v6002_v14 = vpop.f32.mrf.mxu1  ;;  %v8387_v57 = vld [vmem:[#allocation2 + $0x58] sm:$0xff] }
 0x69f   : > { %v15375_v63 = vadd.f32 %v6665_v11, %v6308_v23  ;;  %v15377_v24 = vpop.f32.mrf.mxu0  ;;  %v7576_v11 = vld [vmem:[#allocation2 + $0x49] sm:$0xff] }
 0x6a0   : > { %10515 = vmatmul.msk.f32.gmra.mxu1 %vm543_vm1, %v7168_v60  ;;  %v8388_v60 = vld [vmem:[#allocation2 + $0x60] sm:$0xff] }
 0x6a1   : > { %10565 = vmatmul.msk.f32.gmra.mxu2 %vm543_vm1, %v7574_v18 }
 0x6a2   : > { %10615 = vmatmul.msk.f32.gmra.mxu3 %vm543_vm1, %v7980_v37  ;;  %10665 = vmatmul.msk.f32.gmra.mxu0 %vm543_vm1, %v8386_v38 }
 0x6a4   : > { %v6310_v40 = vpop.f32.mrf.mxu2 }
 0x6a5   : > { %v6311_v59 = vadd.f32 %v6310_v40, %v6002_v14  ;;  %v6668_v4 = vpop.f32.mrf.mxu3  ;;  %v6005_v17 = vpop.f32.mrf.mxu1  ;;  %v7982_v14 = vld [vmem:[#allocation2 + $0x5f] sm:$0xff] }
 0x6a7   : > { %v15387_v26 = vadd.f32 %v6668_v4, %v6311_v59  ;;  %v15389_v34 = vpop.f32.mrf.mxu0  ;;  %v15411_v59 = vadd.f32 %v15341_v46, %v15351_v29  ;;  %v7578_v29 = vld [vmem:[#allocation2 + $0x59] sm:$0xff] }
 0x6a8   : > { %10516 = vmatmul.msk.f32.gmra.mxu1 %vm543_vm1, %v7169_v2  ;;  %v8389_v2 = vld [vmem:[#allocation2 + $0x68] sm:$0xff] }
 0x6a9   : > { %10566 = vmatmul.msk.f32.gmra.mxu2 %vm543_vm1, %v7575_v1 }
 0x6aa   : > { %10616 = vmatmul.msk.f32.gmra.mxu3 %vm543_vm1, %v7981_v61  ;;  %10666 = vmatmul.msk.f32.gmra.mxu0 %vm543_vm1, %v8387_v57 }
 0x6ac   : > { %v6313_v41 = vpop.f32.mrf.mxu2 }
 0x6ad   : > { %v6314_v7 = vadd.f32 %v6313_v41, %v6005_v17  ;;  %v6671_v28 = vpop.f32.mrf.mxu3  ;;  %v6008_v19 = vpop.f32.mrf.mxu1  ;;  %v7983_v17 = vld [vmem:[#allocation2 + $0x67] sm:$0xff] }
 0x6af   : > { %v15399_v3 = vadd.f32 %v6671_v28, %v6314_v7  ;;  %v15401_v23 = vpop.f32.mrf.mxu0 }
 0x6b0   : > { %10517 = vmatmul.msk.f32.gmra.mxu1 %vm543_vm1, %v8385_v12  ;;  %v7577_v12 = vld [vmem:[#allocation2 + $0x51] sm:$0xff] }
 0x6b1   : > { %10567 = vmatmul.msk.f32.gmra.mxu2 %vm543_vm1, %v7576_v11  ;;  %v8390_v11 = vld [vmem:[#allocation2 + $0x70] sm:$0xff] }
 0x6b2   : > { %10617 = vmatmul.msk.f32.gmra.mxu3 %vm543_vm1, %v7982_v14  ;;  %10667 = vmatmul.msk.f32.gmra.mxu0 %vm543_vm1, %v8388_v60 }
 0x6b4   : > { %v6316_v18 = vpop.f32.mrf.mxu2 }
 0x6b5   : > { %v6317_v37 = vadd.f32 %v6316_v18, %v6008_v19  ;;  %v6674_v40 = vpop.f32.mrf.mxu3  ;;  %v6011_v16 = vpop.f32.mrf.mxu1  ;;  %v7984_v19 = vld [vmem:[#allocation2 + $0x6f] sm:$0xff] }
 0x6b7   : > { %v15407_v45 = vadd.f32 %v6674_v40, %v6317_v37  ;;  %v15413_v4 = vpop.f32.mrf.mxu0 }
 0x6b8   : > { %10518 = vmatmul.msk.f32.gmra.mxu1 %vm543_vm1, %v8386_v38  ;;  %v15425_v38 = vadd.f32 %v15353_v48, %v15363_v42  ;;  %v7579_v48 = vld [vmem:[#allocation2 + $0x61] sm:$0xff]  ;;  %v15437_v42 = vadd.f32 %v15365_v35, %v15375_v63  ;;  %v7580_v35 = vld [vmem:[#allocation2 + $0x69] sm:$0xff]  ;;  %v15449_v63 = vadd.f32 %v15377_v24, %v15387_v26  ;;  %v7581_v24 = vld [vmem:[#allocation2 + $0x71] sm:$0xff] }
 0x6b9   : > { %10568 = vmatmul.msk.f32.gmra.mxu2 %vm543_vm1, %v7577_v12  ;;  %v7987_v26 = vld [vmem:[#allocation2 + $0x87] sm:$0xff] }
 0x6ba   : > { %10618 = vmatmul.msk.f32.gmra.mxu3 %vm543_vm1, %v7983_v17  ;;  %10668 = vmatmul.msk.f32.gmra.mxu0 %vm543_vm1, %v8389_v2  ;;  %v8391_v17 = vld [vmem:[#allocation2 + $0x78] sm:$0xff] }
 0x6bc   : > { %v6319_v1 = vpop.f32.mrf.mxu2 }
 0x6bd   : > { %v6320_v61 = vadd.f32 %v6319_v1, %v6011_v16  ;;  %v6677_v41 = vpop.f32.mrf.mxu3  ;;  %v6014_v7 = vpop.f32.mrf.mxu1 }
 0x6bf   : > { %v15419_v28 = vadd.f32 %v6677_v41, %v6320_v61  ;;  %v15421_v46 = vpop.f32.mrf.mxu0 }
 0x6c0   : > { %10519 = vmatmul.msk.f32.gmra.mxu1 %vm543_vm1, %v8387_v57  ;;  %v7985_v57 = vld [vmem:[#allocation2 + $0x77] sm:$0xff] }
 0x6c1   : > { %10569 = vmatmul.msk.f32.gmra.mxu2 %vm543_vm1, %v7578_v29 }
 0x6c2   : > { %10619 = vmatmul.msk.f32.gmra.mxu3 %vm543_vm1, %v7984_v19  ;;  %10669 = vmatmul.msk.f32.gmra.mxu0 %vm543_vm1, %v8390_v11 }
 0x6c4   : > { %v6322_v14 = vpop.f32.mrf.mxu2 }
 0x6c5   : > { %v6323_v18 = vadd.f32 %v6322_v14, %v6014_v7  ;;  %v6680_v37 = vpop.f32.mrf.mxu3  ;;  %v6017_v40 = vpop.f32.mrf.mxu1  ;;  %v8392_v14 = vld [vmem:[#allocation2 + $0x80] sm:$0xff] }
 0x6c7   : > { %v15431_v16 = vadd.f32 %v6680_v37, %v6323_v18  ;;  %v15433_v12 = vpop.f32.mrf.mxu0 }
 0x6c8   : > { %10520 = vmatmul.msk.f32.gmra.mxu1 %vm543_vm1, %v8388_v60  ;;  %v7986_v60 = vld [vmem:[#allocation2 + $0x7f] sm:$0xff] }
 0x6c9   : > { %10570 = vmatmul.msk.f32.gmra.mxu2 %vm543_vm1, %v7579_v48 }
 0x6ca   : > { %10620 = vmatmul.msk.f32.gmra.mxu3 %vm543_vm1, %v7985_v57  ;;  %10670 = vmatmul.msk.f32.gmra.mxu0 %vm543_vm1, %v8391_v17 }
 0x6cc   : > { %v6325_v1 = vpop.f32.mrf.mxu2 }
 0x6cd   : > { %v6326_v61 = vadd.f32 %v6325_v1, %v6017_v40  ;;  %v6683_v41 = vpop.f32.mrf.mxu3  ;;  %v6020_v7 = vpop.f32.mrf.mxu1 }
 0x6cf   : > { %v15443_v29 = vadd.f32 %v6683_v41, %v6326_v61  ;;  %v15445_v19 = vpop.f32.mrf.mxu0  ;;  %v8393_v61 = vld [vmem:[#allocation2 + $0x88] sm:$0xff] }
 0x6d0   : > { %10521 = vmatmul.msk.f32.gmra.mxu1 %vm543_vm1, %v8389_v2  ;;  %v15463_v2 = vadd.f32 %v15389_v34, %v15399_v3  ;;  %v7988_v34 = vld [vmem:[#allocation2 + $0x8f] sm:$0xff]  ;;  %v15475_v3 = vadd.f32 %v15401_v23, %v15407_v45  ;;  %v7989_v23 = vld [vmem:[#allocation2 + $0x97] sm:$0xff]  ;;  %v15487_v45 = vadd.f32 %v15413_v4, %v15419_v28  ;;  %v7990_v4 = vld [vmem:[#allocation2 + $0x9f] sm:$0xff] }
 0x6d1   : > { %10571 = vmatmul.msk.f32.gmra.mxu2 %vm543_vm1, %v7580_v35  ;;  %v8396_v28 = vld [vmem:[#allocation2 + $0xa0] sm:$0xff] }
 0x6d2   : > { %10621 = vmatmul.msk.f32.gmra.mxu3 %vm543_vm1, %v7986_v60  ;;  %10671 = vmatmul.msk.f32.gmra.mxu0 %vm543_vm1, %v8392_v14  ;;  %18092 = vst [vmem:[#allocation66_spill] sm:$0xff] %v15463_v2 }
 0x6d3   : > { %18093 = vst [vmem:[#allocation72_spill] sm:$0xff] %v15475_v3 }
 0x6d4   : > { %v6328_v18 = vpop.f32.mrf.mxu2  ;;  %18094 = vst [vmem:[#allocation73_spill] sm:$0xff] %v15487_v45 }
 0x6d5   : > { %v6329_v37 = vadd.f32 %v6328_v18, %v6020_v7  ;;  %v6686_v40 = vpop.f32.mrf.mxu3  ;;  %v6023_v48 = vpop.f32.mrf.mxu1 }
 0x6d7   : > { %v15455_v57 = vadd.f32 %v6686_v40, %v6329_v37  ;;  %v15457_v1 = vpop.f32.mrf.mxu0  ;;  %v8394_v40 = vld [vmem:[#allocation2 + $0x90] sm:$0xff] }
 0x6d8   : > { %10522 = vmatmul.msk.f32.gmra.mxu1 %vm543_vm1, %v8390_v11  ;;  %v7582_v11 = vld [vmem:[#allocation2 + $0x79] sm:$0xff] }
 0x6d9   : > { %10572 = vmatmul.msk.f32.gmra.mxu2 %vm543_vm1, %v7581_v24 }
 0x6da   : > { %10622 = vmatmul.msk.f32.gmra.mxu3 %vm543_vm1, %v7987_v26  ;;  %10672 = vmatmul.msk.f32.gmra.mxu0 %vm543_vm1, %v8393_v61 }
 0x6dc   : > { %v6331_v41 = vpop.f32.mrf.mxu2 }
 0x6dd   : > { %v6332_v7 = vadd.f32 %v6331_v41, %v6023_v48  ;;  %v6689_v35 = vpop.f32.mrf.mxu3  ;;  %v6026_v60 = vpop.f32.mrf.mxu1 }
 0x6df   : > { %v15467_v18 = vadd.f32 %v6689_v35, %v6332_v7  ;;  %v15469_v37 = vpop.f32.mrf.mxu0 }
 0x6e0   : > { %10523 = vmatmul.msk.f32.gmra.mxu1 %vm543_vm1, %v8391_v17  ;;  %v7583_v17 = vld [vmem:[#allocation2 + $0x81] sm:$0xff] }
 0x6e1   : > { %10573 = vmatmul.msk.f32.gmra.mxu2 %vm543_vm1, %v7582_v11  ;;  %v8395_v11 = vld [vmem:[#allocation2 + $0x98] sm:$0xff] }
 0x6e2   : > { %10623 = vmatmul.msk.f32.gmra.mxu3 %vm543_vm1, %v7988_v34  ;;  %10673 = vmatmul.msk.f32.gmra.mxu0 %vm543_vm1, %v8394_v40 }
 0x6e4   : > { %v6334_v48 = vpop.f32.mrf.mxu2 }
 0x6e5   : > { %v6335_v24 = vadd.f32 %v6334_v48, %v6026_v60  ;;  %v6692_v26 = vpop.f32.mrf.mxu3  ;;  %v6029_v41 = vpop.f32.mrf.mxu1 }
 0x6e7   : > { %v15479_v7 = vadd.f32 %v6692_v26, %v6335_v24  ;;  %v15481_v35 = vpop.f32.mrf.mxu0 }
 0x6e8   : > { %10524 = vmatmul.msk.f32.gmra.mxu1 %vm543_vm1, %v8392_v14  ;;  %v7584_v14 = vld [vmem:[#allocation2 + $0x89] sm:$0xff] }
 0x6e9   : > { %10574 = vmatmul.msk.f32.gmra.mxu2 %vm543_vm1, %v7583_v17  ;;  %v15500_v17 = vadd.f32 %v15421_v46, %v15431_v16  ;;  %v8397_v46 = vld [vmem:[#allocation2 + $0xa8] sm:$0xff]  ;;  %v15513_v16 = vadd.f32 %v15433_v12, %v15443_v29  ;;  %v15525_v29 = vadd.f32 %v15445_v19, %v15455_v57  ;;  %v15537_v57 = vadd.f32 %v15457_v1, %v15467_v18 }
 0x6ea   : > { %10624 = vmatmul.msk.f32.gmra.mxu3 %vm543_vm1, %v7989_v23  ;;  %10674 = vmatmul.msk.f32.gmra.mxu0 %vm543_vm1, %v8395_v11  ;;  %v15549_v18 = vadd.f32 %v15469_v37, %v15479_v7 }
 0x6eb   : > { %18095 = vst [vmem:[#allocation67_spill] sm:$0xff] %v15500_v17 }
 0x6ec   : > { %v6337_v60 = vpop.f32.mrf.mxu2  ;;  %18096 = vst [vmem:[#allocation68_spill] sm:$0xff] %v15513_v16 }
 0x6ed   : > { %v6338_v34 = vadd.f32 %v6337_v60, %v6029_v41  ;;  %v6695_v48 = vpop.f32.mrf.mxu3  ;;  %v6032_v24 = vpop.f32.mrf.mxu1  ;;  %18097 = vst [vmem:[#allocation70_spill] sm:$0xff] %v15525_v29 }
 0x6ee   : > { %18098 = vst [vmem:[#allocation74_spill] sm:$0xff] %v15537_v57 }
 0x6ef   : > { %v15491_v26 = vadd.f32 %v6695_v48, %v6338_v34  ;;  %v15493_v3 = vpop.f32.mrf.mxu0  ;;  %18099 = vst [vmem:[#allocation75_spill] sm:$0xff] %v15549_v18  ;;  %v8824_v18 = vld [vmem:[#allocation2 + $0x151] sm:$0xff] }
 0x6f0   : > { %10525 = vmatmul.msk.f32.gmra.mxu1 %vm543_vm1, %v8393_v61  ;;  %v7585_v61 = vld [vmem:[#allocation2 + $0x91] sm:$0xff] }
 0x6f1   : > { %10575 = vmatmul.msk.f32.gmra.mxu2 %vm543_vm1, %v7584_v14  ;;  %v7991_v14 = vld [vmem:[#allocation2 + $0xa7] sm:$0xff] }
 0x6f2   : > { %10625 = vmatmul.msk.f32.gmra.mxu3 %vm543_vm1, %v7990_v4  ;;  %10675 = vmatmul.msk.f32.gmra.mxu0 %vm543_vm1, %v8396_v28 }
 0x6f4   : > { %v6340_v41 = vpop.f32.mrf.mxu2 }
 0x6f5   : > { %v6341_v23 = vadd.f32 %v6340_v41, %v6032_v24  ;;  %v6698_v60 = vpop.f32.mrf.mxu3  ;;  %v6035_v34 = vpop.f32.mrf.mxu1 }
 0x6f7   : > { %v15503_v48 = vadd.f32 %v6698_v60, %v6341_v23  ;;  %v15505_v45 = vpop.f32.mrf.mxu0 }
 0x6f8   : > { %10526 = vmatmul.msk.f32.gmra.mxu1 %vm543_vm1, %v8394_v40  ;;  %v7586_v40 = vld [vmem:[#allocation2 + $0x99] sm:$0xff] }
 0x6f9   : > { %10576 = vmatmul.msk.f32.gmra.mxu2 %vm543_vm1, %v7585_v61  ;;  %v7992_v61 = vld [vmem:[#allocation2 + $0xaf] sm:$0xff] }
 0x6fa   : > { %10626 = vmatmul.msk.f32.gmra.mxu3 %vm543_vm1, %v7991_v14  ;;  %10676 = vmatmul.msk.f32.gmra.mxu0 %vm543_vm1, %v8397_v46  ;;  %v8398_v14 = vld [vmem:[#allocation2 + $0xb0] sm:$0xff] }
 0x6fc   : > { %v6343_v24 = vpop.f32.mrf.mxu2 }
 0x6fd   : > { %v6344_v4 = vadd.f32 %v6343_v24, %v6035_v34  ;;  %v6701_v41 = vpop.f32.mrf.mxu3  ;;  %v6038_v23 = vpop.f32.mrf.mxu1 }
 0x6ff   : > { %v15515_v60 = vadd.f32 %v6701_v41, %v6344_v4  ;;  %v15517_v17 = vpop.f32.mrf.mxu0 }
 0x700   : > { %10527 = vmatmul.msk.f32.gmra.mxu1 %vm543_vm1, %v8395_v11  ;;  %v7587_v11 = vld [vmem:[#allocation2 + $0xa1] sm:$0xff] }
 0x701   : > { %10577 = vmatmul.msk.f32.gmra.mxu2 %vm543_vm1, %v7586_v40  ;;  %v7993_v40 = vld [vmem:[#allocation2 + $0xb7] sm:$0xff] }
 0x702   : > { %10627 = vmatmul.msk.f32.gmra.mxu3 %vm543_vm1, %v7992_v61  ;;  %10677 = vmatmul.msk.f32.gmra.mxu0 %vm543_vm1, %v8398_v14  ;;  %v8399_v61 = vld [vmem:[#allocation2 + $0xb8] sm:$0xff] }
 0x704   : > { %v6346_v12 = vpop.f32.mrf.mxu2 }
 0x705   : > { %v6347_v34 = vadd.f32 %v6346_v12, %v6038_v23  ;;  %v6704_v24 = vpop.f32.mrf.mxu3  ;;  %v6041_v4 = vpop.f32.mrf.mxu1 }
 0x707   : > { %v15527_v41 = vadd.f32 %v6704_v24, %v6347_v34  ;;  %v15529_v16 = vpop.f32.mrf.mxu0 }
 0x708   : > { %10528 = vmatmul.msk.f32.gmra.mxu1 %vm543_vm1, %v8396_v28  ;;  %v7588_v28 = vld [vmem:[#allocation2 + $0xa9] sm:$0xff] }
 0x709   : > { %10578 = vmatmul.msk.f32.gmra.mxu2 %vm543_vm1, %v7587_v11  ;;  %v7994_v11 = vld [vmem:[#allocation2 + $0xbf] sm:$0xff] }
 0x70a   : > { %10628 = vmatmul.msk.f32.gmra.mxu3 %vm543_vm1, %v7993_v40  ;;  %10678 = vmatmul.msk.f32.gmra.mxu0 %vm543_vm1, %v8399_v61  ;;  %v8400_v40 = vld [vmem:[#allocation2 + $0xc0] sm:$0xff] }
 0x70c   : > { %v6349_v19 = vpop.f32.mrf.mxu2 }
 0x70d   : > { %v6350_v23 = vadd.f32 %v6349_v19, %v6041_v4  ;;  %v6707_v12 = vpop.f32.mrf.mxu3  ;;  %v6044_v34 = vpop.f32.mrf.mxu1 }
 0x70f   : > { %v15539_v24 = vadd.f32 %v6707_v12, %v6350_v23  ;;  %v15541_v29 = vpop.f32.mrf.mxu0 }
 0x710   : > { %10529 = vmatmul.msk.f32.gmra.mxu1 %vm543_vm1, %v8397_v46  ;;  %v7589_v46 = vld [vmem:[#allocation2 + $0xb1] sm:$0xff] }
 0x711   : > { %10579 = vmatmul.msk.f32.gmra.mxu2 %vm543_vm1, %v7588_v28  ;;  %v7995_v28 = vld [vmem:[#allocation2 + $0xc7] sm:$0xff] }
 0x712   : > { %10629 = vmatmul.msk.f32.gmra.mxu3 %vm543_vm1, %v7994_v11  ;;  %10679 = vmatmul.msk.f32.gmra.mxu0 %vm543_vm1, %v8400_v40  ;;  %v8401_v11 = vld [vmem:[#allocation2 + $0xc8] sm:$0xff] }
 0x714   : > { %v6352_v1 = vpop.f32.mrf.mxu2 }
 0x715   : > { %v6353_v4 = vadd.f32 %v6352_v1, %v6044_v34  ;;  %v6710_v19 = vpop.f32.mrf.mxu3  ;;  %v7381_v23 = vpop.f32.mrf.mxu1  ;;  %v15562_v1 = vadd.f32 %v15481_v35, %v15491_v26 }
 0x716   : > { %v7525_v2 = vadd.f32 %v7381_v23, %v15118_v31  ;;  %v7996_v31 = vld [vmem:[#allocation2 + $0xcf] sm:$0xff] }
 0x717   : > { %v15551_v12 = vadd.f32 %v6710_v19, %v6353_v4  ;;  %v15553_v57 = vpop.f32.mrf.mxu0  ;;  %18100 = vst [vmem:[#allocation76_spill] sm:$0xff] %v15562_v1  ;;  %v8402_v23 = vld [vmem:[#allocation2 + $0xd0] sm:$0xff]  ;;  %v8822_v1 = vld [vmem:[#allocation2 + $0x141] sm:$0xff] }
 0x718   : > { %10530 = vmatmul.msk.f32.gmra.mxu1 %vm543_vm1, %v8398_v14 }
 0x719   : > { %10580 = vmatmul.msk.f32.gmra.mxu2 %vm543_vm1, %v7589_v46  ;;  %v7590_v46 = vld [vmem:[#allocation2 + $0xb9] sm:$0xff] }
 0x71a   : > { %10630 = vmatmul.msk.f32.gmra.mxu3 %vm543_vm1, %v7995_v28  ;;  %10680 = vmatmul.msk.f32.gmra.mxu0 %vm543_vm1, %v8401_v11 }
 0x71c   : > { %v7787_v37 = vpop.f32.mrf.mxu2 }
 0x71d   : > { %v7931_v7 = vadd.f32 %v7787_v37, %v7525_v2  ;;  %v8193_v34 = vpop.f32.mrf.mxu3  ;;  %v7384_v4 = vpop.f32.mrf.mxu1  ;;  %v15575_v37 = vadd.f32 %v15493_v3, %v15503_v48 }
 0x71e   : > { %v7526_v2 = vadd.f32 %v7384_v4, %v15125_v22  ;;  %v7997_v22 = vld [vmem:[#allocation2 + $0xd7] sm:$0xff] }
 0x71f   : > { %v15564_v19 = vadd.f32 %v8193_v34, %v7931_v7  ;;  %v15566_v14 = vpop.f32.mrf.mxu0  ;;  %18101 = vst [vmem:[#allocation69_spill] sm:$0xff] %v15575_v37  ;;  %v8403_v4 = vld [vmem:[#allocation2 + $0xd8] sm:$0xff] }
 0x720   : > { %10531 = vmatmul.msk.f32.gmra.mxu1 %vm543_vm1, %v8399_v61  ;;  %v8820_v37 = vld [vmem:[#allocation2 + $0x131] sm:$0xff] }
 0x721   : > { %10581 = vmatmul.msk.f32.gmra.mxu2 %vm543_vm1, %v7590_v46  ;;  %v7591_v46 = vld [vmem:[#allocation2 + $0xc1] sm:$0xff] }
 0x722   : > { %10631 = vmatmul.msk.f32.gmra.mxu3 %vm543_vm1, %v7996_v31  ;;  %10681 = vmatmul.msk.f32.gmra.mxu0 %vm543_vm1, %v8402_v23 }
 0x724   : > { %v7790_v35 = vpop.f32.mrf.mxu2 }
 0x725   : > { %v7932_v26 = vadd.f32 %v7790_v35, %v7526_v2  ;;  %v8196_v28 = vpop.f32.mrf.mxu3  ;;  %v7387_v7 = vpop.f32.mrf.mxu1  ;;  %v15588_v35 = vadd.f32 %v15505_v45, %v15515_v60 }
 0x726   : > { %v7527_v31 = vadd.f32 %v7387_v7, %v15132_v5  ;;  %v7998_v5 = vld [vmem:[#allocation2 + $0xdf] sm:$0xff] }
 0x727   : > { %v15577_v34 = vadd.f32 %v8196_v28, %v7932_v26  ;;  %v15579_v61 = vpop.f32.mrf.mxu0  ;;  %18102 = vst [vmem:[#allocation71_spill] sm:$0xff] %v15588_v35  ;;  %v8404_v7 = vld [vmem:[#allocation2 + $0xe0] sm:$0xff] }
 0x728   : > { %10532 = vmatmul.msk.f32.gmra.mxu1 %vm543_vm1, %v8400_v40  ;;  %v8818_v35 = vld [vmem:[#allocation2 + $0x121] sm:$0xff] }
 0x729   : > { %10582 = vmatmul.msk.f32.gmra.mxu2 %vm543_vm1, %v7591_v46  ;;  %v7592_v46 = vld [vmem:[#allocation2 + $0xc9] sm:$0xff] }
 0x72a   : > { %10632 = vmatmul.msk.f32.gmra.mxu3 %vm543_vm1, %v7997_v22  ;;  %10682 = vmatmul.msk.f32.gmra.mxu0 %vm543_vm1, %v8403_v4 }
 0x72c   : > { %v7793_v3 = vpop.f32.mrf.mxu2 }
 0x72d   : > { %v7933_v48 = vadd.f32 %v7793_v3, %v7527_v31  ;;  %v8199_v2 = vpop.f32.mrf.mxu3  ;;  %v7390_v26 = vpop.f32.mrf.mxu1 }
 0x72e   : > { %v7528_v22 = vadd.f32 %v7390_v26, %v15138_v54  ;;  %v7999_v54 = vld [vmem:[#allocation2 + $0xe7] sm:$0xff] }
 0x72f   : > { %v15590_v28 = vadd.f32 %v8199_v2, %v7933_v48  ;;  %v15592_v40 = vpop.f32.mrf.mxu0  ;;  %v15601_v48 = vadd.f32 %v15517_v17, %v15527_v41  ;;  %v8405_v26 = vld [vmem:[#allocation2 + $0xe8] sm:$0xff] }
 0x730   : > { %10533 = vmatmul.msk.f32.gmra.mxu1 %vm543_vm1, %v8401_v11 }
 0x731   : > { %10583 = vmatmul.msk.f32.gmra.mxu2 %vm543_vm1, %v7592_v46  ;;  %18103 = vst [vmem:[#allocation77_spill] sm:$0xff] %v15601_v48  ;;  %v7593_v46 = vld [vmem:[#allocation2 + $0xd1] sm:$0xff] }
 0x732   : > { %10633 = vmatmul.msk.f32.gmra.mxu3 %vm543_vm1, %v7998_v5  ;;  %10683 = vmatmul.msk.f32.gmra.mxu0 %vm543_vm1, %v8404_v7  ;;  %v8816_v48 = vld [vmem:[#allocation2 + $0x111] sm:$0xff] }
 0x734   : > { %v7796_v45 = vpop.f32.mrf.mxu2 }
 0x735   : > { %v7934_v60 = vadd.f32 %v7796_v45, %v7528_v22  ;;  %v8202_v31 = vpop.f32.mrf.mxu3  ;;  %v7393_v3 = vpop.f32.mrf.mxu1 }
 0x736   : > { %v7529_v5 = vadd.f32 %v7393_v3, %v15144_v9  ;;  %v8000_v9 = vld [vmem:[#allocation2 + $0xef] sm:$0xff] }
 0x737   : > { %v15603_v2 = vadd.f32 %v8202_v31, %v7934_v60  ;;  %v15605_v11 = vpop.f32.mrf.mxu0  ;;  %v15614_v60 = vadd.f32 %v15529_v16, %v15539_v24  ;;  %v8406_v3 = vld [vmem:[#allocation2 + $0xf0] sm:$0xff] }
 0x738   : > { %10534 = vmatmul.msk.f32.gmra.mxu1 %vm543_vm1, %v8402_v23  ;;  %v7594_v23 = vld [vmem:[#allocation2 + $0xd9] sm:$0xff] }
 0x739   : > { %10584 = vmatmul.msk.f32.gmra.mxu2 %vm543_vm1, %v7593_v46  ;;  %18104 = vst [vmem:[#allocation79_spill] sm:$0xff] %v15614_v60  ;;  %v8814_v60 = vld [vmem:[#allocation2 + $0x101] sm:$0xff] }
 0x73a   : > { %10634 = vmatmul.msk.f32.gmra.mxu3 %vm543_vm1, %v7999_v54  ;;  %10684 = vmatmul.msk.f32.gmra.mxu0 %vm543_vm1, %v8405_v26 }
 0x73c   : > { %v7799_v22 = vpop.f32.mrf.mxu2 }
 0x73d   : > { %v7935_v17 = vadd.f32 %v7799_v22, %v7529_v5  ;;  %v8205_v41 = vpop.f32.mrf.mxu3  ;;  %v7396_v45 = vpop.f32.mrf.mxu1 }
 0x73e   : > { %v7530_v54 = vadd.f32 %v7396_v45, %v15150_v15  ;;  %v8407_v15 = vld [vmem:[#allocation2 + $0xf8] sm:$0xff] }
 0x73f   : > { %v15616_v31 = vadd.f32 %v8205_v41, %v7935_v17  ;;  %v15618_v46 = vpop.f32.mrf.mxu0  ;;  %v15627_v17 = vadd.f32 %v15541_v29, %v15551_v12 }
 0x740   : > { %10535 = vmatmul.msk.f32.gmra.mxu1 %vm543_vm1, %v8403_v4  ;;  %v7595_v4 = vld [vmem:[#allocation2 + $0xe1] sm:$0xff] }
 0x741   : > { %10585 = vmatmul.msk.f32.gmra.mxu2 %vm543_vm1, %v7594_v23  ;;  %18105 = vst [vmem:[#allocation81_spill] sm:$0xff] %v15627_v17  ;;  %v8001_v23 = vld [vmem:[#allocation2 + $0xf7] sm:$0xff] }
 0x742   : > { %10635 = vmatmul.msk.f32.gmra.mxu3 %vm543_vm1, %v8000_v9  ;;  %10685 = vmatmul.msk.f32.gmra.mxu0 %vm543_vm1, %v8406_v3  ;;  %v8812_v17 = vld [vmem:[#allocation2 + $0xf1] sm:$0xff] }
 0x744   : > { %v7802_v5 = vpop.f32.mrf.mxu2 }
 0x745   : > { %v7936_v16 = vadd.f32 %v7802_v5, %v7530_v54  ;;  %v8208_v24 = vpop.f32.mrf.mxu3  ;;  %v7399_v22 = vpop.f32.mrf.mxu1 }
 0x746   : > { %v7531_v45 = vadd.f32 %v7399_v22, %v15156_v52  ;;  %v8002_v52 = vld [vmem:[#allocation2 + $0xff] sm:$0xff] }
 0x747   : > { %v15629_v41 = vadd.f32 %v8208_v24, %v7936_v16  ;;  %v15635_v9 = vpop.f32.mrf.mxu0  ;;  %v7596_v24 = vld [vmem:[#allocation2 + $0xe9] sm:$0xff]  ;;  %v8408_v22 = vld [vmem:[#allocation2 + $0x100] sm:$0xff] }
 0x748   : > { %10536 = vmatmul.msk.f32.gmra.mxu1 %vm543_vm1, %v8404_v7  ;;  %v15642_v7 = vadd.f32 %v15553_v57, %v15564_v19 }
 0x749   : > { %10586 = vmatmul.msk.f32.gmra.mxu2 %vm543_vm1, %v7595_v4 }
 0x74a   : > { %10636 = vmatmul.msk.f32.gmra.mxu3 %vm543_vm1, %v8001_v23  ;;  %10686 = vmatmul.msk.f32.gmra.mxu0 %vm543_vm1, %v8407_v15 }
 0x74c   : > { %v7805_v54 = vpop.f32.mrf.mxu2 }
 0x74d   : > { %v7937_v29 = vadd.f32 %v7805_v54, %v7531_v45  ;;  %v8211_v12 = vpop.f32.mrf.mxu3  ;;  %v7402_v5 = vpop.f32.mrf.mxu1 }
 0x74e   : > { %v7532_v4 = vadd.f32 %v7402_v5, %v15162_v47  ;;  %v8003_v47 = vld [vmem:[#allocation2 + $0x107] sm:$0xff] }
 0x74f   : > { %v15638_v16 = vadd.f32 %v8211_v12, %v7937_v29  ;;  %v15649_v45 = vpop.f32.mrf.mxu0  ;;  %v7597_v12 = vld [vmem:[#allocation2 + $0xf1] sm:$0xff]  ;;  %v8409_v5 = vld [vmem:[#allocation2 + $0x108] sm:$0xff] }
 0x750   : > { %10537 = vmatmul.msk.f32.gmra.mxu1 %vm543_vm1, %v8405_v26  ;;  %v15655_v26 = vadd.f32 %v15566_v14, %v15577_v34  ;;  %v15668_v34 = vadd.f32 %v15579_v61, %v15590_v28  ;;  %v7599_v61 = vld [vmem:[#allocation2 + $0x101] sm:$0xff]  ;;  %v15679_v28 = vadd.f32 %v15592_v40, %v15603_v2  ;;  %v7600_v2 = vld [vmem:[#allocation2 + $0x109] sm:$0xff] }
 0x751   : > { %10587 = vmatmul.msk.f32.gmra.mxu2 %vm543_vm1, %v7596_v24 }
 0x752   : > { %10637 = vmatmul.msk.f32.gmra.mxu3 %vm543_vm1, %v8002_v52  ;;  %10687 = vmatmul.msk.f32.gmra.mxu0 %vm543_vm1, %v8408_v22 }
 0x754   : > { %v7808_v23 = vpop.f32.mrf.mxu2 }
 0x755   : > { %v7938_v54 = vadd.f32 %v7808_v23, %v7532_v4  ;;  %v8214_v29 = vpop.f32.mrf.mxu3  ;;  %v7405_v57 = vpop.f32.mrf.mxu1 }
 0x756   : > { %v7533_v24 = vadd.f32 %v7405_v57, %v15170_v55  ;;  %v8004_v55 = vld [vmem:[#allocation2 + $0x10f] sm:$0xff] }
 0x757   : > { %v15651_v19 = vadd.f32 %v8214_v29, %v7938_v54  ;;  %v15662_v29 = vpop.f32.mrf.mxu0  ;;  %v8410_v57 = vld [vmem:[#allocation2 + $0x110] sm:$0xff] }
 0x758   : > { %10538 = vmatmul.msk.f32.gmra.mxu1 %vm543_vm1, %v8406_v3  ;;  %v7598_v3 = vld [vmem:[#allocation2 + $0xf9] sm:$0xff] }
 0x759   : > { %10588 = vmatmul.msk.f32.gmra.mxu2 %vm543_vm1, %v7597_v12 }
 0x75a   : > { %10638 = vmatmul.msk.f32.gmra.mxu3 %vm543_vm1, %v8003_v47  ;;  %10688 = vmatmul.msk.f32.gmra.mxu0 %vm543_vm1, %v8409_v5 }
 0x75c   : > { %v7811_v52 = vpop.f32.mrf.mxu2 }
 0x75d   : > { %v7939_v4 = vadd.f32 %v7811_v52, %v7533_v24  ;;  %v8217_v23 = vpop.f32.mrf.mxu3  ;;  %v7408_v54 = vpop.f32.mrf.mxu1 }
 0x75e   : > { %v7534_v12 = vadd.f32 %v7408_v54, %v15177_v21  ;;  %v8005_v21 = vld [vmem:[#allocation2 + $0x117] sm:$0xff] }
 0x75f   : > { %v15664_v14 = vadd.f32 %v8217_v23, %v7939_v4  ;;  %v8411_v54 = vld [vmem:[#allocation2 + $0x118] sm:$0xff] }
 0x760   : > { %10539 = vmatmul.msk.f32.gmra.mxu1 %vm543_vm1, %v8407_v15  ;;  %v15681_v15 = vpop.f32.mrf.mxu0 }
 0x761   : > { %10589 = vmatmul.msk.f32.gmra.mxu2 %vm543_vm1, %v7598_v3 }
 0x762   : > { %10639 = vmatmul.msk.f32.gmra.mxu3 %vm543_vm1, %v8004_v55  ;;  %10689 = vmatmul.msk.f32.gmra.mxu0 %vm543_vm1, %v8410_v57 }
 0x764   : > { %v7814_v47 = vpop.f32.mrf.mxu2 }
 0x765   : > { %v7940_v24 = vadd.f32 %v7814_v47, %v7534_v12  ;;  %v8220_v52 = vpop.f32.mrf.mxu3  ;;  %v7411_v4 = vpop.f32.mrf.mxu1 }
 0x766   : > { %v7535_v3 = vadd.f32 %v7411_v4, %v15184_v49  ;;  %v8412_v49 = vld [vmem:[#allocation2 + $0x120] sm:$0xff] }
 0x767   : > { %v15675_v23 = vadd.f32 %v8220_v52, %v7940_v24  ;;  %v8006_v52 = vld [vmem:[#allocation2 + $0x11f] sm:$0xff] }
 0x768   : > { %10540 = vmatmul.msk.f32.gmra.mxu1 %vm543_vm1, %v8408_v22  ;;  %v15692_v22 = vadd.f32 %v15605_v11, %v15616_v31  ;;  %v15697_v4 = vpop.f32.mrf.mxu0  ;;  %v7601_v31 = vld [vmem:[#allocation2 + $0x111] sm:$0xff] }
 0x769   : > { %10590 = vmatmul.msk.f32.gmra.mxu2 %vm543_vm1, %v7599_v61 }
 0x76a   : > { %10640 = vmatmul.msk.f32.gmra.mxu3 %vm543_vm1, %v8005_v21  ;;  %10690 = vmatmul.msk.f32.gmra.mxu0 %vm543_vm1, %v8411_v54 }
 0x76c   : > { %v7817_v55 = vpop.f32.mrf.mxu2 }
 0x76d   : > { %v7941_v12 = vadd.f32 %v7817_v55, %v7535_v3  ;;  %v8223_v47 = vpop.f32.mrf.mxu3  ;;  %v7414_v24 = vpop.f32.mrf.mxu1 }
 0x76e   : > { %v7536_v61 = vadd.f32 %v7414_v24, %v15190_v25  ;;  %v8413_v25 = vld [vmem:[#allocation2 + $0x128] sm:$0xff] }
 0x76f   : > { %v15688_v40 = vadd.f32 %v8223_v47, %v7941_v12  ;;  %v8007_v47 = vld [vmem:[#allocation2 + $0x127] sm:$0xff] }
 0x770   : > { %10541 = vmatmul.msk.f32.gmra.mxu1 %vm543_vm1, %v8409_v5  ;;  %v15705_v5 = vadd.f32 %v15618_v46, %v15629_v41  ;;  %v7602_v41 = vld [vmem:[#allocation2 + $0x119] sm:$0xff] }
 0x771   : > { %10591 = vmatmul.msk.f32.gmra.mxu2 %vm543_vm1, %v7600_v2 }
 0x772   : > { %10641 = vmatmul.msk.f32.gmra.mxu3 %vm543_vm1, %v8006_v52  ;;  %10691 = vmatmul.msk.f32.gmra.mxu0 %vm543_vm1, %v8412_v49  ;;  %v15712_v52 = vpop.f32.mrf.mxu0 }
 0x774   : > { %v7820_v21 = vpop.f32.mrf.mxu2 }
 0x775   : > { %v7942_v3 = vadd.f32 %v7820_v21, %v7536_v61  ;;  %v8226_v55 = vpop.f32.mrf.mxu3  ;;  %v7417_v12 = vpop.f32.mrf.mxu1 }
 0x776   : > { %v7537_v24 = vadd.f32 %v7417_v12, %v15196_v27  ;;  %v8414_v27 = vld [vmem:[#allocation2 + $0x130] sm:$0xff] }
 0x777   : > { %v15701_v11 = vadd.f32 %v8226_v55, %v7942_v3  ;;  %v15720_v55 = vadd.f32 %v15635_v9, %v15638_v16  ;;  %v8009_v9 = vld [vmem:[#allocation2 + $0x137] sm:$0xff]  ;;  %v15733_v16 = vadd.f32 %v15649_v45, %v15651_v19  ;;  %v8010_v45 = vld [vmem:[#allocation2 + $0x13f] sm:$0xff]  ;;  %v15746_v19 = vadd.f32 %v15662_v29, %v15664_v14  ;;  %v8011_v29 = vld [vmem:[#allocation2 + $0x147] sm:$0xff] }
 0x778   : > { %10542 = vmatmul.msk.f32.gmra.mxu1 %vm543_vm1, %v8410_v57  ;;  %v8008_v57 = vld [vmem:[#allocation2 + $0x12f] sm:$0xff] }
 0x779   : > { %10592 = vmatmul.msk.f32.gmra.mxu2 %vm543_vm1, %v7601_v31  ;;  %v8417_v14 = vld [vmem:[#allocation2 + $0x148] sm:$0xff] }
 0x77a   : > { %10642 = vmatmul.msk.f32.gmra.mxu3 %vm543_vm1, %v8007_v47  ;;  %10692 = vmatmul.msk.f32.gmra.mxu0 %vm543_vm1, %v8413_v25 }
 0x77c   : > { %v7823_v2 = vpop.f32.mrf.mxu2 }
 0x77d   : > { %v7943_v61 = vadd.f32 %v7823_v2, %v7537_v24  ;;  %v8229_v21 = vpop.f32.mrf.mxu3  ;;  %v7420_v3 = vpop.f32.mrf.mxu1 }
 0x77e   : > { %v7538_v12 = vadd.f32 %v7420_v3, %v15202_v39  ;;  %v8415_v39 = vld [vmem:[#allocation2 + $0x138] sm:$0xff] }
 0x77f   : > { %v15714_v46 = vadd.f32 %v8229_v21, %v7943_v61  ;;  %v15725_v61 = vpop.f32.mrf.mxu0  ;;  %v7603_v21 = vld [vmem:[#allocation2 + $0x121] sm:$0xff] }
 0x780   : > { %10543 = vmatmul.msk.f32.gmra.mxu1 %vm543_vm1, %v8411_v54 }
 0x781   : > { %10593 = vmatmul.msk.f32.gmra.mxu2 %vm543_vm1, %v7602_v41 }
 0x782   : > { %10643 = vmatmul.msk.f32.gmra.mxu3 %vm543_vm1, %v8008_v57  ;;  %10693 = vmatmul.msk.f32.gmra.mxu0 %vm543_vm1, %v8414_v27 }
 0x784   : > { %v7826_v31 = vpop.f32.mrf.mxu2 }
 0x785   : > { %v7944_v47 = vadd.f32 %v7826_v31, %v7538_v12  ;;  %v8232_v24 = vpop.f32.mrf.mxu3  ;;  %v7423_v2 = vpop.f32.mrf.mxu1 }
 0x786   : > { %v7539_v3 = vadd.f32 %v7423_v2, %v15208_v13  ;;  %v8416_v13 = vld [vmem:[#allocation2 + $0x140] sm:$0xff] }
 0x787   : > { %v15727_v54 = vadd.f32 %v8232_v24, %v7944_v47  ;;  %v15740_v24 = vpop.f32.mrf.mxu0 }
 0x788   : > { %10544 = vmatmul.msk.f32.gmra.mxu1 %vm543_vm1, %v8412_v49  ;;  %v7604_v49 = vld [vmem:[#allocation2 + $0x129] sm:$0xff] }
 0x789   : > { %10594 = vmatmul.msk.f32.gmra.mxu2 %vm543_vm1, %v7603_v21 }
 0x78a   : > { %10644 = vmatmul.msk.f32.gmra.mxu3 %vm543_vm1, %v8009_v9  ;;  %10694 = vmatmul.msk.f32.gmra.mxu0 %vm543_vm1, %v8415_v39 }
 0x78c   : > { %v7829_v41 = vpop.f32.mrf.mxu2 }
 0x78d   : > { %v7945_v57 = vadd.f32 %v7829_v41, %v7539_v3  ;;  %v8235_v12 = vpop.f32.mrf.mxu3  ;;  %v7426_v31 = vpop.f32.mrf.mxu1 }
 0x78e   : > { %v7540_v2 = vadd.f32 %v7426_v31, %v15218_v0  ;;  %v15758_v0 = vadd.f32 %v15681_v15, %v15675_v23  ;;  %v8418_v23 = vld [vmem:[#allocation2 + $0x150] sm:$0xff] }
 0x78f   : > { %v15738_v47 = vadd.f32 %v8235_v12, %v7945_v57  ;;  %v15760_v12 = vpop.f32.mrf.mxu0 }
 0x790   : > { %10545 = vmatmul.msk.f32.gmra.mxu1 %vm543_vm1, %v8413_v25  ;;  %v7605_v25 = vld [vmem:[#allocation2 + $0x131] sm:$0xff] }
 0x791   : > { %10595 = vmatmul.msk.f32.gmra.mxu2 %vm543_vm1, %v7604_v49 }
 0x792   : > { %10645 = vmatmul.msk.f32.gmra.mxu3 %vm543_vm1, %v8010_v45  ;;  %10695 = vmatmul.msk.f32.gmra.mxu0 %vm543_vm1, %v8416_v13 }
 0x794   : > { %v7832_v21 = vpop.f32.mrf.mxu2 }
 0x795   : > { %v7946_v9 = vadd.f32 %v7832_v21, %v7540_v2  ;;  %v8238_v3 = vpop.f32.mrf.mxu3  ;;  %v7429_v41 = vpop.f32.mrf.mxu1 }
 0x796   : > { %v7541_v31 = vadd.f32 %v7429_v41, %v15228_v51  ;;  %v15771_v51 = vadd.f32 %v15697_v4, %v15688_v40  ;;  %v8419_v40 = vld [vmem:[#allocation2 + $0x158] sm:$0xff] }
 0x797   : > { %v15751_v57 = vadd.f32 %v8238_v3, %v7946_v9  ;;  %v7606_v9 = vld [vmem:[#allocation2 + $0x139] sm:$0xff]  ;;  %v8012_v3 = vld [vmem:[#allocation2 + $0x14f] sm:$0xff] }
 0x798   : > { %10546 = vmatmul.msk.f32.gmra.mxu1 %vm543_vm1, %v8414_v27 }
 0x799   : > { %10596 = vmatmul.msk.f32.gmra.mxu2 %vm543_vm1, %v7605_v25  ;;  %v15775_v25 = vpop.f32.mrf.mxu0 }
 0x79a   : > { %10646 = vmatmul.msk.f32.gmra.mxu3 %vm543_vm1, %v8011_v29  ;;  %10696 = vmatmul.msk.f32.gmra.mxu0 %vm543_vm1, %v8417_v14 }
 0x79c   : > { %v7835_v49 = vpop.f32.mrf.mxu2 }
 0x79d   : > { %v7947_v45 = vadd.f32 %v7835_v49, %v7541_v31  ;;  %v8241_v2 = vpop.f32.mrf.mxu3  ;;  %v7432_v27 = vpop.f32.mrf.mxu1 }
 0x79e   : > { %v7542_v15 = vadd.f32 %v7432_v27, %v15237_v50  ;;  %v15784_v50 = vadd.f32 %v15712_v52, %v15701_v11  ;;  %v8420_v11 = vld [vmem:[#allocation2 + $0x160] sm:$0xff]  ;;  %v15799_v52 = vadd.f32 %v15725_v61, %v15714_v46  ;;  %v15812_v61 = vadd.f32 %v15740_v24, %v15727_v54 }
 0x79f   : > { %v15764_v21 = vadd.f32 %v8241_v2, %v7947_v45  ;;  %v7607_v45 = vld [vmem:[#allocation2 + $0x141] sm:$0xff]  ;;  %v8013_v2 = vld [vmem:[#allocation2 + $0x157] sm:$0xff]  ;;  %v15825_v24 = vadd.f32 %v15760_v12, %v15738_v47  ;;  %v15836_v12 = vadd.f32 %v15775_v25, %v15751_v57 }
 0x7a0   : > { %10547 = vmatmul.msk.f32.gmra.mxu1 %vm543_vm1, %v8415_v39 }
 0x7a1   : > { %10597 = vmatmul.msk.f32.gmra.mxu2 %vm543_vm1, %v7606_v9 }
 0x7a2   : > { %10647 = vmatmul.msk.f32.gmra.mxu3 %vm543_vm1, %v8012_v3  ;;  %10697 = vmatmul.msk.f32.gmra.mxu0 %vm543_vm1, %v8418_v23 }
 0x7a4   : > { %v7838_v41 = vpop.f32.mrf.mxu2 }
 0x7a5   : > { %v7948_v29 = vadd.f32 %v7838_v41, %v7542_v15  ;;  %v8244_v31 = vpop.f32.mrf.mxu3  ;;  %v7435_v39 = vpop.f32.mrf.mxu1 }
 0x7a6   : > { %v7543_v4 = vadd.f32 %v7435_v39, %v15247_v10  ;;  %v15788_v41 = vpop.f32.mrf.mxu0 }
 0x7a7   : > { %v15777_v49 = vadd.f32 %v8244_v31, %v7948_v29  ;;  %v7608_v29 = vld [vmem:[#allocation2 + $0x149] sm:$0xff]  ;;  %v8014_v31 = vld [vmem:[#allocation2 + $0x15f] sm:$0xff]  ;;  %v15847_v25 = vadd.f32 %v15788_v41, %v15764_v21 }
 0x7a8   : > { %10548 = vmatmul.msk.f32.gmra.mxu1 %vm543_vm1, %v8416_v13 }
 0x7a9   : > { %10598 = vmatmul.msk.f32.gmra.mxu2 %vm543_vm1, %v7607_v45 }
 0x7aa   : > { %10648 = vmatmul.msk.f32.gmra.mxu3 %vm543_vm1, %v8013_v2  ;;  %10698 = vmatmul.msk.f32.gmra.mxu0 %vm543_vm1, %v8419_v40 }
 0x7ac   : > { %v7841_v27 = vpop.f32.mrf.mxu2 }
 0x7ad   : > { %v7949_v9 = vadd.f32 %v7841_v27, %v7543_v4  ;;  %v8247_v3 = vpop.f32.mrf.mxu3  ;;  %v7438_v15 = vpop.f32.mrf.mxu1 }
 0x7ae   : > { %v7544_v10 = vadd.f32 %v7438_v15, %v15256_v6  ;;  %v8015_v6 = vld [vmem:[#allocation2 + $0x167] sm:$0xff] }
 0x7af   : > { %v15790_v13 = vadd.f32 %v8247_v3, %v7949_v9  ;;  %v15803_v9 = vpop.f32.mrf.mxu0  ;;  %v8421_v3 = vld [vmem:[#allocation2 + $0x168] sm:$0xff] }
 0x7b0   : > { %10549 = vmatmul.msk.f32.gmra.mxu1 %vm543_vm1, %v8417_v14  ;;  %v7609_v14 = vld [vmem:[#allocation2 + $0x151] sm:$0xff]  ;;  %v15859_v41 = vadd.f32 %v15803_v9, %v15777_v49 }
 0x7b1   : > { %10599 = vmatmul.msk.f32.gmra.mxu2 %vm543_vm1, %v7608_v29 }
 0x7b2   : > { %10649 = vmatmul.msk.f32.gmra.mxu3 %vm543_vm1, %v8014_v31  ;;  %10699 = vmatmul.msk.f32.gmra.mxu0 %vm543_vm1, %v8420_v11 }
 0x7b4   : > { %v7844_v39 = vpop.f32.mrf.mxu2 }
 0x7b5   : > { %v7950_v45 = vadd.f32 %v7844_v39, %v7544_v10  ;;  %v8250_v2 = vpop.f32.mrf.mxu3  ;;  %v7441_v4 = vpop.f32.mrf.mxu1 }
 0x7b6   : > { %v7545_v46 = vadd.f32 %v7441_v4, %v15267_v53  ;;  %v8422_v53 = vld [vmem:[#allocation2 + $0x170] sm:$0xff] }
 0x7b7   : > { %v15801_v27 = vadd.f32 %v8250_v2, %v7950_v45  ;;  %v8016_v45 = vld [vmem:[#allocation2 + $0x16f] sm:$0xff]  ;;  %v15819_v2 = vpop.f32.mrf.mxu0 }
 0x7b8   : > { %10550 = vmatmul.msk.f32.gmra.mxu1 %vm543_vm1, %v8418_v23  ;;  %v7610_v23 = vld [vmem:[#allocation2 + $0x159] sm:$0xff] }
 0x7b9   : > { %10600 = vmatmul.msk.f32.gmra.mxu2 %vm543_vm1, %v7609_v14 }
 0x7ba   : > { %10650 = vmatmul.msk.f32.gmra.mxu3 %vm543_vm1, %v8015_v6  ;;  %10700 = vmatmul.msk.f32.gmra.mxu0 %vm543_vm1, %v8421_v3 }
 0x7bc   : > { %v7847_v15 = vpop.f32.mrf.mxu2 }
 0x7bd   : > { %v7951_v29 = vadd.f32 %v7847_v15, %v7545_v46  ;;  %v8253_v31 = vpop.f32.mrf.mxu3  ;;  %v7444_v10 = vpop.f32.mrf.mxu1  ;;  %v7611_v15 = vld [vmem:[#allocation2 + $0x161] sm:$0xff] }
 0x7be   : > { %v7546_v54 = vadd.f32 %v7444_v10, %v15278_v62  ;;  %v8423_v62 = vld [vmem:[#allocation2 + $0x178] sm:$0xff] }
 0x7bf   : > { %v15814_v39 = vadd.f32 %v8253_v31, %v7951_v29  ;;  %v8017_v29 = vld [vmem:[#allocation2 + $0x177] sm:$0xff]  ;;  %v8656_v10 = vpop.f32.mrf.mxu0 }
 0x7c0   : > { %10551 = vmatmul.msk.f32.gmra.mxu1 %vm543_vm1, %v8419_v40 }
 0x7c1   : > { %10601 = vmatmul.msk.f32.gmra.mxu2 %vm543_vm1, %v7610_v23 }
 0x7c2   : > { %10651 = vmatmul.msk.f32.gmra.mxu3 %vm543_vm1, %v8016_v45  ;;  %10701 = vmatmul.msk.f32.gmra.mxu0 %vm543_vm1, %v8422_v53 }
 0x7c4   : > { %v7850_v4 = vpop.f32.mrf.mxu2 }
 0x7c5   : > { %v7952_v14 = vadd.f32 %v7850_v4, %v7546_v54  ;;  %v8256_v6 = vpop.f32.mrf.mxu3  ;;  %v7447_v40 = vpop.f32.mrf.mxu1  ;;  %v7612_v4 = vld [vmem:[#allocation2 + $0x169] sm:$0xff] }
 0x7c6   : > { %v7547_v31 = vadd.f32 %v7447_v40, %v15294_v36  ;;  %v8424_v36 = vld [vmem:[#allocation2 + $0x180] sm:$0xff] }
 0x7c7   : > { %v15827_v46 = vadd.f32 %v8256_v6, %v7952_v14  ;;  %v8018_v14 = vld [vmem:[#allocation2 + $0x17f] sm:$0xff] }
 0x7c8   : > { %10552 = vmatmul.msk.f32.gmra.mxu1 %vm543_vm1, %v8420_v11 }
 0x7c9   : > { %10602 = vmatmul.msk.f32.gmra.mxu2 %vm543_vm1, %v7611_v15 }
 0x7ca   : > { %10652 = vmatmul.msk.f32.gmra.mxu3 %vm543_vm1, %v8017_v29  ;;  %10702 = vmatmul.msk.f32.gmra.mxu0 %vm543_vm1, %v8423_v62 }
 0x7cc   : > { %v7853_v47 = vpop.f32.mrf.mxu2 }
 0x7cd   : > { %v7953_v23 = vadd.f32 %v7853_v47, %v7547_v31  ;;  %v8259_v45 = vpop.f32.mrf.mxu3  ;;  %v7450_v54 = vpop.f32.mrf.mxu1  ;;  %v7613_v47 = vld [vmem:[#allocation2 + $0x171] sm:$0xff] }
 0x7ce   : > { %v7548_v6 = vadd.f32 %v7450_v54, %v15316_v43  ;;  %v8659_v31 = vpop.f32.mrf.mxu0 }
 0x7cf   : > { %v15838_v11 = vadd.f32 %v8259_v45, %v7953_v23  ;;  %v8019_v23 = vld [vmem:[#allocation2 + $0x187] sm:$0xff] }
 0x7d0   : > { %10553 = vmatmul.msk.f32.gmra.mxu1 %vm543_vm1, %v8421_v3 }
 0x7d1   : > { %10603 = vmatmul.msk.f32.gmra.mxu2 %vm543_vm1, %v7612_v4 }
 0x7d2   : > { %10653 = vmatmul.msk.f32.gmra.mxu3 %vm543_vm1, %v8018_v14  ;;  %10703 = vmatmul.msk.f32.gmra.mxu0 %vm543_vm1, %v8424_v36 }
 0x7d4   : > { %v7856_v57 = vpop.f32.mrf.mxu2 }
 0x7d5   : > { %v7954_v40 = vadd.f32 %v7856_v57, %v7548_v6  ;;  %v8262_v15 = vpop.f32.mrf.mxu3  ;;  %v7453_v29 = vpop.f32.mrf.mxu1 }
 0x7d6   : > { %v7549_v43 = vadd.f32 %v7453_v29, %v15335_v44  ;;  %v8662_v6 = vpop.f32.mrf.mxu0  ;;  %v8020_v44 = vld [vmem:[#allocation2 + $0x18f] sm:$0xff] }
 0x7d7   : > { %v15849_v3 = vadd.f32 %v8262_v15, %v7954_v40  ;;  %v15871_v15 = vadd.f32 %v15819_v2, %v15790_v13 }
 0x7d8   : > { %10554 = vmatmul.msk.f32.gmra.mxu1 %vm543_vm1, %v8422_v53  ;;  %v7614_v53 = vld [vmem:[#allocation2 + $0x179] sm:$0xff] }
 0x7d9   : > { %10604 = vmatmul.msk.f32.gmra.mxu2 %vm543_vm1, %v7613_v47 }
 0x7da   : > { %10654 = vmatmul.msk.f32.gmra.mxu3 %vm543_vm1, %v8019_v23  ;;  %10704 = vmatmul.msk.f32.gmra.mxu0 %vm543_vm1, %v15065_v8  ;;  %v8021_v23 = vld [vmem:[#allocation2 + $0x197] sm:$0xff] }
 0x7dc   : > { %v7859_v21 = vpop.f32.mrf.mxu2 }
 0x7dd   : > { %v7955_v45 = vadd.f32 %v7859_v21, %v7549_v43  ;;  %v8265_v54 = vpop.f32.mrf.mxu3  ;;  %v7456_v4 = vpop.f32.mrf.mxu1 }
 0x7de   : > { %v7550_v57 = vadd.f32 %v7456_v4, %v15348_v20  ;;  %v8427_v20 = vld [vmem:[#allocation2 + $0x198] sm:$0xff]  ;;  %v8665_v43 = vpop.f32.mrf.mxu0 }
 0x7df   : > { %v15861_v14 = vadd.f32 %v8265_v54, %v7955_v45  ;;  %v15881_v54 = vadd.f32 %v8656_v10, %v15801_v27 }
 0x7e0   : > { %10555 = vmatmul.msk.f32.gmra.mxu1 %vm543_vm1, %v8423_v62  ;;  %v7615_v62 = vld [vmem:[#allocation2 + $0x181] sm:$0xff] }
 0x7e1   : > { %10605 = vmatmul.msk.f32.gmra.mxu2 %vm543_vm1, %v7614_v53  ;;  %18106 = vst [vmem:[#allocation80_spill] sm:$0xff] %v15881_v54  ;;  %v8833_v54 = vld [vmem:[#allocation2 + $0x199] sm:$0xff] }
 0x7e2   : > { %10655 = vmatmul.msk.f32.gmra.mxu3 %vm543_vm1, %v8020_v44  ;;  %10705 = vmatmul.msk.f32.gmra.mxu0 %vm543_vm1, %v15068_v58  ;;  %v8022_v44 = vld [vmem:[#allocation2 + $0x19f] sm:$0xff] }
 0x7e4   : > { %v7862_v49 = vpop.f32.mrf.mxu2 }
 0x7e5   : > { %v7956_v9 = vadd.f32 %v7862_v49, %v7550_v57  ;;  %v8268_v40 = vpop.f32.mrf.mxu3  ;;  %v7459_v29 = vpop.f32.mrf.mxu1 }
 0x7e6   : > { %v7551_v21 = vadd.f32 %v7459_v29, %v15361_v33  ;;  %v8428_v33 = vld [vmem:[#allocation2 + $0x1a0] sm:$0xff]  ;;  %v8668_v27 = vpop.f32.mrf.mxu0 }
 0x7e7   : > { %v15873_v47 = vadd.f32 %v8268_v40, %v7956_v9  ;;  %v15892_v40 = vadd.f32 %v8659_v31, %v15814_v39 }
 0x7e8   : > { %10556 = vmatmul.msk.f32.gmra.mxu1 %vm543_vm1, %v8424_v36  ;;  %v7616_v36 = vld [vmem:[#allocation2 + $0x189] sm:$0xff] }
 0x7e9   : > { %10606 = vmatmul.msk.f32.gmra.mxu2 %vm543_vm1, %v7615_v62  ;;  %18107 = vst [vmem:[#allocation83_spill] sm:$0xff] %v15892_v40  ;;  %v8828_v40 = vld [vmem:[#allocation2 + $0x171] sm:$0xff] }
 0x7ea   : > { %10656 = vmatmul.msk.f32.gmra.mxu3 %vm543_vm1, %v8021_v23  ;;  %10706 = vmatmul.msk.f32.gmra.mxu0 %vm543_vm1, %v8427_v20  ;;  %v8023_v23 = vld [vmem:[#allocation2 + $0x1a7] sm:$0xff] }
 0x7ec   : > { %v7865_v45 = vpop.f32.mrf.mxu2 }
 0x7ed   : > { %v7957_v13 = vadd.f32 %v7865_v45, %v7551_v21  ;;  %v8271_v2 = vpop.f32.mrf.mxu3  ;;  %v7462_v4 = vpop.f32.mrf.mxu1 }
 0x7ee   : > { %v7552_v57 = vadd.f32 %v7462_v4, %v15373_v56  ;;  %v8429_v56 = vld [vmem:[#allocation2 + $0x1a8] sm:$0xff]  ;;  %v8671_v4 = vpop.f32.mrf.mxu0 }
 0x7ef   : > { %v15883_v53 = vadd.f32 %v8271_v2, %v7957_v13  ;;  %v15903_v2 = vadd.f32 %v8662_v6, %v15827_v46 }
 0x7f0   : > { %10557 = vmatmul.msk.f32.gmra.mxu1 %vm543_vm1, %v15065_v8  ;;  %v7617_v8 = vld [vmem:[#allocation2 + $0x191] sm:$0xff] }
 0x7f1   : > { %10607 = vmatmul.msk.f32.gmra.mxu2 %vm543_vm1, %v7616_v36  ;;  %18108 = vst [vmem:[#allocation84_spill] sm:$0xff] %v15903_v2  ;;  %v8827_v2 = vld [vmem:[#allocation2 + $0x169] sm:$0xff] }
 0x7f2   : > { %10657 = vmatmul.msk.f32.gmra.mxu3 %vm543_vm1, %v8022_v44  ;;  %10707 = vmatmul.msk.f32.gmra.mxu0 %vm543_vm1, %v8428_v33  ;;  %v8024_v44 = vld [vmem:[#allocation2 + $0x1af] sm:$0xff] }
 0x7f4   : > { %v7868_v49 = vpop.f32.mrf.mxu2 }
 0x7f5   : > { %v7958_v10 = vadd.f32 %v7868_v49, %v7552_v57  ;;  %v8274_v9 = vpop.f32.mrf.mxu3  ;;  %v7465_v29 = vpop.f32.mrf.mxu1 }
 0x7f6   : > { %v7553_v21 = vadd.f32 %v7465_v29, %v15385_v32  ;;  %v8430_v32 = vld [vmem:[#allocation2 + $0x1b0] sm:$0xff] }
 0x7f7   : > { %v15894_v62 = vadd.f32 %v8274_v9, %v7958_v10  ;;  %v15913_v9 = vadd.f32 %v8665_v43, %v15838_v11 }
 0x7f8   : > { %10558 = vmatmul.msk.f32.gmra.mxu1 %vm543_vm1, %v15068_v58  ;;  %v7618_v58 = vld [vmem:[#allocation2 + $0x199] sm:$0xff] }
 0x7f9   : > { %10608 = vmatmul.msk.f32.gmra.mxu2 %vm543_vm1, %v7617_v8  ;;  %18109 = vst [vmem:[#allocation87_spill] sm:$0xff] %v15913_v9  ;;  %v8674_v8 = vpop.f32.mrf.mxu0  ;;  %v8826_v9 = vld [vmem:[#allocation2 + $0x161] sm:$0xff] }
 0x7fa   : > { %10658 = vmatmul.msk.f32.gmra.mxu3 %vm543_vm1, %v8023_v23  ;;  %10708 = vmatmul.msk.f32.gmra.mxu0 %vm543_vm1, %v8429_v56  ;;  %v8025_v23 = vld [vmem:[#allocation2 + $0x1b7] sm:$0xff] }
 0x7fc   : > { %v7871_v45 = vpop.f32.mrf.mxu2 }
 0x7fd   : > { %v7959_v39 = vadd.f32 %v7871_v45, %v7553_v21  ;;  %v8277_v31 = vpop.f32.mrf.mxu3  ;;  %v7468_v13 = vpop.f32.mrf.mxu1 }
 0x7fe   : > { %v7554_v57 = vadd.f32 %v7468_v13, %v15397_v30  ;;  %v8431_v30 = vld [vmem:[#allocation2 + $0x1b8] sm:$0xff] }
 0x7ff   : > { %v15905_v36 = vadd.f32 %v8277_v31, %v7959_v39  ;;  %v15923_v31 = vadd.f32 %v8668_v27, %v15849_v3 }
 0x800   : > { %10559 = vmatmul.msk.f32.gmra.mxu1 %vm543_vm1, %v8427_v20  ;;  %v7619_v20 = vld [vmem:[#allocation2 + $0x1a1] sm:$0xff] }
 0x801   : > { %10609 = vmatmul.msk.f32.gmra.mxu2 %vm543_vm1, %v7618_v58  ;;  %18110 = vst [vmem:[#allocation85_spill] sm:$0xff] %v15923_v31  ;;  %v8026_v58 = vld [vmem:[#allocation2 + $0x1bf] sm:$0xff] }
 0x802   : > { %10659 = vmatmul.msk.f32.gmra.mxu3 %vm543_vm1, %v8024_v44  ;;  %10709 = vmatmul.msk.f32.gmra.mxu0 %vm543_vm1, %v8430_v32  ;;  %v8677_v44 = vpop.f32.mrf.mxu0  ;;  %v8825_v31 = vld [vmem:[#allocation2 + $0x159] sm:$0xff] }
 0x804   : > { %v7874_v49 = vpop.f32.mrf.mxu2 }
 0x805   : > { %v7960_v10 = vadd.f32 %v7874_v49, %v7554_v57  ;;  %v8280_v46 = vpop.f32.mrf.mxu3  ;;  %v7471_v6 = vpop.f32.mrf.mxu1 }
 0x806   : > { %v7555_v21 = vadd.f32 %v7471_v6, %v15411_v59  ;;  %v8432_v59 = vld [vmem:[#allocation2 + $0x1c0] sm:$0xff] }
 0x807   : > { %v15915_v29 = vadd.f32 %v8280_v46, %v7960_v10  ;;  %v15933_v46 = vadd.f32 %v8671_v4, %v15861_v14 }
 0x808   : > { %10560 = vmatmul.msk.f32.gmra.mxu1 %vm543_vm1, %v8428_v33  ;;  %v7620_v33 = vld [vmem:[#allocation2 + $0x1a9] sm:$0xff] }
 0x809   : > { %10610 = vmatmul.msk.f32.gmra.mxu2 %vm543_vm1, %v7619_v20 }
 0x80a   : > { %10660 = vmatmul.msk.f32.gmra.mxu3 %vm543_vm1, %v8025_v23  ;;  %10710 = vmatmul.msk.f32.gmra.mxu0 %vm543_vm1, %v8431_v30  ;;  %v8680_v23 = vpop.f32.mrf.mxu0 }
 0x80c   : > { %v7877_v45 = vpop.f32.mrf.mxu2 }
 0x80d   : > { %v7961_v39 = vadd.f32 %v7877_v45, %v7555_v21  ;;  %v8283_v11 = vpop.f32.mrf.mxu3  ;;  %v7474_v43 = vpop.f32.mrf.mxu1 }
 0x80e   : > { %v7556_v32 = vadd.f32 %v7474_v43, %v15425_v38 }
 0x80f   : > { %v15925_v13 = vadd.f32 %v8283_v11, %v7961_v39  ;;  %v15938_v39 = vadd.f32 %v8674_v8, %v15873_v47  ;;  %v8792_v11 = vld [vmem:[#allocation2 + $0x51] sm:$0xff] }
 0x810   : > { %10561 = vmatmul.msk.f32.gmra.mxu1 %vm543_vm1, %v8429_v56  ;;  %v8791_v56 = vld [vmem:[#allocation2 + $0x49] sm:$0xff] }
 0x811   : > { %10611 = vmatmul.msk.f32.gmra.mxu2 %vm543_vm1, %v7620_v33 }
 0x812   : > { %10661 = vmatmul.msk.f32.gmra.mxu3 %vm543_vm1, %v8026_v58  ;;  %10711 = vmatmul.msk.f32.gmra.mxu0 %vm543_vm1, %v8432_v59  ;;  %v8683_v59 = vpop.f32.mrf.mxu0 }
 0x814   : > { %v7880_v57 = vpop.f32.mrf.mxu2 }
 0x815   : > { %v7962_v49 = vadd.f32 %v7880_v57, %v7556_v32  ;;  %v8286_v3 = vpop.f32.mrf.mxu3  ;;  %v7477_v27 = vpop.f32.mrf.mxu1  ;;  %v15943_v32 = vadd.f32 %v8677_v44, %v15883_v53  ;;  %v8793_v57 = vld [vmem:[#allocation2 + $0x59] sm:$0xff] }
 0x816   : > { %v7557_v6 = vadd.f32 %v7477_v27, %v15437_v42 }
 0x817   : > { %v8368_v10 = vadd.f32 %v8286_v3, %v7962_v49  ;;  %v18111_v49 = vld [vmem:[#allocation66_spill] sm:$0xff] }
 0x818   : > { %10714 = vmatmul.msk.f32.vlgmr.msra.gmra.mxu1 %vm543_vm1, %v8791_v56 }
 0x81c   : > { %v7883_v20 = vpop.f32.mrf.mxu2 }
 0x81d   : > { %v7963_v30 = vadd.f32 %v7883_v20, %v7557_v6  ;;  %v8289_v21 = vpop.f32.mrf.mxu3  ;;  %v7480_v38 = vpop.f32.mrf.mxu1  ;;  %v15948_v20 = vadd.f32 %v8680_v23, %v15894_v62 }
 0x81e   : > { %v7558_v14 = vadd.f32 %v7480_v38, %v15449_v63  ;;  %v8794_v63 = vld [vmem:[#allocation2 + $0x61] sm:$0xff] }
 0x81f   : > { %v8369_v45 = vadd.f32 %v8289_v21, %v7963_v30  ;;  %v8686_v30 = vpop.f32.mrf.mxu0  ;;  %v18112_v21 = vld [vmem:[#allocation72_spill] sm:$0xff] }
 0x820   : > { %10715 = vmatmul.msk.f32.gmra.mxu1 %vm543_vm1, %v8792_v11 }
 0x824   : > { %v7886_v4 = vpop.f32.mrf.mxu2 }
 0x825   : > { %v7964_v43 = vadd.f32 %v7886_v4, %v7558_v14  ;;  %v8292_v33 = vpop.f32.mrf.mxu3  ;;  %v7483_v58 = vpop.f32.mrf.mxu1 }
 0x826   : > { %v7559_v47 = vadd.f32 %v7483_v58, %v18111_v49 }
 0x827   : > { %v8370_v42 = vadd.f32 %v8292_v33, %v7964_v43  ;;  %v8795_v43 = vld [vmem:[#allocation2 + $0x69] sm:$0xff]  ;;  %v15953_v33 = vadd.f32 %v8683_v59, %v15905_v36  ;;  %v8689_v58 = vpop.f32.mrf.mxu0  ;;  %v8797_v59 = vld [vmem:[#allocation2 + $0x79] sm:$0xff] }
 0x828   : > { %10716 = vmatmul.msk.f32.gmra.mxu1 %vm543_vm1, %v8793_v57  ;;  %v18113_v57 = vld [vmem:[#allocation73_spill] sm:$0xff] }
 0x82c   : > { %v7889_v8 = vpop.f32.mrf.mxu2 }
 0x82d   : > { %v7965_v3 = vadd.f32 %v7889_v8, %v7559_v47  ;;  %v8295_v27 = vpop.f32.mrf.mxu3  ;;  %v7486_v56 = vpop.f32.mrf.mxu1 }
 0x82e   : > { %v7560_v53 = vadd.f32 %v7486_v56, %v18112_v21  ;;  %v15960_v56 = vadd.f32 %v8686_v30, %v15915_v29  ;;  %v15966_v21 = vadd.f32 %v8689_v58, %v15925_v13  ;;  %v8799_v30 = vld [vmem:[#allocation2 + $0x89] sm:$0xff]  ;;  %v8800_v58 = vld [vmem:[#allocation2 + $0x91] sm:$0xff] }
 0x82f   : > { %v8371_v6 = vadd.f32 %v8295_v27, %v7965_v3  ;;  %v8796_v27 = vld [vmem:[#allocation2 + $0x71] sm:$0xff] }
 0x830   : > { %10717 = vmatmul.msk.f32.gmra.mxu1 %vm543_vm1, %v8794_v63  ;;  %v8692_v63 = vpop.f32.mrf.mxu0 }
 0x834   : > { %v7892_v44 = vpop.f32.mrf.mxu2 }
 0x835   : > { %v7966_v38 = vadd.f32 %v7892_v44, %v7560_v53  ;;  %v8298_v11 = vpop.f32.mrf.mxu3  ;;  %v7489_v14 = vpop.f32.mrf.mxu1 }
 0x836   : > { %v7561_v62 = vadd.f32 %v7489_v14, %v18113_v57 }
 0x837   : > { %v8372_v4 = vadd.f32 %v8298_v11, %v7966_v38  ;;  %v8798_v38 = vld [vmem:[#allocation2 + $0x81] sm:$0xff]  ;;  %v15971_v11 = vadd.f32 %v8692_v63, %v8368_v10 }
 0x838   : > { %10718 = vmatmul.msk.f32.gmra.mxu1 %vm543_vm1, %v8795_v43  ;;  %v8695_v44 = vpop.f32.mrf.mxu0 }
 0x839   : > { %v15976_v14 = vadd.f32 %v8695_v44, %v8369_v45  ;;  %v8803_v44 = vld [vmem:[#allocation2 + $0xa9] sm:$0xff] }
 0x83c   : > { %v7895_v23 = vpop.f32.mrf.mxu2 }
 0x83d   : > { %v7967_v49 = vadd.f32 %v7895_v23, %v7561_v62  ;;  %v8301_v47 = vpop.f32.mrf.mxu3  ;;  %v15957_v8 = vpop.f32.mrf.mxu1  ;;  %v8801_v23 = vld [vmem:[#allocation2 + $0x99] sm:$0xff] }
 0x83f   : > { %v8373_v3 = vadd.f32 %v8301_v47, %v7967_v49 }
 0x840   : > { %10719 = vmatmul.msk.f32.gmra.mxu1 %vm543_vm1, %v8796_v27  ;;  %v8698_v43 = vpop.f32.mrf.mxu0  ;;  %v8802_v27 = vld [vmem:[#allocation2 + $0xa1] sm:$0xff] }
 0x841   : > { %v15981_v57 = vadd.f32 %v8698_v43, %v8370_v42 }
 0x845   : > { %v15963_v36 = vpop.f32.mrf.mxu1 }
 0x848   : > { %10720 = vmatmul.msk.f32.gmra.mxu1 %vm543_vm1, %v8797_v59  ;;  %v8701_v62 = vpop.f32.mrf.mxu0 }
 0x849   : > { %v15986_v49 = vadd.f32 %v8701_v62, %v8371_v6  ;;  %v8806_v62 = vld [vmem:[#allocation2 + $0xc1] sm:$0xff] }
 0x84d   : > { %v15969_v53 = vpop.f32.mrf.mxu1 }
 0x850   : > { %10721 = vmatmul.msk.f32.gmra.mxu1 %vm543_vm1, %v8798_v38  ;;  %v8704_v45 = vpop.f32.mrf.mxu0 }
 0x851   : > { %v15991_v63 = vadd.f32 %v8704_v45, %v8372_v4 }
 0x855   : > { %v15974_v29 = vpop.f32.mrf.mxu1 }
 0x856   : > { %18114 = vst [vmem:[#allocation89_spill] sm:$0xff] %v15974_v29  ;;  %v8829_v29 = vld [vmem:[#allocation2 + $0x179] sm:$0xff] }
 0x858   : > { %10722 = vmatmul.msk.f32.gmra.mxu1 %vm543_vm1, %v8799_v30  ;;  %v8707_v59 = vpop.f32.mrf.mxu0  ;;  %v8804_v30 = vld [vmem:[#allocation2 + $0xb1] sm:$0xff] }
 0x859   : > { %v15996_v38 = vadd.f32 %v8707_v59, %v8373_v3  ;;  %v8807_v3 = vld [vmem:[#allocation2 + $0xc9] sm:$0xff] }
 0x85d   : > { %v15979_v13 = vpop.f32.mrf.mxu1 }
 0x85e   : > { %18115 = vst [vmem:[#allocation91_spill] sm:$0xff] %v15979_v13  ;;  %v8823_v13 = vld [vmem:[#allocation2 + $0x149] sm:$0xff] }
 0x860   : > { %10723 = vmatmul.msk.f32.gmra.mxu1 %vm543_vm1, %v8800_v58  ;;  %v8805_v58 = vld [vmem:[#allocation2 + $0xb9] sm:$0xff] }
 0x865   : > { %v15984_v10 = vpop.f32.mrf.mxu1 }
 0x866   : > { %18116 = vst [vmem:[#allocation95_spill] sm:$0xff] %v15984_v10  ;;  %v8821_v10 = vld [vmem:[#allocation2 + $0x139] sm:$0xff] }
 0x868   : > { %10724 = vmatmul.msk.f32.gmra.mxu1 %vm543_vm1, %v8801_v23 }
 0x86d   : > { %v15989_v47 = vpop.f32.mrf.mxu1 }
 0x86e   : > { %18117 = vst [vmem:[#allocation131_spill] sm:$0xff] %v15989_v47  ;;  %v8819_v47 = vld [vmem:[#allocation2 + $0x129] sm:$0xff] }
 0x870   : > { %10725 = vmatmul.msk.f32.gmra.mxu1 %vm543_vm1, %v8802_v27  ;;  %v8808_v27 = vld [vmem:[#allocation2 + $0xd1] sm:$0xff] }
 0x875   : > { %v15994_v42 = vpop.f32.mrf.mxu1 }
 0x876   : > { %18118 = vst [vmem:[#allocation133_spill] sm:$0xff] %v15994_v42  ;;  %v8817_v42 = vld [vmem:[#allocation2 + $0x119] sm:$0xff] }
 0x878   : > { %10726 = vmatmul.msk.f32.gmra.mxu1 %vm543_vm1, %v8803_v44  ;;  %v8809_v44 = vld [vmem:[#allocation2 + $0xd9] sm:$0xff] }
 0x87d   : > { %v15999_v6 = vpop.f32.mrf.mxu1 }
 0x87e   : > { %18119 = vst [vmem:[#allocation137_spill] sm:$0xff] %v15999_v6  ;;  %v8815_v6 = vld [vmem:[#allocation2 + $0x109] sm:$0xff] }
 0x880   : > { %10727 = vmatmul.msk.f32.gmra.mxu1 %vm543_vm1, %v8804_v30 }
 0x885   : > { %v16002_v43 = vpop.f32.mrf.mxu1 }
 0x886   : > { %18120 = vst [vmem:[#allocation139_spill] sm:$0xff] %v16002_v43  ;;  %v8813_v43 = vld [vmem:[#allocation2 + $0xf9] sm:$0xff] }
 0x888   : > { %10728 = vmatmul.msk.f32.gmra.mxu1 %vm543_vm1, %v8805_v58  ;;  %v8810_v58 = vld [vmem:[#allocation2 + $0xe1] sm:$0xff] }
 0x88d   : > { %v16005_v4 = vpop.f32.mrf.mxu1 }
 0x88e   : > { %18121 = vst [vmem:[#allocation10_spill] sm:$0xff] %v16005_v4  ;;  %v8811_v4 = vld [vmem:[#allocation2 + $0xe9] sm:$0xff] }
 0x890   : > { %10729 = vmatmul.msk.f32.gmra.mxu1 %vm543_vm1, %v8806_v62 }
 0x895   : > { %v16008_v23 = vpop.f32.mrf.mxu1 }
 0x898   : > { %10730 = vmatmul.msk.f32.gmra.mxu1 %vm543_vm1, %v8807_v3 }
 0x89d   : > { %v16011_v45 = vpop.f32.mrf.mxu1 }
 0x8a0   : > { %10731 = vmatmul.msk.f32.gmra.mxu1 %vm543_vm1, %v8808_v27 }
 0x8a5   : > { %v16014_v59 = vpop.f32.mrf.mxu1 }
 0x8a8   : > { %10732 = vmatmul.msk.f32.gmra.mxu1 %vm543_vm1, %v8809_v44 }
 0x8ad   : > { %v16017_v30 = vpop.f32.mrf.mxu1 }
 0x8b0   : > { %10733 = vmatmul.msk.f32.gmra.mxu1 %vm543_vm1, %v8810_v58 }
 0x8b5   : > { %v16020_v62 = vpop.f32.mrf.mxu1 }
 0x8b8   : > { %10734 = vmatmul.msk.f32.gmra.mxu1 %vm543_vm1, %v8811_v4 }
 0x8bd   : > { %v16023_v3 = vpop.f32.mrf.mxu1 }
 0x8c0   : > { %10735 = vmatmul.msk.f32.gmra.mxu1 %vm543_vm1, %v8812_v17 }
 0x8c5   : > { %v16026_v27 = vpop.f32.mrf.mxu1 }
 0x8c8   : > { %10736 = vmatmul.msk.f32.gmra.mxu1 %vm543_vm1, %v8813_v43 }
 0x8cd   : > { %v16029_v44 = vpop.f32.mrf.mxu1 }
 0x8d0   : > { %10737 = vmatmul.msk.f32.gmra.mxu1 %vm543_vm1, %v8814_v60 }
 0x8d5   : > { %v16032_v58 = vpop.f32.mrf.mxu1 }
 0x8d8   : > { %10738 = vmatmul.msk.f32.gmra.mxu1 %vm543_vm1, %v8815_v6 }
 0x8dd   : > { %v16035_v4 = vpop.f32.mrf.mxu1 }
 0x8e0   : > { %10739 = vmatmul.msk.f32.gmra.mxu1 %vm543_vm1, %v8816_v48 }
 0x8e5   : > { %v16038_v17 = vpop.f32.mrf.mxu1 }
 0x8e8   : > { %10740 = vmatmul.msk.f32.gmra.mxu1 %vm543_vm1, %v8817_v42 }
 0x8ed   : > { %v16041_v43 = vpop.f32.mrf.mxu1 }
 0x8f0   : > { %10741 = vmatmul.msk.f32.gmra.mxu1 %vm543_vm1, %v8818_v35 }
 0x8f5   : > { %v16044_v60 = vpop.f32.mrf.mxu1 }
 0x8f8   : > { %10742 = vmatmul.msk.f32.gmra.mxu1 %vm543_vm1, %v8819_v47 }
 0x8fd   : > { %v16047_v6 = vpop.f32.mrf.mxu1 }
 0x900   : > { %10743 = vmatmul.msk.f32.gmra.mxu1 %vm543_vm1, %v8820_v37 }
 0x905   : > { %v16050_v48 = vpop.f32.mrf.mxu1 }
 0x908   : > { %10744 = vmatmul.msk.f32.gmra.mxu1 %vm543_vm1, %v8821_v10 }
 0x90d   : > { %v16053_v42 = vpop.f32.mrf.mxu1 }
 0x910   : > { %10745 = vmatmul.msk.f32.gmra.mxu1 %vm543_vm1, %v8822_v1 }
 0x915   : > { %v16056_v35 = vpop.f32.mrf.mxu1 }
 0x918   : > { %10746 = vmatmul.msk.f32.gmra.mxu1 %vm543_vm1, %v8823_v13 }
 0x91d   : > { %v16059_v47 = vpop.f32.mrf.mxu1 }
 0x920   : > { %10747 = vmatmul.msk.f32.gmra.mxu1 %vm543_vm1, %v8824_v18 }
 0x925   : > { %v16062_v37 = vpop.f32.mrf.mxu1 }
 0x928   : > { %10748 = vmatmul.msk.f32.gmra.mxu1 %vm543_vm1, %v8825_v31 }
 0x92d   : > { %v16065_v10 = vpop.f32.mrf.mxu1 }
 0x92e   : > { %18122 = vst [vmem:[#allocation144_spill] sm:$0xff] %v16065_v10  ;;  %v8830_v10 = vld [vmem:[#allocation2 + $0x181] sm:$0xff] }
 0x930   : > { %10749 = vmatmul.msk.f32.gmra.mxu1 %vm543_vm1, %v8826_v9 }
 0x935   : > { %v16068_v1 = vpop.f32.mrf.mxu1 }
 0x936   : > { %18123 = vst [vmem:[#allocation11_spill] sm:$0xff] %v16068_v1 }
 0x938   : > { %10750 = vmatmul.msk.f32.gmra.mxu1 %vm543_vm1, %v8827_v2  ;;  %v8831_v2 = vld [vmem:[#allocation2 + $0x189] sm:$0xff] }
 0x93d   : > { %v16071_v13 = vpop.f32.mrf.mxu1 }
 0x93e   : > { %18124 = vst [vmem:[#allocation147_spill] sm:$0xff] %v16071_v13 }
 0x940   : > { %10751 = vmatmul.msk.f32.gmra.mxu1 %vm543_vm1, %v8828_v40 }
 0x945   : > { %v16074_v18 = vpop.f32.mrf.mxu1 }
 0x946   : > { %18125 = vst [vmem:[#allocation13_spill] sm:$0xff] %v16074_v18  ;;  %v8832_v18 = vld [vmem:[#allocation2 + $0x191] sm:$0xff] }
 0x948   : > { %10752 = vmatmul.msk.f32.gmra.mxu1 %vm543_vm1, %v8829_v29 }
 0x94d   : > { %v16077_v31 = vpop.f32.mrf.mxu1 }
 0x94e   : > { %18126 = vst [vmem:[#allocation152_spill] sm:$0xff] %v16077_v31 }
 0x950   : > { %10753 = vmatmul.msk.f32.gmra.mxu1 %vm543_vm1, %v8830_v10 }
 0x955   : > { %v9077_v9 = vpop.f32.mrf.mxu1 }
 0x956   : > { %v16081_v1 = vadd.f32 %v9077_v9, %v15933_v46  ;;  %v8834_v9 = vld [vmem:[#allocation2 + $0x1a1] sm:$0xff] }
 0x958   : > { %10754 = vmatmul.msk.f32.gmra.mxu1 %vm543_vm1, %v8831_v2 }
 0x95d   : > { %v9080_v13 = vpop.f32.mrf.mxu1 }
 0x95e   : > { %v16085_v40 = vadd.f32 %v9080_v13, %v15938_v39  ;;  %v8835_v13 = vld [vmem:[#allocation2 + $0x1a9] sm:$0xff] }
 0x960   : > { %10755 = vmatmul.msk.f32.gmra.mxu1 %vm543_vm1, %v8832_v18 }
 0x965   : > { %v9083_v29 = vpop.f32.mrf.mxu1 }
 0x966   : > { %v16089_v31 = vadd.f32 %v9083_v29, %v15943_v32  ;;  %v8836_v29 = vld [vmem:[#allocation2 + $0x1b1] sm:$0xff] }
 0x968   : > { %10756 = vmatmul.msk.f32.gmra.mxu1 %vm543_vm1, %v8833_v54 }
 0x96d   : > { %v9086_v10 = vpop.f32.mrf.mxu1 }
 0x96e   : > { %v16093_v46 = vadd.f32 %v9086_v10, %v15948_v20  ;;  %v8837_v10 = vld [vmem:[#allocation2 + $0x1b9] sm:$0xff] }
 0x970   : > { %10757 = vmatmul.msk.f32.gmra.mxu1 %vm543_vm1, %v8834_v9 }
 0x975   : > { %v9089_v2 = vpop.f32.mrf.mxu1 }
 0x976   : > { %v16097_v39 = vadd.f32 %v9089_v2, %v15953_v33  ;;  %v9150_v33 = vadd.f32 %v16011_v45, %v15655_v26  ;;  %v9151_v26 = vadd.f32 %v16014_v59, %v15668_v34  ;;  %v18133_v34 = vld [vmem:[#allocation6_spill] sm:$0xff] }
 0x977   : > { %vm18134_vm2 = vcmp.eq.s32.totalorder %v18133_v34, 1 }
 0x978   : > { %10758 = vmatmul.msk.f32.gmra.mxu1 %vm543_vm1, %v8835_v13  ;;  %v8838_v13 = vld [vmem:[#allocation2 + $0x1c1] sm:$0xff] }
 0x97d   : > { %v9092_v18 = vpop.f32.mrf.mxu1 }
 0x97e   : > { %v16101_v32 = vadd.f32 %v9092_v18, %v15960_v56  ;;  %v9149_v56 = vadd.f32 %v16008_v23, %v15642_v7  ;;  %v16118_v18 = vld [vmem:[%s17066_s4] ss:$0 sm:$0xff]  ;;  %v18129_v7 = vld [vmem:[#allocation12_spill] sm:$0xff] }
 0x97f   : > { %vm18130_vm15 = vcmp.eq.s32.totalorder %v18129_v7, 1  ;;  %v18135_v7 = vld [vmem:[#allocation7_spill] sm:$0xff] }
 0x980   : > { %10759 = vmatmul.msk.f32.gmra.mxu1 %vm543_vm1, %v8836_v29  ;;  %v16122_v29 = vadd.f32 %v16118_v18, %v9150_v33  ;;  %v16140_v33 = vpop.f32.mrf.mxu3  ;;  %vm18136_vm8 = vcmp.eq.s32.totalorder %v18135_v7, 1 }
 0x982   : > { %18127 = vst [vmem:[#allocation154_spill] sm:$0xff] %v16122_v29  ;;  %v9250_v23 = vsel %vm18130_vm15, %v16122_v29, 0.0 }
 0x985   : > { %v9095_v54 = vpop.f32.mrf.mxu1 }
 0x986   : > { %v16105_v20 = vadd.f32 %v9095_v54, %v15966_v21  ;;  %v7898_v21 = vpop.f32.mrf.mxu2  ;;  %v16133_v54 = vadd.f32 %v16118_v18, %v9151_v26 }
 0x988   : > { %10760 = vmatmul.msk.f32.gmra.mxu1 %vm543_vm1, %v8837_v10  ;;  %18131 = vst [vmem:[#allocation135_spill] sm:$0xff] %v16133_v54  ;;  %v9152_v10 = vadd.f32 %v16017_v30, %v15679_v28  ;;  %v9251_v26 = vsel %vm18136_vm8, %v16133_v54, 0.0  ;;  %v9154_v28 = vadd.f32 %v16023_v3, %v15705_v5  ;;  %v9156_v3 = vadd.f32 %v16029_v44, %v15733_v16 }
 0x989   : > { %v9401_v7 = vmul.f32 %v9251_v26, %v9251_v26  ;;  %v9157_v16 = vadd.f32 %v16032_v58, %v15746_v19 }
 0x98a   : > { %v16151_v29 = vadd.f32 %v16118_v18, %v9152_v10  ;;  %v18139_v10 = vld [vmem:[#allocation15_spill] sm:$0xff]  ;;  %v16168_v5 = vadd.f32 %v16118_v18, %v9154_v28 }
 0x98b   : > { %vm18140_vm4 = vcmp.eq.s32.totalorder %v18139_v10, 1  ;;  %v18143_v10 = vld [vmem:[#allocation8_spill] sm:$0xff] }
 0x98c   : > { %18137 = vst [vmem:[#allocation136_spill] sm:$0xff] %v16151_v29  ;;  %vm18144_vm7 = vcmp.eq.s32.totalorder %v18143_v10, 1  ;;  %v16196_v10 = vadd.f32 %v16118_v18, %v9156_v3 }
 0x98d   : > { %v9098_v9 = vpop.f32.mrf.mxu1  ;;  %18141 = vst [vmem:[#allocation94_spill] sm:$0xff] %v16168_v5 }
 0x98e   : > { %v16111_v2 = vadd.f32 %v9098_v9, %v15971_v11  ;;  %v16127_v11 = vadd.f32 %v16118_v18, %v9149_v56  ;;  %v9400_v56 = vmul.f32 %v9250_v23, %v9250_v23  ;;  %18147 = vst [vmem:[#allocation98_spill] sm:$0xff] %v16196_v10 }
 0x990   : > { %10761 = vmatmul.msk.f32.gmra.mxu1 %vm543_vm1, %v8838_v13  ;;  %18128 = vst [vmem:[#allocation101_spill] sm:$0xff] %v16127_v11  ;;  %v9249_v59 = vsel %vm18134_vm2, %v16127_v11, 0.0  ;;  %v9153_v13 = vadd.f32 %v16020_v62, %v15692_v22  ;;  %v9155_v22 = vadd.f32 %v16026_v27, %v15720_v55  ;;  %v9298_v62 = vsel %vm543_vm1, %v9250_v23, 0.0  ;;  %v18142_v55 = vld [vmem:[#allocation67_spill] sm:$0xff] }
 0x991   : > { %v9399_v30 = vmul.f32 %v9249_v59, %v9249_v59  ;;  %v9448_v34 = vsel %vm543_vm1, %v9400_v56, 0.0  ;;  %v9252_v11 = vsel %vm18140_vm4, %v16151_v29, 0.0  ;;  %v7562_v27 = vadd.f32 %v15957_v8, %v18142_v55 }
 0x992   : > { %v9297_v23 = vsel %vm543_vm1, %v9249_v59, 0.0  ;;  %v16184_v29 = vadd.f32 %v16118_v18, %v9155_v22  ;;  %v9450_v8 = vsel %vm543_vm1, %v9401_v7, 0.0  ;;  %v16189_v59 = vpop.f32.mrf.mxu3  ;;  %v9158_v22 = vadd.f32 %v16035_v4, %v15758_v0  ;;  %v18148_v7 = vld [vmem:[#allocation20_spill] sm:$0xff]  ;;  %v16210_v4 = vpop.f32.mrf.mxu0 }
 0x993   : > { %v9447_v56 = vsel %vm543_vm1, %v9399_v30, 0.0  ;;  %v9302_v30 = vsel %vm543_vm1, %v9252_v11, 0.0  ;;  %vm18149_vm13 = vcmp.eq.s32.totalorder %v18148_v7, 1 }
 0x994   : > { %v9449_v44 = vadd.f32 %v9448_v34, %v9447_v56 }
 0x995   : > { %v9101_v45 = vpop.f32.mrf.mxu1 }
 0x996   : > { %v16138_v9 = vadd.f32 %v9101_v45, %v15976_v14  ;;  %v16155_v14 = vpop.f32.mrf.mxu2  ;;  %v16158_v45 = vadd.f32 %v16118_v18, %v9153_v13  ;;  %v9451_v34 = vadd.f32 %v9450_v8, %v9449_v44 }
 0x998   : > { %18132 = vst [vmem:[#allocation100_spill] sm:$0xff] %v16138_v9  ;;  %v9300_v9 = vsel %vm543_vm1, %v9251_v26, 0.0  ;;  %v9253_v28 = vsel %vm18144_vm7, %v16158_v45, 0.0  ;;  %v18145_v26 = vld [vmem:[#allocation18_spill] sm:$0xff] }
 0x999   : > { %18138 = vst [vmem:[#allocation104_spill] sm:$0xff] %v16158_v45  ;;  %vm18146_vm11 = vcmp.eq.s32.totalorder %v18145_v26, 1  ;;  %v9403_v58 = vmul.f32 %v9253_v28, %v9253_v28 }
 0x99a   : > { %v9254_v55 = vsel %vm18146_vm11, %v16168_v5, 0.0  ;;  %v9304_v5 = vsel %vm543_vm1, %v9253_v28, 0.0 }
 0x99b   : > { %v9404_v45 = vmul.f32 %v9254_v55, %v9254_v55  ;;  %v9454_v44 = vsel %vm543_vm1, %v9403_v58, 0.0  ;;  %v9306_v28 = vsel %vm543_vm1, %v9254_v55, 0.0  ;;  %v9161_v55 = vadd.f32 %v16044_v60, %v15799_v52  ;;  %v16250_v60 = vpop.f32.mrf.mxu3 }
 0x99d   : > { %v9104_v54 = vpop.f32.mrf.mxu1 }
 0x99e   : > { %v16173_v13 = vadd.f32 %v9104_v54, %v15981_v57  ;;  %v9299_v57 = vadd.f32 %v9298_v62, %v9297_v23  ;;  %v9402_v54 = vmul.f32 %v9252_v11, %v9252_v11  ;;  %v7968_v62 = vadd.f32 %v7898_v21, %v7562_v27  ;;  %v16206_v56 = vpop.f32.mrf.mxu2  ;;  %v18150_v21 = vld [vmem:[#allocation21_spill] sm:$0xff] }
 0x99f   : > { %v9255_v23 = vsel %vm18149_vm13, %v16184_v29, 0.0  ;;  %v16204_v11 = vadd.f32 %v16118_v18, %v9157_v16  ;;  %vm18151_vm5 = vcmp.eq.s32.totalorder %v18150_v21, 1  ;;  %v16216_v27 = vadd.f32 %v16118_v18, %v9158_v22  ;;  %v18153_v21 = vld [vmem:[#allocation23_spill] sm:$0xff] }
 0x9a0   : > { %v9301_v19 = vadd.f32 %v9300_v9, %v9299_v57  ;;  %v9452_v3 = vsel %vm543_vm1, %v9402_v54, 0.0  ;;  %v9256_v9 = vsel %vm18151_vm5, %v16196_v10, 0.0  ;;  %v9159_v16 = vadd.f32 %v16038_v17, %v15771_v51 }
 0x9a1   : > { %v9405_v8 = vmul.f32 %v9255_v23, %v9255_v23  ;;  %v9160_v54 = vadd.f32 %v16041_v43, %v15784_v50  ;;  %v9453_v7 = vadd.f32 %v9452_v3, %v9451_v34  ;;  %vm18154_vm0 = vcmp.eq.s32.totalorder %v18153_v21, 1  ;;  %v18155_v50 = vld [vmem:[#allocation24_spill] sm:$0xff]  ;;  %v18160_v21 = vld [vmem:[#allocation27_spill] sm:$0xff] }
 0x9a2   : > { %v9303_v26 = vadd.f32 %v9302_v30, %v9301_v19  ;;  %v18152_v30 = vld [vmem:[#allocation68_spill] sm:$0xff]  ;;  %v9257_v51 = vsel %vm18154_vm0, %v16204_v11, 0.0  ;;  %v9308_v17 = vsel %vm543_vm1, %v9255_v23, 0.0  ;;  %v9406_v58 = vmul.f32 %v9256_v9, %v9256_v9 }
 0x9a3   : > { %v7563_v19 = vadd.f32 %v15963_v36, %v18152_v30  ;;  %vm18156_vm12 = vcmp.eq.s32.totalorder %v18155_v50, 1  ;;  %v16240_v43 = vadd.f32 %v16118_v18, %v9159_v16  ;;  %v9407_v34 = vmul.f32 %v9257_v51, %v9257_v51  ;;  %v18157_v30 = vld [vmem:[#allocation26_spill] sm:$0xff] }
 0x9a4   : > { %v9305_v22 = vadd.f32 %v9304_v5, %v9303_v26  ;;  %v9258_v36 = vsel %vm18156_vm12, %v16216_v27, 0.0  ;;  %v16243_v5 = vadd.f32 %v16140_v33, %v7968_v62  ;;  %v16247_v23 = vadd.f32 %v16118_v18, %v9160_v54 }
 0x9a5   : > { %v9107_v0 = vpop.f32.mrf.mxu1  ;;  %v7969_v52 = vadd.f32 %v16155_v14, %v7563_v19  ;;  %v9310_v16 = vsel %vm543_vm1, %v9256_v9, 0.0  ;;  %v9460_v33 = vsel %vm543_vm1, %v9406_v58, 0.0  ;;  %v9408_v62 = vmul.f32 %v9258_v36, %v9258_v36 }
 0x9a6   : > { %v16221_v57 = vadd.f32 %v9107_v0, %v15986_v49  ;;  %v9456_v49 = vsel %vm543_vm1, %v9404_v45, 0.0  ;;  %v9455_v0 = vadd.f32 %v9454_v44, %v9453_v7  ;;  %v9307_v10 = vadd.f32 %v9306_v28, %v9305_v22  ;;  %v16269_v9 = vpop.f32.mrf.mxu2 }
 0x9a7   : > { %v9458_v45 = vsel %vm543_vm1, %v9405_v8, 0.0  ;;  %v9162_v44 = vadd.f32 %v16047_v6, %v15812_v61  ;;  %v16257_v28 = vadd.f32 %v16118_v18, %v9161_v55  ;;  %vm18158_vm3 = vcmp.eq.s32.totalorder %v18157_v30, 1  ;;  %v18159_v61 = vld [vmem:[#allocation70_spill] sm:$0xff] }
 0x9a8   : > { %v9457_v26 = vadd.f32 %v9456_v49, %v9455_v0  ;;  %v9309_v3 = vadd.f32 %v9308_v17, %v9307_v10  ;;  %v9259_v14 = vsel %vm18158_vm3, %v16240_v43, 0.0  ;;  %v9163_v10 = vadd.f32 %v16050_v48, %v15825_v24  ;;  %v16276_v17 = vpop.f32.mrf.mxu0 }
 0x9a9   : > { %v7564_v6 = vadd.f32 %v15969_v53, %v18159_v61  ;;  %v9312_v7 = vsel %vm543_vm1, %v9257_v51, 0.0  ;;  %v9462_v22 = vsel %vm543_vm1, %v9407_v34, 0.0  ;;  %vm18161_vm6 = vcmp.eq.s32.totalorder %v18160_v21, 1  ;;  %v18162_v51 = vld [vmem:[#allocation28_spill] sm:$0xff]  ;;  %v18166_v61 = vld [vmem:[#allocation30_spill] sm:$0xff] }
 0x9aa   : > { %v9459_v54 = vadd.f32 %v9458_v45, %v9457_v26  ;;  %v9260_v49 = vsel %vm18161_vm6, %v16247_v23, 0.0  ;;  %v9311_v58 = vadd.f32 %v9310_v16, %v9309_v3  ;;  %v16280_v48 = vadd.f32 %v16118_v18, %v9162_v44 }
 0x9ab   : > { %v9464_v53 = vsel %vm543_vm1, %v9408_v62, 0.0  ;;  %v9409_v55 = vmul.f32 %v9259_v14, %v9259_v14  ;;  %vm18163_vm10 = vcmp.eq.s32.totalorder %v18162_v51, 1  ;;  %v9164_v50 = vadd.f32 %v16053_v42, %v15836_v12  ;;  %v18164_v12 = vld [vmem:[#allocation29_spill] sm:$0xff] }
 0x9ac   : > { %v9461_v24 = vadd.f32 %v9460_v33, %v9459_v54  ;;  %v9261_v0 = vsel %vm18163_vm10, %v16257_v28, 0.0  ;;  %v9313_v45 = vadd.f32 %v9312_v7, %v9311_v58  ;;  %v9410_v26 = vmul.f32 %v9260_v49, %v9260_v49 }
 0x9ad   : > { %v9110_v8 = vpop.f32.mrf.mxu1  ;;  %v16289_v3 = vadd.f32 %v16118_v18, %v9163_v10  ;;  %v7970_v44 = vadd.f32 %v16206_v56, %v7564_v6  ;;  %v9316_v16 = vsel %vm543_vm1, %v9259_v14, 0.0  ;;  %v9165_v33 = vadd.f32 %v16056_v35, %v15847_v25  ;;  %v16308_v14 = vpop.f32.mrf.mxu3 }
 0x9ae   : > { %v16265_v19 = vadd.f32 %v9110_v8, %v15991_v63  ;;  %v9314_v63 = vsel %vm543_vm1, %v9258_v36, 0.0  ;;  %v9463_v34 = vadd.f32 %v9462_v22, %v9461_v24  ;;  %v16292_v36 = vadd.f32 %v16189_v59, %v7969_v52 }
 0x9af   : > { %v9315_v62 = vadd.f32 %v9314_v63, %v9313_v45  ;;  %v9411_v54 = vmul.f32 %v9261_v0, %v9261_v0  ;;  %vm18165_vm9 = vcmp.eq.s32.totalorder %v18164_v12, 1  ;;  %v9466_v30 = vsel %vm543_vm1, %v9409_v55, 0.0  ;;  %v18171_v45 = vld [vmem:[#allocation144_spill] sm:$0xff]  ;;  %v18174_v12 = vld [vmem:[#allocation34_spill] sm:$0xff] }
 0x9b0   : > { %v9465_v8 = vadd.f32 %v9464_v53, %v9463_v34  ;;  %v9262_v42 = vsel %vm18165_vm9, %v16280_v48, 0.0  ;;  %v9318_v10 = vsel %vm543_vm1, %v9260_v49, 0.0  ;;  %v16304_v59 = vadd.f32 %v16118_v18, %v9164_v50  ;;  %v7910_v53 = vpop.f32.mrf.mxu2  ;;  %v18170_v50 = vld [vmem:[#allocation80_spill] sm:$0xff] }
 0x9b1   : > { %v9166_v56 = vadd.f32 %v16059_v47, %v15859_v41  ;;  %v9317_v25 = vadd.f32 %v9316_v16, %v9315_v62  ;;  %v9468_v35 = vsel %vm543_vm1, %v9410_v26, 0.0  ;;  %vm18167_vm14 = vcmp.eq.s32.totalorder %v18166_v61, 1  ;;  %v16333_v26 = vpop.f32.mrf.mxu0  ;;  %v18173_v16 = vld [vmem:[#allocation89_spill] sm:$0xff] }
 0x9b2   : > { %v9263_v6 = vsel %vm18167_vm14, %v16289_v3, 0.0  ;;  %v9320_v22 = vsel %vm543_vm1, %v9261_v0, 0.0  ;;  %v9412_v21 = vmul.f32 %v9262_v42, %v9262_v42  ;;  %v16319_v49 = vadd.f32 %v16118_v18, %v9165_v33 }
 0x9b3   : > { %v9167_v41 = vadd.f32 %v16062_v37, %v15871_v15  ;;  %v9467_v47 = vadd.f32 %v9466_v30, %v9465_v8  ;;  %v9319_v58 = vadd.f32 %v9318_v10, %v9317_v25  ;;  %v9470_v24 = vsel %vm543_vm1, %v9411_v54, 0.0  ;;  %v18172_v37 = vld [vmem:[#allocation74_spill] sm:$0xff]  ;;  %v18176_v10 = vld [vmem:[#allocation83_spill] sm:$0xff] }
 0x9b4   : > { %v9322_v63 = vsel %vm543_vm1, %v9262_v42, 0.0  ;;  %v9413_v55 = vmul.f32 %v9263_v6, %v9263_v6  ;;  %v16329_v0 = vadd.f32 %v16118_v18, %v9166_v56  ;;  %v9168_v34 = vadd.f32 %v18171_v45, %v18170_v50  ;;  %v18177_v56 = vld [vmem:[#allocation11_spill] sm:$0xff] }
 0x9b5   : > { %v9113_v52 = vpop.f32.mrf.mxu1  ;;  %v16336_v15 = vadd.f32 %v16250_v60, %v7970_v44  ;;  %v7565_v33 = vadd.f32 %v18173_v16, %v18172_v37  ;;  %v9469_v62 = vadd.f32 %v9468_v35, %v9467_v47  ;;  %v9321_v8 = vadd.f32 %v9320_v22, %v9319_v58  ;;  %v18178_v22 = vld [vmem:[#allocation35_spill] sm:$0xff]  ;;  %v18181_v58 = vld [vmem:[#allocation84_spill] sm:$0xff] }
 0x9b6   : > { %v16315_v7 = vadd.f32 %v9113_v52, %v15996_v38  ;;  %v18168_v38 = vld [vmem:[#allocation31_spill] sm:$0xff]  ;;  %v9472_v54 = vsel %vm543_vm1, %v9412_v21, 0.0  ;;  %vm18175_vm2 = vcmp.eq.s32.totalorder %v18174_v12, 1  ;;  %v16345_v30 = vadd.f32 %v16118_v18, %v9167_v41 }
 0x9b7   : > { %vm18169_vm15 = vcmp.eq.s32.totalorder %v18168_v38, 1  ;;  %v9265_v42 = vsel %vm18175_vm2, %v16319_v49, 0.0  ;;  %v9169_v52 = vadd.f32 %v18177_v56, %v18176_v10  ;;  %v9471_v25 = vadd.f32 %v9470_v24, %v9469_v62  ;;  %v18182_v41 = vld [vmem:[#allocation147_spill] sm:$0xff]  ;;  %v8316_v10 = vpop.f32.mrf.mxu3 }
 0x9b8   : > { %v9264_v51 = vsel %vm18169_vm15, %v16304_v59, 0.0  ;;  %v9323_v60 = vadd.f32 %v9322_v63, %v9321_v8  ;;  %v9324_v44 = vsel %vm543_vm1, %v9263_v6, 0.0  ;;  %v9474_v35 = vsel %vm543_vm1, %v9413_v55, 0.0  ;;  %v18183_v55 = vld [vmem:[#allocation36_spill] sm:$0xff]  ;;  %v18186_v8 = vld [vmem:[#allocation13_spill] sm:$0xff] }
 0x9b9   : > { %v9414_v61 = vmul.f32 %v9264_v51, %v9264_v51  ;;  %vm18179_vm8 = vcmp.eq.s32.totalorder %v18178_v22, 1  ;;  %v16355_v47 = vadd.f32 %v16118_v18, %v9168_v34  ;;  %v9170_v38 = vadd.f32 %v18182_v41, %v18181_v58  ;;  %v18185_v34 = vld [vmem:[#allocation87_spill] sm:$0xff] }
 0x9ba   : > { %v9266_v21 = vsel %vm18179_vm8, %v16329_v0, 0.0  ;;  %v7971_v24 = vadd.f32 %v16269_v9, %v7565_v33  ;;  %v9473_v63 = vadd.f32 %v9472_v54, %v9471_v25  ;;  %v9326_v6 = vsel %vm543_vm1, %v9264_v51, 0.0  ;;  %v18187_v54 = vld [vmem:[#allocation37_spill] sm:$0xff]  ;;  %v18191_v41 = vld [vmem:[#allocation75_spill] sm:$0xff] }
 0x9bb   : > { %18180 = vst [vmem:[#allocation92_spill] sm:$0xff] %v16355_v47  ;;  %v9415_v45 = vmul.f32 %v9265_v42, %v9265_v42  ;;  %v9325_v37 = vadd.f32 %v9324_v44, %v9323_v60  ;;  %vm18184_vm4 = vcmp.eq.s32.totalorder %v18183_v55, 1  ;;  %v16367_v62 = vadd.f32 %v16118_v18, %v9169_v52  ;;  %v18189_v52 = vld [vmem:[#allocation85_spill] sm:$0xff]  ;;  %v18190_v44 = vld [vmem:[#allocation152_spill] sm:$0xff]  ;;  %v18192_v55 = vld [vmem:[#allocation91_spill] sm:$0xff] }
 0x9bc   : > { %v9267_v16 = vsel %vm18184_vm4, %v16345_v30, 0.0  ;;  %v9171_v12 = vadd.f32 %v18186_v8, %v18185_v34  ;;  %v9475_v56 = vadd.f32 %v9474_v35, %v9473_v63  ;;  %v9476_v22 = vsel %vm543_vm1, %v9414_v61, 0.0  ;;  %v7913_v63 = vpop.f32.mrf.mxu2  ;;  %v18193_v8 = vld [vmem:[#allocation38_spill] sm:$0xff] }
 0x9bd   : > { %v16359_v50 = vpop.f32.mrf.mxu1  ;;  %v9328_v9 = vsel %vm543_vm1, %v9265_v42, 0.0  ;;  %v9416_v33 = vmul.f32 %v9266_v21, %v9266_v21  ;;  %v9327_v51 = vadd.f32 %v9326_v6, %v9325_v37  ;;  %vm18188_vm7 = vcmp.eq.s32.totalorder %v18187_v54, 1 }
 0x9be   : > { %v9268_v25 = vsel %vm18188_vm7, %v16355_v47, 0.0  ;;  %v16377_v60 = vadd.f32 %v16118_v18, %v9170_v38  ;;  %v9172_v58 = vadd.f32 %v18190_v44, %v18189_v52  ;;  %v7566_v34 = vadd.f32 %v18192_v55, %v18191_v41  ;;  %v16391_v47 = vpop.f32.mrf.mxu0 }
 0x9bf   : > { %v9478_v35 = vsel %vm543_vm1, %v9415_v45, 0.0  ;;  %v9330_v61 = vsel %vm543_vm1, %v9266_v21, 0.0  ;;  %v9417_v42 = vmul.f32 %v9267_v16, %v9267_v16  ;;  %v9477_v6 = vadd.f32 %v9476_v22, %v9475_v56  ;;  %v18196_v56 = vld [vmem:[#allocation39_spill] sm:$0xff] }
 0x9c0   : > { %v9329_v37 = vadd.f32 %v9328_v9, %v9327_v51  ;;  %vm18194_vm11 = vcmp.eq.s32.totalorder %v18193_v8, 1  ;;  %v16389_v38 = vadd.f32 %v16118_v18, %v9171_v12  ;;  %v7972_v52 = vadd.f32 %v7910_v53, %v7566_v34 }
 0x9c1   : > { %v9269_v54 = vsel %vm18194_vm11, %v16367_v62, 0.0  ;;  %v9480_v44 = vsel %vm543_vm1, %v9416_v33, 0.0  ;;  %v9332_v45 = vsel %vm543_vm1, %v9267_v16, 0.0  ;;  %v9418_v41 = vmul.f32 %v9268_v25, %v9268_v25 }
 0x9c2   : > { %18195 = vst [vmem:[#allocation16_spill] sm:$0xff] %v16389_v38  ;;  %v9479_v21 = vadd.f32 %v9478_v35, %v9477_v6  ;;  %v9331_v55 = vadd.f32 %v9330_v61, %v9329_v37  ;;  %vm18197_vm13 = vcmp.eq.s32.totalorder %v18196_v56, 1  ;;  %v16399_v9 = vadd.f32 %v16118_v18, %v9172_v58  ;;  %v18199_v61 = vld [vmem:[#allocation40_spill] sm:$0xff] }
 0x9c3   : > { %v9270_v22 = vsel %vm18197_vm13, %v16377_v60, 0.0  ;;  %v16404_v12 = vadd.f32 %v16308_v14, %v7971_v24  ;;  %v9482_v53 = vsel %vm543_vm1, %v9417_v42, 0.0  ;;  %v9334_v33 = vsel %vm543_vm1, %v9268_v25, 0.0 }
 0x9c4   : > { %18198 = vst [vmem:[#allocation143_spill] sm:$0xff] %v16399_v9  ;;  %v9419_v16 = vmul.f32 %v9269_v54, %v9269_v54  ;;  %v9481_v34 = vadd.f32 %v9480_v44, %v9479_v21  ;;  %v9333_v35 = vadd.f32 %v9332_v45, %v9331_v55  ;;  %vm18200_vm5 = vcmp.eq.s32.totalorder %v18199_v61, 1  ;;  %v18202_v44 = vld [vmem:[#allocation41_spill] sm:$0xff]  ;;  %v18205_v55 = vld [vmem:[#allocation76_spill] sm:$0xff] }
 0x9c5   : > { %v16401_v51 = vpop.f32.mrf.mxu1  ;;  %v9271_v6 = vsel %vm18200_vm5, %v16389_v38, 0.0  ;;  %v16413_v58 = vadd.f32 %v16118_v18, %v16081_v1  ;;  %v16415_v37 = vadd.f32 %v8316_v10, %v7972_v52  ;;  %v9484_v14 = vsel %vm543_vm1, %v9418_v41, 0.0  ;;  %v18206_v1 = vld [vmem:[#allocation95_spill] sm:$0xff]  ;;  %v8319_v10 = vpop.f32.mrf.mxu3 }
 0x9c6   : > { %v9336_v24 = vsel %vm543_vm1, %v9269_v54, 0.0  ;;  %v9420_v42 = vmul.f32 %v9270_v22, %v9270_v22  ;;  %v9483_v8 = vadd.f32 %v9482_v53, %v9481_v34  ;;  %v9335_v25 = vadd.f32 %v9334_v33, %v9333_v35  ;;  %v18207_v33 = vld [vmem:[#allocation42_spill] sm:$0xff] }
 0x9c7   : > { %18201 = vst [vmem:[#allocation138_spill] sm:$0xff] %v16413_v58  ;;  %vm18203_vm0 = vcmp.eq.s32.totalorder %v18202_v44, 1  ;;  %v16424_v21 = vadd.f32 %v16118_v18, %v16085_v40  ;;  %v7567_v56 = vadd.f32 %v18206_v1, %v18205_v55  ;;  %v9486_v52 = vsel %vm543_vm1, %v9419_v16, 0.0  ;;  %v7916_v16 = vpop.f32.mrf.mxu2 }
 0x9c8   : > { %v9272_v45 = vsel %vm18203_vm0, %v16399_v9, 0.0  ;;  %v9338_v41 = vsel %vm543_vm1, %v9270_v22, 0.0  ;;  %v9421_v54 = vmul.f32 %v9271_v6, %v9271_v6  ;;  %v9485_v61 = vadd.f32 %v9484_v14, %v9483_v8  ;;  %v18209_v14 = vld [vmem:[#allocation43_spill] sm:$0xff] }
 0x9c9   : > { %18204 = vst [vmem:[#allocation109_spill] sm:$0xff] %v16424_v21  ;;  %v9337_v53 = vadd.f32 %v9336_v24, %v9335_v25  ;;  %vm18208_vm12 = vcmp.eq.s32.totalorder %v18207_v33, 1  ;;  %v16435_v35 = vadd.f32 %v16118_v18, %v16089_v31  ;;  %v7973_v40 = vadd.f32 %v7913_v63, %v7567_v56  ;;  %v16448_v31 = vpop.f32.mrf.mxu0  ;;  %v18211_v63 = vld [vmem:[#allocation69_spill] sm:$0xff]  ;;  %v18213_v33 = vld [vmem:[#allocation44_spill] sm:$0xff] }
 0x9ca   : > { %v9273_v34 = vsel %vm18208_vm12, %v16413_v58, 0.0  ;;  %v9488_v44 = vsel %vm543_vm1, %v9420_v42, 0.0  ;;  %v9340_v55 = vsel %vm543_vm1, %v9271_v6, 0.0  ;;  %v9422_v1 = vmul.f32 %v9272_v45, %v9272_v45  ;;  %v18212_v42 = vld [vmem:[#allocation131_spill] sm:$0xff] }
 0x9cb   : > { %v9487_v9 = vadd.f32 %v9486_v52, %v9485_v61  ;;  %v9339_v22 = vadd.f32 %v9338_v41, %v9337_v53  ;;  %vm18210_vm3 = vcmp.eq.s32.totalorder %v18209_v14, 1  ;;  %v16444_v8 = vadd.f32 %v16118_v18, %v16093_v46 }
 0x9cc   : > { %v9274_v24 = vsel %vm18210_vm3, %v16424_v21, 0.0  ;;  %v7568_v56 = vadd.f32 %v18212_v42, %v18211_v63  ;;  %v9490_v6 = vsel %vm543_vm1, %v9421_v54, 0.0  ;;  %v9342_v52 = vsel %vm543_vm1, %v9272_v45, 0.0  ;;  %v18216_v45 = vld [vmem:[#allocation45_spill] sm:$0xff] }
 0x9cd   : > { %v16446_v25 = vpop.f32.mrf.mxu1  ;;  %v9423_v41 = vmul.f32 %v9273_v34, %v9273_v34  ;;  %v9489_v61 = vadd.f32 %v9488_v44, %v9487_v9  ;;  %v9341_v53 = vadd.f32 %v9340_v55, %v9339_v22  ;;  %vm18214_vm6 = vcmp.eq.s32.totalorder %v18213_v33, 1 }
 0x9ce   : > { %v9275_v14 = vsel %vm18214_vm6, %v16435_v35, 0.0  ;;  %v16459_v46 = vadd.f32 %v16118_v18, %v16097_v39  ;;  %v7974_v21 = vadd.f32 %v7916_v16, %v7568_v56  ;;  %v9492_v58 = vsel %vm543_vm1, %v9422_v1, 0.0 }
 0x9cf   : > { %v9344_v63 = vsel %vm543_vm1, %v9273_v34, 0.0  ;;  %v9424_v42 = vmul.f32 %v9274_v24, %v9274_v24  ;;  %v9491_v54 = vadd.f32 %v9490_v6, %v9489_v61  ;;  %v9343_v38 = vadd.f32 %v9342_v52, %v9341_v53  ;;  %v18220_v6 = vld [vmem:[#allocation46_spill] sm:$0xff]  ;;  %v8322_v61 = vpop.f32.mrf.mxu3 }
 0x9d0   : > { %18215 = vst [vmem:[#allocation140_spill] sm:$0xff] %v16459_v46  ;;  %vm18217_vm10 = vcmp.eq.s32.totalorder %v18216_v45, 1  ;;  %v16468_v44 = vadd.f32 %v16118_v18, %v16101_v32  ;;  %v9494_v55 = vsel %vm543_vm1, %v9423_v41, 0.0  ;;  %v9346_v39 = vsel %vm543_vm1, %v9274_v24, 0.0  ;;  %v18226_v45 = vld [vmem:[#allocation71_spill] sm:$0xff] }
 0x9d1   : > { %v9276_v9 = vsel %vm18217_vm10, %v16444_v8, 0.0  ;;  %v9425_v16 = vmul.f32 %v9275_v14, %v9275_v14  ;;  %v16474_v1 = vadd.f32 %v16118_v18, %v16105_v20  ;;  %v16476_v34 = vadd.f32 %v8319_v10, %v7973_v40 }
 0x9d2   : > { %18218 = vst [vmem:[#allocation114_spill] sm:$0xff] %v16468_v44  ;;  %v9493_v22 = vadd.f32 %v9492_v58, %v9491_v54  ;;  %v9345_v56 = vadd.f32 %v9344_v63, %v9343_v38  ;;  %vm18221_vm9 = vcmp.eq.s32.totalorder %v18220_v6, 1  ;;  %v9496_v32 = vsel %vm543_vm1, %v9424_v42, 0.0  ;;  %v18222_v38 = vld [vmem:[#allocation47_spill] sm:$0xff]  ;;  %v18224_v54 = vld [vmem:[#allocation48_spill] sm:$0xff] }
 0x9d3   : > { %18219 = vst [vmem:[#allocation103_spill] sm:$0xff] %v16474_v1  ;;  %v9277_v52 = vsel %vm18221_vm9, %v16459_v46, 0.0  ;;  %v9348_v41 = vsel %vm543_vm1, %v9275_v14, 0.0  ;;  %v9426_v53 = vmul.f32 %v9276_v9, %v9276_v9  ;;  %v16485_v24 = vadd.f32 %v16118_v18, %v16111_v2 }
 0x9d4   : > { %v16487_v20 = vadd.f32 %v8322_v61, %v7974_v21  ;;  %v9495_v10 = vadd.f32 %v9494_v55, %v9493_v22  ;;  %v9347_v40 = vadd.f32 %v9346_v39, %v9345_v56  ;;  %vm18223_vm14 = vcmp.eq.s32.totalorder %v18222_v38, 1  ;;  %v18227_v21 = vld [vmem:[#allocation133_spill] sm:$0xff]  ;;  %v18228_v22 = vld [vmem:[#allocation100_spill] sm:$0xff]  ;;  %v8725_v61 = vpop.f32.mrf.mxu0 }
 0x9d5   : > { %v9278_v58 = vsel %vm18223_vm14, %v16468_v44, 0.0  ;;  %v16492_v33 = vpop.f32.mrf.mxu1  ;;  %v9498_v63 = vsel %vm543_vm1, %v9425_v16, 0.0  ;;  %v9350_v42 = vsel %vm543_vm1, %v9276_v9, 0.0  ;;  %v9427_v14 = vmul.f32 %v9277_v52, %v9277_v52  ;;  %v18229_v44 = vld [vmem:[#allocation49_spill] sm:$0xff] }
 0x9d6   : > { %vm18225_vm15 = vcmp.eq.s32.totalorder %v18224_v54, 1  ;;  %v16501_v6 = vadd.f32 %v18227_v21, %v18226_v45  ;;  %v9497_v55 = vadd.f32 %v9496_v32, %v9495_v10  ;;  %v9349_v39 = vadd.f32 %v9348_v41, %v9347_v40 }
 0x9d7   : > { %v9279_v2 = vsel %vm18225_vm15, %v16474_v1, 0.0  ;;  %v16505_v56 = vadd.f32 %v16118_v18, %v18228_v22  ;;  %v9500_v16 = vsel %vm543_vm1, %v9426_v53, 0.0  ;;  %v9352_v9 = vsel %vm543_vm1, %v9277_v52, 0.0 }
 0x9d8   : > { %v9428_v38 = vmul.f32 %v9278_v58, %v9278_v58  ;;  %vm18230_vm2 = vcmp.eq.s32.totalorder %v18229_v44, 1  ;;  %v9499_v1 = vadd.f32 %v9498_v63, %v9497_v55  ;;  %v9351_v46 = vadd.f32 %v9350_v42, %v9349_v39  ;;  %v18231_v63 = vld [vmem:[#allocation50_spill] sm:$0xff] }
 0x9d9   : > { %v9280_v54 = vsel %vm18230_vm2, %v16485_v24, 0.0  ;;  %v9429_v45 = vmul.f32 %v9279_v2, %v9279_v2  ;;  %v16514_v32 = vadd.f32 %v16118_v18, %v16173_v13  ;;  %v9502_v41 = vsel %vm543_vm1, %v9427_v14, 0.0 }
 0x9da   : > { %v9354_v10 = vsel %vm543_vm1, %v9278_v58, 0.0  ;;  %v8780_v53 = vadd.f32 %v16210_v4, %v16243_v5  ;;  %v8781_v52 = vadd.f32 %v16276_v17, %v16292_v36  ;;  %v9501_v40 = vadd.f32 %v9500_v16, %v9499_v1 }
 0x9db   : > { %v9353_v44 = vadd.f32 %v9352_v9, %v9351_v46  ;;  %v9430_v21 = vmul.f32 %v9280_v54, %v9280_v54  ;;  %vm18232_vm8 = vcmp.eq.s32.totalorder %v18231_v63, 1  ;;  %v9504_v13 = vsel %vm543_vm1, %v9428_v38, 0.0  ;;  %v18233_v46 = vld [vmem:[#allocation51_spill] sm:$0xff]  ;;  %v18237_v63 = vld [vmem:[#allocation53_spill] sm:$0xff] }
 0x9dc   : > { %v9281_v42 = vsel %vm18232_vm8, %v16505_v56, 0.0  ;;  %v9356_v55 = vsel %vm543_vm1, %v9279_v2, 0.0  ;;  %v16529_v58 = vadd.f32 %v16118_v18, %v16221_v57  ;;  %v8782_v4 = vadd.f32 %v16333_v26, %v16336_v15 }
 0x9dd   : > { %v9503_v5 = vadd.f32 %v9502_v41, %v9501_v40  ;;  %v9355_v17 = vadd.f32 %v9354_v10, %v9353_v44  ;;  %v9506_v36 = vsel %vm543_vm1, %v9429_v45, 0.0  ;;  %vm18234_vm4 = vcmp.eq.s32.totalorder %v18233_v46, 1  ;;  %v9128_v14 = vpop.f32.mrf.mxu1  ;;  %v18235_v45 = vld [vmem:[#allocation52_spill] sm:$0xff]  ;;  %v8728_v44 = vpop.f32.mrf.mxu0 }
 0x9de   : > { %v9282_v1 = vsel %vm18234_vm4, %v16514_v32, 0.0  ;;  %v9358_v39 = vsel %vm543_vm1, %v9280_v54, 0.0  ;;  %v9431_v22 = vmul.f32 %v9281_v42, %v9281_v42  ;;  %v16540_v2 = vadd.f32 %v16118_v18, %v16265_v19 }
 0x9df   : > { %v9186_v57 = vadd.f32 %v16359_v50, %v8780_v53  ;;  %v9505_v16 = vadd.f32 %v9504_v13, %v9503_v5  ;;  %v9357_v26 = vadd.f32 %v9356_v55, %v9355_v17  ;;  %v9508_v15 = vsel %vm543_vm1, %v9430_v21, 0.0 }
 0x9e0   : > { %v9360_v9 = vsel %vm543_vm1, %v9281_v42, 0.0  ;;  %v9432_v38 = vmul.f32 %v9282_v1, %v9282_v1  ;;  %vm18236_vm7 = vcmp.eq.s32.totalorder %v18235_v45, 1  ;;  %v16550_v54 = vadd.f32 %v16118_v18, %v16315_v7 }
 0x9e1   : > { %v9283_v41 = vsel %vm18236_vm7, %v16529_v58, 0.0  ;;  %v9187_v19 = vadd.f32 %v16401_v51, %v8781_v52  ;;  %v9507_v10 = vadd.f32 %v9506_v36, %v9505_v16  ;;  %v9359_v40 = vadd.f32 %v9358_v39, %v9357_v26  ;;  %v7919_v52 = vpop.f32.mrf.mxu2 }
 0x9e2   : > { %v8783_v50 = vadd.f32 %v16391_v47, %v16404_v12  ;;  %v8784_v53 = vadd.f32 %v16448_v31, %v16415_v37  ;;  %v9510_v21 = vsel %vm543_vm1, %v9431_v22, 0.0  ;;  %vm18238_vm11 = vcmp.eq.s32.totalorder %v18237_v63, 1  ;;  %v18239_v31 = vld [vmem:[#allocation54_spill] sm:$0xff] }
 0x9e3   : > { %v9284_v42 = vsel %vm18238_vm11, %v16540_v2, 0.0  ;;  %v16562_v7 = vadd.f32 %v16118_v18, %v9186_v57  ;;  %v9188_v51 = vadd.f32 %v16446_v25, %v8782_v4  ;;  %v9509_v13 = vadd.f32 %v9508_v15, %v9507_v10  ;;  %v18241_v57 = vld [vmem:[#allocation55_spill] sm:$0xff] }
 0x9e4   : > { %v9361_v55 = vadd.f32 %v9360_v9, %v9359_v40  ;;  %v9362_v47 = vsel %vm543_vm1, %v9282_v1, 0.0  ;;  %v9433_v12 = vmul.f32 %v9283_v41, %v9283_v41  ;;  %v9512_v37 = vsel %vm543_vm1, %v9432_v38, 0.0 }
 0x9e5   : > { %vm18240_vm13 = vcmp.eq.s32.totalorder %v18239_v31, 1  ;;  %v16571_v17 = vadd.f32 %v16118_v18, %v9187_v19  ;;  %v9189_v36 = vadd.f32 %v16492_v33, %v8783_v50  ;;  %v9511_v46 = vadd.f32 %v9510_v21, %v9509_v13  ;;  %v9131_v22 = vpop.f32.mrf.mxu1  ;;  %v18243_v19 = vld [vmem:[#allocation56_spill] sm:$0xff]  ;;  %v8325_v50 = vpop.f32.mrf.mxu3 }
 0x9e6   : > { %v9285_v5 = vsel %vm18240_vm13, %v16550_v54, 0.0  ;;  %v9364_v25 = vsel %vm543_vm1, %v9283_v41, 0.0  ;;  %v9434_v4 = vmul.f32 %v9284_v42, %v9284_v42  ;;  %v8785_v39 = vadd.f32 %v8725_v61, %v16476_v34 }
 0x9e7   : > { %v9363_v1 = vadd.f32 %v9362_v47, %v9361_v55  ;;  %vm18242_vm5 = vcmp.eq.s32.totalorder %v18241_v57, 1  ;;  %v16580_v26 = vadd.f32 %v16118_v18, %v9188_v51  ;;  %v9190_v15 = vadd.f32 %v9128_v14, %v8784_v53  ;;  %v18245_v51 = vld [vmem:[#allocation57_spill] sm:$0xff] }
 0x9e8   : > { %v9286_v16 = vsel %vm18242_vm5, %v16562_v7, 0.0  ;;  %v9513_v9 = vadd.f32 %v9512_v37, %v9511_v46  ;;  %v9514_v38 = vsel %vm543_vm1, %v9433_v12, 0.0  ;;  %v9366_v33 = vsel %vm543_vm1, %v9284_v42, 0.0  ;;  %v8731_v37 = vpop.f32.mrf.mxu0 }
 0x9e9   : > { %v9435_v45 = vmul.f32 %v9285_v5, %v9285_v5  ;;  %v9365_v41 = vadd.f32 %v9364_v25, %v9363_v1  ;;  %vm18244_vm0 = vcmp.eq.s32.totalorder %v18243_v19, 1  ;;  %v16588_v61 = vadd.f32 %v16118_v18, %v9189_v36  ;;  %v18247_v36 = vld [vmem:[#allocation58_spill] sm:$0xff] }
 0x9ea   : > { %v9287_v34 = vsel %vm18244_vm0, %v16571_v17, 0.0  ;;  %v9191_v10 = vadd.f32 %v9131_v22, %v8785_v39  ;;  %v7975_v40 = vadd.f32 %v7919_v52, %v16501_v6  ;;  %v9516_v14 = vsel %vm543_vm1, %v9434_v4, 0.0  ;;  %v7922_v4 = vpop.f32.mrf.mxu2 }
 0x9eb   : > { %v9368_v53 = vsel %vm543_vm1, %v9285_v5, 0.0  ;;  %v9436_v21 = vmul.f32 %v9286_v16, %v9286_v16  ;;  %v9515_v63 = vadd.f32 %v9514_v38, %v9513_v9  ;;  %v9367_v42 = vadd.f32 %v9366_v33, %v9365_v41 }
 0x9ec   : > { %vm18246_vm12 = vcmp.eq.s32.totalorder %v18245_v51, 1  ;;  %v16597_v55 = vadd.f32 %v16118_v18, %v9190_v15  ;;  %v9518_v47 = vsel %vm543_vm1, %v9435_v45, 0.0  ;;  %v9370_v12 = vsel %vm543_vm1, %v9286_v16, 0.0 }
 0x9ed   : > { %v9288_v13 = vsel %vm18246_vm12, %v16580_v26, 0.0  ;;  %v9437_v6 = vmul.f32 %v9287_v34, %v9287_v34  ;;  %v8786_v52 = vadd.f32 %v8728_v44, %v16487_v20  ;;  %v9517_v31 = vadd.f32 %v9516_v14, %v9515_v63  ;;  %v9134_v57 = vpop.f32.mrf.mxu1  ;;  %v18249_v20 = vld [vmem:[#allocation59_spill] sm:$0xff]  ;;  %v18251_v14 = vld [vmem:[#allocation60_spill] sm:$0xff] }
 0x9ee   : > { %v9369_v5 = vadd.f32 %v9368_v53, %v9367_v42  ;;  %vm18248_vm3 = vcmp.eq.s32.totalorder %v18247_v36, 1  ;;  %v16606_v25 = vadd.f32 %v16118_v18, %v9191_v10  ;;  %v9520_v39 = vsel %vm543_vm1, %v9436_v21, 0.0 }
 0x9ef   : > { %v9289_v46 = vsel %vm18248_vm3, %v16588_v61, 0.0  ;;  %v9372_v22 = vsel %vm543_vm1, %v9287_v34, 0.0  ;;  %v9438_v1 = vmul.f32 %v9288_v13, %v9288_v13  ;;  %v9519_v16 = vadd.f32 %v9518_v47, %v9517_v31 }
 0x9f0   : > { %v9371_v15 = vadd.f32 %v9370_v12, %v9369_v5  ;;  %vm18250_vm6 = vcmp.eq.s32.totalorder %v18249_v20, 1  ;;  %v9192_v9 = vadd.f32 %v9134_v57, %v8786_v52  ;;  %v8381_v38 = vadd.f32 %v8325_v50, %v7975_v40  ;;  %v18253_v40 = vld [vmem:[#allocation77_spill] sm:$0xff]  ;;  %v8328_v52 = vpop.f32.mrf.mxu3 }
 0x9f1   : > { %v9290_v44 = vsel %vm18250_vm6, %v16597_v55, 0.0  ;;  %v9522_v33 = vsel %vm543_vm1, %v9437_v6, 0.0  ;;  %v9374_v45 = vsel %vm543_vm1, %v9288_v13, 0.0  ;;  %v9439_v41 = vmul.f32 %v9289_v46, %v9289_v46  ;;  %v18254_v50 = vld [vmem:[#allocation137_spill] sm:$0xff] }
 0x9f2   : > { %v9521_v19 = vadd.f32 %v9520_v39, %v9519_v16  ;;  %v9373_v10 = vadd.f32 %v9372_v22, %v9371_v15  ;;  %vm18252_vm10 = vcmp.eq.s32.totalorder %v18251_v14, 1  ;;  %v16619_v53 = vadd.f32 %v16118_v18, %v9192_v9  ;;  %v18255_v12 = vld [vmem:[#allocation61_spill] sm:$0xff] }
 0x9f3   : > { %v9291_v34 = vsel %vm18252_vm10, %v16606_v25, 0.0  ;;  %v9524_v21 = vsel %vm543_vm1, %v9438_v1, 0.0  ;;  %v9376_v63 = vsel %vm543_vm1, %v9289_v46, 0.0  ;;  %v9440_v42 = vmul.f32 %v9290_v44, %v9290_v44 }
 0x9f4   : > { %v7570_v51 = vadd.f32 %v18254_v50, %v18253_v40  ;;  %v9523_v47 = vadd.f32 %v9522_v33, %v9521_v19  ;;  %v9375_v13 = vadd.f32 %v9374_v45, %v9373_v10  ;;  %vm18256_vm9 = vcmp.eq.s32.totalorder %v18255_v12, 1  ;;  %v8734_v19 = vpop.f32.mrf.mxu0  ;;  %v7925_v10 = vpop.f32.mrf.mxu2 }
 0x9f5   : > { %v9292_v6 = vsel %vm18256_vm9, %v16619_v53, 0.0  ;;  %v9526_v31 = vsel %vm543_vm1, %v9439_v41, 0.0  ;;  %v9378_v5 = vsel %vm543_vm1, %v9290_v44, 0.0  ;;  %v9441_v36 = vmul.f32 %v9291_v34, %v9291_v34  ;;  %v9137_v20 = vpop.f32.mrf.mxu1 }
 0x9f6   : > { %v7976_v39 = vadd.f32 %v7922_v4, %v7570_v51  ;;  %v9525_v22 = vadd.f32 %v9524_v21, %v9523_v47  ;;  %v9377_v1 = vadd.f32 %v9376_v63, %v9375_v13  ;;  %v8787_v46 = vadd.f32 %v8731_v37, %v8381_v38  ;;  %v18258_v63 = vld [vmem:[#allocation139_spill] sm:$0xff]  ;;  %v18259_v51 = vld [vmem:[#allocation62_spill] sm:$0xff] }
 0x9f7   : > { %v9528_v57 = vsel %vm543_vm1, %v9440_v42, 0.0  ;;  %v9380_v16 = vsel %vm543_vm1, %v9291_v34, 0.0  ;;  %v9442_v15 = vmul.f32 %v9292_v6, %v9292_v6  ;;  %v9530_v41 = vsel %vm543_vm1, %v9441_v36, 0.0  ;;  %v18257_v34 = vld [vmem:[#allocation79_spill] sm:$0xff] }
 0x9f8   : > { %v9527_v9 = vadd.f32 %v9526_v31, %v9525_v22  ;;  %v9379_v33 = vadd.f32 %v9378_v5, %v9377_v1  ;;  %v9193_v45 = vadd.f32 %v9137_v20, %v8787_v46  ;;  %v9382_v44 = vsel %vm543_vm1, %v9292_v6, 0.0  ;;  %v8331_v36 = vpop.f32.mrf.mxu3 }
 0x9f9   : > { %v8382_v14 = vadd.f32 %v8328_v52, %v7976_v39  ;;  %v9532_v38 = vsel %vm543_vm1, %v9442_v15, 0.0  ;;  %v7571_v42 = vadd.f32 %v18258_v63, %v18257_v34  ;;  %vm18260_vm14 = vcmp.eq.s32.totalorder %v18259_v51, 1 }
 0x9fa   : > { %v9529_v4 = vadd.f32 %v9528_v57, %v9527_v9  ;;  %v9381_v21 = vadd.f32 %v9380_v16, %v9379_v33  ;;  %v16635_v37 = vadd.f32 %v16118_v18, %v9193_v45  ;;  %v18261_v9 = vld [vmem:[#allocation81_spill] sm:$0xff]  ;;  %v18262_v33 = vld [vmem:[#allocation10_spill] sm:$0xff] }
 0x9fb   : > { %v7977_v6 = vadd.f32 %v7925_v10, %v7571_v42  ;;  %v8788_v5 = vadd.f32 %v8734_v19, %v8382_v14  ;;  %v7572_v45 = vadd.f32 %v18262_v33, %v18261_v9  ;;  %v18263_v10 = vld [vmem:[#allocation63_spill] sm:$0xff] }
 0x9fc   : > { %v9531_v40 = vadd.f32 %v9530_v41, %v9529_v4  ;;  %v9383_v50 = vadd.f32 %v9382_v44, %v9381_v21  ;;  %v9293_v47 = vsel %vm18260_vm14, %v16635_v37, 0.0  ;;  %v8737_v15 = vpop.f32.mrf.mxu0  ;;  %v7928_v20 = vpop.f32.mrf.mxu2  ;;  %vm18264_vm15 = vcmp.eq.s32.totalorder %v18263_v10, 1 }
 0x9fd   : > { %v9384_v13 = vsel %vm543_vm1, %v9293_v47, 0.0  ;;  %v9443_v12 = vmul.f32 %v9293_v47, %v9293_v47  ;;  %v9140_v22 = vpop.f32.mrf.mxu1  ;;  %v8383_v57 = vadd.f32 %v8331_v36, %v7977_v6  ;;  %v7978_v14 = vadd.f32 %v7928_v20, %v7572_v45  ;;  %v18266_v47 = vld [vmem:[#allocation64_spill] sm:$0xff] }
 0x9fe   : > { %v9533_v52 = vadd.f32 %v9532_v38, %v9531_v40  ;;  %v9385_v31 = vadd.f32 %v9384_v13, %v9383_v50  ;;  %v9194_v46 = vadd.f32 %v9140_v22, %v8788_v5  ;;  %vm18267_vm2 = vcmp.eq.s32.totalorder %v18266_v47, 1 }
 0x9ff   : > { %v9534_v39 = vsel %vm543_vm1, %v9443_v12, 0.0  ;;  %v8789_v21 = vadd.f32 %v8737_v15, %v8383_v57  ;;  %v18269_v57 = vld [vmem:[#allocation65_spill] sm:$0xff] }
 0xa00   : > { %v9535_v1 = vadd.f32 %v9534_v39, %v9533_v52  ;;  %v16646_v16 = vadd.f32 %v16118_v18, %v9194_v46  ;;  %v8334_v40 = vpop.f32.mrf.mxu3  ;;  %vm18270_vm8 = vcmp.eq.s32.totalorder %v18269_v57, 1  ;;  %v18272_v57 = vld [vmem:[#allocation154_spill] sm:$0xff] }
 0xa01   : > { %v8384_v50 = vadd.f32 %v8334_v40, %v7978_v14 }
 0xa02   : > { %v9294_v41 = vsel %vm18264_vm15, %v16646_v16, 0.0 }
 0xa03   : > { %v9386_v19 = vsel %vm543_vm1, %v9294_v41, 0.0  ;;  %v9444_v44 = vmul.f32 %v9294_v41, %v9294_v41 }
 0xa04   : > { %v9387_v4 = vadd.f32 %v9386_v19, %v9385_v31  ;;  %v8740_v12 = vpop.f32.mrf.mxu0 }
 0xa05   : > { %v9536_v38 = vsel %vm543_vm1, %v9444_v44, 0.0  ;;  %v9143_v34 = vpop.f32.mrf.mxu1  ;;  %v8790_v5 = vadd.f32 %v8740_v12, %v8384_v50 }
 0xa06   : > { %v9537_v63 = vadd.f32 %v9536_v38, %v9535_v1  ;;  %v9195_v42 = vadd.f32 %v9143_v34, %v8789_v21 }
 0xa08   : > { %v16656_v51 = vadd.f32 %v16118_v18, %v9195_v42 }
 0xa0a   : > { %18265 = vst [vmem:[#allocation108_spill] sm:$0xff] %v16656_v51  ;;  %v9295_v13 = vsel %vm18267_vm2, %v16656_v51, 0.0 }
 0xa0b   : > { %v9388_v6 = vsel %vm543_vm1, %v9295_v13, 0.0  ;;  %v9445_v52 = vmul.f32 %v9295_v13, %v9295_v13 }
 0xa0c   : > { %v9389_v31 = vadd.f32 %v9388_v6, %v9387_v4 }
 0xa0d   : > { %v9538_v36 = vsel %vm543_vm1, %v9445_v52, 0.0  ;;  %v9146_v39 = vpop.f32.mrf.mxu1 }
 0xa0e   : > { %v9539_v22 = vadd.f32 %v9538_v36, %v9537_v63  ;;  %v9196_v1 = vadd.f32 %v9146_v39, %v8790_v5 }
 0xa10   : > { %v16664_v46 = vadd.f32 %v16118_v18, %v9196_v1 }
 0xa12   : > { %18268 = vst [vmem:[#allocation86_spill] sm:$0xff] %v16664_v46  ;;  %v9296_v15 = vsel %vm18270_vm8, %v16664_v46, 0.0 }
 0xa13   : > { %v9390_v20 = vsel %vm543_vm1, %v9296_v15, 0.0  ;;  %v9446_v9 = vmul.f32 %v9296_v15, %v9296_v15 }
 0xa14   : > { %v9391_v33 = vadd.f32 %v9390_v20, %v9389_v31  ;;  %v18273_v20 = vld [vmem:[#allocation135_spill] sm:$0xff] }
 0xa15   : > { %v9540_v45 = vsel %vm543_vm1, %v9446_v9, 0.0 }
 0xa16   : > { %v9392_v10 = vrot.slane %v9391_v33, 4  ;;  %v9541_v41 = vadd.f32 %v9540_v45, %v9539_v22  ;;  %v18271_v22 = vld [vmem:[#allocation101_spill] sm:$0xff]  ;;  %v18274_v45 = vld [vmem:[#allocation136_spill] sm:$0xff] }
 0xa18   : > { %v9393_v19 = vadd.f32 %v9392_v10, %v9391_v33  ;;  %v9542_v44 = vrot.slane %v9541_v41, 4 }
 0xa1a   : > { %v9394_v14 = vrot.slane %v9393_v19, 2  ;;  %v9543_v4 = vadd.f32 %v9542_v44, %v9541_v41  ;;  %v18275_v41 = vld [vmem:[#allocation104_spill] sm:$0xff]  ;;  %v18276_v44 = vld [vmem:[#allocation94_spill] sm:$0xff] }
 0xa1c   : > { %v9395_v21 = vadd.f32 %v9394_v14, %v9393_v19  ;;  %v9544_v38 = vrot.slane %v9543_v4, 2 }
 0xa1e   : > { %v9396_v18 = vrot.slane %v9395_v21, 1  ;;  %v9545_v34 = vadd.f32 %v9544_v38, %v9543_v4 }
 0xa20   : > { %v9397_v63 = vadd.f32 %v9396_v18, %v9395_v21  ;;  %v9546_v42 = vrot.slane %v9545_v34, 1  ;;  %v18277_v21 = vld [vmem:[#allocation98_spill] sm:$0xff] }
 0xa22   : > { %v16671_v40 = vmul.f32 0.00390625, %v9397_v63  ;;  %v9547_v50 = vadd.f32 %v9546_v42, %v9545_v34 }
 0xa24   : > { %v9548_v47 = vmul.f32 0.00390625, %v9547_v50  ;;  %v9549_v13 = vmul.f32 %v16671_v40, %v16671_v40  ;;  %v9551_v1 = vsub.f32 %v18271_v22, %v16671_v40  ;;  %v9552_v15 = vsub.f32 %v18272_v57, %v16671_v40 }
 0xa25   : > { %v9553_v9 = vsub.f32 %v18273_v20, %v16671_v40  ;;  %v9554_v10 = vsub.f32 %v18274_v45, %v16671_v40  ;;  %v9555_v19 = vsub.f32 %v18275_v41, %v16671_v40  ;;  %v9556_v14 = vsub.f32 %v18276_v44, %v16671_v40 }
 0xa26   : > { %v9550_v12 = vsub.f32 %v9548_v47, %v9549_v13  ;;  %v9557_v4 = vsub.f32 %v16184_v29, %v16671_v40  ;;  %v9558_v38 = vsub.f32 %v18277_v21, %v16671_v40  ;;  %v9559_v18 = vsub.f32 %v16204_v11, %v16671_v40 }
 0xa27   : > { %v9560_v34 = vsub.f32 %v16216_v27, %v16671_v40  ;;  %v9561_v42 = vsub.f32 %v16240_v43, %v16671_v40  ;;  %v9562_v50 = vsub.f32 %v16247_v23, %v16671_v40  ;;  %v9563_v47 = vsub.f32 %v16257_v28, %v16671_v40  ;;  %v18278_v28 = vld [vmem:[#allocation92_spill] sm:$0xff] }
 0xa28   : > { %v9599_v39 = vadd.f32 1e-05, %v9550_v12  ;;  %v9564_v29 = vsub.f32 %v16280_v48, %v16671_v40  ;;  %v9565_v13 = vsub.f32 %v16289_v3, %v16671_v40  ;;  %v9566_v11 = vsub.f32 %v16304_v59, %v16671_v40  ;;  %v18279_v59 = vld [vmem:[#allocation16_spill] sm:$0xff] }
 0xa29   : > { %v9567_v27 = vsub.f32 %v16319_v49, %v16671_v40  ;;  %v9568_v43 = vsub.f32 %v16329_v0, %v16671_v40  ;;  %v9569_v23 = vsub.f32 %v16345_v30, %v16671_v40  ;;  %v9570_v22 = vsub.f32 %v18278_v28, %v16671_v40  ;;  %v18280_v49 = vld [vmem:[#allocation143_spill] sm:$0xff]  ;;  %v18281_v0 = vld [vmem:[#allocation138_spill] sm:$0xff]  ;;  %v18282_v30 = vld [vmem:[#allocation109_spill] sm:$0xff] }
 0xa2a   : > { %10785 = vrsqrt.f32 %v9599_v39  ;;  %v9571_v48 = vsub.f32 %v16367_v62, %v16671_v40  ;;  %v9572_v3 = vsub.f32 %v16377_v60, %v16671_v40  ;;  %v9573_v57 = vsub.f32 %v18279_v59, %v16671_v40  ;;  %v18283_v60 = vld [vmem:[#allocation140_spill] sm:$0xff]  ;;  %v18284_v28 = vld [vmem:[#allocation114_spill] sm:$0xff] }
 0xa2b   : > { %v9574_v20 = vsub.f32 %v18280_v49, %v16671_v40  ;;  %v9575_v41 = vsub.f32 %v18281_v0, %v16671_v40  ;;  %v9576_v44 = vsub.f32 %v18282_v30, %v16671_v40  ;;  %v9577_v21 = vsub.f32 %v16435_v35, %v16671_v40 }
 0xa2c   : > { %v9578_v62 = vsub.f32 %v16444_v8, %v16671_v40  ;;  %v9580_v59 = vsub.f32 %v18284_v28, %v16671_v40  ;;  %v9582_v30 = vsub.f32 %v16485_v24, %v16671_v40  ;;  %v9583_v35 = vsub.f32 %v16505_v56, %v16671_v40 }
 0xa2d   : > { %v9584_v8 = vsub.f32 %v16514_v32, %v16671_v40  ;;  %v9586_v28 = vsub.f32 %v16540_v2, %v16671_v40  ;;  %vm9606_vm7 = vweird.f32 %v9599_v39  ;;  %v9588_v24 = vsub.f32 %v16562_v7, %v16671_v40 }
 0xa2e   : > { %v9589_v56 = vsub.f32 %v16571_v17, %v16671_v40  ;;  %v9590_v32 = vsub.f32 %v16580_v26, %v16671_v40  ;;  %v9592_v2 = vsub.f32 %v16597_v55, %v16671_v40 }
 0xa30   : > { %v10786_v33 = vpop.eup %10785 }
 0xa31   : > { %v9601_v63 = vmul.f32 %v10786_v33, %v9599_v39  ;;  %vm9607_vm4 = vweird.f32 %v10786_v33  ;;  %v9593_v39 = vsub.f32 %v16606_v25, %v16671_v40 }
 0xa32   : > { %vm9608_vm11 = vmor %vm9606_vm7, %vm9607_vm4 }
 0xa33   : > { %v9602_v12 = vmul.f32 %v10786_v33, %v9601_v63  ;;  %v9579_v63 = vsub.f32 %v18283_v60, %v16671_v40  ;;  %v9585_v60 = vsub.f32 %v16529_v58, %v16671_v40  ;;  %v9591_v58 = vsub.f32 %v16588_v61, %v16671_v40 }
 0xa35   : > { %v9603_v45 = vmul.f32 0.5, %v9602_v12  ;;  %v18285_v12 = vld [vmem:[#allocation103_spill] sm:$0xff] }
 0xa36   : > { %v9581_v0 = vsub.f32 %v18285_v12, %v16671_v40  ;;  %v9587_v12 = vsub.f32 %v16550_v54, %v16671_v40 }
 0xa37   : > { %v9604_v49 = vsub.f32 1.5, %v9603_v45 }
 0xa39   : > { %v9605_v45 = vmul.f32 %v10786_v33, %v9604_v49 }
 0xa3b   : > { %v9609_v54 = vsel %vm9608_vm11, %v10786_v33, %v9605_v45  ;;  %v18288_v45 = vsub.f32 %v16646_v16, %v16671_v40 }
 0xa3c   : > { %v9610_v49 = vmul.f32 %v9609_v54, %v9551_v1  ;;  %v9611_v36 = vmul.f32 %v9609_v54, %v9552_v15  ;;  %v9612_v7 = vmul.f32 %v9609_v54, %v9553_v9  ;;  %v9613_v5 = vmul.f32 %v9609_v54, %v9554_v10 }
 0xa3d   : > { %v9614_v31 = vmul.f32 %v9609_v54, %v9555_v19  ;;  %v9615_v17 = vmul.f32 %v9609_v54, %v9556_v14  ;;  %v9616_v52 = vmul.f32 %v9609_v54, %v9557_v4  ;;  %v16771_v6 = vmul.f32 %v9609_v54, %v9558_v38 }
 0xa3e   : > { %v16773_v26 = vmul.f32 %v9609_v54, %v9559_v18  ;;  %v16775_v46 = vmul.f32 %v9609_v54, %v9560_v34  ;;  %v16777_v61 = vmul.f32 %v9609_v54, %v9561_v42  ;;  %v16779_v55 = vmul.f32 %v9609_v54, %v9562_v50 }
 0xa3f   : > { %v16781_v51 = vmul.f32 %v9609_v54, %v9563_v47  ;;  %v16783_v25 = vmul.f32 %v9609_v54, %v9564_v29  ;;  %v16785_v1 = vmul.f32 %v9609_v54, %v9565_v13  ;;  %v16787_v15 = vmul.f32 %v9609_v54, %v9566_v11 }
 0xa40   : > { %v16789_v9 = vmul.f32 %v9609_v54, %v9567_v27  ;;  %v16791_v33 = vmul.f32 %v9609_v54, %v9568_v43  ;;  %v16793_v10 = vmul.f32 %v9609_v54, %v9569_v23  ;;  %v16795_v19 = vmul.f32 %v9609_v54, %v9570_v22 }
 0xa41   : > { %v16797_v14 = vmul.f32 %v9609_v54, %v9571_v48  ;;  %v16799_v4 = vmul.f32 %v9609_v54, %v9572_v3  ;;  %v16801_v38 = vmul.f32 %v9609_v54, %v9573_v57  ;;  %v16803_v18 = vmul.f32 %v9609_v54, %v9574_v20 }
 0xa42   : > { %v16805_v34 = vmul.f32 %v9609_v54, %v9575_v41  ;;  %v16807_v42 = vmul.f32 %v9609_v54, %v9576_v44  ;;  %v16809_v50 = vmul.f32 %v9609_v54, %v9577_v21  ;;  %v16811_v47 = vmul.f32 %v9609_v54, %v9578_v62  ;;  %v9658_v44 = vld [vmem:[%s10914_s12 + $0x30] sm:$0xff]  ;;  %v9659_v21 = vld [vmem:[%s10914_s12 + $0x38] sm:$0xff]  ;;  %v9660_v62 = vld [vmem:[%s10914_s12 + $0x40] sm:$0xff] }
 0xa43   : > { %v16814_v29 = vmul.f32 %v9609_v54, %v9579_v63  ;;  %v16816_v13 = vmul.f32 %v9609_v54, %v9580_v59  ;;  %v16818_v11 = vmul.f32 %v9609_v54, %v9581_v0  ;;  %v16820_v27 = vmul.f32 %v9609_v54, %v9582_v30 }
 0xa44   : > { %v16822_v43 = vmul.f32 %v9609_v54, %v9583_v35  ;;  %v16824_v23 = vmul.f32 %v9609_v54, %v9584_v8  ;;  %v16826_v22 = vmul.f32 %v9609_v54, %v9585_v60  ;;  %v16828_v48 = vmul.f32 %v9609_v54, %v9586_v28  ;;  %v9661_v8 = vld [vmem:[%s10914_s12 + $0x48] sm:$0xff] }
 0xa45   : > { %v16830_v3 = vmul.f32 %v9609_v54, %v9587_v12  ;;  %v16832_v57 = vmul.f32 %v9609_v54, %v9588_v24  ;;  %v16834_v20 = vmul.f32 %v9609_v54, %v9589_v56  ;;  %v16836_v41 = vmul.f32 %v9609_v54, %v9590_v32  ;;  %v18289_v12 = vld [vmem:[#allocation108_spill] sm:$0xff]  ;;  %v18292_v32 = vld [vmem:[#allocation86_spill] sm:$0xff] }
 0xa46   : > { %v16841_v63 = vmul.f32 %v9609_v54, %v9591_v58  ;;  %v16843_v59 = vmul.f32 %v9609_v54, %v9592_v2  ;;  %v16845_v0 = vmul.f32 %v9609_v54, %v9593_v39  ;;  %v18286_v30 = vsub.f32 %v16619_v53, %v16671_v40  ;;  %v9663_v39 = vld [vmem:[%s10914_s12 + $0x58] sm:$0xff] }
 0xa47   : > { %v18287_v60 = vsub.f32 %v16635_v37, %v16671_v40  ;;  %v16866_v53 = vmul.f32 %v9609_v54, %v18288_v45  ;;  %v18290_v24 = vsub.f32 %v18289_v12, %v16671_v40  ;;  %v18293_v58 = vsub.f32 %v18292_v32, %v16671_v40  ;;  %v9662_v37 = vld [vmem:[%s10914_s12 + $0x50] sm:$0xff]  ;;  %v9664_v45 = vld [vmem:[%s10914_s12 + $0x60] sm:$0xff]  ;;  %v9675_v32 = vld [vmem:[%s10914_s12 + $0xb8] sm:$0xff] }
 0xa48   : > { %v16850_v35 = vmul.f32 %v9609_v54, %v18286_v30  ;;  %v9706_v30 = vadd.f32 %v9658_v44, %v9610_v49  ;;  %v9707_v16 = vadd.f32 %v9659_v21, %v9611_v36  ;;  %v9709_v12 = vadd.f32 %v9661_v8, %v9613_v5  ;;  %v9666_v40 = vld [vmem:[%s10914_s12 + $0x70] sm:$0xff]  ;;  %v9667_v49 = vld [vmem:[%s10914_s12 + $0x78] sm:$0xff]  ;;  %v9668_v5 = vld [vmem:[%s10914_s12 + $0x80] sm:$0xff] }
 0xa49   : > { %v16861_v28 = vmul.f32 %v9609_v54, %v18287_v60  ;;  %v16871_v56 = vmul.f32 %v9609_v54, %v18290_v24  ;;  %v16876_v2 = vmul.f32 %v9609_v54, %v18293_v58  ;;  %v9708_v60 = vadd.f32 %v9660_v62, %v9612_v7  ;;  %v9665_v24 = vld [vmem:[%s10914_s12 + $0x68] sm:$0xff]  ;;  %v9670_v44 = vld [vmem:[%s10914_s12 + $0x90] sm:$0xff]  ;;  %v9671_v21 = vld [vmem:[%s10914_s12 + $0x98] sm:$0xff] }
 0xa4a   : > { %9754 = vst.msk [vmem:[%s16856_s25] sm:$0xff] %vm543_vm1, %v9706_v30  ;;  %v9711_v54 = vadd.f32 %v9663_v39, %v9615_v17  ;;  %v9712_v36 = vadd.f32 %v9664_v45, %v9616_v52  ;;  %v9713_v7 = vadd.f32 %v9665_v24, %v16771_v6  ;;  %v9714_v17 = vadd.f32 %v9666_v40, %v16773_v26  ;;  %v9672_v62 = vld [vmem:[%s10914_s12 + $0xa0] sm:$0xff]  ;;  %v9673_v8 = vld [vmem:[%s10914_s12 + $0xa8] sm:$0xff]  ;;  %v9678_v39 = vld [vmem:[%s10914_s12 + $0xd0] sm:$0xff] }
 0xa4b   : > { %18291 = vst [vmem:[#allocation102_spill] sm:$0xff] %v16871_v56  ;;  %v9710_v56 = vadd.f32 %v9662_v37, %v9614_v31  ;;  %v9669_v31 = vld [vmem:[%s10914_s12 + $0x88] sm:$0xff]  ;;  %v9715_v52 = vadd.f32 %v9667_v49, %v16775_v46  ;;  %v9716_v6 = vadd.f32 %v9668_v5, %v16777_v61  ;;  %v9718_v46 = vadd.f32 %v9670_v44, %v16781_v51  ;;  %v9676_v58 = vld [vmem:[%s10914_s12 + $0xc0] sm:$0xff]  ;;  %v9679_v30 = vld [vmem:[%s10914_s12 + $0xd8] sm:$0xff] }
 0xa4c   : > { %9755 = vst.msk [vmem:[%s16856_s25 + $0x8] sm:$0xff] %vm543_vm1, %v9707_v16  ;;  %v9717_v26 = vadd.f32 %v9669_v31, %v16779_v55  ;;  %v9719_v61 = vadd.f32 %v9671_v21, %v16783_v25  ;;  %v9720_v55 = vadd.f32 %v9672_v62, %v16785_v1  ;;  %v9721_v51 = vadd.f32 %v9673_v8, %v16787_v15  ;;  %v9677_v37 = vld [vmem:[%s10914_s12 + $0xc8] sm:$0xff]  ;;  %v9680_v16 = vld [vmem:[%s10914_s12 + $0xe0] sm:$0xff]  ;;  %v9682_v45 = vld [vmem:[%s10914_s12 + $0xf0] sm:$0xff] }
 0xa4d   : > { %9756 = vst.msk [vmem:[%s16856_s25 + $0x10] sm:$0xff] %vm543_vm1, %v9708_v60  ;;  %v9723_v1 = vadd.f32 %v9675_v32, %v16791_v33  ;;  %v9724_v15 = vadd.f32 %v9676_v58, %v16793_v10  ;;  %v9681_v60 = vld [vmem:[%s10914_s12 + $0xe8] sm:$0xff]  ;;  %v9726_v33 = vadd.f32 %v9678_v39, %v16797_v14  ;;  %v9727_v10 = vadd.f32 %v9679_v30, %v16799_v4  ;;  %v9684_v24 = vld [vmem:[%s10914_s12 + $0x100] sm:$0xff]  ;;  %v9687_v49 = vld [vmem:[%s10914_s12 + $0x118] sm:$0xff] }
 0xa4e   : > { %9757 = vst.msk [vmem:[%s16856_s25 + $0x18] sm:$0xff] %vm543_vm1, %v9709_v12  ;;  %v9683_v12 = vld [vmem:[%s10914_s12 + $0xf8] sm:$0xff]  ;;  %v9729_v14 = vadd.f32 %v9681_v60, %v16803_v18  ;;  %v9685_v40 = vld [vmem:[%s10914_s12 + $0x108] sm:$0xff]  ;;  %v9730_v4 = vadd.f32 %v9682_v45, %v16805_v34  ;;  %v9732_v18 = vadd.f32 %v9684_v24, %v16809_v50  ;;  %v9735_v50 = vadd.f32 %v9687_v49, %v16816_v13 }
 0xa4f   : > { %9758 = vst.msk [vmem:[%s16856_s25 + $0x20] sm:$0xff] %vm543_vm1, %v9710_v56  ;;  %v9674_v56 = vld [vmem:[%s10914_s12 + $0xb0] sm:$0xff]  ;;  %v9733_v34 = vadd.f32 %v9685_v40, %v16811_v47  ;;  %v9689_v5 = vld [vmem:[%s10914_s12 + $0x128] sm:$0xff]  ;;  %v9691_v31 = vld [vmem:[%s10914_s12 + $0x138] sm:$0xff] }
 0xa50   : > { %9759 = vst.msk [vmem:[%s16856_s25 + $0x28] sm:$0xff] %vm543_vm1, %v9711_v54  ;;  %v9722_v25 = vadd.f32 %v9674_v56, %v16789_v9  ;;  %v9725_v9 = vadd.f32 %v9677_v37, %v16795_v19  ;;  %v9728_v19 = vadd.f32 %v9680_v16, %v16801_v38  ;;  %v9686_v54 = vld [vmem:[%s10914_s12 + $0x110] sm:$0xff]  ;;  %v9731_v38 = vadd.f32 %v9683_v12, %v16807_v42  ;;  %v9693_v44 = vld [vmem:[%s10914_s12 + $0x148] sm:$0xff]  ;;  %v9695_v21 = vld [vmem:[%s10914_s12 + $0x158] sm:$0xff] }
 0xa51   : > { %9760 = vst.msk [vmem:[%s16856_s25 + $0x30] sm:$0xff] %vm543_vm1, %v9712_v36  ;;  %v9688_v36 = vld [vmem:[%s10914_s12 + $0x120] sm:$0xff]  ;;  %v9734_v42 = vadd.f32 %v9686_v54, %v16814_v29  ;;  %v9737_v29 = vadd.f32 %v9689_v5, %v16820_v27  ;;  %v9697_v62 = vld [vmem:[%s10914_s12 + $0x168] sm:$0xff]  ;;  %v9699_v8 = vld [vmem:[%s10914_s12 + $0x178] sm:$0xff] }
 0xa52   : > { %9761 = vst.msk [vmem:[%s16856_s25 + $0x38] sm:$0xff] %vm543_vm1, %v9713_v7  ;;  %v9690_v7 = vld [vmem:[%s10914_s12 + $0x130] sm:$0xff]  ;;  %v9736_v47 = vadd.f32 %v9688_v36, %v16818_v11  ;;  %v9739_v11 = vadd.f32 %v9691_v31, %v16824_v23  ;;  %v9701_v56 = vld [vmem:[%s10914_s12 + $0x188] sm:$0xff]  ;;  %v9703_v32 = vld [vmem:[%s10914_s12 + $0x198] sm:$0xff] }
 0xa53   : > { %9762 = vst.msk [vmem:[%s16856_s25 + $0x40] sm:$0xff] %vm543_vm1, %v9714_v17  ;;  %v9692_v17 = vld [vmem:[%s10914_s12 + $0x140] sm:$0xff]  ;;  %v9738_v13 = vadd.f32 %v9690_v7, %v16822_v43  ;;  %v9741_v43 = vadd.f32 %v9693_v44, %v16828_v48  ;;  %v9705_v58 = vld [vmem:[%s10914_s12 + $0x1a8] sm:$0xff]  ;;  %v18294_v37 = vld [vmem:[#allocation102_spill] sm:$0xff] }
 0xa54   : > { %9763 = vst.msk [vmem:[%s16856_s25 + $0x48] sm:$0xff] %vm543_vm1, %v9715_v52  ;;  %v9694_v52 = vld [vmem:[%s10914_s12 + $0x150] sm:$0xff]  ;;  %v9740_v27 = vadd.f32 %v9692_v17, %v16826_v22  ;;  %v9743_v22 = vadd.f32 %v9695_v21, %v16832_v57 }
 0xa55   : > { %9764 = vst.msk [vmem:[%s16856_s25 + $0x50] sm:$0xff] %vm543_vm1, %v9716_v6  ;;  %v9696_v6 = vld [vmem:[%s10914_s12 + $0x160] sm:$0xff]  ;;  %v9742_v23 = vadd.f32 %v9694_v52, %v16830_v3  ;;  %v9745_v3 = vadd.f32 %v9697_v62, %v16836_v41 }
 0xa56   : > { %9765 = vst.msk [vmem:[%s16856_s25 + $0x58] sm:$0xff] %vm543_vm1, %v9717_v26  ;;  %v9698_v26 = vld [vmem:[%s10914_s12 + $0x170] sm:$0xff]  ;;  %v9744_v48 = vadd.f32 %v9696_v6, %v16834_v20  ;;  %v9747_v20 = vadd.f32 %v9699_v8, %v16843_v59 }
 0xa57   : > { %9766 = vst.msk [vmem:[%s16856_s25 + $0x60] sm:$0xff] %vm543_vm1, %v9718_v46  ;;  %v9700_v46 = vld [vmem:[%s10914_s12 + $0x180] sm:$0xff]  ;;  %v9746_v57 = vadd.f32 %v9698_v26, %v16841_v63  ;;  %v9749_v63 = vadd.f32 %v9701_v56, %v16850_v35 }
 0xa58   : > { %9767 = vst.msk [vmem:[%s16856_s25 + $0x68] sm:$0xff] %vm543_vm1, %v9719_v61  ;;  %v9702_v61 = vld [vmem:[%s10914_s12 + $0x190] sm:$0xff]  ;;  %v9748_v41 = vadd.f32 %v9700_v46, %v16845_v0 }
 0xa59   : > { %9768 = vst.msk [vmem:[%s16856_s25 + $0x70] sm:$0xff] %vm543_vm1, %v9720_v55  ;;  %v9704_v55 = vld [vmem:[%s10914_s12 + $0x1a0] sm:$0xff]  ;;  %v9750_v59 = vadd.f32 %v9702_v61, %v16861_v28 }
 0xa5a   : > { %9769 = vst.msk [vmem:[%s16856_s25 + $0x78] sm:$0xff] %vm543_vm1, %v9721_v51  ;;  %v9751_v51 = vadd.f32 %v9703_v32, %v16866_v53  ;;  %v9752_v0 = vadd.f32 %v9704_v55, %v18294_v37 }
 0xa5b   : > { %9770 = vst.msk [vmem:[%s16856_s25 + $0x80] sm:$0xff] %vm543_vm1, %v9722_v25  ;;  %v9753_v25 = vadd.f32 %v9705_v58, %v16876_v2 }
 0xa5c   : > { %9771 = vst.msk [vmem:[%s16856_s25 + $0x88] sm:$0xff] %vm543_vm1, %v9723_v1 }
 0xa5d   : > { %9772 = vst.msk [vmem:[%s16856_s25 + $0x90] sm:$0xff] %vm543_vm1, %v9724_v15 }
 0xa5e   : > { %9773 = vst.msk [vmem:[%s16856_s25 + $0x98] sm:$0xff] %vm543_vm1, %v9725_v9 }
 0xa5f   : > { %9774 = vst.msk [vmem:[%s16856_s25 + $0xa0] sm:$0xff] %vm543_vm1, %v9726_v33 }
 0xa60   : > { %9775 = vst.msk [vmem:[%s16856_s25 + $0xa8] sm:$0xff] %vm543_vm1, %v9727_v10 }
 0xa61   : > { %9776 = vst.msk [vmem:[%s16856_s25 + $0xb0] sm:$0xff] %vm543_vm1, %v9728_v19 }
 0xa62   : > { %9777 = vst.msk [vmem:[%s16856_s25 + $0xb8] sm:$0xff] %vm543_vm1, %v9729_v14 }
 0xa63   : > { %9778 = vst.msk [vmem:[%s16856_s25 + $0xc0] sm:$0xff] %vm543_vm1, %v9730_v4 }
 0xa64   : > { %9779 = vst.msk [vmem:[%s16856_s25 + $0xc8] sm:$0xff] %vm543_vm1, %v9731_v38 }
 0xa65   : > { %9780 = vst.msk [vmem:[%s16856_s25 + $0xd0] sm:$0xff] %vm543_vm1, %v9732_v18 }
 0xa66   : > { %9781 = vst.msk [vmem:[%s16856_s25 + $0xd8] sm:$0xff] %vm543_vm1, %v9733_v34 }
 0xa67   : > { %9782 = vst.msk [vmem:[%s16856_s25 + $0xe0] sm:$0xff] %vm543_vm1, %v9734_v42 }
 0xa68   : > { %9783 = vst.msk [vmem:[%s16856_s25 + $0xe8] sm:$0xff] %vm543_vm1, %v9735_v50 }
 0xa69   : > { %9784 = vst.msk [vmem:[%s16856_s25 + $0xf0] sm:$0xff] %vm543_vm1, %v9736_v47 }
 0xa6a   : > { %9785 = vst.msk [vmem:[%s16856_s25 + $0xf8] sm:$0xff] %vm543_vm1, %v9737_v29 }
 0xa6b   : > { %9786 = vst.msk [vmem:[%s16856_s25 + $0x100] sm:$0xff] %vm543_vm1, %v9738_v13 }
 0xa6c   : > { %9787 = vst.msk [vmem:[%s16856_s25 + $0x108] sm:$0xff] %vm543_vm1, %v9739_v11 }
 0xa6d   : > { %9788 = vst.msk [vmem:[%s16856_s25 + $0x110] sm:$0xff] %vm543_vm1, %v9740_v27 }
 0xa6e   : > { %9789 = vst.msk [vmem:[%s16856_s25 + $0x118] sm:$0xff] %vm543_vm1, %v9741_v43 }
 0xa6f   : > { %9790 = vst.msk [vmem:[%s16856_s25 + $0x120] sm:$0xff] %vm543_vm1, %v9742_v23 }
 0xa70   : > { %9791 = vst.msk [vmem:[%s16856_s25 + $0x128] sm:$0xff] %vm543_vm1, %v9743_v22 }
 0xa71   : > { %9792 = vst.msk [vmem:[%s16856_s25 + $0x130] sm:$0xff] %vm543_vm1, %v9744_v48 }
 0xa72   : > { %9793 = vst.msk [vmem:[%s16856_s25 + $0x138] sm:$0xff] %vm543_vm1, %v9745_v3 }
 0xa73   : > { %9794 = vst.msk [vmem:[%s16856_s25 + $0x140] sm:$0xff] %vm543_vm1, %v9746_v57 }
 0xa74   : > { %9795 = vst.msk [vmem:[%s16856_s25 + $0x148] sm:$0xff] %vm543_vm1, %v9747_v20 }
 0xa75   : > { %9796 = vst.msk [vmem:[%s16856_s25 + $0x150] sm:$0xff] %vm543_vm1, %v9748_v41 }
 0xa76   : > { %9797 = vst.msk [vmem:[%s16856_s25 + $0x158] sm:$0xff] %vm543_vm1, %v9749_v63 }
 0xa77   : > { %9798 = vst.msk [vmem:[%s16856_s25 + $0x160] sm:$0xff] %vm543_vm1, %v9750_v59 }
 0xa78   : > { %9799 = vst.msk [vmem:[%s16856_s25 + $0x168] sm:$0xff] %vm543_vm1, %v9751_v51 }
 0xa79   : > { %9800 = vst.msk [vmem:[%s16856_s25 + $0x170] sm:$0xff] %vm543_vm1, %v9752_v0 }
 0xa7a   : > { %9801 = vst.msk [vmem:[%s16856_s25 + $0x178] sm:$0xff] %vm543_vm1, %v9753_v25 }
 0xa7b PF: > { %s16_s21 = sadd.s32 1, %s10839_s21  }
 0xa7c   : > { %p13_p4 = scmp.ge.s32.totalorder %s16_s21, 4  }
 0xa7e   :  { %15 = sbr.rel (!%p13_p4) target bundleno = 1 (0x1), region = 90 }

</bundles_post_ra>
